<compile_context>
chip_gen: v7x
topology: tpu7x:2x2x1
jax: 0.10.0
libtpu: 0.0.40
codegen_flags: <defaults>
</compile_context>

<pallas_src>
import jax
import jax.numpy as jnp
from jax.experimental import pallas as pl
from jax.experimental.pallas import tpu as pltpu

WDTYPE = jnp.bfloat16        # matmul weight / activation-input storage

# ----------------------------- model hyper-params ---------------------------
B = 2              # batch
IMG = 16           # image height/width
IMG_C = 3          # image channels
PATCH = 4          # patch size -> 4x4 = 16 patches
NUM_PATCHES = (IMG // PATCH) ** 2
PATCH_DIM = IMG_C * PATCH * PATCH

V_DIM = 64         # vision hidden
V_HEADS = 2
V_HEAD_DIM = V_DIM // V_HEADS
V_MLP = 128
V_LAYERS = 2

T_DIM = 128        # text hidden
T_HEADS = 4
T_HEAD_DIM = T_DIM // T_HEADS
T_MLP = 256
T_LAYERS = 2
VOCAB = 512
TEXT_LEN = 8
SEQ = NUM_PATCHES + TEXT_LEN   # image tokens prepended to text tokens


# --------------------------- in-kernel building blocks ----------------------

def _mm(x, w):
    """MXU matmul: bf16 operands, f32 accumulation."""
    return jnp.dot(x.astype(jnp.bfloat16), w, preferred_element_type=jnp.float32)


def _layernorm(x, g, b, eps=1e-5):
    mu = jnp.mean(x, axis=-1, keepdims=True)
    var = jnp.mean((x - mu) * (x - mu), axis=-1, keepdims=True)
    return (x - mu) * jax.lax.rsqrt(var + eps) * g + b


def _rmsnorm(x, g, eps=1e-6):
    var = jnp.mean(x * x, axis=-1, keepdims=True)
    return x * jax.lax.rsqrt(var + eps) * g


def _softmax(s):
    s = s - jnp.max(s, axis=-1, keepdims=True)
    p = jnp.exp(s)
    return p * pl.reciprocal(jnp.sum(p, axis=-1, keepdims=True), approx=True)


def _rot_half(xh, hd):
    # [x1, x2] -> [x2, x1]; combined with the sign-folded sin table this
    # reproduces rotate_half(x) * sin.
    return jnp.concatenate([xh[:, hd // 2:], xh[:, :hd // 2]], axis=1)


def _attention(q, k, v, n_heads, head_dim, cos=None, sin_signed=None,
               allow=None):
    """q,k,v: (S, H*Dh) f32 -> (S, H*Dh) f32.

    The attention scale is folded into the Q projection weights at init time.
    Heads are looped statically; causal mask (`allow`) is built once per
    kernel by the caller and applied with jnp.where.
    """
    # TODO(synk): per-review, at real LLaVA dims restructure heads onto a
    # leading batch axis (reordered QKV columns + batched einsum) to avoid
    # 32-lane slice relayouts; kept as a static loop at these toy sizes.
    neg = jnp.float32(-1e9)
    outs = []
    for h in range(n_heads):
        lo, hi = h * head_dim, (h + 1) * head_dim
        qh, kh, vh = q[:, lo:hi], k[:, lo:hi], v[:, lo:hi]
        if cos is not None:
            qh = qh * cos + _rot_half(qh, head_dim) * sin_signed
            kh = kh * cos + _rot_half(kh, head_dim) * sin_signed
        s = jnp.dot(qh, kh.T, preferred_element_type=jnp.float32)
        if allow is not None:
            s = jnp.where(allow, s, neg)
        p = _softmax(s)
        outs.append(jnp.dot(p, vh, preferred_element_type=jnp.float32))
    # concat along lanes -> lane-dense (S, H*Dh) slab.
    return jnp.concatenate(outs, axis=-1)


# --------------------------- the single fused kernel -------------------------

def _fused_llava_kernel(
        patch_ref, tok_ref, cos_ref, sin_ref,
        v_patch_w_ref, v_patch_b_ref, v_pos_ref,
        v_ln1_ref, v_wqkv_ref, v_bqkv_ref, v_wo_ref, v_bo_ref,
        v_ln2_ref, v_wfc1_ref, v_bfc1_ref, v_wfc2_ref, v_bfc2_ref,
        v_post_ln_ref,
        proj_w1_ref, proj_b1_ref, proj_w2_ref, proj_b2_ref,
        t_in_norm_ref, t_wqkv_ref, t_wo_ref, t_post_norm_ref,
        t_wgu_ref, t_wdown_ref,
        final_norm_ref, lm_head_ref,
        logits_ref):
    # ------------------------------ vision tower -----------------------------
    # TODO(synk): real CLIP prepends a class token; omitted in this synthetic model.
    x = _mm(patch_ref[0], v_patch_w_ref[...]) + v_patch_b_ref[...]
    x = x + v_pos_ref[...]                                      # (P, V_DIM) f32
    for l in range(V_LAYERS):
        ln1 = v_ln1_ref[l]
        h = _layernorm(x, ln1[0:1, :], ln1[1:2, :])
        qkv = _mm(h, v_wqkv_ref[l]) + v_bqkv_ref[l]             # (P, 3*V_DIM)
        attn = _attention(qkv[:, :V_DIM], qkv[:, V_DIM:2 * V_DIM],
                          qkv[:, 2 * V_DIM:], V_HEADS, V_HEAD_DIM)
        x = x + _mm(attn, v_wo_ref[l]) + v_bo_ref[l]
        ln2 = v_ln2_ref[l]
        h = _layernorm(x, ln2[0:1, :], ln2[1:2, :])
        h = jax.nn.gelu(_mm(h, v_wfc1_ref[l]) + v_bfc1_ref[l])
        x = x + _mm(h, v_wfc2_ref[l]) + v_bfc2_ref[l]

    # -------------------------- multimodal projector --------------------------
    h = _layernorm(x, v_post_ln_ref[0:1, :], v_post_ln_ref[1:2, :])
    h = jax.nn.gelu(_mm(h, proj_w1_ref[...]) + proj_b1_ref[...])
    img = _mm(h, proj_w2_ref[...]) + proj_b2_ref[...]           # (P, T_DIM)

    # ------------------------ language model (decoder) ------------------------
    # TODO(synk): LLaVA-Next scatters image features at the <image> token and
    # does multi-resolution unpadding; simplified to prepend-concat here.
    x = jnp.concatenate([img, tok_ref[0].astype(jnp.float32)], axis=0)  # (SEQ, D)
    cos = cos_ref[...]
    sin_signed = sin_ref[...]
    row = jax.lax.broadcasted_iota(jnp.int32, (SEQ, SEQ), 0)
    col = jax.lax.broadcasted_iota(jnp.int32, (SEQ, SEQ), 1)
    allow = row >= col                                          # causal, built once
    # TODO(synk): real Mistral uses GQA + sliding-window attention; plain MHA here.
    for l in range(T_LAYERS):
        h = _rmsnorm(x, t_in_norm_ref[l])
        qkv = _mm(h, t_wqkv_ref[l])                             # (SEQ, 3*T_DIM)
        attn = _attention(qkv[:, :T_DIM], qkv[:, T_DIM:2 * T_DIM],
                          qkv[:, 2 * T_DIM:], T_HEADS, T_HEAD_DIM,
                          cos=cos, sin_signed=sin_signed, allow=allow)
        x = x + _mm(attn, t_wo_ref[l])
        h = _rmsnorm(x, t_post_norm_ref[l])
        gu = _mm(h, t_wgu_ref[l])                               # (SEQ, 2*T_MLP)
        g, u = gu[:, :T_MLP], gu[:, T_MLP:]
        x = x + _mm(g * jax.nn.sigmoid(g) * u, t_wdown_ref[l])  # SwiGLU

    # --------------------------------- LM head --------------------------------
    h = _rmsnorm(x, final_norm_ref[...])
    logits_ref[0] = _mm(h, lm_head_ref[...]).astype(logits_ref.dtype)


# ------------------------------ pallas_call glue -----------------------------

def _shared(arr):
    n = arr.ndim
    return pl.BlockSpec(arr.shape, lambda b, _n=n: (0,) * _n)


def _per_batch(shape):
    n = len(shape)
    return pl.BlockSpec((1,) + tuple(shape[1:]),
                        lambda b, _n=n: (b,) + (0,) * (_n - 1))


# --------------------------------- model glue --------------------------------

def patchify(images, patch):
    # images: (B, C, H, W) NCHW, like torch Conv2d input
    b, c, h, w = images.shape
    x = images.reshape(b, c, h // patch, patch, w // patch, patch)
    x = x.transpose(0, 2, 4, 1, 3, 5)              # (B, Hp, Wp, C, p, p)
    return x.reshape(b, (h // patch) * (w // patch), c * patch * patch)


def rope_tables(seq, dim):
    inv_freq = 1.0 / (10000.0 ** (jnp.arange(0, dim, 2, dtype=jnp.float32) / dim))
    t = jnp.arange(seq, dtype=jnp.float32)
    freqs = jnp.outer(t, inv_freq)                  # (S, dim/2)
    emb = jnp.concatenate([freqs, freqs], axis=-1)  # (S, dim)
    # sign-folded sin: rotate_half(x)*sin == [x2, x1]*sin_signed
    sign = jnp.concatenate([-jnp.ones((dim // 2,), jnp.float32),
                            jnp.ones((dim // 2,), jnp.float32)])
    return jnp.cos(emb), jnp.sin(emb) * sign[None, :]


def init_params(key):
    keys = iter(jax.random.split(key, 64))

    def nrm(shape, scale=0.02):
        return scale * jax.random.normal(next(keys), shape, dtype=jnp.float32)

    def w(shape, scale=0.02):
        return nrm(shape, scale).astype(WDTYPE)

    def ln_pack(dim):
        return jnp.stack([jnp.ones((dim,), jnp.float32),
                          jnp.zeros((dim,), jnp.float32)])

    p = {}
    # vision tower (CLIP-ViT-like, pre-LN)
    p["v_patch_w"] = w((PATCH_DIM, V_DIM))
    p["v_patch_b"] = jnp.zeros((1, V_DIM), jnp.float32)
    p["v_pos"] = nrm((NUM_PATCHES, V_DIM))

    v_scale = 1.0 / (V_HEAD_DIM ** 0.5)
    acc = {k: [] for k in ("ln1", "wqkv", "bqkv", "wo", "bo",
                           "ln2", "wfc1", "bfc1", "wfc2", "bfc2")}
    for _ in range(V_LAYERS):
        wq = nrm((V_DIM, V_DIM)) * v_scale          # attention scale folded into Q
        wk, wv = nrm((V_DIM, V_DIM)), nrm((V_DIM, V_DIM))
        acc["ln1"].append(ln_pack(V_DIM))
        acc["wqkv"].append(jnp.concatenate([wq, wk, wv], axis=1).astype(WDTYPE))
        acc["bqkv"].append(jnp.zeros((1, 3 * V_DIM), jnp.float32))
        acc["wo"].append(w((V_DIM, V_DIM)))
        acc["bo"].append(jnp.zeros((1, V_DIM), jnp.float32))
        acc["ln2"].append(ln_pack(V_DIM))
        acc["wfc1"].append(w((V_DIM, V_MLP)))
        acc["bfc1"].append(jnp.zeros((1, V_MLP), jnp.float32))
        acc["wfc2"].append(w((V_MLP, V_DIM)))
        acc["bfc2"].append(jnp.zeros((1, V_DIM), jnp.float32))
    for k, v in acc.items():
        p["v_" + k] = jnp.stack(v)                  # (L, ...)
    p["v_post_ln"] = ln_pack(V_DIM)

    # multimodal projector (linear -> gelu -> linear)
    p["proj_w1"] = w((V_DIM, T_DIM))
    p["proj_b1"] = jnp.zeros((1, T_DIM), jnp.float32)
    p["proj_w2"] = w((T_DIM, T_DIM))
    p["proj_b2"] = jnp.zeros((1, T_DIM), jnp.float32)

    # language model (Mistral-like, bias-free)
    p["embed"] = nrm((VOCAB, T_DIM))
    t_scale = 1.0 / (T_HEAD_DIM ** 0.5)
    acc = {k: [] for k in ("in_norm", "wqkv", "wo", "post_norm", "wgu", "wdown")}
    for _ in range(T_LAYERS):
        wq = nrm((T_DIM, T_DIM)) * t_scale          # attention scale folded into Q
        wk, wv = nrm((T_DIM, T_DIM)), nrm((T_DIM, T_DIM))
        acc["in_norm"].append(jnp.ones((1, T_DIM), jnp.float32))
        acc["wqkv"].append(jnp.concatenate([wq, wk, wv], axis=1).astype(WDTYPE))
        acc["wo"].append(w((T_DIM, T_DIM)))
        acc["post_norm"].append(jnp.ones((1, T_DIM), jnp.float32))
        acc["wgu"].append(jnp.concatenate([w((T_DIM, T_MLP)),
                                           w((T_DIM, T_MLP))], axis=1))
        acc["wdown"].append(w((T_MLP, T_DIM)))
    for k, v in acc.items():
        p["t_" + k] = jnp.stack(v)                  # (L, ...)
    p["final_norm"] = jnp.ones((1, T_DIM), jnp.float32)
    p["lm_head"] = w((T_DIM, VOCAB))
    return p


def llava_forward(params, pixel_values, input_ids):
    """Equivalent of llava.forward: run the multimodal model, return logits."""
    patches = patchify(pixel_values, PATCH).astype(WDTYPE)        # (B, P, 48) bf16
    tok_embeds = jnp.take(params["embed"], input_ids,
                          axis=0).astype(WDTYPE)                  # (B, T, D) bf16
    cos, sin_signed = rope_tables(SEQ, T_HEAD_DIM)                # (SEQ, Dh) f32

    args = [
        patches, tok_embeds, cos, sin_signed,
        params["v_patch_w"], params["v_patch_b"], params["v_pos"],
        params["v_ln1"], params["v_wqkv"], params["v_bqkv"],
        params["v_wo"], params["v_bo"], params["v_ln2"],
        params["v_wfc1"], params["v_bfc1"], params["v_wfc2"], params["v_bfc2"],
        params["v_post_ln"],
        params["proj_w1"], params["proj_b1"], params["proj_w2"], params["proj_b2"],
        params["t_in_norm"], params["t_wqkv"], params["t_wo"],
        params["t_post_norm"], params["t_wgu"], params["t_wdown"],
        params["final_norm"], params["lm_head"],
    ]
    in_specs = ([_per_batch(patches.shape), _per_batch(tok_embeds.shape)]
                + [_shared(a) for a in args[2:]])

    # TODO(synk): at real LLaVA dims (hidden=4096) add a K-grid axis with
    # BlockSpec weight tiling + pl.Buffered(1) weight specs for the 64 MiB
    # VMEM ceiling on v7x; at these toy sizes everything fits resident.
    return pl.pallas_call(
        _fused_llava_kernel,
        out_shape=jax.ShapeDtypeStruct((B, SEQ, VOCAB), jnp.float32),
        grid=(B,),
        in_specs=in_specs,
        out_specs=_per_batch((B, SEQ, VOCAB)),
        compiler_params=pltpu.CompilerParams(
            dimension_semantics=("parallel",)),   # both TCs on v7x; 2-step loop elsewhere
    )(*args)


if __name__ == "__main__":
    key = jax.random.PRNGKey(0)
    pkey, ikey, tkey = jax.random.split(key, 3)
    params = init_params(pkey)
    pixel_values = jax.random.normal(ikey, (B, IMG_C, IMG, IMG), dtype=jnp.float32)
    input_ids = jax.random.randint(tkey, (B, TEXT_LEN), 0, VOCAB)

    logits = jax.jit(llava_forward)(params, pixel_values, input_ids)
    logits = jax.block_until_ready(logits)

    assert logits.shape == (B, SEQ, VOCAB), logits.shape
    assert bool(jnp.all(jnp.isfinite(logits)))
    print("KERNEL_OK")
</pallas_src>

<mosaic_0001>
module attributes {stable_mosaic.version = 11 : i64} {
  func.func @_fused_llava_kernel(%arg0: i32, %arg1: memref<1x16x48xbf16, #tpu.memory_space<vmem>>, %arg2: memref<1x8x128xbf16, #tpu.memory_space<vmem>>, %arg3: memref<24x32xf32, #tpu.memory_space<vmem>>, %arg4: memref<24x32xf32, #tpu.memory_space<vmem>>, %arg5: memref<48x64xbf16, #tpu.memory_space<vmem>>, %arg6: memref<1x64xf32, #tpu.memory_space<vmem>>, %arg7: memref<16x64xf32, #tpu.memory_space<vmem>>, %arg8: memref<2x2x64xf32, #tpu.memory_space<vmem>>, %arg9: memref<2x64x192xbf16, #tpu.memory_space<vmem>>, %arg10: memref<2x1x192xf32, #tpu.memory_space<vmem>>, %arg11: memref<2x64x64xbf16, #tpu.memory_space<vmem>>, %arg12: memref<2x1x64xf32, #tpu.memory_space<vmem>>, %arg13: memref<2x2x64xf32, #tpu.memory_space<vmem>>, %arg14: memref<2x64x128xbf16, #tpu.memory_space<vmem>>, %arg15: memref<2x1x128xf32, #tpu.memory_space<vmem>>, %arg16: memref<2x128x64xbf16, #tpu.memory_space<vmem>>, %arg17: memref<2x1x64xf32, #tpu.memory_space<vmem>>, %arg18: memref<2x64xf32, #tpu.memory_space<vmem>>, %arg19: memref<64x128xbf16, #tpu.memory_space<vmem>>, %arg20: memref<1x128xf32, #tpu.memory_space<vmem>>, %arg21: memref<128x128xbf16, #tpu.memory_space<vmem>>, %arg22: memref<1x128xf32, #tpu.memory_space<vmem>>, %arg23: memref<2x1x128xf32, #tpu.memory_space<vmem>>, %arg24: memref<2x128x384xbf16, #tpu.memory_space<vmem>>, %arg25: memref<2x128x128xbf16, #tpu.memory_space<vmem>>, %arg26: memref<2x1x128xf32, #tpu.memory_space<vmem>>, %arg27: memref<2x128x512xbf16, #tpu.memory_space<vmem>>, %arg28: memref<2x256x128xbf16, #tpu.memory_space<vmem>>, %arg29: memref<1x128xf32, #tpu.memory_space<vmem>>, %arg30: memref<128x512xbf16, #tpu.memory_space<vmem>>, %arg31: memref<1x24x512xf32, #tpu.memory_space<vmem>>) attributes {dimension_semantics = [#tpu.dimension_semantics<parallel>], iteration_bounds = array<i64: 2>, scalar_prefetch = 0 : i64, scratch_operands = 0 : i64, tpu.core_type = #tpu.core_type<tc>, window_params = [{transform_indices = @transform_0, window_bounds = array<i64: 1, 16, 48>}, {transform_indices = @transform_1, window_bounds = array<i64: 1, 8, 128>}, {pipeline_mode = #tpu.pipeline_mode<synchronous>, transform_indices = @transform_2, window_bounds = array<i64: 24, 32>}, {pipeline_mode = #tpu.pipeline_mode<synchronous>, transform_indices = @transform_3, window_bounds = array<i64: 24, 32>}, {pipeline_mode = #tpu.pipeline_mode<synchronous>, transform_indices = @transform_4, window_bounds = array<i64: 48, 64>}, {pipeline_mode = #tpu.pipeline_mode<synchronous>, transform_indices = @transform_5, window_bounds = array<i64: 1, 64>}, {pipeline_mode = #tpu.pipeline_mode<synchronous>, transform_indices = @transform_6, window_bounds = array<i64: 16, 64>}, {pipeline_mode = #tpu.pipeline_mode<synchronous>, transform_indices = @transform_7, window_bounds = array<i64: 2, 2, 64>}, {pipeline_mode = #tpu.pipeline_mode<synchronous>, transform_indices = @transform_8, window_bounds = array<i64: 2, 64, 192>}, {pipeline_mode = #tpu.pipeline_mode<synchronous>, transform_indices = @transform_9, window_bounds = array<i64: 2, 1, 192>}, {pipeline_mode = #tpu.pipeline_mode<synchronous>, transform_indices = @transform_10, window_bounds = array<i64: 2, 64, 64>}, {pipeline_mode = #tpu.pipeline_mode<synchronous>, transform_indices = @transform_11, window_bounds = array<i64: 2, 1, 64>}, {pipeline_mode = #tpu.pipeline_mode<synchronous>, transform_indices = @transform_12, window_bounds = array<i64: 2, 2, 64>}, {pipeline_mode = #tpu.pipeline_mode<synchronous>, transform_indices = @transform_13, window_bounds = array<i64: 2, 64, 128>}, {pipeline_mode = #tpu.pipeline_mode<synchronous>, transform_indices = @transform_14, window_bounds = array<i64: 2, 1, 128>}, {pipeline_mode = #tpu.pipeline_mode<synchronous>, transform_indices = @transform_15, window_bounds = array<i64: 2, 128, 64>}, {pipeline_mode = #tpu.pipeline_mode<synchronous>, transform_indices = @transform_16, window_bounds = array<i64: 2, 1, 64>}, {pipeline_mode = #tpu.pipeline_mode<synchronous>, transform_indices = @transform_17, window_bounds = array<i64: 2, 64>}, {pipeline_mode = #tpu.pipeline_mode<synchronous>, transform_indices = @transform_18, window_bounds = array<i64: 64, 128>}, {pipeline_mode = #tpu.pipeline_mode<synchronous>, transform_indices = @transform_19, window_bounds = array<i64: 1, 128>}, {pipeline_mode = #tpu.pipeline_mode<synchronous>, transform_indices = @transform_20, window_bounds = array<i64: 128, 128>}, {pipeline_mode = #tpu.pipeline_mode<synchronous>, transform_indices = @transform_21, window_bounds = array<i64: 1, 128>}, {pipeline_mode = #tpu.pipeline_mode<synchronous>, transform_indices = @transform_22, window_bounds = array<i64: 2, 1, 128>}, {pipeline_mode = #tpu.pipeline_mode<synchronous>, transform_indices = @transform_23, window_bounds = array<i64: 2, 128, 384>}, {pipeline_mode = #tpu.pipeline_mode<synchronous>, transform_indices = @transform_24, window_bounds = array<i64: 2, 128, 128>}, {pipeline_mode = #tpu.pipeline_mode<synchronous>, transform_indices = @transform_25, window_bounds = array<i64: 2, 1, 128>}, {pipeline_mode = #tpu.pipeline_mode<synchronous>, transform_indices = @transform_26, window_bounds = array<i64: 2, 128, 512>}, {pipeline_mode = #tpu.pipeline_mode<synchronous>, transform_indices = @transform_27, window_bounds = array<i64: 2, 256, 128>}, {pipeline_mode = #tpu.pipeline_mode<synchronous>, transform_indices = @transform_28, window_bounds = array<i64: 1, 128>}, {pipeline_mode = #tpu.pipeline_mode<synchronous>, transform_indices = @transform_29, window_bounds = array<i64: 128, 512>}, {transform_indices = @transform_30, window_bounds = array<i64: 1, 24, 512>}]} {
    %c0 = arith.constant 0 : index
    %c0_0 = arith.constant 0 : index
    %c0_1 = arith.constant 0 : index
    %0 = vector.load %arg1[%c0, %c0_0, %c0_1] : memref<1x16x48xbf16, #tpu.memory_space<vmem>>, vector<1x16x48xbf16>
    %1 = vector.shape_cast %0 : vector<1x16x48xbf16> to vector<16x48xbf16>
    %c0_2 = arith.constant 0 : index
    %c0_3 = arith.constant 0 : index
    %2 = vector.load %arg5[%c0_2, %c0_3] : memref<48x64xbf16, #tpu.memory_space<vmem>>, vector<48x64xbf16>
    %cst = arith.constant dense<0.000000e+00> : vector<16x64xf32>
    %3 = tpu.matmul %1, %2, %cst {dimension_numbers = #tpu.dot_dimension_numbers<[1], [0], [0], [1], [0, 0, 1, 1], [], []>} : vector<16x48xbf16>, vector<48x64xbf16>, vector<16x64xf32> -> vector<16x64xf32>
    %c0_4 = arith.constant 0 : index
    %c0_5 = arith.constant 0 : index
    %4 = vector.load %arg6[%c0_4, %c0_5] : memref<1x64xf32, #tpu.memory_space<vmem>>, vector<1x64xf32>
    %5 = vector.broadcast %4 : vector<1x64xf32> to vector<16x64xf32>
    %6 = arith.addf %3, %5 : vector<16x64xf32>
    %c0_6 = arith.constant 0 : index
    %c0_7 = arith.constant 0 : index
    %7 = vector.load %arg7[%c0_6, %c0_7] : memref<16x64xf32, #tpu.memory_space<vmem>>, vector<16x64xf32>
    %8 = arith.addf %6, %7 : vector<16x64xf32>
    %c0_8 = arith.constant 0 : index
    %c0_9 = arith.constant 0 : index
    %c0_10 = arith.constant 0 : index
    %9 = vector.load %arg8[%c0_8, %c0_9, %c0_10] : memref<2x2x64xf32, #tpu.memory_space<vmem>>, vector<1x2x64xf32>
    %10 = vector.shape_cast %9 : vector<1x2x64xf32> to vector<2x64xf32>
    %11 = vector.extract_strided_slice %10 {offsets = [0, 0], sizes = [1, 64], strides = [1, 1]} : vector<2x64xf32> to vector<1x64xf32>
    %12 = vector.extract_strided_slice %10 {offsets = [1, 0], sizes = [1, 64], strides = [1, 1]} : vector<2x64xf32> to vector<1x64xf32>
    %cst_11 = arith.constant dense<0.000000e+00> : vector<16xf32>
    %13 = vector.multi_reduction <add>, %8, %cst_11 [1] : vector<16x64xf32> to vector<16xf32>
    %14 = vector.shape_cast %13 : vector<16xf32> to vector<16x1xf32>
    %cst_12 = arith.constant 6.400000e+01 : f32
    %15 = vector.broadcast %cst_12 : f32 to vector<16x1xf32>
    %16 = arith.divf %14, %15 : vector<16x1xf32>
    %17 = vector.broadcast %16 : vector<16x1xf32> to vector<16x64xf32>
    %18 = arith.subf %8, %17 : vector<16x64xf32>
    %19 = vector.broadcast %16 : vector<16x1xf32> to vector<16x64xf32>
    %20 = arith.subf %8, %19 : vector<16x64xf32>
    %21 = arith.mulf %18, %20 : vector<16x64xf32>
    %cst_13 = arith.constant dense<0.000000e+00> : vector<16xf32>
    %22 = vector.multi_reduction <add>, %21, %cst_13 [1] : vector<16x64xf32> to vector<16xf32>
    %23 = vector.shape_cast %22 : vector<16xf32> to vector<16x1xf32>
    %cst_14 = arith.constant 6.400000e+01 : f32
    %24 = vector.broadcast %cst_14 : f32 to vector<16x1xf32>
    %25 = arith.divf %23, %24 : vector<16x1xf32>
    %26 = vector.broadcast %16 : vector<16x1xf32> to vector<16x64xf32>
    %27 = arith.subf %8, %26 : vector<16x64xf32>
    %cst_15 = arith.constant 9.99999974E-6 : f32
    %28 = vector.broadcast %cst_15 : f32 to vector<16x1xf32>
    %29 = arith.addf %25, %28 : vector<16x1xf32>
    %30 = math.rsqrt %29 : vector<16x1xf32>
    %31 = vector.broadcast %30 : vector<16x1xf32> to vector<16x64xf32>
    %32 = arith.mulf %27, %31 : vector<16x64xf32>
    %33 = vector.broadcast %11 : vector<1x64xf32> to vector<16x64xf32>
    %34 = arith.mulf %32, %33 : vector<16x64xf32>
    %35 = vector.broadcast %12 : vector<1x64xf32> to vector<16x64xf32>
    %36 = arith.addf %34, %35 : vector<16x64xf32>
    %c0_16 = arith.constant 0 : index
    %c0_17 = arith.constant 0 : index
    %c0_18 = arith.constant 0 : index
    %37 = vector.load %arg9[%c0_16, %c0_17, %c0_18] : memref<2x64x192xbf16, #tpu.memory_space<vmem>>, vector<1x64x192xbf16>
    %38 = vector.shape_cast %37 : vector<1x64x192xbf16> to vector<64x192xbf16>
    %39 = arith.truncf %36 : vector<16x64xf32> to vector<16x64xbf16>
    %cst_19 = arith.constant dense<0.000000e+00> : vector<16x192xf32>
    %40 = tpu.matmul %39, %38, %cst_19 {dimension_numbers = #tpu.dot_dimension_numbers<[1], [0], [0], [1], [0, 0, 1, 1], [], []>} : vector<16x64xbf16>, vector<64x192xbf16>, vector<16x192xf32> -> vector<16x192xf32>
    %c0_20 = arith.constant 0 : index
    %c0_21 = arith.constant 0 : index
    %c0_22 = arith.constant 0 : index
    %41 = vector.load %arg10[%c0_20, %c0_21, %c0_22] : memref<2x1x192xf32, #tpu.memory_space<vmem>>, vector<1x1x192xf32>
    %42 = vector.shape_cast %41 : vector<1x1x192xf32> to vector<1x192xf32>
    %43 = vector.broadcast %42 : vector<1x192xf32> to vector<16x192xf32>
    %44 = arith.addf %40, %43 : vector<16x192xf32>
    %45 = vector.extract_strided_slice %44 {offsets = [0, 0], sizes = [16, 64], strides = [1, 1]} : vector<16x192xf32> to vector<16x64xf32>
    %46 = vector.extract_strided_slice %44 {offsets = [0, 64], sizes = [16, 64], strides = [1, 1]} : vector<16x192xf32> to vector<16x64xf32>
    %47 = vector.extract_strided_slice %44 {offsets = [0, 128], sizes = [16, 64], strides = [1, 1]} : vector<16x192xf32> to vector<16x64xf32>
    %48 = vector.extract_strided_slice %45 {offsets = [0, 0], sizes = [16, 32], strides = [1, 1]} : vector<16x64xf32> to vector<16x32xf32>
    %49 = vector.extract_strided_slice %46 {offsets = [0, 0], sizes = [16, 32], strides = [1, 1]} : vector<16x64xf32> to vector<16x32xf32>
    %50 = vector.extract_strided_slice %47 {offsets = [0, 0], sizes = [16, 32], strides = [1, 1]} : vector<16x64xf32> to vector<16x32xf32>
    %51 = tpu.transpose %49, [1, 0] : vector<16x32xf32> -> vector<32x16xf32>
    %cst_23 = arith.constant dense<0.000000e+00> : vector<16x16xf32>
    %52 = tpu.matmul %48, %51, %cst_23 {dimension_numbers = #tpu.dot_dimension_numbers<[1], [0], [0], [1], [0, 0, 1, 1], [], []>} : vector<16x32xf32>, vector<32x16xf32>, vector<16x16xf32> -> vector<16x16xf32>
    %cst_24 = arith.constant dense<0xFF800000> : vector<16xf32>
    %53 = vector.multi_reduction <maximumf>, %52, %cst_24 [1] : vector<16x16xf32> to vector<16xf32>
    %54 = vector.shape_cast %53 : vector<16xf32> to vector<16x1xf32>
    %55 = vector.broadcast %54 : vector<16x1xf32> to vector<16x16xf32>
    %56 = arith.subf %52, %55 : vector<16x16xf32>
    %57 = math.exp %56 : vector<16x16xf32>
    %cst_25 = arith.constant dense<0.000000e+00> : vector<16xf32>
    %58 = vector.multi_reduction <add>, %57, %cst_25 [1] : vector<16x16xf32> to vector<16xf32>
    %59 = vector.shape_cast %58 : vector<16xf32> to vector<16x1xf32>
    %60 = tpu.reciprocal %59 {approx = true} : vector<16x1xf32> -> vector<16x1xf32>
    %61 = vector.broadcast %60 : vector<16x1xf32> to vector<16x16xf32>
    %62 = arith.mulf %57, %61 : vector<16x16xf32>
    %cst_26 = arith.constant dense<0.000000e+00> : vector<16x32xf32>
    %63 = tpu.matmul %62, %50, %cst_26 {dimension_numbers = #tpu.dot_dimension_numbers<[1], [0], [0], [1], [0, 0, 1, 1], [], []>} : vector<16x16xf32>, vector<16x32xf32>, vector<16x32xf32> -> vector<16x32xf32>
    %64 = vector.extract_strided_slice %45 {offsets = [0, 32], sizes = [16, 32], strides = [1, 1]} : vector<16x64xf32> to vector<16x32xf32>
    %65 = vector.extract_strided_slice %46 {offsets = [0, 32], sizes = [16, 32], strides = [1, 1]} : vector<16x64xf32> to vector<16x32xf32>
    %66 = vector.extract_strided_slice %47 {offsets = [0, 32], sizes = [16, 32], strides = [1, 1]} : vector<16x64xf32> to vector<16x32xf32>
    %67 = tpu.transpose %65, [1, 0] : vector<16x32xf32> -> vector<32x16xf32>
    %cst_27 = arith.constant dense<0.000000e+00> : vector<16x16xf32>
    %68 = tpu.matmul %64, %67, %cst_27 {dimension_numbers = #tpu.dot_dimension_numbers<[1], [0], [0], [1], [0, 0, 1, 1], [], []>} : vector<16x32xf32>, vector<32x16xf32>, vector<16x16xf32> -> vector<16x16xf32>
    %cst_28 = arith.constant dense<0xFF800000> : vector<16xf32>
    %69 = vector.multi_reduction <maximumf>, %68, %cst_28 [1] : vector<16x16xf32> to vector<16xf32>
    %70 = vector.shape_cast %69 : vector<16xf32> to vector<16x1xf32>
    %71 = vector.broadcast %70 : vector<16x1xf32> to vector<16x16xf32>
    %72 = arith.subf %68, %71 : vector<16x16xf32>
    %73 = math.exp %72 : vector<16x16xf32>
    %cst_29 = arith.constant dense<0.000000e+00> : vector<16xf32>
    %74 = vector.multi_reduction <add>, %73, %cst_29 [1] : vector<16x16xf32> to vector<16xf32>
    %75 = vector.shape_cast %74 : vector<16xf32> to vector<16x1xf32>
    %76 = tpu.reciprocal %75 {approx = true} : vector<16x1xf32> -> vector<16x1xf32>
    %77 = vector.broadcast %76 : vector<16x1xf32> to vector<16x16xf32>
    %78 = arith.mulf %73, %77 : vector<16x16xf32>
    %cst_30 = arith.constant dense<0.000000e+00> : vector<16x32xf32>
    %79 = tpu.matmul %78, %66, %cst_30 {dimension_numbers = #tpu.dot_dimension_numbers<[1], [0], [0], [1], [0, 0, 1, 1], [], []>} : vector<16x16xf32>, vector<16x32xf32>, vector<16x32xf32> -> vector<16x32xf32>
    %80 = tpu.concatenate %63, %79 in 1 : vector<16x32xf32>, vector<16x32xf32> -> vector<16x64xf32>
    %c0_31 = arith.constant 0 : index
    %c0_32 = arith.constant 0 : index
    %c0_33 = arith.constant 0 : index
    %81 = vector.load %arg11[%c0_31, %c0_32, %c0_33] : memref<2x64x64xbf16, #tpu.memory_space<vmem>>, vector<1x64x64xbf16>
    %82 = vector.shape_cast %81 : vector<1x64x64xbf16> to vector<64x64xbf16>
    %83 = arith.truncf %80 : vector<16x64xf32> to vector<16x64xbf16>
    %cst_34 = arith.constant dense<0.000000e+00> : vector<16x64xf32>
    %84 = tpu.matmul %83, %82, %cst_34 {dimension_numbers = #tpu.dot_dimension_numbers<[1], [0], [0], [1], [0, 0, 1, 1], [], []>} : vector<16x64xbf16>, vector<64x64xbf16>, vector<16x64xf32> -> vector<16x64xf32>
    %85 = arith.addf %8, %84 : vector<16x64xf32>
    %c0_35 = arith.constant 0 : index
    %c0_36 = arith.constant 0 : index
    %c0_37 = arith.constant 0 : index
    %86 = vector.load %arg12[%c0_35, %c0_36, %c0_37] : memref<2x1x64xf32, #tpu.memory_space<vmem>>, vector<1x1x64xf32>
    %87 = vector.shape_cast %86 : vector<1x1x64xf32> to vector<1x64xf32>
    %88 = vector.broadcast %87 : vector<1x64xf32> to vector<16x64xf32>
    %89 = arith.addf %85, %88 : vector<16x64xf32>
    %c0_38 = arith.constant 0 : index
    %c0_39 = arith.constant 0 : index
    %c0_40 = arith.constant 0 : index
    %90 = vector.load %arg13[%c0_38, %c0_39, %c0_40] : memref<2x2x64xf32, #tpu.memory_space<vmem>>, vector<1x2x64xf32>
    %91 = vector.shape_cast %90 : vector<1x2x64xf32> to vector<2x64xf32>
    %92 = vector.extract_strided_slice %91 {offsets = [0, 0], sizes = [1, 64], strides = [1, 1]} : vector<2x64xf32> to vector<1x64xf32>
    %93 = vector.extract_strided_slice %91 {offsets = [1, 0], sizes = [1, 64], strides = [1, 1]} : vector<2x64xf32> to vector<1x64xf32>
    %cst_41 = arith.constant dense<0.000000e+00> : vector<16xf32>
    %94 = vector.multi_reduction <add>, %89, %cst_41 [1] : vector<16x64xf32> to vector<16xf32>
    %95 = vector.shape_cast %94 : vector<16xf32> to vector<16x1xf32>
    %cst_42 = arith.constant 6.400000e+01 : f32
    %96 = vector.broadcast %cst_42 : f32 to vector<16x1xf32>
    %97 = arith.divf %95, %96 : vector<16x1xf32>
    %98 = vector.broadcast %97 : vector<16x1xf32> to vector<16x64xf32>
    %99 = arith.subf %89, %98 : vector<16x64xf32>
    %100 = vector.broadcast %97 : vector<16x1xf32> to vector<16x64xf32>
    %101 = arith.subf %89, %100 : vector<16x64xf32>
    %102 = arith.mulf %99, %101 : vector<16x64xf32>
    %cst_43 = arith.constant dense<0.000000e+00> : vector<16xf32>
    %103 = vector.multi_reduction <add>, %102, %cst_43 [1] : vector<16x64xf32> to vector<16xf32>
    %104 = vector.shape_cast %103 : vector<16xf32> to vector<16x1xf32>
    %cst_44 = arith.constant 6.400000e+01 : f32
    %105 = vector.broadcast %cst_44 : f32 to vector<16x1xf32>
    %106 = arith.divf %104, %105 : vector<16x1xf32>
    %107 = vector.broadcast %97 : vector<16x1xf32> to vector<16x64xf32>
    %108 = arith.subf %89, %107 : vector<16x64xf32>
    %cst_45 = arith.constant 9.99999974E-6 : f32
    %109 = vector.broadcast %cst_45 : f32 to vector<16x1xf32>
    %110 = arith.addf %106, %109 : vector<16x1xf32>
    %111 = math.rsqrt %110 : vector<16x1xf32>
    %112 = vector.broadcast %111 : vector<16x1xf32> to vector<16x64xf32>
    %113 = arith.mulf %108, %112 : vector<16x64xf32>
    %114 = vector.broadcast %92 : vector<1x64xf32> to vector<16x64xf32>
    %115 = arith.mulf %113, %114 : vector<16x64xf32>
    %116 = vector.broadcast %93 : vector<1x64xf32> to vector<16x64xf32>
    %117 = arith.addf %115, %116 : vector<16x64xf32>
    %c0_46 = arith.constant 0 : index
    %c0_47 = arith.constant 0 : index
    %c0_48 = arith.constant 0 : index
    %118 = vector.load %arg14[%c0_46, %c0_47, %c0_48] : memref<2x64x128xbf16, #tpu.memory_space<vmem>>, vector<1x64x128xbf16>
    %119 = vector.shape_cast %118 : vector<1x64x128xbf16> to vector<64x128xbf16>
    %120 = arith.truncf %117 : vector<16x64xf32> to vector<16x64xbf16>
    %cst_49 = arith.constant dense<0.000000e+00> : vector<16x128xf32>
    %121 = tpu.matmul %120, %119, %cst_49 {dimension_numbers = #tpu.dot_dimension_numbers<[1], [0], [0], [1], [0, 0, 1, 1], [], []>} : vector<16x64xbf16>, vector<64x128xbf16>, vector<16x128xf32> -> vector<16x128xf32>
    %c0_50 = arith.constant 0 : index
    %c0_51 = arith.constant 0 : index
    %c0_52 = arith.constant 0 : index
    %122 = vector.load %arg15[%c0_50, %c0_51, %c0_52] : memref<2x1x128xf32, #tpu.memory_space<vmem>>, vector<1x1x128xf32>
    %123 = vector.shape_cast %122 : vector<1x1x128xf32> to vector<1x128xf32>
    %124 = vector.broadcast %123 : vector<1x128xf32> to vector<16x128xf32>
    %125 = arith.addf %121, %124 : vector<16x128xf32>
    %126 = arith.mulf %125, %125 : vector<16x128xf32>
    %127 = arith.mulf %125, %126 : vector<16x128xf32>
    %cst_53 = arith.constant 4.471500e-02 : f32
    %128 = vector.broadcast %cst_53 : f32 to vector<16x128xf32>
    %129 = arith.mulf %128, %127 : vector<16x128xf32>
    %130 = arith.addf %125, %129 : vector<16x128xf32>
    %cst_54 = arith.constant 0.797884583 : f32
    %131 = vector.broadcast %cst_54 : f32 to vector<16x128xf32>
    %132 = arith.mulf %131, %130 : vector<16x128xf32>
    %133 = math.tanh %132 : vector<16x128xf32>
    %cst_55 = arith.constant 1.000000e+00 : f32
    %134 = vector.broadcast %cst_55 : f32 to vector<16x128xf32>
    %135 = arith.addf %134, %133 : vector<16x128xf32>
    %cst_56 = arith.constant 5.000000e-01 : f32
    %136 = vector.broadcast %cst_56 : f32 to vector<16x128xf32>
    %137 = arith.mulf %136, %135 : vector<16x128xf32>
    %138 = arith.mulf %125, %137 : vector<16x128xf32>
    %c0_57 = arith.constant 0 : index
    %c0_58 = arith.constant 0 : index
    %c0_59 = arith.constant 0 : index
    %139 = vector.load %arg16[%c0_57, %c0_58, %c0_59] : memref<2x128x64xbf16, #tpu.memory_space<vmem>>, vector<1x128x64xbf16>
    %140 = vector.shape_cast %139 : vector<1x128x64xbf16> to vector<128x64xbf16>
    %141 = arith.truncf %138 : vector<16x128xf32> to vector<16x128xbf16>
    %cst_60 = arith.constant dense<0.000000e+00> : vector<16x64xf32>
    %142 = tpu.matmul %141, %140, %cst_60 {dimension_numbers = #tpu.dot_dimension_numbers<[1], [0], [0], [1], [0, 0, 1, 1], [], []>} : vector<16x128xbf16>, vector<128x64xbf16>, vector<16x64xf32> -> vector<16x64xf32>
    %143 = arith.addf %89, %142 : vector<16x64xf32>
    %c0_61 = arith.constant 0 : index
    %c0_62 = arith.constant 0 : index
    %c0_63 = arith.constant 0 : index
    %144 = vector.load %arg17[%c0_61, %c0_62, %c0_63] : memref<2x1x64xf32, #tpu.memory_space<vmem>>, vector<1x1x64xf32>
    %145 = vector.shape_cast %144 : vector<1x1x64xf32> to vector<1x64xf32>
    %146 = vector.broadcast %145 : vector<1x64xf32> to vector<16x64xf32>
    %147 = arith.addf %143, %146 : vector<16x64xf32>
    %c1 = arith.constant 1 : index
    %c0_64 = arith.constant 0 : index
    %c0_65 = arith.constant 0 : index
    %148 = vector.load %arg8[%c1, %c0_64, %c0_65] : memref<2x2x64xf32, #tpu.memory_space<vmem>>, vector<1x2x64xf32>
    %149 = vector.shape_cast %148 : vector<1x2x64xf32> to vector<2x64xf32>
    %150 = vector.extract_strided_slice %149 {offsets = [0, 0], sizes = [1, 64], strides = [1, 1]} : vector<2x64xf32> to vector<1x64xf32>
    %151 = vector.extract_strided_slice %149 {offsets = [1, 0], sizes = [1, 64], strides = [1, 1]} : vector<2x64xf32> to vector<1x64xf32>
    %cst_66 = arith.constant dense<0.000000e+00> : vector<16xf32>
    %152 = vector.multi_reduction <add>, %147, %cst_66 [1] : vector<16x64xf32> to vector<16xf32>
    %153 = vector.shape_cast %152 : vector<16xf32> to vector<16x1xf32>
    %cst_67 = arith.constant 6.400000e+01 : f32
    %154 = vector.broadcast %cst_67 : f32 to vector<16x1xf32>
    %155 = arith.divf %153, %154 : vector<16x1xf32>
    %156 = vector.broadcast %155 : vector<16x1xf32> to vector<16x64xf32>
    %157 = arith.subf %147, %156 : vector<16x64xf32>
    %158 = vector.broadcast %155 : vector<16x1xf32> to vector<16x64xf32>
    %159 = arith.subf %147, %158 : vector<16x64xf32>
    %160 = arith.mulf %157, %159 : vector<16x64xf32>
    %cst_68 = arith.constant dense<0.000000e+00> : vector<16xf32>
    %161 = vector.multi_reduction <add>, %160, %cst_68 [1] : vector<16x64xf32> to vector<16xf32>
    %162 = vector.shape_cast %161 : vector<16xf32> to vector<16x1xf32>
    %cst_69 = arith.constant 6.400000e+01 : f32
    %163 = vector.broadcast %cst_69 : f32 to vector<16x1xf32>
    %164 = arith.divf %162, %163 : vector<16x1xf32>
    %165 = vector.broadcast %155 : vector<16x1xf32> to vector<16x64xf32>
    %166 = arith.subf %147, %165 : vector<16x64xf32>
    %cst_70 = arith.constant 9.99999974E-6 : f32
    %167 = vector.broadcast %cst_70 : f32 to vector<16x1xf32>
    %168 = arith.addf %164, %167 : vector<16x1xf32>
    %169 = math.rsqrt %168 : vector<16x1xf32>
    %170 = vector.broadcast %169 : vector<16x1xf32> to vector<16x64xf32>
    %171 = arith.mulf %166, %170 : vector<16x64xf32>
    %172 = vector.broadcast %150 : vector<1x64xf32> to vector<16x64xf32>
    %173 = arith.mulf %171, %172 : vector<16x64xf32>
    %174 = vector.broadcast %151 : vector<1x64xf32> to vector<16x64xf32>
    %175 = arith.addf %173, %174 : vector<16x64xf32>
    %c1_71 = arith.constant 1 : index
    %c0_72 = arith.constant 0 : index
    %c0_73 = arith.constant 0 : index
    %176 = vector.load %arg9[%c1_71, %c0_72, %c0_73] : memref<2x64x192xbf16, #tpu.memory_space<vmem>>, vector<1x64x192xbf16>
    %177 = vector.shape_cast %176 : vector<1x64x192xbf16> to vector<64x192xbf16>
    %178 = arith.truncf %175 : vector<16x64xf32> to vector<16x64xbf16>
    %cst_74 = arith.constant dense<0.000000e+00> : vector<16x192xf32>
    %179 = tpu.matmul %178, %177, %cst_74 {dimension_numbers = #tpu.dot_dimension_numbers<[1], [0], [0], [1], [0, 0, 1, 1], [], []>} : vector<16x64xbf16>, vector<64x192xbf16>, vector<16x192xf32> -> vector<16x192xf32>
    %c1_75 = arith.constant 1 : index
    %c0_76 = arith.constant 0 : index
    %c0_77 = arith.constant 0 : index
    %180 = vector.load %arg10[%c1_75, %c0_76, %c0_77] : memref<2x1x192xf32, #tpu.memory_space<vmem>>, vector<1x1x192xf32>
    %181 = vector.shape_cast %180 : vector<1x1x192xf32> to vector<1x192xf32>
    %182 = vector.broadcast %181 : vector<1x192xf32> to vector<16x192xf32>
    %183 = arith.addf %179, %182 : vector<16x192xf32>
    %184 = vector.extract_strided_slice %183 {offsets = [0, 0], sizes = [16, 64], strides = [1, 1]} : vector<16x192xf32> to vector<16x64xf32>
    %185 = vector.extract_strided_slice %183 {offsets = [0, 64], sizes = [16, 64], strides = [1, 1]} : vector<16x192xf32> to vector<16x64xf32>
    %186 = vector.extract_strided_slice %183 {offsets = [0, 128], sizes = [16, 64], strides = [1, 1]} : vector<16x192xf32> to vector<16x64xf32>
    %187 = vector.extract_strided_slice %184 {offsets = [0, 0], sizes = [16, 32], strides = [1, 1]} : vector<16x64xf32> to vector<16x32xf32>
    %188 = vector.extract_strided_slice %185 {offsets = [0, 0], sizes = [16, 32], strides = [1, 1]} : vector<16x64xf32> to vector<16x32xf32>
    %189 = vector.extract_strided_slice %186 {offsets = [0, 0], sizes = [16, 32], strides = [1, 1]} : vector<16x64xf32> to vector<16x32xf32>
    %190 = tpu.transpose %188, [1, 0] : vector<16x32xf32> -> vector<32x16xf32>
    %cst_78 = arith.constant dense<0.000000e+00> : vector<16x16xf32>
    %191 = tpu.matmul %187, %190, %cst_78 {dimension_numbers = #tpu.dot_dimension_numbers<[1], [0], [0], [1], [0, 0, 1, 1], [], []>} : vector<16x32xf32>, vector<32x16xf32>, vector<16x16xf32> -> vector<16x16xf32>
    %cst_79 = arith.constant dense<0xFF800000> : vector<16xf32>
    %192 = vector.multi_reduction <maximumf>, %191, %cst_79 [1] : vector<16x16xf32> to vector<16xf32>
    %193 = vector.shape_cast %192 : vector<16xf32> to vector<16x1xf32>
    %194 = vector.broadcast %193 : vector<16x1xf32> to vector<16x16xf32>
    %195 = arith.subf %191, %194 : vector<16x16xf32>
    %196 = math.exp %195 : vector<16x16xf32>
    %cst_80 = arith.constant dense<0.000000e+00> : vector<16xf32>
    %197 = vector.multi_reduction <add>, %196, %cst_80 [1] : vector<16x16xf32> to vector<16xf32>
    %198 = vector.shape_cast %197 : vector<16xf32> to vector<16x1xf32>
    %199 = tpu.reciprocal %198 {approx = true} : vector<16x1xf32> -> vector<16x1xf32>
    %200 = vector.broadcast %199 : vector<16x1xf32> to vector<16x16xf32>
    %201 = arith.mulf %196, %200 : vector<16x16xf32>
    %cst_81 = arith.constant dense<0.000000e+00> : vector<16x32xf32>
    %202 = tpu.matmul %201, %189, %cst_81 {dimension_numbers = #tpu.dot_dimension_numbers<[1], [0], [0], [1], [0, 0, 1, 1], [], []>} : vector<16x16xf32>, vector<16x32xf32>, vector<16x32xf32> -> vector<16x32xf32>
    %203 = vector.extract_strided_slice %184 {offsets = [0, 32], sizes = [16, 32], strides = [1, 1]} : vector<16x64xf32> to vector<16x32xf32>
    %204 = vector.extract_strided_slice %185 {offsets = [0, 32], sizes = [16, 32], strides = [1, 1]} : vector<16x64xf32> to vector<16x32xf32>
    %205 = vector.extract_strided_slice %186 {offsets = [0, 32], sizes = [16, 32], strides = [1, 1]} : vector<16x64xf32> to vector<16x32xf32>
    %206 = tpu.transpose %204, [1, 0] : vector<16x32xf32> -> vector<32x16xf32>
    %cst_82 = arith.constant dense<0.000000e+00> : vector<16x16xf32>
    %207 = tpu.matmul %203, %206, %cst_82 {dimension_numbers = #tpu.dot_dimension_numbers<[1], [0], [0], [1], [0, 0, 1, 1], [], []>} : vector<16x32xf32>, vector<32x16xf32>, vector<16x16xf32> -> vector<16x16xf32>
    %cst_83 = arith.constant dense<0xFF800000> : vector<16xf32>
    %208 = vector.multi_reduction <maximumf>, %207, %cst_83 [1] : vector<16x16xf32> to vector<16xf32>
    %209 = vector.shape_cast %208 : vector<16xf32> to vector<16x1xf32>
    %210 = vector.broadcast %209 : vector<16x1xf32> to vector<16x16xf32>
    %211 = arith.subf %207, %210 : vector<16x16xf32>
    %212 = math.exp %211 : vector<16x16xf32>
    %cst_84 = arith.constant dense<0.000000e+00> : vector<16xf32>
    %213 = vector.multi_reduction <add>, %212, %cst_84 [1] : vector<16x16xf32> to vector<16xf32>
    %214 = vector.shape_cast %213 : vector<16xf32> to vector<16x1xf32>
    %215 = tpu.reciprocal %214 {approx = true} : vector<16x1xf32> -> vector<16x1xf32>
    %216 = vector.broadcast %215 : vector<16x1xf32> to vector<16x16xf32>
    %217 = arith.mulf %212, %216 : vector<16x16xf32>
    %cst_85 = arith.constant dense<0.000000e+00> : vector<16x32xf32>
    %218 = tpu.matmul %217, %205, %cst_85 {dimension_numbers = #tpu.dot_dimension_numbers<[1], [0], [0], [1], [0, 0, 1, 1], [], []>} : vector<16x16xf32>, vector<16x32xf32>, vector<16x32xf32> -> vector<16x32xf32>
    %219 = tpu.concatenate %202, %218 in 1 : vector<16x32xf32>, vector<16x32xf32> -> vector<16x64xf32>
    %c1_86 = arith.constant 1 : index
    %c0_87 = arith.constant 0 : index
    %c0_88 = arith.constant 0 : index
    %220 = vector.load %arg11[%c1_86, %c0_87, %c0_88] : memref<2x64x64xbf16, #tpu.memory_space<vmem>>, vector<1x64x64xbf16>
    %221 = vector.shape_cast %220 : vector<1x64x64xbf16> to vector<64x64xbf16>
    %222 = arith.truncf %219 : vector<16x64xf32> to vector<16x64xbf16>
    %cst_89 = arith.constant dense<0.000000e+00> : vector<16x64xf32>
    %223 = tpu.matmul %222, %221, %cst_89 {dimension_numbers = #tpu.dot_dimension_numbers<[1], [0], [0], [1], [0, 0, 1, 1], [], []>} : vector<16x64xbf16>, vector<64x64xbf16>, vector<16x64xf32> -> vector<16x64xf32>
    %224 = arith.addf %147, %223 : vector<16x64xf32>
    %c1_90 = arith.constant 1 : index
    %c0_91 = arith.constant 0 : index
    %c0_92 = arith.constant 0 : index
    %225 = vector.load %arg12[%c1_90, %c0_91, %c0_92] : memref<2x1x64xf32, #tpu.memory_space<vmem>>, vector<1x1x64xf32>
    %226 = vector.shape_cast %225 : vector<1x1x64xf32> to vector<1x64xf32>
    %227 = vector.broadcast %226 : vector<1x64xf32> to vector<16x64xf32>
    %228 = arith.addf %224, %227 : vector<16x64xf32>
    %c1_93 = arith.constant 1 : index
    %c0_94 = arith.constant 0 : index
    %c0_95 = arith.constant 0 : index
    %229 = vector.load %arg13[%c1_93, %c0_94, %c0_95] : memref<2x2x64xf32, #tpu.memory_space<vmem>>, vector<1x2x64xf32>
    %230 = vector.shape_cast %229 : vector<1x2x64xf32> to vector<2x64xf32>
    %231 = vector.extract_strided_slice %230 {offsets = [0, 0], sizes = [1, 64], strides = [1, 1]} : vector<2x64xf32> to vector<1x64xf32>
    %232 = vector.extract_strided_slice %230 {offsets = [1, 0], sizes = [1, 64], strides = [1, 1]} : vector<2x64xf32> to vector<1x64xf32>
    %cst_96 = arith.constant dense<0.000000e+00> : vector<16xf32>
    %233 = vector.multi_reduction <add>, %228, %cst_96 [1] : vector<16x64xf32> to vector<16xf32>
    %234 = vector.shape_cast %233 : vector<16xf32> to vector<16x1xf32>
    %cst_97 = arith.constant 6.400000e+01 : f32
    %235 = vector.broadcast %cst_97 : f32 to vector<16x1xf32>
    %236 = arith.divf %234, %235 : vector<16x1xf32>
    %237 = vector.broadcast %236 : vector<16x1xf32> to vector<16x64xf32>
    %238 = arith.subf %228, %237 : vector<16x64xf32>
    %239 = vector.broadcast %236 : vector<16x1xf32> to vector<16x64xf32>
    %240 = arith.subf %228, %239 : vector<16x64xf32>
    %241 = arith.mulf %238, %240 : vector<16x64xf32>
    %cst_98 = arith.constant dense<0.000000e+00> : vector<16xf32>
    %242 = vector.multi_reduction <add>, %241, %cst_98 [1] : vector<16x64xf32> to vector<16xf32>
    %243 = vector.shape_cast %242 : vector<16xf32> to vector<16x1xf32>
    %cst_99 = arith.constant 6.400000e+01 : f32
    %244 = vector.broadcast %cst_99 : f32 to vector<16x1xf32>
    %245 = arith.divf %243, %244 : vector<16x1xf32>
    %246 = vector.broadcast %236 : vector<16x1xf32> to vector<16x64xf32>
    %247 = arith.subf %228, %246 : vector<16x64xf32>
    %cst_100 = arith.constant 9.99999974E-6 : f32
    %248 = vector.broadcast %cst_100 : f32 to vector<16x1xf32>
    %249 = arith.addf %245, %248 : vector<16x1xf32>
    %250 = math.rsqrt %249 : vector<16x1xf32>
    %251 = vector.broadcast %250 : vector<16x1xf32> to vector<16x64xf32>
    %252 = arith.mulf %247, %251 : vector<16x64xf32>
    %253 = vector.broadcast %231 : vector<1x64xf32> to vector<16x64xf32>
    %254 = arith.mulf %252, %253 : vector<16x64xf32>
    %255 = vector.broadcast %232 : vector<1x64xf32> to vector<16x64xf32>
    %256 = arith.addf %254, %255 : vector<16x64xf32>
    %c1_101 = arith.constant 1 : index
    %c0_102 = arith.constant 0 : index
    %c0_103 = arith.constant 0 : index
    %257 = vector.load %arg14[%c1_101, %c0_102, %c0_103] : memref<2x64x128xbf16, #tpu.memory_space<vmem>>, vector<1x64x128xbf16>
    %258 = vector.shape_cast %257 : vector<1x64x128xbf16> to vector<64x128xbf16>
    %259 = arith.truncf %256 : vector<16x64xf32> to vector<16x64xbf16>
    %cst_104 = arith.constant dense<0.000000e+00> : vector<16x128xf32>
    %260 = tpu.matmul %259, %258, %cst_104 {dimension_numbers = #tpu.dot_dimension_numbers<[1], [0], [0], [1], [0, 0, 1, 1], [], []>} : vector<16x64xbf16>, vector<64x128xbf16>, vector<16x128xf32> -> vector<16x128xf32>
    %c1_105 = arith.constant 1 : index
    %c0_106 = arith.constant 0 : index
    %c0_107 = arith.constant 0 : index
    %261 = vector.load %arg15[%c1_105, %c0_106, %c0_107] : memref<2x1x128xf32, #tpu.memory_space<vmem>>, vector<1x1x128xf32>
    %262 = vector.shape_cast %261 : vector<1x1x128xf32> to vector<1x128xf32>
    %263 = vector.broadcast %262 : vector<1x128xf32> to vector<16x128xf32>
    %264 = arith.addf %260, %263 : vector<16x128xf32>
    %265 = arith.mulf %264, %264 : vector<16x128xf32>
    %266 = arith.mulf %264, %265 : vector<16x128xf32>
    %cst_108 = arith.constant 4.471500e-02 : f32
    %267 = vector.broadcast %cst_108 : f32 to vector<16x128xf32>
    %268 = arith.mulf %267, %266 : vector<16x128xf32>
    %269 = arith.addf %264, %268 : vector<16x128xf32>
    %cst_109 = arith.constant 0.797884583 : f32
    %270 = vector.broadcast %cst_109 : f32 to vector<16x128xf32>
    %271 = arith.mulf %270, %269 : vector<16x128xf32>
    %272 = math.tanh %271 : vector<16x128xf32>
    %cst_110 = arith.constant 1.000000e+00 : f32
    %273 = vector.broadcast %cst_110 : f32 to vector<16x128xf32>
    %274 = arith.addf %273, %272 : vector<16x128xf32>
    %cst_111 = arith.constant 5.000000e-01 : f32
    %275 = vector.broadcast %cst_111 : f32 to vector<16x128xf32>
    %276 = arith.mulf %275, %274 : vector<16x128xf32>
    %277 = arith.mulf %264, %276 : vector<16x128xf32>
    %c1_112 = arith.constant 1 : index
    %c0_113 = arith.constant 0 : index
    %c0_114 = arith.constant 0 : index
    %278 = vector.load %arg16[%c1_112, %c0_113, %c0_114] : memref<2x128x64xbf16, #tpu.memory_space<vmem>>, vector<1x128x64xbf16>
    %279 = vector.shape_cast %278 : vector<1x128x64xbf16> to vector<128x64xbf16>
    %280 = arith.truncf %277 : vector<16x128xf32> to vector<16x128xbf16>
    %cst_115 = arith.constant dense<0.000000e+00> : vector<16x64xf32>
    %281 = tpu.matmul %280, %279, %cst_115 {dimension_numbers = #tpu.dot_dimension_numbers<[1], [0], [0], [1], [0, 0, 1, 1], [], []>} : vector<16x128xbf16>, vector<128x64xbf16>, vector<16x64xf32> -> vector<16x64xf32>
    %282 = arith.addf %228, %281 : vector<16x64xf32>
    %c1_116 = arith.constant 1 : index
    %c0_117 = arith.constant 0 : index
    %c0_118 = arith.constant 0 : index
    %283 = vector.load %arg17[%c1_116, %c0_117, %c0_118] : memref<2x1x64xf32, #tpu.memory_space<vmem>>, vector<1x1x64xf32>
    %284 = vector.shape_cast %283 : vector<1x1x64xf32> to vector<1x64xf32>
    %285 = vector.broadcast %284 : vector<1x64xf32> to vector<16x64xf32>
    %286 = arith.addf %282, %285 : vector<16x64xf32>
    %c0_119 = arith.constant 0 : index
    %c0_120 = arith.constant 0 : index
    %287 = vector.load %arg18[%c0_119, %c0_120] : memref<2x64xf32, #tpu.memory_space<vmem>>, vector<1x64xf32>
    %c1_121 = arith.constant 1 : index
    %c0_122 = arith.constant 0 : index
    %288 = vector.load %arg18[%c1_121, %c0_122] : memref<2x64xf32, #tpu.memory_space<vmem>>, vector<1x64xf32>
    %cst_123 = arith.constant dense<0.000000e+00> : vector<16xf32>
    %289 = vector.multi_reduction <add>, %286, %cst_123 [1] : vector<16x64xf32> to vector<16xf32>
    %290 = vector.shape_cast %289 : vector<16xf32> to vector<16x1xf32>
    %cst_124 = arith.constant 6.400000e+01 : f32
    %291 = vector.broadcast %cst_124 : f32 to vector<16x1xf32>
    %292 = arith.divf %290, %291 : vector<16x1xf32>
    %293 = vector.broadcast %292 : vector<16x1xf32> to vector<16x64xf32>
    %294 = arith.subf %286, %293 : vector<16x64xf32>
    %295 = vector.broadcast %292 : vector<16x1xf32> to vector<16x64xf32>
    %296 = arith.subf %286, %295 : vector<16x64xf32>
    %297 = arith.mulf %294, %296 : vector<16x64xf32>
    %cst_125 = arith.constant dense<0.000000e+00> : vector<16xf32>
    %298 = vector.multi_reduction <add>, %297, %cst_125 [1] : vector<16x64xf32> to vector<16xf32>
    %299 = vector.shape_cast %298 : vector<16xf32> to vector<16x1xf32>
    %cst_126 = arith.constant 6.400000e+01 : f32
    %300 = vector.broadcast %cst_126 : f32 to vector<16x1xf32>
    %301 = arith.divf %299, %300 : vector<16x1xf32>
    %302 = vector.broadcast %292 : vector<16x1xf32> to vector<16x64xf32>
    %303 = arith.subf %286, %302 : vector<16x64xf32>
    %cst_127 = arith.constant 9.99999974E-6 : f32
    %304 = vector.broadcast %cst_127 : f32 to vector<16x1xf32>
    %305 = arith.addf %301, %304 : vector<16x1xf32>
    %306 = math.rsqrt %305 : vector<16x1xf32>
    %307 = vector.broadcast %306 : vector<16x1xf32> to vector<16x64xf32>
    %308 = arith.mulf %303, %307 : vector<16x64xf32>
    %309 = vector.broadcast %287 : vector<1x64xf32> to vector<16x64xf32>
    %310 = arith.mulf %308, %309 : vector<16x64xf32>
    %311 = vector.broadcast %288 : vector<1x64xf32> to vector<16x64xf32>
    %312 = arith.addf %310, %311 : vector<16x64xf32>
    %c0_128 = arith.constant 0 : index
    %c0_129 = arith.constant 0 : index
    %313 = vector.load %arg19[%c0_128, %c0_129] : memref<64x128xbf16, #tpu.memory_space<vmem>>, vector<64x128xbf16>
    %314 = arith.truncf %312 : vector<16x64xf32> to vector<16x64xbf16>
    %cst_130 = arith.constant dense<0.000000e+00> : vector<16x128xf32>
    %315 = tpu.matmul %314, %313, %cst_130 {dimension_numbers = #tpu.dot_dimension_numbers<[1], [0], [0], [1], [0, 0, 1, 1], [], []>} : vector<16x64xbf16>, vector<64x128xbf16>, vector<16x128xf32> -> vector<16x128xf32>
    %c0_131 = arith.constant 0 : index
    %c0_132 = arith.constant 0 : index
    %316 = vector.load %arg20[%c0_131, %c0_132] : memref<1x128xf32, #tpu.memory_space<vmem>>, vector<1x128xf32>
    %317 = vector.broadcast %316 : vector<1x128xf32> to vector<16x128xf32>
    %318 = arith.addf %315, %317 : vector<16x128xf32>
    %319 = arith.mulf %318, %318 : vector<16x128xf32>
    %320 = arith.mulf %318, %319 : vector<16x128xf32>
    %cst_133 = arith.constant 4.471500e-02 : f32
    %321 = vector.broadcast %cst_133 : f32 to vector<16x128xf32>
    %322 = arith.mulf %321, %320 : vector<16x128xf32>
    %323 = arith.addf %318, %322 : vector<16x128xf32>
    %cst_134 = arith.constant 0.797884583 : f32
    %324 = vector.broadcast %cst_134 : f32 to vector<16x128xf32>
    %325 = arith.mulf %324, %323 : vector<16x128xf32>
    %326 = math.tanh %325 : vector<16x128xf32>
    %cst_135 = arith.constant 1.000000e+00 : f32
    %327 = vector.broadcast %cst_135 : f32 to vector<16x128xf32>
    %328 = arith.addf %327, %326 : vector<16x128xf32>
    %cst_136 = arith.constant 5.000000e-01 : f32
    %329 = vector.broadcast %cst_136 : f32 to vector<16x128xf32>
    %330 = arith.mulf %329, %328 : vector<16x128xf32>
    %331 = arith.mulf %318, %330 : vector<16x128xf32>
    %c0_137 = arith.constant 0 : index
    %c0_138 = arith.constant 0 : index
    %332 = vector.load %arg21[%c0_137, %c0_138] : memref<128x128xbf16, #tpu.memory_space<vmem>>, vector<128x128xbf16>
    %333 = arith.truncf %331 : vector<16x128xf32> to vector<16x128xbf16>
    %cst_139 = arith.constant dense<0.000000e+00> : vector<16x128xf32>
    %334 = tpu.matmul %333, %332, %cst_139 {dimension_numbers = #tpu.dot_dimension_numbers<[1], [0], [0], [1], [0, 0, 1, 1], [], []>} : vector<16x128xbf16>, vector<128x128xbf16>, vector<16x128xf32> -> vector<16x128xf32>
    %c0_140 = arith.constant 0 : index
    %c0_141 = arith.constant 0 : index
    %335 = vector.load %arg22[%c0_140, %c0_141] : memref<1x128xf32, #tpu.memory_space<vmem>>, vector<1x128xf32>
    %336 = vector.broadcast %335 : vector<1x128xf32> to vector<16x128xf32>
    %337 = arith.addf %334, %336 : vector<16x128xf32>
    %c0_142 = arith.constant 0 : index
    %c0_143 = arith.constant 0 : index
    %c0_144 = arith.constant 0 : index
    %338 = vector.load %arg2[%c0_142, %c0_143, %c0_144] : memref<1x8x128xbf16, #tpu.memory_space<vmem>>, vector<1x8x128xbf16>
    %339 = vector.shape_cast %338 : vector<1x8x128xbf16> to vector<8x128xbf16>
    %340 = arith.extf %339 : vector<8x128xbf16> to vector<8x128xf32>
    %341 = tpu.concatenate %337, %340 in 0 : vector<16x128xf32>, vector<8x128xf32> -> vector<24x128xf32>
    %c0_145 = arith.constant 0 : index
    %c0_146 = arith.constant 0 : index
    %342 = vector.load %arg3[%c0_145, %c0_146] : memref<24x32xf32, #tpu.memory_space<vmem>>, vector<24x32xf32>
    %c0_147 = arith.constant 0 : index
    %c0_148 = arith.constant 0 : index
    %343 = vector.load %arg4[%c0_147, %c0_148] : memref<24x32xf32, #tpu.memory_space<vmem>>, vector<24x32xf32>
    %344 = tpu.iota {dimensions = array<i32: 0>} : vector<24x24xi32>
    %345 = tpu.iota {dimensions = array<i32: 1>} : vector<24x24xi32>
    %346 = arith.cmpi sge, %344, %345 : vector<24x24xi32>
    %c0_149 = arith.constant 0 : index
    %c0_150 = arith.constant 0 : index
    %c0_151 = arith.constant 0 : index
    %347 = vector.load %arg23[%c0_149, %c0_150, %c0_151] : memref<2x1x128xf32, #tpu.memory_space<vmem>>, vector<1x1x128xf32>
    %348 = vector.shape_cast %347 : vector<1x1x128xf32> to vector<1x128xf32>
    %349 = arith.mulf %341, %341 : vector<24x128xf32>
    %cst_152 = arith.constant dense<0.000000e+00> : vector<24xf32>
    %350 = vector.multi_reduction <add>, %349, %cst_152 [1] : vector<24x128xf32> to vector<24xf32>
    %351 = vector.shape_cast %350 : vector<24xf32> to vector<24x1xf32>
    %cst_153 = arith.constant 1.280000e+02 : f32
    %352 = vector.broadcast %cst_153 : f32 to vector<24x1xf32>
    %353 = arith.divf %351, %352 : vector<24x1xf32>
    %cst_154 = arith.constant 9.99999997E-7 : f32
    %354 = vector.broadcast %cst_154 : f32 to vector<24x1xf32>
    %355 = arith.addf %353, %354 : vector<24x1xf32>
    %356 = math.rsqrt %355 : vector<24x1xf32>
    %357 = vector.broadcast %356 : vector<24x1xf32> to vector<24x128xf32>
    %358 = arith.mulf %341, %357 : vector<24x128xf32>
    %359 = vector.broadcast %348 : vector<1x128xf32> to vector<24x128xf32>
    %360 = arith.mulf %358, %359 : vector<24x128xf32>
    %c0_155 = arith.constant 0 : index
    %c0_156 = arith.constant 0 : index
    %c0_157 = arith.constant 0 : index
    %361 = vector.load %arg24[%c0_155, %c0_156, %c0_157] : memref<2x128x384xbf16, #tpu.memory_space<vmem>>, vector<1x128x384xbf16>
    %362 = vector.shape_cast %361 : vector<1x128x384xbf16> to vector<128x384xbf16>
    %363 = arith.truncf %360 : vector<24x128xf32> to vector<24x128xbf16>
    %cst_158 = arith.constant dense<0.000000e+00> : vector<24x384xf32>
    %364 = tpu.matmul %363, %362, %cst_158 {dimension_numbers = #tpu.dot_dimension_numbers<[1], [0], [0], [1], [0, 0, 1, 1], [], []>} : vector<24x128xbf16>, vector<128x384xbf16>, vector<24x384xf32> -> vector<24x384xf32>
    %365 = vector.extract_strided_slice %364 {offsets = [0, 0], sizes = [24, 128], strides = [1, 1]} : vector<24x384xf32> to vector<24x128xf32>
    %366 = vector.extract_strided_slice %364 {offsets = [0, 128], sizes = [24, 128], strides = [1, 1]} : vector<24x384xf32> to vector<24x128xf32>
    %367 = vector.extract_strided_slice %364 {offsets = [0, 256], sizes = [24, 128], strides = [1, 1]} : vector<24x384xf32> to vector<24x128xf32>
    %368 = vector.extract_strided_slice %365 {offsets = [0, 0], sizes = [24, 32], strides = [1, 1]} : vector<24x128xf32> to vector<24x32xf32>
    %369 = vector.extract_strided_slice %366 {offsets = [0, 0], sizes = [24, 32], strides = [1, 1]} : vector<24x128xf32> to vector<24x32xf32>
    %370 = vector.extract_strided_slice %367 {offsets = [0, 0], sizes = [24, 32], strides = [1, 1]} : vector<24x128xf32> to vector<24x32xf32>
    %371 = arith.mulf %368, %342 : vector<24x32xf32>
    %372 = vector.extract_strided_slice %368 {offsets = [0, 16], sizes = [24, 16], strides = [1, 1]} : vector<24x32xf32> to vector<24x16xf32>
    %373 = vector.extract_strided_slice %368 {offsets = [0, 0], sizes = [24, 16], strides = [1, 1]} : vector<24x32xf32> to vector<24x16xf32>
    %374 = tpu.concatenate %372, %373 in 1 : vector<24x16xf32>, vector<24x16xf32> -> vector<24x32xf32>
    %375 = arith.mulf %374, %343 : vector<24x32xf32>
    %376 = arith.addf %371, %375 : vector<24x32xf32>
    %377 = arith.mulf %369, %342 : vector<24x32xf32>
    %378 = vector.extract_strided_slice %369 {offsets = [0, 16], sizes = [24, 16], strides = [1, 1]} : vector<24x32xf32> to vector<24x16xf32>
    %379 = vector.extract_strided_slice %369 {offsets = [0, 0], sizes = [24, 16], strides = [1, 1]} : vector<24x32xf32> to vector<24x16xf32>
    %380 = tpu.concatenate %378, %379 in 1 : vector<24x16xf32>, vector<24x16xf32> -> vector<24x32xf32>
    %381 = arith.mulf %380, %343 : vector<24x32xf32>
    %382 = arith.addf %377, %381 : vector<24x32xf32>
    %383 = tpu.transpose %382, [1, 0] : vector<24x32xf32> -> vector<32x24xf32>
    %cst_159 = arith.constant dense<0.000000e+00> : vector<24x24xf32>
    %384 = tpu.matmul %376, %383, %cst_159 {dimension_numbers = #tpu.dot_dimension_numbers<[1], [0], [0], [1], [0, 0, 1, 1], [], []>} : vector<24x32xf32>, vector<32x24xf32>, vector<24x24xf32> -> vector<24x24xf32>
    %cst_160 = arith.constant -1.000000e+09 : f32
    %385 = vector.broadcast %cst_160 : f32 to vector<24x24xf32>
    %386 = arith.select %346, %384, %385 : vector<24x24xi1>, vector<24x24xf32>
    %cst_161 = arith.constant dense<0xFF800000> : vector<24xf32>
    %387 = vector.multi_reduction <maximumf>, %386, %cst_161 [1] : vector<24x24xf32> to vector<24xf32>
    %388 = vector.shape_cast %387 : vector<24xf32> to vector<24x1xf32>
    %389 = vector.broadcast %388 : vector<24x1xf32> to vector<24x24xf32>
    %390 = arith.subf %386, %389 : vector<24x24xf32>
    %391 = math.exp %390 : vector<24x24xf32>
    %cst_162 = arith.constant dense<0.000000e+00> : vector<24xf32>
    %392 = vector.multi_reduction <add>, %391, %cst_162 [1] : vector<24x24xf32> to vector<24xf32>
    %393 = vector.shape_cast %392 : vector<24xf32> to vector<24x1xf32>
    %394 = tpu.reciprocal %393 {approx = true} : vector<24x1xf32> -> vector<24x1xf32>
    %395 = vector.broadcast %394 : vector<24x1xf32> to vector<24x24xf32>
    %396 = arith.mulf %391, %395 : vector<24x24xf32>
    %cst_163 = arith.constant dense<0.000000e+00> : vector<24x32xf32>
    %397 = tpu.matmul %396, %370, %cst_163 {dimension_numbers = #tpu.dot_dimension_numbers<[1], [0], [0], [1], [0, 0, 1, 1], [], []>} : vector<24x24xf32>, vector<24x32xf32>, vector<24x32xf32> -> vector<24x32xf32>
    %398 = vector.extract_strided_slice %365 {offsets = [0, 32], sizes = [24, 32], strides = [1, 1]} : vector<24x128xf32> to vector<24x32xf32>
    %399 = vector.extract_strided_slice %366 {offsets = [0, 32], sizes = [24, 32], strides = [1, 1]} : vector<24x128xf32> to vector<24x32xf32>
    %400 = vector.extract_strided_slice %367 {offsets = [0, 32], sizes = [24, 32], strides = [1, 1]} : vector<24x128xf32> to vector<24x32xf32>
    %401 = arith.mulf %398, %342 : vector<24x32xf32>
    %402 = vector.extract_strided_slice %398 {offsets = [0, 16], sizes = [24, 16], strides = [1, 1]} : vector<24x32xf32> to vector<24x16xf32>
    %403 = vector.extract_strided_slice %398 {offsets = [0, 0], sizes = [24, 16], strides = [1, 1]} : vector<24x32xf32> to vector<24x16xf32>
    %404 = tpu.concatenate %402, %403 in 1 : vector<24x16xf32>, vector<24x16xf32> -> vector<24x32xf32>
    %405 = arith.mulf %404, %343 : vector<24x32xf32>
    %406 = arith.addf %401, %405 : vector<24x32xf32>
    %407 = arith.mulf %399, %342 : vector<24x32xf32>
    %408 = vector.extract_strided_slice %399 {offsets = [0, 16], sizes = [24, 16], strides = [1, 1]} : vector<24x32xf32> to vector<24x16xf32>
    %409 = vector.extract_strided_slice %399 {offsets = [0, 0], sizes = [24, 16], strides = [1, 1]} : vector<24x32xf32> to vector<24x16xf32>
    %410 = tpu.concatenate %408, %409 in 1 : vector<24x16xf32>, vector<24x16xf32> -> vector<24x32xf32>
    %411 = arith.mulf %410, %343 : vector<24x32xf32>
    %412 = arith.addf %407, %411 : vector<24x32xf32>
    %413 = tpu.transpose %412, [1, 0] : vector<24x32xf32> -> vector<32x24xf32>
    %cst_164 = arith.constant dense<0.000000e+00> : vector<24x24xf32>
    %414 = tpu.matmul %406, %413, %cst_164 {dimension_numbers = #tpu.dot_dimension_numbers<[1], [0], [0], [1], [0, 0, 1, 1], [], []>} : vector<24x32xf32>, vector<32x24xf32>, vector<24x24xf32> -> vector<24x24xf32>
    %cst_165 = arith.constant -1.000000e+09 : f32
    %415 = vector.broadcast %cst_165 : f32 to vector<24x24xf32>
    %416 = arith.select %346, %414, %415 : vector<24x24xi1>, vector<24x24xf32>
    %cst_166 = arith.constant dense<0xFF800000> : vector<24xf32>
    %417 = vector.multi_reduction <maximumf>, %416, %cst_166 [1] : vector<24x24xf32> to vector<24xf32>
    %418 = vector.shape_cast %417 : vector<24xf32> to vector<24x1xf32>
    %419 = vector.broadcast %418 : vector<24x1xf32> to vector<24x24xf32>
    %420 = arith.subf %416, %419 : vector<24x24xf32>
    %421 = math.exp %420 : vector<24x24xf32>
    %cst_167 = arith.constant dense<0.000000e+00> : vector<24xf32>
    %422 = vector.multi_reduction <add>, %421, %cst_167 [1] : vector<24x24xf32> to vector<24xf32>
    %423 = vector.shape_cast %422 : vector<24xf32> to vector<24x1xf32>
    %424 = tpu.reciprocal %423 {approx = true} : vector<24x1xf32> -> vector<24x1xf32>
    %425 = vector.broadcast %424 : vector<24x1xf32> to vector<24x24xf32>
    %426 = arith.mulf %421, %425 : vector<24x24xf32>
    %cst_168 = arith.constant dense<0.000000e+00> : vector<24x32xf32>
    %427 = tpu.matmul %426, %400, %cst_168 {dimension_numbers = #tpu.dot_dimension_numbers<[1], [0], [0], [1], [0, 0, 1, 1], [], []>} : vector<24x24xf32>, vector<24x32xf32>, vector<24x32xf32> -> vector<24x32xf32>
    %428 = vector.extract_strided_slice %365 {offsets = [0, 64], sizes = [24, 32], strides = [1, 1]} : vector<24x128xf32> to vector<24x32xf32>
    %429 = vector.extract_strided_slice %366 {offsets = [0, 64], sizes = [24, 32], strides = [1, 1]} : vector<24x128xf32> to vector<24x32xf32>
    %430 = vector.extract_strided_slice %367 {offsets = [0, 64], sizes = [24, 32], strides = [1, 1]} : vector<24x128xf32> to vector<24x32xf32>
    %431 = arith.mulf %428, %342 : vector<24x32xf32>
    %432 = vector.extract_strided_slice %428 {offsets = [0, 16], sizes = [24, 16], strides = [1, 1]} : vector<24x32xf32> to vector<24x16xf32>
    %433 = vector.extract_strided_slice %428 {offsets = [0, 0], sizes = [24, 16], strides = [1, 1]} : vector<24x32xf32> to vector<24x16xf32>
    %434 = tpu.concatenate %432, %433 in 1 : vector<24x16xf32>, vector<24x16xf32> -> vector<24x32xf32>
    %435 = arith.mulf %434, %343 : vector<24x32xf32>
    %436 = arith.addf %431, %435 : vector<24x32xf32>
    %437 = arith.mulf %429, %342 : vector<24x32xf32>
    %438 = vector.extract_strided_slice %429 {offsets = [0, 16], sizes = [24, 16], strides = [1, 1]} : vector<24x32xf32> to vector<24x16xf32>
    %439 = vector.extract_strided_slice %429 {offsets = [0, 0], sizes = [24, 16], strides = [1, 1]} : vector<24x32xf32> to vector<24x16xf32>
    %440 = tpu.concatenate %438, %439 in 1 : vector<24x16xf32>, vector<24x16xf32> -> vector<24x32xf32>
    %441 = arith.mulf %440, %343 : vector<24x32xf32>
    %442 = arith.addf %437, %441 : vector<24x32xf32>
    %443 = tpu.transpose %442, [1, 0] : vector<24x32xf32> -> vector<32x24xf32>
    %cst_169 = arith.constant dense<0.000000e+00> : vector<24x24xf32>
    %444 = tpu.matmul %436, %443, %cst_169 {dimension_numbers = #tpu.dot_dimension_numbers<[1], [0], [0], [1], [0, 0, 1, 1], [], []>} : vector<24x32xf32>, vector<32x24xf32>, vector<24x24xf32> -> vector<24x24xf32>
    %cst_170 = arith.constant -1.000000e+09 : f32
    %445 = vector.broadcast %cst_170 : f32 to vector<24x24xf32>
    %446 = arith.select %346, %444, %445 : vector<24x24xi1>, vector<24x24xf32>
    %cst_171 = arith.constant dense<0xFF800000> : vector<24xf32>
    %447 = vector.multi_reduction <maximumf>, %446, %cst_171 [1] : vector<24x24xf32> to vector<24xf32>
    %448 = vector.shape_cast %447 : vector<24xf32> to vector<24x1xf32>
    %449 = vector.broadcast %448 : vector<24x1xf32> to vector<24x24xf32>
    %450 = arith.subf %446, %449 : vector<24x24xf32>
    %451 = math.exp %450 : vector<24x24xf32>
    %cst_172 = arith.constant dense<0.000000e+00> : vector<24xf32>
    %452 = vector.multi_reduction <add>, %451, %cst_172 [1] : vector<24x24xf32> to vector<24xf32>
    %453 = vector.shape_cast %452 : vector<24xf32> to vector<24x1xf32>
    %454 = tpu.reciprocal %453 {approx = true} : vector<24x1xf32> -> vector<24x1xf32>
    %455 = vector.broadcast %454 : vector<24x1xf32> to vector<24x24xf32>
    %456 = arith.mulf %451, %455 : vector<24x24xf32>
    %cst_173 = arith.constant dense<0.000000e+00> : vector<24x32xf32>
    %457 = tpu.matmul %456, %430, %cst_173 {dimension_numbers = #tpu.dot_dimension_numbers<[1], [0], [0], [1], [0, 0, 1, 1], [], []>} : vector<24x24xf32>, vector<24x32xf32>, vector<24x32xf32> -> vector<24x32xf32>
    %458 = vector.extract_strided_slice %365 {offsets = [0, 96], sizes = [24, 32], strides = [1, 1]} : vector<24x128xf32> to vector<24x32xf32>
    %459 = vector.extract_strided_slice %366 {offsets = [0, 96], sizes = [24, 32], strides = [1, 1]} : vector<24x128xf32> to vector<24x32xf32>
    %460 = vector.extract_strided_slice %367 {offsets = [0, 96], sizes = [24, 32], strides = [1, 1]} : vector<24x128xf32> to vector<24x32xf32>
    %461 = arith.mulf %458, %342 : vector<24x32xf32>
    %462 = vector.extract_strided_slice %458 {offsets = [0, 16], sizes = [24, 16], strides = [1, 1]} : vector<24x32xf32> to vector<24x16xf32>
    %463 = vector.extract_strided_slice %458 {offsets = [0, 0], sizes = [24, 16], strides = [1, 1]} : vector<24x32xf32> to vector<24x16xf32>
    %464 = tpu.concatenate %462, %463 in 1 : vector<24x16xf32>, vector<24x16xf32> -> vector<24x32xf32>
    %465 = arith.mulf %464, %343 : vector<24x32xf32>
    %466 = arith.addf %461, %465 : vector<24x32xf32>
    %467 = arith.mulf %459, %342 : vector<24x32xf32>
    %468 = vector.extract_strided_slice %459 {offsets = [0, 16], sizes = [24, 16], strides = [1, 1]} : vector<24x32xf32> to vector<24x16xf32>
    %469 = vector.extract_strided_slice %459 {offsets = [0, 0], sizes = [24, 16], strides = [1, 1]} : vector<24x32xf32> to vector<24x16xf32>
    %470 = tpu.concatenate %468, %469 in 1 : vector<24x16xf32>, vector<24x16xf32> -> vector<24x32xf32>
    %471 = arith.mulf %470, %343 : vector<24x32xf32>
    %472 = arith.addf %467, %471 : vector<24x32xf32>
    %473 = tpu.transpose %472, [1, 0] : vector<24x32xf32> -> vector<32x24xf32>
    %cst_174 = arith.constant dense<0.000000e+00> : vector<24x24xf32>
    %474 = tpu.matmul %466, %473, %cst_174 {dimension_numbers = #tpu.dot_dimension_numbers<[1], [0], [0], [1], [0, 0, 1, 1], [], []>} : vector<24x32xf32>, vector<32x24xf32>, vector<24x24xf32> -> vector<24x24xf32>
    %cst_175 = arith.constant -1.000000e+09 : f32
    %475 = vector.broadcast %cst_175 : f32 to vector<24x24xf32>
    %476 = arith.select %346, %474, %475 : vector<24x24xi1>, vector<24x24xf32>
    %cst_176 = arith.constant dense<0xFF800000> : vector<24xf32>
    %477 = vector.multi_reduction <maximumf>, %476, %cst_176 [1] : vector<24x24xf32> to vector<24xf32>
    %478 = vector.shape_cast %477 : vector<24xf32> to vector<24x1xf32>
    %479 = vector.broadcast %478 : vector<24x1xf32> to vector<24x24xf32>
    %480 = arith.subf %476, %479 : vector<24x24xf32>
    %481 = math.exp %480 : vector<24x24xf32>
    %cst_177 = arith.constant dense<0.000000e+00> : vector<24xf32>
    %482 = vector.multi_reduction <add>, %481, %cst_177 [1] : vector<24x24xf32> to vector<24xf32>
    %483 = vector.shape_cast %482 : vector<24xf32> to vector<24x1xf32>
    %484 = tpu.reciprocal %483 {approx = true} : vector<24x1xf32> -> vector<24x1xf32>
    %485 = vector.broadcast %484 : vector<24x1xf32> to vector<24x24xf32>
    %486 = arith.mulf %481, %485 : vector<24x24xf32>
    %cst_178 = arith.constant dense<0.000000e+00> : vector<24x32xf32>
    %487 = tpu.matmul %486, %460, %cst_178 {dimension_numbers = #tpu.dot_dimension_numbers<[1], [0], [0], [1], [0, 0, 1, 1], [], []>} : vector<24x24xf32>, vector<24x32xf32>, vector<24x32xf32> -> vector<24x32xf32>
    %488 = tpu.concatenate %397, %427, %457, %487 in 1 : vector<24x32xf32>, vector<24x32xf32>, vector<24x32xf32>, vector<24x32xf32> -> vector<24x128xf32>
    %c0_179 = arith.constant 0 : index
    %c0_180 = arith.constant 0 : index
    %c0_181 = arith.constant 0 : index
    %489 = vector.load %arg25[%c0_179, %c0_180, %c0_181] : memref<2x128x128xbf16, #tpu.memory_space<vmem>>, vector<1x128x128xbf16>
    %490 = vector.shape_cast %489 : vector<1x128x128xbf16> to vector<128x128xbf16>
    %491 = arith.truncf %488 : vector<24x128xf32> to vector<24x128xbf16>
    %cst_182 = arith.constant dense<0.000000e+00> : vector<24x128xf32>
    %492 = tpu.matmul %491, %490, %cst_182 {dimension_numbers = #tpu.dot_dimension_numbers<[1], [0], [0], [1], [0, 0, 1, 1], [], []>} : vector<24x128xbf16>, vector<128x128xbf16>, vector<24x128xf32> -> vector<24x128xf32>
    %493 = arith.addf %341, %492 : vector<24x128xf32>
    %c0_183 = arith.constant 0 : index
    %c0_184 = arith.constant 0 : index
    %c0_185 = arith.constant 0 : index
    %494 = vector.load %arg26[%c0_183, %c0_184, %c0_185] : memref<2x1x128xf32, #tpu.memory_space<vmem>>, vector<1x1x128xf32>
    %495 = vector.shape_cast %494 : vector<1x1x128xf32> to vector<1x128xf32>
    %496 = arith.mulf %493, %493 : vector<24x128xf32>
    %cst_186 = arith.constant dense<0.000000e+00> : vector<24xf32>
    %497 = vector.multi_reduction <add>, %496, %cst_186 [1] : vector<24x128xf32> to vector<24xf32>
    %498 = vector.shape_cast %497 : vector<24xf32> to vector<24x1xf32>
    %cst_187 = arith.constant 1.280000e+02 : f32
    %499 = vector.broadcast %cst_187 : f32 to vector<24x1xf32>
    %500 = arith.divf %498, %499 : vector<24x1xf32>
    %cst_188 = arith.constant 9.99999997E-7 : f32
    %501 = vector.broadcast %cst_188 : f32 to vector<24x1xf32>
    %502 = arith.addf %500, %501 : vector<24x1xf32>
    %503 = math.rsqrt %502 : vector<24x1xf32>
    %504 = vector.broadcast %503 : vector<24x1xf32> to vector<24x128xf32>
    %505 = arith.mulf %493, %504 : vector<24x128xf32>
    %506 = vector.broadcast %495 : vector<1x128xf32> to vector<24x128xf32>
    %507 = arith.mulf %505, %506 : vector<24x128xf32>
    %c0_189 = arith.constant 0 : index
    %c0_190 = arith.constant 0 : index
    %c0_191 = arith.constant 0 : index
    %508 = vector.load %arg27[%c0_189, %c0_190, %c0_191] : memref<2x128x512xbf16, #tpu.memory_space<vmem>>, vector<1x128x512xbf16>
    %509 = vector.shape_cast %508 : vector<1x128x512xbf16> to vector<128x512xbf16>
    %510 = arith.truncf %507 : vector<24x128xf32> to vector<24x128xbf16>
    %cst_192 = arith.constant dense<0.000000e+00> : vector<24x512xf32>
    %511 = tpu.matmul %510, %509, %cst_192 {dimension_numbers = #tpu.dot_dimension_numbers<[1], [0], [0], [1], [0, 0, 1, 1], [], []>} : vector<24x128xbf16>, vector<128x512xbf16>, vector<24x512xf32> -> vector<24x512xf32>
    %512 = vector.extract_strided_slice %511 {offsets = [0, 0], sizes = [24, 256], strides = [1, 1]} : vector<24x512xf32> to vector<24x256xf32>
    %513 = vector.extract_strided_slice %511 {offsets = [0, 256], sizes = [24, 256], strides = [1, 1]} : vector<24x512xf32> to vector<24x256xf32>
    %514 = arith.negf %512 : vector<24x256xf32>
    %515 = math.exp %514 : vector<24x256xf32>
    %cst_193 = arith.constant 1.000000e+00 : f32
    %516 = vector.broadcast %cst_193 : f32 to vector<24x256xf32>
    %517 = arith.addf %516, %515 : vector<24x256xf32>
    %518 = arith.divf %516, %517 : vector<24x256xf32>
    %519 = arith.mulf %512, %518 : vector<24x256xf32>
    %520 = arith.mulf %519, %513 : vector<24x256xf32>
    %c0_194 = arith.constant 0 : index
    %c0_195 = arith.constant 0 : index
    %c0_196 = arith.constant 0 : index
    %521 = vector.load %arg28[%c0_194, %c0_195, %c0_196] : memref<2x256x128xbf16, #tpu.memory_space<vmem>>, vector<1x256x128xbf16>
    %522 = vector.shape_cast %521 : vector<1x256x128xbf16> to vector<256x128xbf16>
    %523 = arith.truncf %520 : vector<24x256xf32> to vector<24x256xbf16>
    %cst_197 = arith.constant dense<0.000000e+00> : vector<24x128xf32>
    %524 = tpu.matmul %523, %522, %cst_197 {dimension_numbers = #tpu.dot_dimension_numbers<[1], [0], [0], [1], [0, 0, 1, 1], [], []>} : vector<24x256xbf16>, vector<256x128xbf16>, vector<24x128xf32> -> vector<24x128xf32>
    %525 = arith.addf %493, %524 : vector<24x128xf32>
    %c1_198 = arith.constant 1 : index
    %c0_199 = arith.constant 0 : index
    %c0_200 = arith.constant 0 : index
    %526 = vector.load %arg23[%c1_198, %c0_199, %c0_200] : memref<2x1x128xf32, #tpu.memory_space<vmem>>, vector<1x1x128xf32>
    %527 = vector.shape_cast %526 : vector<1x1x128xf32> to vector<1x128xf32>
    %528 = arith.mulf %525, %525 : vector<24x128xf32>
    %cst_201 = arith.constant dense<0.000000e+00> : vector<24xf32>
    %529 = vector.multi_reduction <add>, %528, %cst_201 [1] : vector<24x128xf32> to vector<24xf32>
    %530 = vector.shape_cast %529 : vector<24xf32> to vector<24x1xf32>
    %cst_202 = arith.constant 1.280000e+02 : f32
    %531 = vector.broadcast %cst_202 : f32 to vector<24x1xf32>
    %532 = arith.divf %530, %531 : vector<24x1xf32>
    %cst_203 = arith.constant 9.99999997E-7 : f32
    %533 = vector.broadcast %cst_203 : f32 to vector<24x1xf32>
    %534 = arith.addf %532, %533 : vector<24x1xf32>
    %535 = math.rsqrt %534 : vector<24x1xf32>
    %536 = vector.broadcast %535 : vector<24x1xf32> to vector<24x128xf32>
    %537 = arith.mulf %525, %536 : vector<24x128xf32>
    %538 = vector.broadcast %527 : vector<1x128xf32> to vector<24x128xf32>
    %539 = arith.mulf %537, %538 : vector<24x128xf32>
    %c1_204 = arith.constant 1 : index
    %c0_205 = arith.constant 0 : index
    %c0_206 = arith.constant 0 : index
    %540 = vector.load %arg24[%c1_204, %c0_205, %c0_206] : memref<2x128x384xbf16, #tpu.memory_space<vmem>>, vector<1x128x384xbf16>
    %541 = vector.shape_cast %540 : vector<1x128x384xbf16> to vector<128x384xbf16>
    %542 = arith.truncf %539 : vector<24x128xf32> to vector<24x128xbf16>
    %cst_207 = arith.constant dense<0.000000e+00> : vector<24x384xf32>
    %543 = tpu.matmul %542, %541, %cst_207 {dimension_numbers = #tpu.dot_dimension_numbers<[1], [0], [0], [1], [0, 0, 1, 1], [], []>} : vector<24x128xbf16>, vector<128x384xbf16>, vector<24x384xf32> -> vector<24x384xf32>
    %544 = vector.extract_strided_slice %543 {offsets = [0, 0], sizes = [24, 128], strides = [1, 1]} : vector<24x384xf32> to vector<24x128xf32>
    %545 = vector.extract_strided_slice %543 {offsets = [0, 128], sizes = [24, 128], strides = [1, 1]} : vector<24x384xf32> to vector<24x128xf32>
    %546 = vector.extract_strided_slice %543 {offsets = [0, 256], sizes = [24, 128], strides = [1, 1]} : vector<24x384xf32> to vector<24x128xf32>
    %547 = vector.extract_strided_slice %544 {offsets = [0, 0], sizes = [24, 32], strides = [1, 1]} : vector<24x128xf32> to vector<24x32xf32>
    %548 = vector.extract_strided_slice %545 {offsets = [0, 0], sizes = [24, 32], strides = [1, 1]} : vector<24x128xf32> to vector<24x32xf32>
    %549 = vector.extract_strided_slice %546 {offsets = [0, 0], sizes = [24, 32], strides = [1, 1]} : vector<24x128xf32> to vector<24x32xf32>
    %550 = arith.mulf %547, %342 : vector<24x32xf32>
    %551 = vector.extract_strided_slice %547 {offsets = [0, 16], sizes = [24, 16], strides = [1, 1]} : vector<24x32xf32> to vector<24x16xf32>
    %552 = vector.extract_strided_slice %547 {offsets = [0, 0], sizes = [24, 16], strides = [1, 1]} : vector<24x32xf32> to vector<24x16xf32>
    %553 = tpu.concatenate %551, %552 in 1 : vector<24x16xf32>, vector<24x16xf32> -> vector<24x32xf32>
    %554 = arith.mulf %553, %343 : vector<24x32xf32>
    %555 = arith.addf %550, %554 : vector<24x32xf32>
    %556 = arith.mulf %548, %342 : vector<24x32xf32>
    %557 = vector.extract_strided_slice %548 {offsets = [0, 16], sizes = [24, 16], strides = [1, 1]} : vector<24x32xf32> to vector<24x16xf32>
    %558 = vector.extract_strided_slice %548 {offsets = [0, 0], sizes = [24, 16], strides = [1, 1]} : vector<24x32xf32> to vector<24x16xf32>
    %559 = tpu.concatenate %557, %558 in 1 : vector<24x16xf32>, vector<24x16xf32> -> vector<24x32xf32>
    %560 = arith.mulf %559, %343 : vector<24x32xf32>
    %561 = arith.addf %556, %560 : vector<24x32xf32>
    %562 = tpu.transpose %561, [1, 0] : vector<24x32xf32> -> vector<32x24xf32>
    %cst_208 = arith.constant dense<0.000000e+00> : vector<24x24xf32>
    %563 = tpu.matmul %555, %562, %cst_208 {dimension_numbers = #tpu.dot_dimension_numbers<[1], [0], [0], [1], [0, 0, 1, 1], [], []>} : vector<24x32xf32>, vector<32x24xf32>, vector<24x24xf32> -> vector<24x24xf32>
    %cst_209 = arith.constant -1.000000e+09 : f32
    %564 = vector.broadcast %cst_209 : f32 to vector<24x24xf32>
    %565 = arith.select %346, %563, %564 : vector<24x24xi1>, vector<24x24xf32>
    %cst_210 = arith.constant dense<0xFF800000> : vector<24xf32>
    %566 = vector.multi_reduction <maximumf>, %565, %cst_210 [1] : vector<24x24xf32> to vector<24xf32>
    %567 = vector.shape_cast %566 : vector<24xf32> to vector<24x1xf32>
    %568 = vector.broadcast %567 : vector<24x1xf32> to vector<24x24xf32>
    %569 = arith.subf %565, %568 : vector<24x24xf32>
    %570 = math.exp %569 : vector<24x24xf32>
    %cst_211 = arith.constant dense<0.000000e+00> : vector<24xf32>
    %571 = vector.multi_reduction <add>, %570, %cst_211 [1] : vector<24x24xf32> to vector<24xf32>
    %572 = vector.shape_cast %571 : vector<24xf32> to vector<24x1xf32>
    %573 = tpu.reciprocal %572 {approx = true} : vector<24x1xf32> -> vector<24x1xf32>
    %574 = vector.broadcast %573 : vector<24x1xf32> to vector<24x24xf32>
    %575 = arith.mulf %570, %574 : vector<24x24xf32>
    %cst_212 = arith.constant dense<0.000000e+00> : vector<24x32xf32>
    %576 = tpu.matmul %575, %549, %cst_212 {dimension_numbers = #tpu.dot_dimension_numbers<[1], [0], [0], [1], [0, 0, 1, 1], [], []>} : vector<24x24xf32>, vector<24x32xf32>, vector<24x32xf32> -> vector<24x32xf32>
    %577 = vector.extract_strided_slice %544 {offsets = [0, 32], sizes = [24, 32], strides = [1, 1]} : vector<24x128xf32> to vector<24x32xf32>
    %578 = vector.extract_strided_slice %545 {offsets = [0, 32], sizes = [24, 32], strides = [1, 1]} : vector<24x128xf32> to vector<24x32xf32>
    %579 = vector.extract_strided_slice %546 {offsets = [0, 32], sizes = [24, 32], strides = [1, 1]} : vector<24x128xf32> to vector<24x32xf32>
    %580 = arith.mulf %577, %342 : vector<24x32xf32>
    %581 = vector.extract_strided_slice %577 {offsets = [0, 16], sizes = [24, 16], strides = [1, 1]} : vector<24x32xf32> to vector<24x16xf32>
    %582 = vector.extract_strided_slice %577 {offsets = [0, 0], sizes = [24, 16], strides = [1, 1]} : vector<24x32xf32> to vector<24x16xf32>
    %583 = tpu.concatenate %581, %582 in 1 : vector<24x16xf32>, vector<24x16xf32> -> vector<24x32xf32>
    %584 = arith.mulf %583, %343 : vector<24x32xf32>
    %585 = arith.addf %580, %584 : vector<24x32xf32>
    %586 = arith.mulf %578, %342 : vector<24x32xf32>
    %587 = vector.extract_strided_slice %578 {offsets = [0, 16], sizes = [24, 16], strides = [1, 1]} : vector<24x32xf32> to vector<24x16xf32>
    %588 = vector.extract_strided_slice %578 {offsets = [0, 0], sizes = [24, 16], strides = [1, 1]} : vector<24x32xf32> to vector<24x16xf32>
    %589 = tpu.concatenate %587, %588 in 1 : vector<24x16xf32>, vector<24x16xf32> -> vector<24x32xf32>
    %590 = arith.mulf %589, %343 : vector<24x32xf32>
    %591 = arith.addf %586, %590 : vector<24x32xf32>
    %592 = tpu.transpose %591, [1, 0] : vector<24x32xf32> -> vector<32x24xf32>
    %cst_213 = arith.constant dense<0.000000e+00> : vector<24x24xf32>
    %593 = tpu.matmul %585, %592, %cst_213 {dimension_numbers = #tpu.dot_dimension_numbers<[1], [0], [0], [1], [0, 0, 1, 1], [], []>} : vector<24x32xf32>, vector<32x24xf32>, vector<24x24xf32> -> vector<24x24xf32>
    %cst_214 = arith.constant -1.000000e+09 : f32
    %594 = vector.broadcast %cst_214 : f32 to vector<24x24xf32>
    %595 = arith.select %346, %593, %594 : vector<24x24xi1>, vector<24x24xf32>
    %cst_215 = arith.constant dense<0xFF800000> : vector<24xf32>
    %596 = vector.multi_reduction <maximumf>, %595, %cst_215 [1] : vector<24x24xf32> to vector<24xf32>
    %597 = vector.shape_cast %596 : vector<24xf32> to vector<24x1xf32>
    %598 = vector.broadcast %597 : vector<24x1xf32> to vector<24x24xf32>
    %599 = arith.subf %595, %598 : vector<24x24xf32>
    %600 = math.exp %599 : vector<24x24xf32>
    %cst_216 = arith.constant dense<0.000000e+00> : vector<24xf32>
    %601 = vector.multi_reduction <add>, %600, %cst_216 [1] : vector<24x24xf32> to vector<24xf32>
    %602 = vector.shape_cast %601 : vector<24xf32> to vector<24x1xf32>
    %603 = tpu.reciprocal %602 {approx = true} : vector<24x1xf32> -> vector<24x1xf32>
    %604 = vector.broadcast %603 : vector<24x1xf32> to vector<24x24xf32>
    %605 = arith.mulf %600, %604 : vector<24x24xf32>
    %cst_217 = arith.constant dense<0.000000e+00> : vector<24x32xf32>
    %606 = tpu.matmul %605, %579, %cst_217 {dimension_numbers = #tpu.dot_dimension_numbers<[1], [0], [0], [1], [0, 0, 1, 1], [], []>} : vector<24x24xf32>, vector<24x32xf32>, vector<24x32xf32> -> vector<24x32xf32>
    %607 = vector.extract_strided_slice %544 {offsets = [0, 64], sizes = [24, 32], strides = [1, 1]} : vector<24x128xf32> to vector<24x32xf32>
    %608 = vector.extract_strided_slice %545 {offsets = [0, 64], sizes = [24, 32], strides = [1, 1]} : vector<24x128xf32> to vector<24x32xf32>
    %609 = vector.extract_strided_slice %546 {offsets = [0, 64], sizes = [24, 32], strides = [1, 1]} : vector<24x128xf32> to vector<24x32xf32>
    %610 = arith.mulf %607, %342 : vector<24x32xf32>
    %611 = vector.extract_strided_slice %607 {offsets = [0, 16], sizes = [24, 16], strides = [1, 1]} : vector<24x32xf32> to vector<24x16xf32>
    %612 = vector.extract_strided_slice %607 {offsets = [0, 0], sizes = [24, 16], strides = [1, 1]} : vector<24x32xf32> to vector<24x16xf32>
    %613 = tpu.concatenate %611, %612 in 1 : vector<24x16xf32>, vector<24x16xf32> -> vector<24x32xf32>
    %614 = arith.mulf %613, %343 : vector<24x32xf32>
    %615 = arith.addf %610, %614 : vector<24x32xf32>
    %616 = arith.mulf %608, %342 : vector<24x32xf32>
    %617 = vector.extract_strided_slice %608 {offsets = [0, 16], sizes = [24, 16], strides = [1, 1]} : vector<24x32xf32> to vector<24x16xf32>
    %618 = vector.extract_strided_slice %608 {offsets = [0, 0], sizes = [24, 16], strides = [1, 1]} : vector<24x32xf32> to vector<24x16xf32>
    %619 = tpu.concatenate %617, %618 in 1 : vector<24x16xf32>, vector<24x16xf32> -> vector<24x32xf32>
    %620 = arith.mulf %619, %343 : vector<24x32xf32>
    %621 = arith.addf %616, %620 : vector<24x32xf32>
    %622 = tpu.transpose %621, [1, 0] : vector<24x32xf32> -> vector<32x24xf32>
    %cst_218 = arith.constant dense<0.000000e+00> : vector<24x24xf32>
    %623 = tpu.matmul %615, %622, %cst_218 {dimension_numbers = #tpu.dot_dimension_numbers<[1], [0], [0], [1], [0, 0, 1, 1], [], []>} : vector<24x32xf32>, vector<32x24xf32>, vector<24x24xf32> -> vector<24x24xf32>
    %cst_219 = arith.constant -1.000000e+09 : f32
    %624 = vector.broadcast %cst_219 : f32 to vector<24x24xf32>
    %625 = arith.select %346, %623, %624 : vector<24x24xi1>, vector<24x24xf32>
    %cst_220 = arith.constant dense<0xFF800000> : vector<24xf32>
    %626 = vector.multi_reduction <maximumf>, %625, %cst_220 [1] : vector<24x24xf32> to vector<24xf32>
    %627 = vector.shape_cast %626 : vector<24xf32> to vector<24x1xf32>
    %628 = vector.broadcast %627 : vector<24x1xf32> to vector<24x24xf32>
    %629 = arith.subf %625, %628 : vector<24x24xf32>
    %630 = math.exp %629 : vector<24x24xf32>
    %cst_221 = arith.constant dense<0.000000e+00> : vector<24xf32>
    %631 = vector.multi_reduction <add>, %630, %cst_221 [1] : vector<24x24xf32> to vector<24xf32>
    %632 = vector.shape_cast %631 : vector<24xf32> to vector<24x1xf32>
    %633 = tpu.reciprocal %632 {approx = true} : vector<24x1xf32> -> vector<24x1xf32>
    %634 = vector.broadcast %633 : vector<24x1xf32> to vector<24x24xf32>
    %635 = arith.mulf %630, %634 : vector<24x24xf32>
    %cst_222 = arith.constant dense<0.000000e+00> : vector<24x32xf32>
    %636 = tpu.matmul %635, %609, %cst_222 {dimension_numbers = #tpu.dot_dimension_numbers<[1], [0], [0], [1], [0, 0, 1, 1], [], []>} : vector<24x24xf32>, vector<24x32xf32>, vector<24x32xf32> -> vector<24x32xf32>
    %637 = vector.extract_strided_slice %544 {offsets = [0, 96], sizes = [24, 32], strides = [1, 1]} : vector<24x128xf32> to vector<24x32xf32>
    %638 = vector.extract_strided_slice %545 {offsets = [0, 96], sizes = [24, 32], strides = [1, 1]} : vector<24x128xf32> to vector<24x32xf32>
    %639 = vector.extract_strided_slice %546 {offsets = [0, 96], sizes = [24, 32], strides = [1, 1]} : vector<24x128xf32> to vector<24x32xf32>
    %640 = arith.mulf %637, %342 : vector<24x32xf32>
    %641 = vector.extract_strided_slice %637 {offsets = [0, 16], sizes = [24, 16], strides = [1, 1]} : vector<24x32xf32> to vector<24x16xf32>
    %642 = vector.extract_strided_slice %637 {offsets = [0, 0], sizes = [24, 16], strides = [1, 1]} : vector<24x32xf32> to vector<24x16xf32>
    %643 = tpu.concatenate %641, %642 in 1 : vector<24x16xf32>, vector<24x16xf32> -> vector<24x32xf32>
    %644 = arith.mulf %643, %343 : vector<24x32xf32>
    %645 = arith.addf %640, %644 : vector<24x32xf32>
    %646 = arith.mulf %638, %342 : vector<24x32xf32>
    %647 = vector.extract_strided_slice %638 {offsets = [0, 16], sizes = [24, 16], strides = [1, 1]} : vector<24x32xf32> to vector<24x16xf32>
    %648 = vector.extract_strided_slice %638 {offsets = [0, 0], sizes = [24, 16], strides = [1, 1]} : vector<24x32xf32> to vector<24x16xf32>
    %649 = tpu.concatenate %647, %648 in 1 : vector<24x16xf32>, vector<24x16xf32> -> vector<24x32xf32>
    %650 = arith.mulf %649, %343 : vector<24x32xf32>
    %651 = arith.addf %646, %650 : vector<24x32xf32>
    %652 = tpu.transpose %651, [1, 0] : vector<24x32xf32> -> vector<32x24xf32>
    %cst_223 = arith.constant dense<0.000000e+00> : vector<24x24xf32>
    %653 = tpu.matmul %645, %652, %cst_223 {dimension_numbers = #tpu.dot_dimension_numbers<[1], [0], [0], [1], [0, 0, 1, 1], [], []>} : vector<24x32xf32>, vector<32x24xf32>, vector<24x24xf32> -> vector<24x24xf32>
    %cst_224 = arith.constant -1.000000e+09 : f32
    %654 = vector.broadcast %cst_224 : f32 to vector<24x24xf32>
    %655 = arith.select %346, %653, %654 : vector<24x24xi1>, vector<24x24xf32>
    %cst_225 = arith.constant dense<0xFF800000> : vector<24xf32>
    %656 = vector.multi_reduction <maximumf>, %655, %cst_225 [1] : vector<24x24xf32> to vector<24xf32>
    %657 = vector.shape_cast %656 : vector<24xf32> to vector<24x1xf32>
    %658 = vector.broadcast %657 : vector<24x1xf32> to vector<24x24xf32>
    %659 = arith.subf %655, %658 : vector<24x24xf32>
    %660 = math.exp %659 : vector<24x24xf32>
    %cst_226 = arith.constant dense<0.000000e+00> : vector<24xf32>
    %661 = vector.multi_reduction <add>, %660, %cst_226 [1] : vector<24x24xf32> to vector<24xf32>
    %662 = vector.shape_cast %661 : vector<24xf32> to vector<24x1xf32>
    %663 = tpu.reciprocal %662 {approx = true} : vector<24x1xf32> -> vector<24x1xf32>
    %664 = vector.broadcast %663 : vector<24x1xf32> to vector<24x24xf32>
    %665 = arith.mulf %660, %664 : vector<24x24xf32>
    %cst_227 = arith.constant dense<0.000000e+00> : vector<24x32xf32>
    %666 = tpu.matmul %665, %639, %cst_227 {dimension_numbers = #tpu.dot_dimension_numbers<[1], [0], [0], [1], [0, 0, 1, 1], [], []>} : vector<24x24xf32>, vector<24x32xf32>, vector<24x32xf32> -> vector<24x32xf32>
    %667 = tpu.concatenate %576, %606, %636, %666 in 1 : vector<24x32xf32>, vector<24x32xf32>, vector<24x32xf32>, vector<24x32xf32> -> vector<24x128xf32>
    %c1_228 = arith.constant 1 : index
    %c0_229 = arith.constant 0 : index
    %c0_230 = arith.constant 0 : index
    %668 = vector.load %arg25[%c1_228, %c0_229, %c0_230] : memref<2x128x128xbf16, #tpu.memory_space<vmem>>, vector<1x128x128xbf16>
    %669 = vector.shape_cast %668 : vector<1x128x128xbf16> to vector<128x128xbf16>
    %670 = arith.truncf %667 : vector<24x128xf32> to vector<24x128xbf16>
    %cst_231 = arith.constant dense<0.000000e+00> : vector<24x128xf32>
    %671 = tpu.matmul %670, %669, %cst_231 {dimension_numbers = #tpu.dot_dimension_numbers<[1], [0], [0], [1], [0, 0, 1, 1], [], []>} : vector<24x128xbf16>, vector<128x128xbf16>, vector<24x128xf32> -> vector<24x128xf32>
    %672 = arith.addf %525, %671 : vector<24x128xf32>
    %c1_232 = arith.constant 1 : index
    %c0_233 = arith.constant 0 : index
    %c0_234 = arith.constant 0 : index
    %673 = vector.load %arg26[%c1_232, %c0_233, %c0_234] : memref<2x1x128xf32, #tpu.memory_space<vmem>>, vector<1x1x128xf32>
    %674 = vector.shape_cast %673 : vector<1x1x128xf32> to vector<1x128xf32>
    %675 = arith.mulf %672, %672 : vector<24x128xf32>
    %cst_235 = arith.constant dense<0.000000e+00> : vector<24xf32>
    %676 = vector.multi_reduction <add>, %675, %cst_235 [1] : vector<24x128xf32> to vector<24xf32>
    %677 = vector.shape_cast %676 : vector<24xf32> to vector<24x1xf32>
    %cst_236 = arith.constant 1.280000e+02 : f32
    %678 = vector.broadcast %cst_236 : f32 to vector<24x1xf32>
    %679 = arith.divf %677, %678 : vector<24x1xf32>
    %cst_237 = arith.constant 9.99999997E-7 : f32
    %680 = vector.broadcast %cst_237 : f32 to vector<24x1xf32>
    %681 = arith.addf %679, %680 : vector<24x1xf32>
    %682 = math.rsqrt %681 : vector<24x1xf32>
    %683 = vector.broadcast %682 : vector<24x1xf32> to vector<24x128xf32>
    %684 = arith.mulf %672, %683 : vector<24x128xf32>
    %685 = vector.broadcast %674 : vector<1x128xf32> to vector<24x128xf32>
    %686 = arith.mulf %684, %685 : vector<24x128xf32>
    %c1_238 = arith.constant 1 : index
    %c0_239 = arith.constant 0 : index
    %c0_240 = arith.constant 0 : index
    %687 = vector.load %arg27[%c1_238, %c0_239, %c0_240] : memref<2x128x512xbf16, #tpu.memory_space<vmem>>, vector<1x128x512xbf16>
    %688 = vector.shape_cast %687 : vector<1x128x512xbf16> to vector<128x512xbf16>
    %689 = arith.truncf %686 : vector<24x128xf32> to vector<24x128xbf16>
    %cst_241 = arith.constant dense<0.000000e+00> : vector<24x512xf32>
    %690 = tpu.matmul %689, %688, %cst_241 {dimension_numbers = #tpu.dot_dimension_numbers<[1], [0], [0], [1], [0, 0, 1, 1], [], []>} : vector<24x128xbf16>, vector<128x512xbf16>, vector<24x512xf32> -> vector<24x512xf32>
    %691 = vector.extract_strided_slice %690 {offsets = [0, 0], sizes = [24, 256], strides = [1, 1]} : vector<24x512xf32> to vector<24x256xf32>
    %692 = vector.extract_strided_slice %690 {offsets = [0, 256], sizes = [24, 256], strides = [1, 1]} : vector<24x512xf32> to vector<24x256xf32>
    %693 = arith.negf %691 : vector<24x256xf32>
    %694 = math.exp %693 : vector<24x256xf32>
    %cst_242 = arith.constant 1.000000e+00 : f32
    %695 = vector.broadcast %cst_242 : f32 to vector<24x256xf32>
    %696 = arith.addf %695, %694 : vector<24x256xf32>
    %697 = arith.divf %695, %696 : vector<24x256xf32>
    %698 = arith.mulf %691, %697 : vector<24x256xf32>
    %699 = arith.mulf %698, %692 : vector<24x256xf32>
    %c1_243 = arith.constant 1 : index
    %c0_244 = arith.constant 0 : index
    %c0_245 = arith.constant 0 : index
    %700 = vector.load %arg28[%c1_243, %c0_244, %c0_245] : memref<2x256x128xbf16, #tpu.memory_space<vmem>>, vector<1x256x128xbf16>
    %701 = vector.shape_cast %700 : vector<1x256x128xbf16> to vector<256x128xbf16>
    %702 = arith.truncf %699 : vector<24x256xf32> to vector<24x256xbf16>
    %cst_246 = arith.constant dense<0.000000e+00> : vector<24x128xf32>
    %703 = tpu.matmul %702, %701, %cst_246 {dimension_numbers = #tpu.dot_dimension_numbers<[1], [0], [0], [1], [0, 0, 1, 1], [], []>} : vector<24x256xbf16>, vector<256x128xbf16>, vector<24x128xf32> -> vector<24x128xf32>
    %704 = arith.addf %672, %703 : vector<24x128xf32>
    %c0_247 = arith.constant 0 : index
    %c0_248 = arith.constant 0 : index
    %705 = vector.load %arg29[%c0_247, %c0_248] : memref<1x128xf32, #tpu.memory_space<vmem>>, vector<1x128xf32>
    %706 = arith.mulf %704, %704 : vector<24x128xf32>
    %cst_249 = arith.constant dense<0.000000e+00> : vector<24xf32>
    %707 = vector.multi_reduction <add>, %706, %cst_249 [1] : vector<24x128xf32> to vector<24xf32>
    %708 = vector.shape_cast %707 : vector<24xf32> to vector<24x1xf32>
    %cst_250 = arith.constant 1.280000e+02 : f32
    %709 = vector.broadcast %cst_250 : f32 to vector<24x1xf32>
    %710 = arith.divf %708, %709 : vector<24x1xf32>
    %cst_251 = arith.constant 9.99999997E-7 : f32
    %711 = vector.broadcast %cst_251 : f32 to vector<24x1xf32>
    %712 = arith.addf %710, %711 : vector<24x1xf32>
    %713 = math.rsqrt %712 : vector<24x1xf32>
    %714 = vector.broadcast %713 : vector<24x1xf32> to vector<24x128xf32>
    %715 = arith.mulf %704, %714 : vector<24x128xf32>
    %716 = vector.broadcast %705 : vector<1x128xf32> to vector<24x128xf32>
    %717 = arith.mulf %715, %716 : vector<24x128xf32>
    %c0_252 = arith.constant 0 : index
    %c0_253 = arith.constant 0 : index
    %718 = vector.load %arg30[%c0_252, %c0_253] : memref<128x512xbf16, #tpu.memory_space<vmem>>, vector<128x512xbf16>
    %719 = arith.truncf %717 : vector<24x128xf32> to vector<24x128xbf16>
    %cst_254 = arith.constant dense<0.000000e+00> : vector<24x512xf32>
    %720 = tpu.matmul %719, %718, %cst_254 {dimension_numbers = #tpu.dot_dimension_numbers<[1], [0], [0], [1], [0, 0, 1, 1], [], []>} : vector<24x128xbf16>, vector<128x512xbf16>, vector<24x512xf32> -> vector<24x512xf32>
    %c0_255 = arith.constant 0 : index
    %c0_256 = arith.constant 0 : index
    %c0_257 = arith.constant 0 : index
    %721 = vector.load %arg31[%c0_255, %c0_256, %c0_257] : memref<1x24x512xf32, #tpu.memory_space<vmem>>, vector<1x24x512xf32>
    %722 = vector.shape_cast %721 : vector<1x24x512xf32> to vector<24x512xf32>
    %723 = vector.shape_cast %720 : vector<24x512xf32> to vector<1x24x512xf32>
    tpu.vector_store %arg31[%c0_255, %c0_256, %c0_257], %723 {strides = array<i32>} : memref<1x24x512xf32, #tpu.memory_space<vmem>>, vector<1x24x512xf32>,
    return
  }
  func.func @transform_0(%arg0: i32) -> (i32, i32, i32) {
    %c0_i32 = arith.constant 0 : i32
    %c0_i32_0 = arith.constant 0 : i32
    %c0_i32_1 = arith.constant 0 : i32
    return %arg0, %c0_i32, %c0_i32_0 : i32, i32, i32
  }
  func.func @transform_1(%arg0: i32) -> (i32, i32, i32) {
    %c0_i32 = arith.constant 0 : i32
    %c0_i32_0 = arith.constant 0 : i32
    %c0_i32_1 = arith.constant 0 : i32
    return %arg0, %c0_i32, %c0_i32_0 : i32, i32, i32
  }
  func.func @transform_2(%arg0: i32) -> (i32, i32) {
    %c0_i32 = arith.constant 0 : i32
    %c0_i32_0 = arith.constant 0 : i32
    %c0_i32_1 = arith.constant 0 : i32
    return %c0_i32, %c0_i32_0 : i32, i32
  }
  func.func @transform_3(%arg0: i32) -> (i32, i32) {
    %c0_i32 = arith.constant 0 : i32
    %c0_i32_0 = arith.constant 0 : i32
    %c0_i32_1 = arith.constant 0 : i32
    return %c0_i32, %c0_i32_0 : i32, i32
  }
  func.func @transform_4(%arg0: i32) -> (i32, i32) {
    %c0_i32 = arith.constant 0 : i32
    %c0_i32_0 = arith.constant 0 : i32
    %c0_i32_1 = arith.constant 0 : i32
    return %c0_i32, %c0_i32_0 : i32, i32
  }
  func.func @transform_5(%arg0: i32) -> (i32, i32) {
    %c0_i32 = arith.constant 0 : i32
    %c0_i32_0 = arith.constant 0 : i32
    %c0_i32_1 = arith.constant 0 : i32
    return %c0_i32, %c0_i32_0 : i32, i32
  }
  func.func @transform_6(%arg0: i32) -> (i32, i32) {
    %c0_i32 = arith.constant 0 : i32
    %c0_i32_0 = arith.constant 0 : i32
    %c0_i32_1 = arith.constant 0 : i32
    return %c0_i32, %c0_i32_0 : i32, i32
  }
  func.func @transform_7(%arg0: i32) -> (i32, i32, i32) {
    %c0_i32 = arith.constant 0 : i32
    %c0_i32_0 = arith.constant 0 : i32
    %c0_i32_1 = arith.constant 0 : i32
    %c0_i32_2 = arith.constant 0 : i32
    return %c0_i32, %c0_i32_0, %c0_i32_1 : i32, i32, i32
  }
  func.func @transform_8(%arg0: i32) -> (i32, i32, i32) {
    %c0_i32 = arith.constant 0 : i32
    %c0_i32_0 = arith.constant 0 : i32
    %c0_i32_1 = arith.constant 0 : i32
    %c0_i32_2 = arith.constant 0 : i32
    return %c0_i32, %c0_i32_0, %c0_i32_1 : i32, i32, i32
  }
  func.func @transform_9(%arg0: i32) -> (i32, i32, i32) {
    %c0_i32 = arith.constant 0 : i32
    %c0_i32_0 = arith.constant 0 : i32
    %c0_i32_1 = arith.constant 0 : i32
    %c0_i32_2 = arith.constant 0 : i32
    return %c0_i32, %c0_i32_0, %c0_i32_1 : i32, i32, i32
  }
  func.func @transform_10(%arg0: i32) -> (i32, i32, i32) {
    %c0_i32 = arith.constant 0 : i32
    %c0_i32_0 = arith.constant 0 : i32
    %c0_i32_1 = arith.constant 0 : i32
    %c0_i32_2 = arith.constant 0 : i32
    return %c0_i32, %c0_i32_0, %c0_i32_1 : i32, i32, i32
  }
  func.func @transform_11(%arg0: i32) -> (i32, i32, i32) {
    %c0_i32 = arith.constant 0 : i32
    %c0_i32_0 = arith.constant 0 : i32
    %c0_i32_1 = arith.constant 0 : i32
    %c0_i32_2 = arith.constant 0 : i32
    return %c0_i32, %c0_i32_0, %c0_i32_1 : i32, i32, i32
  }
  func.func @transform_12(%arg0: i32) -> (i32, i32, i32) {
    %c0_i32 = arith.constant 0 : i32
    %c0_i32_0 = arith.constant 0 : i32
    %c0_i32_1 = arith.constant 0 : i32
    %c0_i32_2 = arith.constant 0 : i32
    return %c0_i32, %c0_i32_0, %c0_i32_1 : i32, i32, i32
  }
  func.func @transform_13(%arg0: i32) -> (i32, i32, i32) {
    %c0_i32 = arith.constant 0 : i32
    %c0_i32_0 = arith.constant 0 : i32
    %c0_i32_1 = arith.constant 0 : i32
    %c0_i32_2 = arith.constant 0 : i32
    return %c0_i32, %c0_i32_0, %c0_i32_1 : i32, i32, i32
  }
  func.func @transform_14(%arg0: i32) -> (i32, i32, i32) {
    %c0_i32 = arith.constant 0 : i32
    %c0_i32_0 = arith.constant 0 : i32
    %c0_i32_1 = arith.constant 0 : i32
    %c0_i32_2 = arith.constant 0 : i32
    return %c0_i32, %c0_i32_0, %c0_i32_1 : i32, i32, i32
  }
  func.func @transform_15(%arg0: i32) -> (i32, i32, i32) {
    %c0_i32 = arith.constant 0 : i32
    %c0_i32_0 = arith.constant 0 : i32
    %c0_i32_1 = arith.constant 0 : i32
    %c0_i32_2 = arith.constant 0 : i32
    return %c0_i32, %c0_i32_0, %c0_i32_1 : i32, i32, i32
  }
  func.func @transform_16(%arg0: i32) -> (i32, i32, i32) {
    %c0_i32 = arith.constant 0 : i32
    %c0_i32_0 = arith.constant 0 : i32
    %c0_i32_1 = arith.constant 0 : i32
    %c0_i32_2 = arith.constant 0 : i32
    return %c0_i32, %c0_i32_0, %c0_i32_1 : i32, i32, i32
  }
  func.func @transform_17(%arg0: i32) -> (i32, i32) {
    %c0_i32 = arith.constant 0 : i32
    %c0_i32_0 = arith.constant 0 : i32
    %c0_i32_1 = arith.constant 0 : i32
    return %c0_i32, %c0_i32_0 : i32, i32
  }
  func.func @transform_18(%arg0: i32) -> (i32, i32) {
    %c0_i32 = arith.constant 0 : i32
    %c0_i32_0 = arith.constant 0 : i32
    %c0_i32_1 = arith.constant 0 : i32
    return %c0_i32, %c0_i32_0 : i32, i32
  }
  func.func @transform_19(%arg0: i32) -> (i32, i32) {
    %c0_i32 = arith.constant 0 : i32
    %c0_i32_0 = arith.constant 0 : i32
    %c0_i32_1 = arith.constant 0 : i32
    return %c0_i32, %c0_i32_0 : i32, i32
  }
  func.func @transform_20(%arg0: i32) -> (i32, i32) {
    %c0_i32 = arith.constant 0 : i32
    %c0_i32_0 = arith.constant 0 : i32
    %c0_i32_1 = arith.constant 0 : i32
    return %c0_i32, %c0_i32_0 : i32, i32
  }
  func.func @transform_21(%arg0: i32) -> (i32, i32) {
    %c0_i32 = arith.constant 0 : i32
    %c0_i32_0 = arith.constant 0 : i32
    %c0_i32_1 = arith.constant 0 : i32
    return %c0_i32, %c0_i32_0 : i32, i32
  }
  func.func @transform_22(%arg0: i32) -> (i32, i32, i32) {
    %c0_i32 = arith.constant 0 : i32
    %c0_i32_0 = arith.constant 0 : i32
    %c0_i32_1 = arith.constant 0 : i32
    %c0_i32_2 = arith.constant 0 : i32
    return %c0_i32, %c0_i32_0, %c0_i32_1 : i32, i32, i32
  }
  func.func @transform_23(%arg0: i32) -> (i32, i32, i32) {
    %c0_i32 = arith.constant 0 : i32
    %c0_i32_0 = arith.constant 0 : i32
    %c0_i32_1 = arith.constant 0 : i32
    %c0_i32_2 = arith.constant 0 : i32
    return %c0_i32, %c0_i32_0, %c0_i32_1 : i32, i32, i32
  }
  func.func @transform_24(%arg0: i32) -> (i32, i32, i32) {
    %c0_i32 = arith.constant 0 : i32
    %c0_i32_0 = arith.constant 0 : i32
    %c0_i32_1 = arith.constant 0 : i32
    %c0_i32_2 = arith.constant 0 : i32
    return %c0_i32, %c0_i32_0, %c0_i32_1 : i32, i32, i32
  }
  func.func @transform_25(%arg0: i32) -> (i32, i32, i32) {
    %c0_i32 = arith.constant 0 : i32
    %c0_i32_0 = arith.constant 0 : i32
    %c0_i32_1 = arith.constant 0 : i32
    %c0_i32_2 = arith.constant 0 : i32
    return %c0_i32, %c0_i32_0, %c0_i32_1 : i32, i32, i32
  }
  func.func @transform_26(%arg0: i32) -> (i32, i32, i32) {
    %c0_i32 = arith.constant 0 : i32
    %c0_i32_0 = arith.constant 0 : i32
    %c0_i32_1 = arith.constant 0 : i32
    %c0_i32_2 = arith.constant 0 : i32
    return %c0_i32, %c0_i32_0, %c0_i32_1 : i32, i32, i32
  }
  func.func @transform_27(%arg0: i32) -> (i32, i32, i32) {
    %c0_i32 = arith.constant 0 : i32
    %c0_i32_0 = arith.constant 0 : i32
    %c0_i32_1 = arith.constant 0 : i32
    %c0_i32_2 = arith.constant 0 : i32
    return %c0_i32, %c0_i32_0, %c0_i32_1 : i32, i32, i32
  }
  func.func @transform_28(%arg0: i32) -> (i32, i32) {
    %c0_i32 = arith.constant 0 : i32
    %c0_i32_0 = arith.constant 0 : i32
    %c0_i32_1 = arith.constant 0 : i32
    return %c0_i32, %c0_i32_0 : i32, i32
  }
  func.func @transform_29(%arg0: i32) -> (i32, i32) {
    %c0_i32 = arith.constant 0 : i32
    %c0_i32_0 = arith.constant 0 : i32
    %c0_i32_1 = arith.constant 0 : i32
    return %c0_i32, %c0_i32_0 : i32, i32
  }
  func.func @transform_30(%arg0: i32) -> (i32, i32, i32) {
    %c0_i32 = arith.constant 0 : i32
    %c0_i32_0 = arith.constant 0 : i32
    %c0_i32_1 = arith.constant 0 : i32
    return %arg0, %c0_i32, %c0_i32_0 : i32, i32, i32
  }
}

</mosaic_0001>

<bundles_post_ra>
// kernel: llava_forward.1
= control target key start
LH: loop header
LB: loop body
LE: loop exit
PB: predicated region body
PF: predicated region fallthrough
CT: control target
= control target key end

     0   :  { %s11417_s6 = smov 1   ;;  %s11418_s10 = smov 2   ;;  %s13591_s0 = inlined_call_operand.smem [shape: u32[31], index: -1, kind: input, shape index: {}] }
   0x1   :  { %s11492_s5 = sld [smem:[%s13591_s0]]   ;;  %s11419_s14 = smov 3  }
   0x2   :  { %s11497_s9 = sld [smem:[%s13591_s0 + %s11417_s6]]   ;;  %s11420_s18 = smov 4  }
   0x3   :  { %s11502_s13 = sld [smem:[%s13591_s0 + %s11418_s10]]   ;;  %s11421_s22 = smov 5  }
   0x4   :  { %s11507_s17 = sld [smem:[%s13591_s0 + %s11419_s14]]   ;;  %s11422_s26 = smov 6  }
   0x5   :  { %s11512_s21 = sld [smem:[%s13591_s0 + %s11420_s18]]   ;;  %s11423_s30 = smov 7  }
   0x6   :  { %s11517_s25 = sld [smem:[%s13591_s0 + %s11421_s22]]   ;;  %s11424_s4 = smov 8  }
   0x7   :  { %13644 = sst [smem:[#allocation40_spill]] %s11492_s5  ;;  %s11425_s10 = smov 9  }
   0x8   :  { %13645 = sst [smem:[#allocation41_spill]] %s11497_s9  ;;  %s11426_s15 = smov 10  }
   0x9   :  { %13646 = sst [smem:[#allocation42_spill]] %s11502_s13  ;;  %s11427_s20 = smov 11  }
   0xa   :  { %13647 = sst [smem:[#allocation43_spill]] %s11507_s17  ;;  %s11429_s1 = smov 13  }
   0xb   :  { %s11522_s29 = sld [smem:[%s13591_s0 + %s11422_s26]]   ;;  %s11428_s26 = smov 12  }
   0xc   :  { %13648 = sst [smem:[#allocation44_spill]] %s11517_s25  ;;  %s11430_s7 = smov 14  }
   0xd   :  { %s11527_s3 = sld [smem:[%s13591_s0 + %s11423_s30]]   ;;  %s11432_s22 = smov 16  }
   0xe   :  { %s11532_s8 = sld [smem:[%s13591_s0 + %s11424_s4]]   ;;  %s11433_s28 = smov 17  }
   0xf   :  { %s11537_s14 = sld [smem:[%s13591_s0 + %s11425_s10]]  }
  0x10   :  { %s11542_s19 = sld [smem:[%s13591_s0 + %s11426_s15]]   ;;  %s11431_s15 = smov 15  }
  0x11   :  { %13649 = sst [smem:[#allocation45_spill]] %s11522_s29 }
  0x12   :  { %s11547_s24 = sld [smem:[%s13591_s0 + %s11427_s20]]  }
  0x13   :  { %13650 = sst [smem:[#allocation46_spill]] %s11527_s3 }
  0x14   :  { %13651 = sst [smem:[#allocation47_spill]] %s11532_s8 }
  0x15   :  { %s11552_s30 = sld [smem:[%s13591_s0 + %s11428_s26]]  }
  0x16   :  { %13652 = sst [smem:[#allocation48_spill]] %s11542_s19 }
  0x17   :  { %s11557_s6 = sld [smem:[%s13591_s0 + %s11429_s1]]  }
  0x18   :  { %13653 = sst [smem:[#allocation49_spill]] %s11547_s24 }
  0x19   :  { %s11562_s12 = sld [smem:[%s13591_s0 + %s11430_s7]]   ;;  %s11434_s7 = smov 18  }
  0x1a   :  { %s11567_s20 = sld [smem:[%s13591_s0 + %s11431_s15]]   ;;  %s11435_s15 = smov 19  }
  0x1b   :  { %s11572_s27 = sld [smem:[%s13591_s0 + %s11432_s22]]   ;;  %s11436_s22 = smov 20  }
  0x1c   :  { %s11577_s4 = sld [smem:[%s13591_s0 + %s11433_s28]]   ;;  %s11437_s28 = smov 21  }
  0x1d   :  { %13654 = sst [smem:[#allocation50_spill]] %s11557_s6 }
  0x1e   :  { %s11582_s17 = sld [smem:[%s13591_s0 + %s11434_s7]]   ;;  %s11438_s7 = smov 22  }
  0x1f   :  { %s11587_s13 = sld [smem:[%s13591_s0 + %s11435_s15]]   ;;  %s11439_s15 = smov 23  }
  0x20   :  { %13655 = sst [smem:[#allocation51_spill]] %s11567_s20 }
  0x21   :  { %s11592_s9 = sld [smem:[%s13591_s0 + %s11436_s22]]   ;;  %s11440_s22 = smov 24  }
  0x22   :  { %13656 = sst [smem:[#allocation52_spill]] %s11577_s4 }
  0x23   :  { %s11597_s20 = sld [smem:[%s13591_s0 + %s11437_s28]]   ;;  %s11441_s28 = smov 25  }
  0x24   :  { %13657 = sst [smem:[#allocation53_spill]] %s11582_s17 }
  0x25   :  { %s11602_s17 = sld [smem:[%s13591_s0 + %s11438_s7]]   ;;  %s11442_s7 = smov 26  }
  0x26   :  { %s11607_s24 = sld [smem:[%s13591_s0 + %s11439_s15]]   ;;  %s11443_s15 = smov 27  }
  0x27   :  { %13658 = sst [smem:[#allocation54_spill]] %s11592_s9 }
  0x28   :  { %s11612_s3 = sld [smem:[%s13591_s0 + %s11440_s22]]   ;;  %s11444_s22 = smov 28  }
  0x29   :  { %s11617_s8 = sld [smem:[%s13591_s0 + %s11441_s28]]   ;;  %s11445_s28 = smov 29  }
  0x2a   :  { %s11622_s29 = sld [smem:[%s13591_s0 + %s11442_s7]]   ;;  %s11446_s7 = smov 30  }
  0x2b   :  { %s11632_s5 = sld [smem:[%s13591_s0 + %s11444_s22]]  }
  0x2c   :  { %13659 = sst [smem:[#allocation55_spill]] %s11607_s24 }
  0x2d   :  { %s11627_s24 = sld [smem:[%s13591_s0 + %s11443_s15]]  }
  0x2e   :  { %13660 = sst [smem:[#allocation56_spill]] %s11612_s3 }
  0x2f   :  { %13661 = sst [smem:[#allocation57_spill]] %s11617_s8 }
  0x30   :  { %13662 = sst [smem:[#allocation58_spill]] %s11622_s29 }
  0x31   :  { %13663 = sst [smem:[#allocation59_spill]] %s11632_s5 }
  0x32   :  { %s11637_s8 = sld [smem:[%s13591_s0 + %s11445_s28]]  }
  0x33   :  { %s11642_s29 = sld [smem:[%s13591_s0 + %s11446_s7]]  }
  0x38   :  { %13664 = sst [smem:[#allocation60_spill]] %s11637_s8 }
  0x39   :  { %66 = vsyncpa [#allocation3], 0 }
  0x3a   :  { %67 = vsyncpa [#allocation6], 0 }
  0x3b   :  { %68 = vsyncpa [#allocation9], 0 }
  0x3c   :  { %69 = vsyncpa [#allocation12], 0 }
  0x3d   :  { %70 = vsyncpa [#allocation15], 0 }
  0x3e   :  { %71 = vsyncpa [#allocation18], 0 }
  0x3f   :  { %72 = vsyncpa [#allocation21], 0 }
  0x40   :  { %73 = vsyncpa [#allocation24], 0 }
  0x41   :  { %74 = vsyncpa [#allocation27], 0 }
  0x42   :  { %75 = vsyncpa [#allocation4], 0 }
  0x43   :  { %77 = vsyncpa [#allocation4 + $0x1], 0  ;;  %s11644_s15 = smov 0   ;;  %s11646_s16 = smov 0  }
  0x44   :  { %s11648_s18 = smov 0   ;;  %s11650_s22 = smov 0  }
  0x45   :  { %13665 = sst [smem:[#allocation61_spill]] %s11648_s18 }
  0x46 LB: > { %s13667_s9 = sld [smem:[#allocation54_spill]]  ;;  %s13668_s8 = sld [smem:[#allocation60_spill]]  ;;  %s11415_s22 = sphi %s11650_s22, %s13746_s22   ;;  %s11407_s16 = sphi %s11646_s16, %s13750_s16   ;;  %s11403_s15 = sphi %s11644_s15, %s13749_s15  }
  0x47   : > { %s13669_s6 = sld [smem:[#allocation50_spill]]  ;;  %s13670_s5 = sld [smem:[#allocation59_spill]] }
  0x48   : > { %s13671_s4 = sld [smem:[#allocation52_spill]]  ;;  %s13672_s3 = sld [smem:[#allocation56_spill]] }
  0x49   : > { %s13673_s25 = sld [smem:[#allocation44_spill]]  ;;  %s13674_s19 = sld [smem:[#allocation48_spill]] }
  0x4a   : > { %s13675_s18 = sld [smem:[#allocation61_spill]]  ;;  %13678 = sst [smem:[#allocation63_spill]] %s11415_s22 }
  0x4b   : > { %13676 = sst [smem:[#allocation61_spill]] %s11403_s15  ;;  %s11665_s0 = sadd.s32 4294967295, %s11415_s22  }
  0x4c   : > { %s8441_s23 = sadd.s32 4294967294, %s11415_s22   ;;  %s11669_s26 = sadd.s32 1, %s11415_s22  }
  0x4d   : > { %13679 = sst [smem:[#allocation64_spill]] %s11669_s26  ;;  %s727_s1 = ssub.s32 %s11415_s22, %s11669_s26 }
  0x4e   : > { %p728_p1 = scmp.eq.s32.totalorder %s727_s1, 0  ;;  %p741_p2 = scmp.eq.s32.totalorder %s11665_s0, 1 }
  0x4f   : > { %p746_p3 = scmp.ne.s32.totalorder %s11407_s16, %s11403_s15  ;;  %p747_p4 = scmp.eq.s32.totalorder %s8441_s23, 1 }
  0x50   : > { %13677 = sst [smem:[#allocation62_spill]] %s13675_s18  ;;  %s730_s28 = sadd.s32 1, %s13675_s18 }
  0x51   : > { %p740_p0 = scmp.ne.s32.totalorder %s13675_s18, %s11407_s16  ;;  %p11686_p6 = por %p747_p4, %p746_p3 }
  0x52   : > { %s11680_s2 = scalar_select %p728_p1, %s13675_s18, %s730_s28  }
  0x53   : > { %p11682_p5 = por %p741_p2, %p740_p0  ;;  %p8442_p7 = scmp.ge.s32.totalorder %s11415_s22, 1 }
  0x54   : > { %13680 = sst [smem:[#allocation65_spill]] %s11680_s2  ;;  %p754_p8 = scmp.lt.s32.totalorder %s11415_s22, 3 }
  0x55   : > { %s13681_s7 = scalar_select %p11682_p5, 1, 0 }
  0x56   : > { %s13682_s10 = scalar_select %p11686_p6, 1, 0 }
  0x57   : > { %p13608_p9 = scmp.eq.s32.totalorder %s11665_s0, 0  ;;  %p11693_p10 = pnand %p8442_p7, %p754_p8 }
  0x58   : > { %13683 = sst [smem:[#allocation66_spill]] %s13682_s10  ;;  %s11447_s23 = smov [#allocation5]  }
  0x59   : > { %s13684_s11 = scalar_select %p11693_p10, 1, 0 }
  0x5a   : > { %s786_s28 = sshll.u32 %s11447_s23, 4  ;;  %p9950_p11 = pneg %p11693_p10  ;;  %s787_s28 = int_to_ptr.vmem [resolvable:$true] %s786_s28 }
  0x5b   : > { %s11448_s2 = smov [#allocation8]   ;;  %s11449_s26 = smov [#allocation11]  }
  0x5c   : > { %p11701_p12 = pnand %p13608_p9, %p9950_p11  ;;  %s818_s18 = sshll.u32 %s11448_s2, 4  ;;  %s11705_s18 = int_to_ptr.vmem [resolvable:$true] %s818_s18 }
  0x5d   : > { %s11707_s10 = sshll.u32 %s11449_s26, 4  ;;  %s10841_s15 = scalar_lea.hbm %s13673_s25, 16  ;;  %s848_s10 = int_to_ptr.vmem [resolvable:$true] %s11707_s10 }
  0x5e   : > { %p10842_p13 = scmp.ne.s32.totalorder %s13673_s25, %s10841_s15  ;;  %p11713_p0 = pneg %p11701_p12 }
  0x5f   : > { %p10848_p3 = scmp.lt.u32.totalorder %s10841_s15, %s13673_s25 }
  0x60   : > { %p10844_p1 = pnand %p11713_p0, %p10842_p13 }
  0x62   : > { %p10845_p2 = pneg %p10844_p1 }
  0x64   : > { %p10850_p4 = pnand %p10848_p3, %p10845_p2 }
  0x66   : > { %10853 = shalt.err (!%p10850_p4)
}
  0x67   : > { %s10854_s2 = scalar_lea.vmem %s787_s28, 16  ;;  %s10861_s26 = scalar_lea.vmem %s787_s28, 32 }
  0x68   : > { %p10855_p7 = scmp.ne.s32.totalorder %s787_s28, %s10854_s2  ;;  %p10862_p9 = scmp.lt.s32.totalorder %s787_s28, %s787_s28 }
  0x69   : > { %p10863_p6 = scmp.lt.s32.totalorder %s10861_s26, %s10854_s2 }
  0x6a   : > { %p10857_p8 = pnand %p10855_p7, %p11713_p0 }
  0x6b   : > { %p10864_p5 = por %p10863_p6, %p10862_p9 }
  0x6c   : > { %p10858_p11 = pneg %p10857_p8 }
  0x6e   : > { %p10865_p10 = pnand %p10864_p5, %p10858_p11 }
  0x70   : > { %10868 = shalt.err (!%p10865_p10)
}
  0x71   : > { %9956 = dma.hbm_to_vmem [thread:$0]  (!%p11701_p12), %s13673_s25, 16, %s787_s28, [#allocation6]  }
  0x72   : > { %s10869_s15 = scalar_lea.hbm %s13674_s19, 1024 }
  0x73   : > { %p10870_p13 = scmp.ne.s32.totalorder %s13674_s19, %s10869_s15  ;;  %p10876_p3 = scmp.lt.u32.totalorder %s10869_s15, %s13674_s19 }
  0x75   : > { %p10872_p1 = pnand %p10870_p13, %p11713_p0 }
  0x77   : > { %p10873_p2 = pneg %p10872_p1 }
  0x79   : > { %p10878_p4 = pnand %p10876_p3, %p10873_p2 }
  0x7b   : > { %10881 = shalt.err (!%p10878_p4)
}
  0x7c   : > { %s10882_s2 = scalar_lea.vmem %s11705_s18, 1024  ;;  %p10890_p10 = scmp.lt.s32.totalorder %s11705_s18, %s11705_s18 }
  0x7d   : > { %p10883_p5 = scmp.ne.s32.totalorder %s11705_s18, %s10882_s2  ;;  %p10891_p7 = scmp.lt.s32.totalorder %s10882_s2, %s10882_s2 }
  0x7f   : > { %p10885_p6 = pnand %p10883_p5, %p11713_p0  ;;  %p10892_p8 = por %p10891_p7, %p10890_p10 }
  0x81   : > { %p10886_p9 = pneg %p10885_p6 }
  0x83   : > { %p10893_p11 = pnand %p10892_p8, %p10886_p9 }
  0x85   : > { %10896 = shalt.err (!%p10893_p11)
}
  0x86   : > { %s13618_s28 = smov 64   ;;  %s13620_s26 = smov 4  }
  0x87   : > { %9962 = dma.hbm_to_vmem [thread:$0]  (!%p11701_p12), %s13674_s19, 1024, %s11705_s18, [#allocation9], %s13618_s28, %s13618_s28, %s13620_s26  }
  0x88   : > { %s10897_s15 = scalar_lea.hbm %s13669_s6, 1024 }
  0x89   : > { %p10898_p13 = scmp.ne.s32.totalorder %s13669_s6, %s10897_s15  ;;  %p10904_p3 = scmp.lt.u32.totalorder %s10897_s15, %s13669_s6 }
  0x8b   : > { %p10900_p1 = pnand %p10898_p13, %p11713_p0 }
  0x8d   : > { %p10901_p2 = pneg %p10900_p1 }
  0x8f   : > { %p10906_p4 = pnand %p10904_p3, %p10901_p2 }
  0x91   : > { %10909 = shalt.err (!%p10906_p4)
}
  0x92   : > { %s10910_s2 = scalar_lea.vmem %s848_s10, 1024  ;;  %p10918_p10 = scmp.lt.s32.totalorder %s848_s10, %s848_s10 }
  0x93   : > { %p10911_p5 = scmp.ne.s32.totalorder %s848_s10, %s10910_s2  ;;  %p10919_p7 = scmp.lt.s32.totalorder %s10910_s2, %s10910_s2 }
  0x95   : > { %p10913_p6 = pnand %p10911_p5, %p11713_p0  ;;  %p10920_p8 = por %p10919_p7, %p10918_p10 }
  0x97   : > { %p10914_p9 = pneg %p10913_p6 }
  0x99   : > { %p10921_p11 = pnand %p10920_p8, %p10914_p9 }
  0x9b   : > { %10924 = shalt.err (!%p10921_p11)
}
  0x9c   : > { %9968 = dma.hbm_to_vmem [thread:$0]  (!%p11701_p12), %s13669_s6, 1024, %s848_s10, [#allocation12], %s13618_s28, %s13618_s28, %s13620_s26  }
  0x9d   : > { %s11452_s18 = smov [#allocation14]   ;;  %s11453_s19 = smov [#allocation17]  }
  0x9e   : > { %s876_s15 = sshll.u32 %s11452_s18, 4  ;;  %s904_s25 = sshll.u32 %s11453_s19, 4  ;;  %s877_s15 = int_to_ptr.vmem [resolvable:$true] %s876_s15  ;;  %s905_s25 = int_to_ptr.vmem [resolvable:$true] %s904_s25 }
  0x9f   : > { %s10925_s2 = scalar_lea.hbm %s11572_s27, 32 }
  0xa0   : > { %p10926_p13 = scmp.ne.s32.totalorder %s11572_s27, %s10925_s2  ;;  %p10932_p3 = scmp.lt.u32.totalorder %s10925_s2, %s11572_s27 }
  0xa2   : > { %p10928_p1 = pnand %p10926_p13, %p11713_p0 }
  0xa4   : > { %p10929_p2 = pneg %p10928_p1 }
  0xa6   : > { %p10934_p4 = pnand %p10932_p3, %p10929_p2 }
  0xa8   : > { %10937 = shalt.err (!%p10934_p4)
}
  0xa9   : > { %s10938_s22 = scalar_lea.vmem %s877_s15, 32  ;;  %p10946_p10 = scmp.lt.s32.totalorder %s877_s15, %s877_s15 }
  0xaa   : > { %p10939_p5 = scmp.ne.s32.totalorder %s877_s15, %s10938_s22  ;;  %p10947_p7 = scmp.lt.s32.totalorder %s10938_s22, %s10938_s22 }
  0xac   : > { %p10941_p6 = pnand %p10939_p5, %p11713_p0  ;;  %p10948_p8 = por %p10947_p7, %p10946_p10 }
  0xae   : > { %p10942_p9 = pneg %p10941_p6 }
  0xb0   : > { %p10949_p11 = pnand %p10948_p8, %p10942_p9 }
  0xb2   : > { %10952 = shalt.err (!%p10949_p11)
}
  0xb3   : > { %s13614_s19 = smov 16   ;;  %s13616_s10 = smov 1  }
  0xb4   : > { %9974 = dma.hbm_to_vmem [thread:$0]  (!%p11701_p12), %s11572_s27, 32, %s877_s15, [#allocation15], %s13614_s19, %s13614_s19, %s13616_s10  }
  0xb5   : > { %s10953_s18 = scalar_lea.hbm %s11587_s13, 16 }
  0xb6   : > { %p10954_p13 = scmp.ne.s32.totalorder %s11587_s13, %s10953_s18  ;;  %p10960_p3 = scmp.lt.u32.totalorder %s10953_s18, %s11587_s13 }
  0xb8   : > { %p10956_p1 = pnand %p10954_p13, %p11713_p0 }
  0xba   : > { %p10957_p2 = pneg %p10956_p1 }
  0xbc   : > { %p10962_p4 = pnand %p10960_p3, %p10957_p2 }
  0xbe   : > { %10965 = shalt.err (!%p10962_p4)
}
  0xbf   : > { %s10966_s22 = scalar_lea.vmem %s905_s25, 16  ;;  %s10973_s2 = scalar_lea.vmem %s905_s25, 32 }
  0xc0   : > { %p10967_p5 = scmp.ne.s32.totalorder %s905_s25, %s10966_s22  ;;  %p10974_p10 = scmp.lt.s32.totalorder %s905_s25, %s905_s25 }
  0xc1   : > { %p10975_p7 = scmp.lt.s32.totalorder %s10973_s2, %s10966_s22 }
  0xc2   : > { %p10969_p6 = pnand %p10967_p5, %p11713_p0 }
  0xc3   : > { %p10976_p8 = por %p10975_p7, %p10974_p10 }
  0xc4   : > { %p10970_p9 = pneg %p10969_p6 }
  0xc6   : > { %p10977_p11 = pnand %p10976_p8, %p10970_p9 }
  0xc8   : > { %10980 = shalt.err (!%p10977_p11)
}
  0xc9   : > { %9980 = dma.hbm_to_vmem [thread:$0]  (!%p11701_p12), %s11587_s13, 16, %s905_s25, [#allocation18]  }
  0xca   : > { %s11456_s15 = smov [#allocation20]   ;;  %s11457_s19 = smov [#allocation23]  }
  0xcb   : > { %s928_s18 = sshll.u32 %s11456_s15, 4  ;;  %s954_s10 = sshll.u32 %s11457_s19, 4  ;;  %s929_s18 = int_to_ptr.vmem [resolvable:$true] %s928_s18  ;;  %s955_s10 = int_to_ptr.vmem [resolvable:$true] %s954_s10 }
  0xcc   : > { %s10981_s28 = scalar_lea.hbm %s11597_s20, 16 }
  0xcd   : > { %p10982_p13 = scmp.ne.s32.totalorder %s11597_s20, %s10981_s28  ;;  %p10988_p3 = scmp.lt.u32.totalorder %s10981_s28, %s11597_s20 }
  0xcf   : > { %p10984_p1 = pnand %p10982_p13, %p11713_p0 }
  0xd1   : > { %p10985_p2 = pneg %p10984_p1 }
  0xd3   : > { %p10990_p4 = pnand %p10988_p3, %p10985_p2 }
  0xd5   : > { %10993 = shalt.err (!%p10990_p4)
}
  0xd6   : > { %s10994_s22 = scalar_lea.vmem %s929_s18, 16  ;;  %s11001_s25 = scalar_lea.vmem %s929_s18, 32 }
  0xd7   : > { %p10995_p5 = scmp.ne.s32.totalorder %s929_s18, %s10994_s22  ;;  %p11002_p10 = scmp.lt.s32.totalorder %s929_s18, %s929_s18 }
  0xd8   : > { %p11003_p7 = scmp.lt.s32.totalorder %s11001_s25, %s10994_s22 }
  0xd9   : > { %p10997_p6 = pnand %p10995_p5, %p11713_p0 }
  0xda   : > { %p11004_p8 = por %p11003_p7, %p11002_p10 }
  0xdb   : > { %p10998_p9 = pneg %p10997_p6 }
  0xdd   : > { %p11005_p11 = pnand %p11004_p8, %p10998_p9 }
  0xdf   : > { %11008 = shalt.err (!%p11005_p11)
}
  0xe0   : > { %9986 = dma.hbm_to_vmem [thread:$0]  (!%p11701_p12), %s11597_s20, 16, %s929_s18, [#allocation21]  }
  0xe1   : > { %s11009_s28 = scalar_lea.hbm %s13672_s3, 2048 }
  0xe2   : > { %p11010_p13 = scmp.ne.s32.totalorder %s13672_s3, %s11009_s28  ;;  %p11016_p3 = scmp.lt.u32.totalorder %s11009_s28, %s13672_s3 }
  0xe4   : > { %p11012_p1 = pnand %p11010_p13, %p11713_p0 }
  0xe6   : > { %p11013_p2 = pneg %p11012_p1 }
  0xe8   : > { %p11018_p4 = pnand %p11016_p3, %p11013_p2 }
  0xea   : > { %11021 = shalt.err (!%p11018_p4)
}
  0xeb   : > { %s11022_s19 = scalar_lea.vmem %s955_s10, 2048  ;;  %p11030_p10 = scmp.lt.s32.totalorder %s955_s10, %s955_s10 }
  0xec   : > { %p11023_p5 = scmp.ne.s32.totalorder %s955_s10, %s11022_s19  ;;  %p11031_p7 = scmp.lt.s32.totalorder %s11022_s19, %s11022_s19 }
  0xee   : > { %p11025_p6 = pnand %p11023_p5, %p11713_p0  ;;  %p11032_p8 = por %p11031_p7, %p11030_p10 }
  0xf0   : > { %p11026_p9 = pneg %p11025_p6 }
  0xf2   : > { %p11033_p11 = pnand %p11032_p8, %p11026_p9 }
  0xf4   : > { %11036 = shalt.err (!%p11033_p11)
}
  0xf5   : > { %s13687_s2 = smov 64   ;;  %s11458_s15 = smov [#allocation26]  }
  0xf6   : > { %9992 = dma.hbm_to_vmem [thread:$0]  (!%p11701_p12), %s13672_s3, 2048, %s955_s10, [#allocation24], %s13687_s2, %s13687_s2, %s13620_s26  }
  0xf7   : > { %s987_s18 = sshll.u32 %s11458_s15, 4  ;;  %s11459_s22 = smov [#allocation2]   ;;  %s988_s18 = int_to_ptr.vmem [resolvable:$true] %s987_s18 }
  0xf8   : > { %s772_s25 = sshll.u32 %s11459_s22, 4  ;;  %s11037_s28 = scalar_lea.hbm %s13670_s5, 16  ;;  %s773_s25 = int_to_ptr.vmem [resolvable:$true] %s772_s25 }
  0xf9   : > { %p11038_p13 = scmp.ne.s32.totalorder %s13670_s5, %s11037_s28  ;;  %p11044_p3 = scmp.lt.u32.totalorder %s11037_s28, %s13670_s5 }
  0xfb   : > { %p11040_p1 = pnand %p11038_p13, %p11713_p0 }
  0xfd   : > { %p11041_p2 = pneg %p11040_p1 }
  0xff   : > { %p11046_p4 = pnand %p11044_p3, %p11041_p2 }
 0x101   : > { %11049 = shalt.err (!%p11046_p4)
}
 0x102   : > { %s11050_s19 = scalar_lea.vmem %s988_s18, 16  ;;  %s11057_s10 = scalar_lea.vmem %s988_s18, 32 }
 0x103   : > { %p11051_p5 = scmp.ne.s32.totalorder %s988_s18, %s11050_s19  ;;  %p11058_p10 = scmp.lt.s32.totalorder %s988_s18, %s988_s18 }
 0x104   : > { %p11059_p7 = scmp.lt.s32.totalorder %s11057_s10, %s11050_s19 }
 0x105   : > { %p11053_p6 = pnand %p11051_p5, %p11713_p0 }
 0x106   : > { %p11060_p8 = por %p11059_p7, %p11058_p10 }
 0x107   : > { %p11054_p9 = pneg %p11053_p6 }
 0x109   : > { %p11061_p11 = pnand %p11060_p8, %p11054_p9 }
 0x10b   : > { %11064 = shalt.err (!%p11061_p11)
}
 0x10c   : > { %9998 = dma.hbm_to_vmem [thread:$0]  (!%p11701_p12), %s13670_s5, 16, %s988_s18, [#allocation27]  }
 0x10d   : > { %s11065_s15 = scalar_lea.hbm %s11512_s21, 384 }
 0x10e   : > { %p11066_p13 = scmp.ne.s32.totalorder %s11512_s21, %s11065_s15  ;;  %p11072_p3 = scmp.lt.u32.totalorder %s11065_s15, %s11512_s21 }
 0x110   : > { %p11068_p1 = pnand %p11066_p13, %p11713_p0 }
 0x112   : > { %p11069_p2 = pneg %p11068_p1 }
 0x114   : > { %p11074_p4 = pnand %p11072_p3, %p11069_p2 }
 0x116   : > { %11077 = shalt.err (!%p11074_p4)
}
 0x117   : > { %s11078_s22 = scalar_lea.vmem %s773_s25, 384  ;;  %p11086_p10 = scmp.lt.s32.totalorder %s773_s25, %s773_s25 }
 0x118   : > { %p11079_p5 = scmp.ne.s32.totalorder %s773_s25, %s11078_s22  ;;  %p11087_p7 = scmp.lt.s32.totalorder %s11078_s22, %s11078_s22 }
 0x11a   : > { %p11081_p6 = pnand %p11079_p5, %p11713_p0  ;;  %p11088_p8 = por %p11087_p7, %p11086_p10 }
 0x11c   : > { %p11082_p9 = pneg %p11081_p6 }
 0x11e   : > { %p11089_p11 = pnand %p11088_p8, %p11082_p9 }
 0x120   : > { %11092 = shalt.err (!%p11089_p11)
}
 0x121   : > { %9953 = dma.hbm_to_vmem [thread:$0]  (!%p11701_p12), %s11512_s21, 384, %s773_s25, [#allocation3], %s13687_s2, %s13687_s2, %s13620_s26  }
 0x122   : > { %s11460_s18 = smov [#allocation7]   ;;  %s11093_s19 = scalar_lea.hbm %s11537_s14, 64 }
 0x123   : > { %s805_s28 = sshll.u32 %s11460_s18, 4  ;;  %p11094_p13 = scmp.ne.s32.totalorder %s11537_s14, %s11093_s19  ;;  %s806_s28 = int_to_ptr.vmem [resolvable:$true] %s805_s28 }
 0x124   : > { %p11100_p3 = scmp.lt.u32.totalorder %s11093_s19, %s11537_s14 }
 0x125   : > { %p11096_p1 = pnand %p11094_p13, %p11713_p0 }
 0x127   : > { %p11097_p2 = pneg %p11096_p1 }
 0x129   : > { %p11102_p4 = pnand %p11100_p3, %p11097_p2 }
 0x12b   : > { %11105 = shalt.err (!%p11102_p4)
}
 0x12c   : > { %s11106_s10 = scalar_lea.vmem %s806_s28, 64  ;;  %p11114_p10 = scmp.lt.s32.totalorder %s806_s28, %s806_s28 }
 0x12d   : > { %p11107_p5 = scmp.ne.s32.totalorder %s806_s28, %s11106_s10  ;;  %p11115_p7 = scmp.lt.s32.totalorder %s11106_s10, %s11106_s10 }
 0x12f   : > { %p11109_p6 = pnand %p11107_p5, %p11713_p0  ;;  %p11116_p8 = por %p11115_p7, %p11114_p10 }
 0x131   : > { %p11110_p9 = pneg %p11109_p6 }
 0x133   : > { %p11117_p11 = pnand %p11116_p8, %p11110_p9 }
 0x135   : > { %11120 = shalt.err (!%p11117_p11)
}
 0x136   : > { %s11461_s25 = smov 32   ;;  %s11462_s15 = smov 2  }
 0x137   : > { %9959 = dma.hbm_to_vmem [thread:$0]  (!%p11701_p12), %s11537_s14, 64, %s806_s28, [#allocation6], %s11461_s25, %s11461_s25, %s11462_s15  }
 0x138   : > { %s11463_s22 = smov [#allocation10]   ;;  %s11464_s19 = smov [#allocation13]  }
 0x139   : > { %s834_s18 = sshll.u32 %s11463_s22, 4  ;;  %s860_s26 = sshll.u32 %s11464_s19, 4  ;;  %s835_s18 = int_to_ptr.vmem [resolvable:$true] %s834_s18  ;;  %s11836_s26 = int_to_ptr.vmem [resolvable:$true] %s860_s26 }
 0x13a   : > { %s11121_s10 = scalar_lea.hbm %s11552_s30, 64 }
 0x13b   : > { %p11122_p13 = scmp.ne.s32.totalorder %s11552_s30, %s11121_s10  ;;  %p11128_p3 = scmp.lt.u32.totalorder %s11121_s10, %s11552_s30 }
 0x13d   : > { %p11124_p1 = pnand %p11122_p13, %p11713_p0 }
 0x13f   : > { %p11125_p2 = pneg %p11124_p1 }
 0x141   : > { %p11130_p4 = pnand %p11128_p3, %p11125_p2 }
 0x143   : > { %11133 = shalt.err (!%p11130_p4)
}
 0x144   : > { %s11134_s3 = scalar_lea.vmem %s835_s18, 64  ;;  %p11142_p10 = scmp.lt.s32.totalorder %s835_s18, %s835_s18 }
 0x145   : > { %p11135_p5 = scmp.ne.s32.totalorder %s835_s18, %s11134_s3  ;;  %p11143_p7 = scmp.lt.s32.totalorder %s11134_s3, %s11134_s3 }
 0x147   : > { %p11137_p6 = pnand %p11135_p5, %p11713_p0  ;;  %p11144_p8 = por %p11143_p7, %p11142_p10 }
 0x149   : > { %p11138_p9 = pneg %p11137_p6 }
 0x14b   : > { %p11145_p11 = pnand %p11144_p8, %p11138_p9 }
 0x14d   : > { %11148 = shalt.err (!%p11145_p11)
}
 0x14e   : > { %9965 = dma.hbm_to_vmem [thread:$0]  (!%p11701_p12), %s11552_s30, 64, %s835_s18, [#allocation9], %s11461_s25, %s11461_s25, %s11462_s15  }
 0x14f   : > { %s11149_s28 = scalar_lea.hbm %s11562_s12, 32 }
 0x150   : > { %p11150_p13 = scmp.ne.s32.totalorder %s11562_s12, %s11149_s28  ;;  %p11156_p3 = scmp.lt.u32.totalorder %s11149_s28, %s11562_s12 }
 0x152   : > { %p11152_p1 = pnand %p11150_p13, %p11713_p0 }
 0x154   : > { %p11153_p2 = pneg %p11152_p1 }
 0x156   : > { %p11158_p4 = pnand %p11156_p3, %p11153_p2 }
 0x158   : > { %11161 = shalt.err (!%p11158_p4)
}
 0x159   : > { %s11162_s3 = scalar_lea.vmem %s11836_s26, 32  ;;  %p11170_p10 = scmp.lt.s32.totalorder %s11836_s26, %s11836_s26 }
 0x15a   : > { %p11163_p5 = scmp.ne.s32.totalorder %s11836_s26, %s11162_s3  ;;  %p11171_p7 = scmp.lt.s32.totalorder %s11162_s3, %s11162_s3 }
 0x15c   : > { %p11165_p6 = pnand %p11163_p5, %p11713_p0  ;;  %p11172_p8 = por %p11171_p7, %p11170_p10 }
 0x15e   : > { %p11166_p9 = pneg %p11165_p6 }
 0x160   : > { %p11173_p11 = pnand %p11172_p8, %p11166_p9 }
 0x162   : > { %11176 = shalt.err (!%p11173_p11)
}
 0x163   : > { %s13688_s25 = smov 1   ;;  %s13689_s15 = smov 16  }
 0x164   : > { %9971 = dma.hbm_to_vmem [thread:$0]  (!%p11701_p12), %s11562_s12, 32, %s11836_s26, [#allocation12], %s13689_s15, %s13689_s15, %s13688_s25  }
 0x165   : > { %s11465_s22 = smov [#allocation16]   ;;  %s11466_s19 = smov [#allocation19]  }
 0x166   : > { %s890_s18 = sshll.u32 %s11465_s22, 4  ;;  %s914_s10 = sshll.u32 %s11466_s19, 4  ;;  %s891_s18 = int_to_ptr.vmem [resolvable:$true] %s890_s18  ;;  %s11866_s10 = int_to_ptr.vmem [resolvable:$true] %s914_s10 }
 0x167   : > { %s11177_s28 = scalar_lea.hbm %s13671_s4, 32 }
 0x168   : > { %p11178_p13 = scmp.ne.s32.totalorder %s13671_s4, %s11177_s28  ;;  %p11184_p3 = scmp.lt.u32.totalorder %s11177_s28, %s13671_s4 }
 0x16a   : > { %p11180_p1 = pnand %p11178_p13, %p11713_p0 }
 0x16c   : > { %p11181_p2 = pneg %p11180_p1 }
 0x16e   : > { %p11186_p4 = pnand %p11184_p3, %p11181_p2 }
 0x170   : > { %11189 = shalt.err (!%p11186_p4)
}
 0x171   : > { %s11190_s3 = scalar_lea.vmem %s891_s18, 32  ;;  %p11198_p10 = scmp.lt.s32.totalorder %s891_s18, %s891_s18 }
 0x172   : > { %p11191_p5 = scmp.ne.s32.totalorder %s891_s18, %s11190_s3  ;;  %p11199_p7 = scmp.lt.s32.totalorder %s11190_s3, %s11190_s3 }
 0x174   : > { %p11193_p6 = pnand %p11191_p5, %p11713_p0  ;;  %p11200_p8 = por %p11199_p7, %p11198_p10 }
 0x176   : > { %p11194_p9 = pneg %p11193_p6 }
 0x178   : > { %p11201_p11 = pnand %p11200_p8, %p11194_p9 }
 0x17a   : > { %11204 = shalt.err (!%p11201_p11)
}
 0x17b   : > { %9977 = dma.hbm_to_vmem [thread:$0]  (!%p11701_p12), %s13671_s4, 32, %s891_s18, [#allocation15]  }
 0x17c   : > { %s11205_s26 = scalar_lea.hbm %s13667_s9, 1024 }
 0x17d   : > { %p11206_p13 = scmp.ne.s32.totalorder %s13667_s9, %s11205_s26  ;;  %p11212_p3 = scmp.lt.u32.totalorder %s11205_s26, %s13667_s9 }
 0x17f   : > { %p11208_p1 = pnand %p11206_p13, %p11713_p0 }
 0x181   : > { %p11209_p2 = pneg %p11208_p1 }
 0x183   : > { %p11214_p4 = pnand %p11212_p3, %p11209_p2 }
 0x185   : > { %11217 = shalt.err (!%p11214_p4)
}
 0x186   : > { %s11218_s22 = scalar_lea.vmem %s11866_s10, 1024  ;;  %p11226_p10 = scmp.lt.s32.totalorder %s11866_s10, %s11866_s10 }
 0x187   : > { %p11219_p5 = scmp.ne.s32.totalorder %s11866_s10, %s11218_s22  ;;  %p11227_p7 = scmp.lt.s32.totalorder %s11218_s22, %s11218_s22 }
 0x189   : > { %p11221_p6 = pnand %p11219_p5, %p11713_p0  ;;  %p11228_p8 = por %p11227_p7, %p11226_p10 }
 0x18b   : > { %p11222_p9 = pneg %p11221_p6 }
 0x18d   : > { %p11229_p11 = pnand %p11228_p8, %p11222_p9 }
 0x18f   : > { %11232 = shalt.err (!%p11229_p11)
}
 0x190   : > { %s13690_s18 = smov 4   ;;  %s11467_s19 = smov [#allocation22]  }
 0x191   : > { %9983 = dma.hbm_to_vmem [thread:$0]  (!%p11701_p12), %s13667_s9, 1024, %s11866_s10, [#allocation18], %s13687_s2, %s13687_s2, %s13690_s18  }
 0x192   : > { %s938_s28 = sshll.u32 %s11467_s19, 4  ;;  %s11468_s3 = smov [#allocation25]   ;;  %s939_s28 = int_to_ptr.vmem [resolvable:$true] %s938_s28 }
 0x193   : > { %s967_s26 = sshll.u32 %s11468_s3, 4  ;;  %s11233_s22 = scalar_lea.hbm %s11602_s17, 32  ;;  %s11896_s26 = int_to_ptr.vmem [resolvable:$true] %s967_s26 }
 0x194   : > { %p11234_p13 = scmp.ne.s32.totalorder %s11602_s17, %s11233_s22  ;;  %p11240_p3 = scmp.lt.u32.totalorder %s11233_s22, %s11602_s17 }
 0x196   : > { %p11236_p1 = pnand %p11234_p13, %p11713_p0 }
 0x198   : > { %p11237_p2 = pneg %p11236_p1 }
 0x19a   : > { %p11242_p4 = pnand %p11240_p3, %p11237_p2 }
 0x19c   : > { %11245 = shalt.err (!%p11242_p4)
}
 0x19d   : > { %s11246_s4 = scalar_lea.vmem %s939_s28, 32  ;;  %p11254_p10 = scmp.lt.s32.totalorder %s939_s28, %s939_s28 }
 0x19e   : > { %p11247_p5 = scmp.ne.s32.totalorder %s939_s28, %s11246_s4  ;;  %p11255_p7 = scmp.lt.s32.totalorder %s11246_s4, %s11246_s4 }
 0x1a0   : > { %p11249_p6 = pnand %p11247_p5, %p11713_p0  ;;  %p11256_p8 = por %p11255_p7, %p11254_p10 }
 0x1a2   : > { %p11250_p9 = pneg %p11249_p6 }
 0x1a4   : > { %p11257_p11 = pnand %p11256_p8, %p11250_p9 }
 0x1a6   : > { %11260 = shalt.err (!%p11257_p11)
}
 0x1a7   : > { %s13691_s2 = sld [smem:[#allocation57_spill]] }
 0x1a8   : > { %9989 = dma.hbm_to_vmem [thread:$0]  (!%p11701_p12), %s11602_s17, 32, %s939_s28, [#allocation21], %s13689_s15, %s13689_s15, %s13688_s25  }
 0x1ad   : > { %s11261_s10 = scalar_lea.hbm %s13691_s2, 32 }
 0x1ae   : > { %p11262_p13 = scmp.ne.s32.totalorder %s13691_s2, %s11261_s10  ;;  %p11268_p3 = scmp.lt.u32.totalorder %s11261_s10, %s13691_s2 }
 0x1b0   : > { %p11264_p1 = pnand %p11262_p13, %p11713_p0 }
 0x1b2   : > { %p11265_p2 = pneg %p11264_p1 }
 0x1b4   : > { %p11270_p4 = pnand %p11268_p3, %p11265_p2 }
 0x1b6   : > { %11273 = shalt.err (!%p11270_p4)
}
 0x1b7   : > { %s11274_s4 = scalar_lea.vmem %s11896_s26, 32  ;;  %p11282_p10 = scmp.lt.s32.totalorder %s11896_s26, %s11896_s26 }
 0x1b8   : > { %p11275_p5 = scmp.ne.s32.totalorder %s11896_s26, %s11274_s4  ;;  %p11283_p7 = scmp.lt.s32.totalorder %s11274_s4, %s11274_s4 }
 0x1ba   : > { %p11277_p6 = pnand %p11275_p5, %p11713_p0  ;;  %p11284_p8 = por %p11283_p7, %p11282_p10 }
 0x1bc   : > { %p11278_p9 = pneg %p11277_p6 }
 0x1be   : > { %p11285_p11 = pnand %p11284_p8, %p11278_p9 }
 0x1c0   : > { %11288 = shalt.err (!%p11285_p11)
}
 0x1c1   : > { %9995 = dma.hbm_to_vmem [thread:$0]  (!%p11701_p12), %s13691_s2, 32, %s11896_s26, [#allocation24], %s13689_s15, %s13689_s15, %s13688_s25  }
 0x1c2   : > { %s11469_s18 = smov [#allocation28]   ;;  %s11289_s28 = scalar_lea.hbm %s13668_s8, 4096 }
 0x1c3   : > { %s997_s19 = sshll.u32 %s11469_s18, 4  ;;  %p11290_p13 = scmp.ne.s32.totalorder %s13668_s8, %s11289_s28  ;;  %s998_s19 = int_to_ptr.vmem [resolvable:$true] %s997_s19 }
 0x1c4   : > { %p11296_p3 = scmp.lt.u32.totalorder %s11289_s28, %s13668_s8 }
 0x1c5   : > { %p11292_p1 = pnand %p11290_p13, %p11713_p0 }
 0x1c7   : > { %p11293_p2 = pneg %p11292_p1 }
 0x1c9   : > { %p11298_p4 = pnand %p11296_p3, %p11293_p2 }
 0x1cb   : > { %11301 = shalt.err (!%p11298_p4)
}
 0x1cc   : > { %s11302_s3 = scalar_lea.vmem %s998_s19, 4096  ;;  %p11310_p10 = scmp.lt.s32.totalorder %s998_s19, %s998_s19 }
 0x1cd   : > { %p11303_p5 = scmp.ne.s32.totalorder %s998_s19, %s11302_s3  ;;  %p11311_p7 = scmp.lt.s32.totalorder %s11302_s3, %s11302_s3 }
 0x1cf   : > { %p11305_p6 = pnand %p11303_p5, %p11713_p0  ;;  %p11312_p8 = por %p11311_p7, %p11310_p10 }
 0x1d1   : > { %p11306_p9 = pneg %p11305_p6 }
 0x1d3   : > { %p11313_p11 = pnand %p11312_p8, %p11306_p9 }
 0x1d5   : > { %11316 = shalt.err (!%p11313_p11)
}
 0x1d6   : > { %s11470_s25 = smov 256   ;;  %p13692_p13 = scmp.ne.s32.totalorder %s13684_s11, 0 }
 0x1d7   : > { %10001 = dma.hbm_to_vmem [thread:$0]  (!%p11701_p12), %s13668_s8, 4096, %s998_s19, [#allocation27], %s11470_s25, %s11470_s25, %s13689_s15  }
 0x1d8   : > { %1028 = sbr.rel (%p13692_p13) target bundleno = 12616 (0x3148), region = 140  ;;  %p13693_p1 = scmp.eq.s32.totalorder (!%p13692_p13), %s11665_s0, 0 }
 0x1df   : > { %11362 = dma.done.wait (%p13693_p1), [#allocation3], 384   ;;  %p13694_p0 = pmov %p13693_p1 }
 0x1e1   : > { %11364 = vsyncadd (%p13694_p0), [#allocation3], 4294966912  ;;  %p13695_p2 = pmov %p13694_p0 }
 0x1e2   : > { %p13696_p3 = pmov %p13694_p0 }
 0x1e3   : > { %11366 = dma.done.wait (%p13695_p2), [#allocation6], 80  }
 0x1e4   : > { %11368 = vsyncadd (%p13696_p3), [#allocation6], 4294967216  ;;  %p13697_p4 = pmov %p13694_p0 }
 0x1e5   : > { %p13698_p12 = pmov %p13694_p0 }
 0x1e6   : > { %11370 = dma.done.wait (%p13697_p4), [#allocation9], 1088  }
 0x1e7   : > { %11372 = vsyncadd (%p13698_p12), [#allocation9], 4294966208  ;;  %p13699_p5 = pmov %p13694_p0 }
 0x1e8   : > { %p13700_p6 = pmov %p13694_p0 }
 0x1e9   : > { %11374 = dma.done.wait (%p13699_p5), [#allocation12], 1056  }
 0x1ea   : > { %11376 = vsyncadd (%p13700_p6), [#allocation12], 4294966240  ;;  %p13701_p9 = pmov %p13694_p0 }
 0x1eb   : > { %p13702_p10 = pmov %p13694_p0 }
 0x1ec   : > { %11378 = dma.done.wait (%p13701_p9), [#allocation15], 64  }
 0x1ed   : > { %11380 = vsyncadd (%p13702_p10), [#allocation15], 4294967232  ;;  %p13703_p7 = pmov %p13694_p0 }
 0x1ee   : > { %p13704_p8 = pmov %p13694_p0 }
 0x1ef   : > { %11382 = dma.done.wait (%p13703_p7), [#allocation18], 1040  }
 0x1f0   : > { %11384 = vsyncadd (%p13704_p8), [#allocation18], 4294966256  ;;  %p13705_p11 = pmov %p13694_p0 }
 0x1f1   : > { %p13706_p13 = pmov %p13694_p0 }
 0x1f2   : > { %11386 = dma.done.wait (%p13705_p11), [#allocation21], 48  }
 0x1f3   : > { %11388 = vsyncadd (%p13706_p13), [#allocation21], 4294967248  ;;  %p13707_p1 = pmov %p13694_p0 }
 0x1f5   : > { %11390 = dma.done.wait (%p13707_p1), [#allocation24], 2080  }
 0x1f6   : > { %11392 = vsyncadd (%p13694_p0), [#allocation24], 4294965216  ;;  %p13708_p2 = pmov %p13694_p0 }
 0x1f7   : > { %p13709_p3 = pmov %p13694_p0 }
 0x1f8   : > { %11394 = dma.done.wait (%p13708_p2), [#allocation27], 4112  }
 0x1f9   : > { %11396 = vsyncadd (%p13709_p3), [#allocation27], 4294963184  ;;  %s13710_s11 = sld [smem:[#allocation40_spill]]  ;;  %p1174_p4 = scmp.lt.s32.totalorder %s11665_s0, 1  ;;  %v11471_v0 = vmov 0.0   ;;  %vm11472_vm0 = vmmov 0   ;;  %v1300_v41 = vlaneseq }
 0x1fa   : > { %9276 = vmatprep.subr.bf16.mxu0 %v11471_v0  ;;  %9282 = vmatprep.mubr.msk.bf16.mxu0 %vm11472_vm0, %v11471_v0  ;;  %s13711_s23 = sld [smem:[#allocation45_spill]]  ;;  %v10269_v1 = vld [vmem:[#allocation2] sm:$0xff]   ;;  %v10270_v2 = vld [vmem:[#allocation2 + $0x8] sm:$0xff]   ;;  %v10271_v3 = vld [vmem:[#allocation2 + $0x10] sm:$0xff]   ;;  %vm1222_vm1 = vcmask 392192   ;;  %vm1272_vm2 = vcmask 523264  }
 0x1fb   : > { %s11983_s1 = scalar_select %p1174_p4, %s11665_s0, 1  ;;  %9277 = vmatpush3.bf16.msra.mxu0 %v10269_v1  ;;  %v8482_v5 = vld [vmem:[#allocation5] ss:$0 sm:$0xff]  ;;  %v11473_v32 = vmov 0   ;;  %v12013_v44 = vshrl.u32 %v1300_v41, 7  ;;  %vm1425_vm3 = vcmask 261120  }
 0x1fc   : > { %9278 = vmatprep.subr.bf16.mxu0 %v11471_v0  ;;  %s13712_s22 = sld [smem:[#allocation47_spill]]  ;;  %1408 = vmatprep.mubr.bf16.mxu1 %v11473_v32  ;;  %s13714_s4 = sld [smem:[#allocation46_spill]]  ;;  %v1321_v59 = vld [vmem:[#allocation7] sm:$0x3]  ;;  %vm12042_vm4 = vmpackc.low %vm1425_vm3, %vm1425_vm3  ;;  %vm1509_vm5 = vcmask 130048   ;;  %vm3809_vm7 = vcmask 195584  }
 0x1fd   : > { %s8995_s15 = sshll.u32 %s11983_s1, 3  ;;  %v12016_v45 = vsub.s32 0, %v12013_v44  ;;  %v12021_v50 = vsub.s32 1, %v12013_v44  ;;  %s13627_s18 = smov 32   ;;  %vm4919_vm10 = vcmask 785408  }
 0x1fe   : > { %s13625_s19 = smov 64   ;;  %s13623_s28 = smov 96  }
 0x1ff   : > { %s1178_s26 = scalar_lea.vmem %s13710_s11, %s8995_s15  ;;  %9279 = vmatpush3.bf16.msra.mxu0 %v10270_v2  ;;  %v1326_v60 = vrot.slane %v1321_v59, %v12016_v45  ;;  %v1330_v62 = vrot.slane %v1321_v59, %v12021_v50  ;;  %s13717_s3 = sld [smem:[#allocation49_spill]] }
 0x200   : > { %9280 = vmatprep.subr.bf16.mxu0 %v11471_v0  ;;  %v10272_v4 = vld [vmem:[%s1178_s26] sm:$0xff]   ;;  %v1268_v11 = vld [vmem:[%s13711_s23 + $0x8] sm:$0xff]  ;;  %s13718_s25 = sld [smem:[#allocation51_spill]]  ;;  %s13719_s11 = sld [smem:[#allocation53_spill]] }
 0x201   : > { %v1267_v7 = vld [vmem:[%s13711_s23] sm:$0xff]  ;;  %s13720_s15 = sld [smem:[#allocation55_spill]]  ;;  %s13727_s2 = smov 64  }
 0x202   : > { %s13713_s10 = smov %s13712_s22  ;;  %v10273_v28 = vld [vmem:[%s13712_s22 + $0x4] ss:$8 sps:$4 sm:$0xff]   ;;  %v1271_v46 = vld [vmem:[%s13714_s4] sm:$0x3]  ;;  %s13722_s22 = sld [smem:[#allocation41_spill]] }
 0x203   : > { %9281 = vmatpush3.bf16.msra.mxu0 %v10271_v3  ;;  %v10275_v29 = vld [vmem:[%s13713_s10] ss:$8 sps:$4 sm:$0xff]   ;;  %v10276_v30 = vld [vmem:[%s13713_s10 + $0x14] ss:$8 sps:$4 sm:$0xff]   ;;  %1376 = vmatprep.subr.bf16.mxu1 %v10273_v28  ;;  %v10278_v31 = vld [vmem:[%s13713_s10 + $0x10] ss:$8 sps:$4 sm:$0xff]   ;;  %v1303_v49 = vrot.slane %v1271_v46, %v12016_v45  ;;  %v1309_v54 = vrot.slane %v1271_v46, %v12021_v50 }
 0x204   : > { %1377 = vmatpush1.bf16.msra.mxu1 %v10275_v29  ;;  %v10279_v33 = vld [vmem:[%s13713_s10 + $0x24] ss:$8 sps:$4 sm:$0xff]   ;;  %v10281_v34 = vld [vmem:[%s13713_s10 + $0x20] ss:$8 sps:$4 sm:$0xff]   ;;  %v10282_v35 = vld [vmem:[%s13713_s10 + $0x34] ss:$8 sps:$4 sm:$0xff]  }
 0x205   : > { %1378 = vmatprep.subr.bf16.mxu1 %v10276_v30  ;;  %v10284_v36 = vld [vmem:[%s13713_s10 + $0x30] ss:$8 sps:$4 sm:$0xff]   ;;  %s13740_s5 = smov 16   ;;  %p13741_p5 = scmp.ne.s32.totalorder %s13681_s7, 0 }
 0x206   : > { %9283 = vmatmul.mubr.msk.bf16.vlgmr.msra.gmra.mrb[0].mxu0 %vm1222_vm1, %v10272_v4 }
 0x207   : > { %s13721_s26 = smov %s13720_s15 }
 0x208   : > { %1379 = vmatpush1.bf16.msra.mxu1 %v10278_v31 }
 0x209   : > { %1380 = vmatprep.subr.bf16.mxu1 %v10279_v33 }
 0x20c   : > { %1381 = vmatpush1.bf16.msra.mxu1 %v10281_v34 }
 0x20d   : > { %1382 = vmatprep.subr.bf16.mxu1 %v10282_v35 }
 0x210   : > { %1383 = vmatpush1.bf16.msra.mxu1 %v10284_v36 }
 0x2d9   : > { %v1260_v6 = vpop.f32.mrb[0].mxu0 }
 0x2da   : > { %v1261_v8 = vadd.f32 %v8482_v5, %v1260_v6  ;;  %v9284_v9 = vpop.f32.mrb[1].mxu0 }
 0x2db   : > { %v1263_v10 = vpop.f32.mrb[2].mxu0 }
 0x2dc   : > { %v11991_v12 = vadd.f32 %v1267_v7, %v1261_v8  ;;  %v1264_v13 = vadd.f32 %v8482_v5, %v1263_v10  ;;  %v9285_v14 = vpop.f32.mrb[3].mxu0 }
 0x2de   : > { %v11993_v15 = vadd.f32 %v1268_v11, %v1264_v13  ;;  %v1273_v16 = vsel %vm1272_vm2, %v11991_v12, 0.0 }
 0x2df   : > { %1274 = vadd.xlane.f32.xlu0 %v1273_v16 }
 0x2e0   : > { %v1276_v17 = vsel %vm1272_vm2, %v11993_v15, 0.0 }
 0x2e3   : > { %1277 = vadd.xlane.f32.xlu0 %v1276_v17 }
 0x36c   : > { %v1275_v18 = vpop.xlane.xlu0 %1274 }
 0x36d   : > { %v1280_v19 = vmul.f32 0.015625, %v1275_v18 }
 0x36f   : > { %v1282_v20 = vsub.f32 %v11991_v12, %v1280_v19 }
 0x370   : > { %v1278_v21 = vpop.xlane.xlu0 %1277 }
 0x371   : > { %v1281_v22 = vmul.f32 0.015625, %v1278_v21  ;;  %v1284_v23 = vmul.f32 %v1282_v20, %v1282_v20 }
 0x373   : > { %v1283_v24 = vsub.f32 %v11993_v15, %v1281_v22  ;;  %v1286_v25 = vsel %vm1272_vm2, %v1284_v23, 0.0 }
 0x374   : > { %1287 = vadd.xlane.f32.xlu1 %v1286_v25 }
 0x375   : > { %v1285_v26 = vmul.f32 %v1283_v24, %v1283_v24 }
 0x377   : > { %v1289_v27 = vsel %vm1272_vm2, %v1285_v26, 0.0 }
 0x378   : > { %1290 = vadd.xlane.f32.xlu1 %v1289_v27 }
 0x401   : > { %v1288_v37 = vpop.xlane.xlu1 %1287 }
 0x402   : > { %v1292_v38 = vmul.f32 0.015625, %v1288_v37 }
 0x404   : > { %v1294_v39 = vadd.f32 1e-05, %v1292_v38 }
 0x405   : > { %v1291_v40 = vpop.xlane.xlu1 %1290 }
 0x406   : > { %10597 = vrsqrt.f32 %v1294_v39  ;;  %v1293_v42 = vmul.f32 0.015625, %v1291_v40 }
 0x408   : > { %v1295_v43 = vadd.f32 1e-05, %v1293_v42 }
 0x40a   : > { %10599 = vrsqrt.f32 %v1295_v43 }
 0x410   : > { %v10598_v47 = vpop.eup %10597 }
 0x411   : > { %v1298_v48 = vmul.f32 %v10598_v47, %v1282_v20 }
 0x413   : > { %v1304_v53 = vmul.f32 %v1303_v49, %v1298_v48 }
 0x414   : > { %v10600_v51 = vpop.eup %10599 }
 0x415   : > { %v1299_v52 = vmul.f32 %v10600_v51, %v1283_v24  ;;  %v1310_v56 = vadd.f32 %v1309_v54, %v1304_v53 }
 0x417   : > { %v1305_v55 = vmul.f32 %v1303_v49, %v1299_v52 }
 0x419   : > { %v1311_v57 = vadd.f32 %v1309_v54, %v1305_v55 }
 0x41b   : > { %v1320_v58 = vpack.c.bf16 %v1311_v57, %v1310_v56 }
 0x41d   : > { %8496 = vmatmul.mubr.msk.bf16.vlgmr.msra.gmra.mrb[0].mxu1 %vm1272_vm2, %v1320_v58 }
 0x4f0   : > { %v1410_v61 = vpop.f32.mrb[0].mxu1 }
 0x4f1   : > { %v1411_v63 = vadd.f32 %v1410_v61, %v1326_v60  ;;  %v1412_v1 = vpop.f32.mrb[1].mxu1 }
 0x4f2   : > { %v1414_v2 = vpop.f32.mrb[2].mxu1  ;;  %v12028_v5 = vadd.f32 %v1412_v1, %v1330_v62 }
 0x4f3   : > { %v1415_v3 = vadd.f32 %v1414_v2, %v1326_v60  ;;  %v1416_v4 = vpop.f32.mrb[3].mxu1  ;;  %9290 = vmatprep.mubr.msk.f32.mxu0 %vm1425_vm3, %v1411_v63 }
 0x4f4   : > { %v12030_v6 = vadd.f32 %v1416_v4, %v1330_v62 }
 0x4f5   : > { %v10144_v7 = vpack.i.bf16 %v1415_v3, %v1411_v63 }
 0x4f6   : > { %v10149_v8 = vpack.i.bf16 %v12030_v6, %v12028_v5  ;;  %v9788_v9 = vpack.c.bf16 %v12030_v6, %v12028_v5 }
 0x4f7   : > { %10145 = vrot.lane.b32.xlu1 %v10144_v7, %s13627_s18  ;;  %10140 = vrot.lane.b32.xlu0 %v10144_v7, %s13625_s19 }
 0x4fb   : > { %1613 = vrot.lane.b32.xlu1 %v1411_v63, %s13623_s28 }
 0x4ff   : > { %1615 = vrot.lane.b32.xlu1 %v1415_v3, %s13623_s28 }
 0x569   : > { %v10146_v10 = vpop.permute.xlu1 %10145  ;;  %v10141_v11 = vpop.permute.xlu0 %10140 }
 0x56a   : > { %v10148_v13 = vunpack.i.h.bf16 %v10146_v10  ;;  %v10147_v14 = vunpack.i.l.bf16 %v10146_v10  ;;  %v10143_v16 = vunpack.i.h.bf16 %v10141_v11  ;;  %v10142_v17 = vunpack.i.l.bf16 %v10141_v11  ;;  %v10286_v10 = vld [vmem:[#allocation8 + $0x8] sm:$0xff]   ;;  %v10287_v11 = vld [vmem:[#allocation8 + $0x10] sm:$0xff]  }
 0x56c   : > { %v9792_v19 = vpack.c.bf16 %v10148_v13, %v10147_v14  ;;  %v9782_v20 = vpack.c.bf16 %v10143_v16, %v10142_v17  ;;  %v10288_v13 = vld [vmem:[#allocation8 + $0x18] sm:$0xff]  }
 0x56d   : > { %v1614_v21 = vpop.permute.xlu1 %1613 }
 0x56e   : > { %9784 = vmatprep.subr.msk.bf16.mxu0 %vm12042_vm4, %v9782_v20  ;;  %9794 = vmatprep.subr.msk.bf16.mxu1 %vm12042_vm4, %v9792_v19 }
 0x56f   : > { %9304 = vmatprep.mubr.msk.f32.mxu1 %vm1425_vm3, %v1614_v21  ;;  %9787 = vmatpush3.bf16.xpose.msk.msra.mxu0 %vm12042_vm4, %v9782_v20 }
 0x570   : > { %9797 = vmatpush3.bf16.xpose.msk.msra.mxu1 %vm12042_vm4, %v9792_v19  ;;  %9789 = vmatprep.subr.bf16.mxu0 %v9788_v9 }
 0x571   : > { %9314 = vmatprep.subr.bf16.mxu1 %v11471_v0  ;;  %v1616_v22 = vpop.permute.xlu1 %1615 }
 0x576   : > { %9291 = vmatmul.mubr.msk.f32.vlgmr.msra.gmra.mrb[4].mxu0 %vm1425_vm3, %v1415_v3 }
 0x577   : > { %9305 = vmatmul.mubr.msk.f32.vlgmr.msra.gmra.mrb[4].mxu1 %vm1425_vm3, %v1616_v22  ;;  %9791 = vmatpush3.bf16.msra.mxu0 %v9788_v9  ;;  %v10285_v9 = vld [vmem:[#allocation8] sm:$0xff]  }
 0x578   : > { %9322 = vmatprep.mubr.msk.bf16.mxu1 %vm11472_vm0, %v11471_v0  ;;  %9315 = vmatpush3.bf16.msra.mxu1 %v10285_v9 }
 0x579   : > { %9316 = vmatprep.subr.bf16.mxu1 %v11471_v0 }
 0x57c   : > { %9317 = vmatpush3.bf16.msra.mxu1 %v10286_v10  ;;  %v10293_v10 = vld [vmem:[%s13718_s25] sm:$0xff]  }
 0x57d   : > { %9318 = vmatprep.subr.bf16.mxu1 %v11471_v0 }
 0x580   : > { %9319 = vmatpush3.bf16.msra.mxu1 %v10287_v11  ;;  %v10294_v11 = vld [vmem:[%s13718_s25 + $0x8] sm:$0xff]  }
 0x581   : > { %9320 = vmatprep.subr.bf16.mxu1 %v11471_v0 }
 0x584   : > { %9321 = vmatpush3.bf16.msra.mxu1 %v10288_v13  ;;  %v10295_v13 = vld [vmem:[%s13718_s25 + $0x10] sm:$0xff]  }
 0x585   : > { %9338 = vmatprep.subr.bf16.mxu1 %v11471_v0 }
 0x649   : > { %v9292_v23 = vpop.f32.mrb[4].mxu0 }
 0x64a   : > { %v9306_v24 = vpop.f32.mrb[4].mxu1  ;;  %v1500_v25 = vpop.f32.mrb[5].mxu0  ;;  %v1513_v26 = vsel %vm1509_vm5, %v9292_v23, -inf }
 0x64b   : > { %v1695_v27 = vpop.f32.mrb[5].mxu1  ;;  %1514 = vmax.xlane.f32.xlu1 %v1513_v26  ;;  %v1510_v28 = vsel %vm1509_vm5, %v1500_v25, -inf  ;;  %v1707_v30 = vsel %vm1509_vm5, %v9306_v24, -inf }
 0x64c   : > { %1511 = vmax.xlane.f32.xlu0 %v1510_v28  ;;  %v1704_v29 = vsel %vm1509_vm5, %v1695_v27, -inf  ;;  %v8514_v28 = vld [vmem:[%s13717_s3] ss:$0 sm:$0xff] }
 0x650   : > { %1705 = vmax.xlane.f32.xlu0 %v1704_v29 }
 0x654   : > { %1708 = vmax.xlane.f32.xlu0 %v1707_v30 }
 0x6d8   : > { %v1515_v31 = vpop.xlane.xlu1 %1514 }
 0x6d9   : > { %v1517_v33 = vsub.f32 %v9292_v23, %v1515_v31  ;;  %v1512_v34 = vpop.xlane.xlu0 %1511 }
 0x6da   : > { %v1516_v35 = vsub.f32 %v1500_v25, %v1512_v34 }
 0x6db   : > { %v1520_v36 = vmul.f32 1.442695, %v1517_v33 }
 0x6dc   : > { %v1518_v37 = vmul.f32 1.442695, %v1516_v35 }
 0x6dd   : > { %10601 = vpow2.f32 %v1520_v36  ;;  %v1706_v38 = vpop.xlane.xlu0 %1705 }
 0x6de   : > { %10603 = vpow2.f32 %v1518_v37  ;;  %v1710_v39 = vsub.f32 %v1695_v27, %v1706_v38 }
 0x6e0   : > { %v1712_v40 = vmul.f32 1.442695, %v1710_v39 }
 0x6e1   : > { %v1709_v42 = vpop.xlane.xlu0 %1708 }
 0x6e2   : > { %10605 = vpow2.f32 %v1712_v40  ;;  %v1711_v43 = vsub.f32 %v9306_v24, %v1709_v42 }
 0x6e4   : > { %v1714_v46 = vmul.f32 1.442695, %v1711_v43 }
 0x6e6   : > { %10607 = vpow2.f32 %v1714_v46 }
 0x6e7   : > { %v10602_v47 = vpop.eup %10601 }
 0x6e8   : > { %v10604_v48 = vpop.eup %10603  ;;  %v1525_v49 = vsel %vm1509_vm5, %v10602_v47, 0.0 }
 0x6e9   : > { %1526 = vadd.xlane.f32.xlu1 %v1525_v49  ;;  %v1522_v51 = vsel %vm1509_vm5, %v10604_v48, 0.0 }
 0x6ea   : > { %1523 = vadd.xlane.f32.xlu0 %v1522_v51  ;;  %v10289_v51 = vld [vmem:[#allocation11] sm:$0xff]  }
 0x6ec   : > { %v10606_v52 = vpop.eup %10605 }
 0x6ed   : > { %v1716_v53 = vsel %vm1509_vm5, %v10606_v52, 0.0 }
 0x6ee   : > { %1717 = vadd.xlane.f32.xlu0 %v1716_v53  ;;  %v10291_v53 = vld [vmem:[#allocation11 + $0x10] sm:$0xff]  }
 0x6f0   : > { %v10608_v54 = vpop.eup %10607 }
 0x6f1   : > { %v1719_v55 = vsel %vm1509_vm5, %v10608_v54, 0.0 }
 0x6f2   : > { %1720 = vadd.xlane.f32.xlu1 %v1719_v55 }
 0x704   : > { %10150 = vrot.lane.b32.xlu0 %v10149_v8, %s13623_s28 }
 0x776   : > { %v1527_v56 = vpop.xlane.xlu1 %1526 }
 0x777   : > { %10609 = vrcp.f32 %v1527_v56  ;;  %v1524_v57 = vpop.xlane.xlu0 %1523 }
 0x778   : > { %10611 = vrcp.f32 %v1524_v57 }
 0x77b   : > { %v1718_v58 = vpop.xlane.xlu0 %1717 }
 0x77c   : > { %10613 = vrcp.f32 %v1718_v58 }
 0x77f   : > { %v1721_v59 = vpop.xlane.xlu1 %1720  ;;  %v10151_v60 = vpop.permute.xlu0 %10150 }
 0x780   : > { %10615 = vrcp.f32 %v1721_v59  ;;  %v10153_v61 = vunpack.i.h.bf16 %v10151_v60  ;;  %v10152_v62 = vunpack.i.l.bf16 %v10151_v60 }
 0x781   : > { %v10610_v63 = vpop.eup %10609 }
 0x782   : > { %v10612_v1 = vpop.eup %10611  ;;  %v9798_v2 = vpack.c.bf16 %v10153_v61, %v10152_v62  ;;  %v1531_v4 = vmul.f32 %v10610_v63, %v10602_v47  ;;  %v1913_v61 = vld [vmem:[#allocation10] sm:$0x3] }
 0x783   : > { %v1530_v3 = vmul.f32 %v10612_v1, %v10604_v48  ;;  %v1943_v62 = vrot.slane %v1913_v61, %v12016_v45 }
 0x784   : > { %9799 = vmatprep.subr.bf16.mxu0 %v9798_v2 }
 0x785   : > { %9297 = vmatprep.mubr.msk.f32.mxu0 %vm1509_vm5, %v1530_v3 }
 0x786   : > { %v10614_v5 = vpop.eup %10613  ;;  %9298 = vmatmul.mubr.msk.f32.vlgmr.msra.gmra.mrb[6].mxu0 %vm1509_vm5, %v1531_v4 }
 0x787   : > { %9801 = vmatpush3.bf16.msra.mxu0 %v9798_v2  ;;  %v1724_v6 = vmul.f32 %v10614_v5, %v10606_v52  ;;  %v10290_v52 = vld [vmem:[#allocation11 + $0x8] sm:$0xff]   ;;  %v1949_v5 = vrot.slane %v1913_v61, %v12021_v50 }
 0x788   : > { %9326 = vmatprep.subr.bf16.mxu0 %v11471_v0 }
 0x789   : > { %9311 = vmatprep.mubr.msk.f32.mxu0 %vm1509_vm5, %v1724_v6 }
 0x78a   : > { %v10616_v7 = vpop.eup %10615 }
 0x78b   : > { %v1725_v8 = vmul.f32 %v10616_v7, %v10608_v54  ;;  %v10292_v54 = vld [vmem:[#allocation11 + $0x18] sm:$0xff]  }
 0x78d   : > { %9312 = vmatmul.mubr.msk.f32.vlgmr.msra.gmra.mrb[8].mxu0 %vm1509_vm5, %v1725_v8 }
 0x78e   : > { %9334 = vmatprep.mubr.msk.bf16.mxu0 %vm11472_vm0, %v11471_v0  ;;  %9327 = vmatpush3.bf16.msra.mxu0 %v10289_v51 }
 0x78f   : > { %9328 = vmatprep.subr.bf16.mxu0 %v11471_v0 }
 0x792   : > { %9329 = vmatpush3.bf16.msra.mxu0 %v10290_v52 }
 0x793   : > { %9330 = vmatprep.subr.bf16.mxu0 %v11471_v0 }
 0x796   : > { %9331 = vmatpush3.bf16.msra.mxu0 %v10291_v53  ;;  %v8529_v53 = vld [vmem:[#allocation14] ss:$0 sm:$0xff] }
 0x797   : > { %9332 = vmatprep.subr.bf16.mxu0 %v11471_v0 }
 0x79a   : > { %9333 = vmatpush3.bf16.msra.mxu0 %v10292_v54 }
 0x859   : > { %v9299_v14 = vpop.f32.mrb[6].mxu0 }
 0x85a   : > { %v1604_v16 = vpop.f32.mrb[7].mxu0 }
 0x860   : > { %v9313_v17 = vpop.f32.mrb[8].mxu0 }
 0x861   : > { %v1806_v19 = vpop.f32.mrb[9].mxu0 }
 0x862   : > { %v10154_v20 = vpack.i.bf16 %v9313_v17, %v1806_v19  ;;  %v10298_v17 = vld [vmem:[%s13718_s25 + $0x28] sm:$0xff]   ;;  %v10299_v19 = vld [vmem:[%s13718_s25 + $0x30] sm:$0xff]  }
 0x864   : > { %10155 = vrot.lane.b32.xlu1 %v10154_v20, %s13627_s18  ;;  %v10300_v20 = vld [vmem:[%s13718_s25 + $0x38] sm:$0xff]  }
 0x8d6   : > { %v10156_v21 = vpop.permute.xlu1 %10155 }
 0x8d7   : > { %v10158_v22 = vunpack.i.h.bf16 %v10156_v21  ;;  %v10157_v23 = vunpack.i.l.bf16 %v10156_v21  ;;  %v8515_v21 = vld [vmem:[#allocation13] ss:$0 sm:$0xff] }
 0x8d9   : > { %v1824_v24 = vsel %vm1425_vm3, %v9299_v14, %v10158_v22  ;;  %v1823_v25 = vsel %vm1425_vm3, %v1604_v16, %v10157_v23  ;;  %v10296_v14 = vld [vmem:[%s13718_s25 + $0x18] sm:$0xff]   ;;  %v10297_v16 = vld [vmem:[%s13718_s25 + $0x20] sm:$0xff]  }
 0x8da   : > { %v1833_v26 = vpack.c.bf16 %v1824_v24, %v1823_v25 }
 0x8dc   : > { %9323 = vmatmul.mubr.msk.bf16.vlgmr.msra.gmra.mrb[8].mxu1 %vm1272_vm2, %v1833_v26 }
 0x8dd   : > { %9354 = vmatprep.mubr.msk.bf16.mxu1 %vm11472_vm0, %v11471_v0  ;;  %9339 = vmatpush3.bf16.msra.mxu1 %v10293_v10  ;;  %v10306_v10 = vld [vmem:[%s13713_s10 + $0x54] ss:$8 sps:$4 sm:$0xff]  }
 0x8de   : > { %9340 = vmatprep.subr.bf16.mxu1 %v11471_v0 }
 0x8e1   : > { %9341 = vmatpush3.bf16.msra.mxu1 %v10294_v11  ;;  %v10304_v11 = vld [vmem:[%s13713_s10 + $0x50] ss:$8 sps:$4 sm:$0xff]  }
 0x8e2   : > { %9342 = vmatprep.subr.bf16.mxu1 %v11471_v0 }
 0x8e5   : > { %9343 = vmatpush3.bf16.msra.mxu1 %v10295_v13  ;;  %v10309_v13 = vld [vmem:[%s13713_s10 + $0x64] ss:$8 sps:$4 sm:$0xff]  }
 0x8e6   : > { %9344 = vmatprep.subr.bf16.mxu1 %v11471_v0 }
 0x8e9   : > { %9345 = vmatpush3.bf16.msra.mxu1 %v10296_v14  ;;  %v10307_v14 = vld [vmem:[%s13713_s10 + $0x60] ss:$8 sps:$4 sm:$0xff]  }
 0x8ea   : > { %9346 = vmatprep.subr.bf16.mxu1 %v11471_v0 }
 0x8ed   : > { %9347 = vmatpush3.bf16.msra.mxu1 %v10297_v16  ;;  %v10310_v16 = vld [vmem:[%s13713_s10 + $0x70] ss:$8 sps:$4 sm:$0xff]  }
 0x8ee   : > { %9348 = vmatprep.subr.bf16.mxu1 %v11471_v0 }
 0x8f1   : > { %9349 = vmatpush3.bf16.msra.mxu1 %v10298_v17  ;;  %v10312_v17 = vld [vmem:[%s13713_s10 + $0x74] ss:$8 sps:$4 sm:$0xff]  }
 0x8f2   : > { %9350 = vmatprep.subr.bf16.mxu1 %v11471_v0 }
 0x8f5   : > { %9351 = vmatpush3.bf16.msra.mxu1 %v10299_v19 }
 0x8f6   : > { %9352 = vmatprep.subr.bf16.mxu1 %v11471_v0 }
 0x8f9   : > { %9353 = vmatpush3.bf16.msra.mxu1 %v10300_v20 }
 0x9af   : > { %v1895_v27 = vpop.f32.mrb[8].mxu1 }
 0x9b0   : > { %v1902_v29 = vadd.f32 %v1895_v27, %v11991_v12  ;;  %v9324_v30 = vpop.f32.mrb[9].mxu1 }
 0x9b1   : > { %v1898_v31 = vpop.f32.mrb[10].mxu1 }
 0x9b2   : > { %v12091_v33 = vadd.f32 %v8514_v28, %v1902_v29  ;;  %v1903_v34 = vadd.f32 %v1898_v31, %v11993_v15  ;;  %v9325_v35 = vpop.f32.mrb[11].mxu1 }
 0x9b4   : > { %v12094_v36 = vadd.f32 %v8514_v28, %v1903_v34  ;;  %v1914_v37 = vsel %vm1272_vm2, %v12091_v33, 0.0 }
 0x9b5   : > { %1915 = vadd.xlane.f32.xlu1 %v1914_v37 }
 0x9b6   : > { %v1917_v38 = vsel %vm1272_vm2, %v12094_v36, 0.0 }
 0x9b7   : > { %1918 = vadd.xlane.f32.xlu0 %v1917_v38 }
 0xa42   : > { %v1916_v39 = vpop.xlane.xlu1 %1915 }
 0xa43   : > { %v1920_v40 = vmul.f32 0.015625, %v1916_v39 }
 0xa44   : > { %v1919_v12 = vpop.xlane.xlu0 %1918 }
 0xa45   : > { %v1922_v42 = vsub.f32 %v12091_v33, %v1920_v40  ;;  %v1921_v43 = vmul.f32 0.015625, %v1919_v12 }
 0xa47   : > { %v1923_v46 = vsub.f32 %v12094_v36, %v1921_v43  ;;  %v1924_v15 = vmul.f32 %v1922_v42, %v1922_v42 }
 0xa49   : > { %v1926_v47 = vsel %vm1272_vm2, %v1924_v15, 0.0  ;;  %v1925_v48 = vmul.f32 %v1923_v46, %v1923_v46 }
 0xa4a   : > { %1927 = vadd.xlane.f32.xlu0 %v1926_v47 }
 0xa4b   : > { %v1929_v49 = vsel %vm1272_vm2, %v1925_v48, 0.0 }
 0xa4c   : > { %1930 = vadd.xlane.f32.xlu1 %v1929_v49 }
 0xad7   : > { %v1928_v55 = vpop.xlane.xlu0 %1927 }
 0xad8   : > { %v1932_v56 = vmul.f32 0.015625, %v1928_v55 }
 0xad9   : > { %v1931_v57 = vpop.xlane.xlu1 %1930 }
 0xada   : > { %v1934_v58 = vadd.f32 1e-05, %v1932_v56  ;;  %v1933_v59 = vmul.f32 0.015625, %v1931_v57 }
 0xadc   : > { %10617 = vrsqrt.f32 %v1934_v58  ;;  %v1935_v60 = vadd.f32 1e-05, %v1933_v59 }
 0xade   : > { %10619 = vrsqrt.f32 %v1935_v60 }
 0xae6   : > { %v10618_v63 = vpop.eup %10617 }
 0xae7   : > { %v1938_v1 = vmul.f32 %v10618_v63, %v1922_v42 }
 0xae8   : > { %v10620_v2 = vpop.eup %10619 }
 0xae9   : > { %v1944_v3 = vmul.f32 %v1943_v62, %v1938_v1  ;;  %v1939_v4 = vmul.f32 %v10620_v2, %v1923_v46 }
 0xaeb   : > { %v1945_v6 = vmul.f32 %v1943_v62, %v1939_v4  ;;  %v1950_v7 = vadd.f32 %v1949_v5, %v1944_v3 }
 0xaed   : > { %v1951_v8 = vadd.f32 %v1949_v5, %v1945_v6 }
 0xaef   : > { %v1960_v9 = vpack.c.bf16 %v1951_v8, %v1950_v7  ;;  %v10303_v8 = vld [vmem:[%s13713_s10 + $0x44] ss:$8 sps:$4 sm:$0xff]  }
 0xaf0   : > { %2277 = vmatprep.subr.bf16.mxu0 %v10303_v8 }
 0xaf1   : > { %9335 = vmatmul.mubr.msk.bf16.vlgmr.msra.gmra.mrb[12].mxu0 %vm1272_vm2, %v1960_v9  ;;  %v10301_v9 = vld [vmem:[%s13713_s10 + $0x40] ss:$8 sps:$4 sm:$0xff]  }
 0xaf2   : > { %2309 = vmatprep.mubr.bf16.mxu0 %v11473_v32  ;;  %2278 = vmatpush1.bf16.msra.mxu0 %v10301_v9 }
 0xaf3   : > { %2279 = vmatprep.subr.bf16.mxu0 %v10306_v10 }
 0xaf6   : > { %2280 = vmatpush1.bf16.msra.mxu0 %v10304_v11 }
 0xaf7   : > { %2281 = vmatprep.subr.bf16.mxu0 %v10309_v13 }
 0xafa   : > { %2282 = vmatpush1.bf16.msra.mxu0 %v10307_v14 }
 0xafb   : > { %2283 = vmatprep.subr.bf16.mxu0 %v10312_v17 }
 0xafe   : > { %2284 = vmatpush1.bf16.msra.mxu0 %v10310_v16 }
 0xbc4   : > { %v2029_v22 = vpop.f32.mrb[12].mxu0 }
 0xbc5   : > { %v2030_v23 = vadd.f32 %v8515_v21, %v2029_v22  ;;  %v9336_v24 = vpop.f32.mrb[13].mxu0 }
 0xbc6   : > { %v2032_v25 = vpop.f32.mrb[14].mxu0 }
 0xbc7   : > { %v2036_v26 = vmul.f32 %v2030_v23, %v2030_v23  ;;  %v2033_v27 = vadd.f32 %v8515_v21, %v2032_v25  ;;  %v9337_v28 = vpop.f32.mrb[15].mxu0  ;;  %v8530_v25 = vld [vmem:[%s13714_s4 + $0x2] sm:$0x3]  ;;  %s13739_s4 = smov 48  }
 0xbc9   : > { %v2038_v29 = vmul.f32 %v2036_v26, %v2030_v23  ;;  %v2037_v30 = vmul.f32 %v2033_v27, %v2033_v27  ;;  %v2202_v26 = vrot.slane %v8530_v25, %v12016_v45 }
 0xbcb   : > { %v2040_v31 = vmul.f32 0.044715, %v2038_v29  ;;  %v2039_v34 = vmul.f32 %v2037_v30, %v2033_v27 }
 0xbcd   : > { %v2042_v35 = vadd.f32 %v2040_v31, %v2030_v23  ;;  %v2041_v37 = vmul.f32 0.044715, %v2039_v34  ;;  %v2208_v34 = vrot.slane %v8530_v25, %v12021_v50 }
 0xbcf   : > { %v2044_v38 = vmul.f32 0.7978846, %v2042_v35  ;;  %v2043_v39 = vadd.f32 %v2041_v37, %v2033_v27 }
 0xbd1   : > { %10621 = vtanh.f32 %v2044_v38  ;;  %v2045_v40 = vmul.f32 0.7978846, %v2043_v39 }
 0xbd3   : > { %10623 = vtanh.f32 %v2045_v40  ;;  %v2222_v40 = vld [vmem:[#allocation7 + $0x2] sm:$0x3] }
 0xbdb   : > { %v10622_v12 = vpop.eup %10621 }
 0xbdc   : > { %v2048_v42 = vadd.f32 1.0, %v10622_v12  ;;  %v2227_v12 = vrot.slane %v2222_v40, %v12016_v45 }
 0xbdd   : > { %v10624_v43 = vpop.eup %10623 }
 0xbde   : > { %v2050_v46 = vmul.f32 0.5, %v2048_v42  ;;  %v2049_v15 = vadd.f32 1.0, %v10624_v43  ;;  %v2231_v43 = vrot.slane %v2222_v40, %v12021_v50 }
 0xbe0   : > { %v2051_v47 = vmul.f32 0.5, %v2049_v15  ;;  %v2052_v48 = vmul.f32 %v2050_v46, %v2030_v23 }
 0xbe2   : > { %v2053_v49 = vmul.f32 %v2051_v47, %v2033_v27 }
 0xbe4   : > { %v2070_v51 = vpack.c.bf16 %v2053_v49, %v2052_v48 }
 0xbe6   : > { %9355 = vmatmul.mubr.bf16.vlgmr.msra.gmra.mrb[12].mxu1 %v2070_v51 }
 0xcb9   : > { %v2153_v52 = vpop.f32.mrb[12].mxu1 }
 0xcba   : > { %v2160_v54 = vadd.f32 %v2153_v52, %v12091_v33  ;;  %v9356_v55 = vpop.f32.mrb[13].mxu1 }
 0xcbb   : > { %v2156_v56 = vpop.f32.mrb[14].mxu1 }
 0xcbc   : > { %v12127_v57 = vadd.f32 %v8529_v53, %v2160_v54  ;;  %v2161_v58 = vadd.f32 %v2156_v56, %v12094_v36  ;;  %v9357_v59 = vpop.f32.mrb[15].mxu1 }
 0xcbe   : > { %v12130_v60 = vadd.f32 %v8529_v53, %v2161_v58  ;;  %v2173_v61 = vsel %vm1272_vm2, %v12127_v57, 0.0 }
 0xcbf   : > { %2174 = vadd.xlane.f32.xlu0 %v2173_v61 }
 0xcc0   : > { %v2176_v62 = vsel %vm1272_vm2, %v12130_v60, 0.0 }
 0xcc1   : > { %2177 = vadd.xlane.f32.xlu1 %v2176_v62 }
 0xd4c   : > { %v2175_v33 = vpop.xlane.xlu0 %2174 }
 0xd4d   : > { %v2179_v63 = vmul.f32 0.015625, %v2175_v33 }
 0xd4e   : > { %v2178_v1 = vpop.xlane.xlu1 %2177 }
 0xd4f   : > { %v2181_v36 = vsub.f32 %v12127_v57, %v2179_v63  ;;  %v2180_v2 = vmul.f32 0.015625, %v2178_v1 }
 0xd51   : > { %v2182_v3 = vsub.f32 %v12130_v60, %v2180_v2  ;;  %v2183_v4 = vmul.f32 %v2181_v36, %v2181_v36 }
 0xd53   : > { %v2185_v5 = vsel %vm1272_vm2, %v2183_v4, 0.0  ;;  %v2184_v6 = vmul.f32 %v2182_v3, %v2182_v3 }
 0xd54   : > { %2186 = vadd.xlane.f32.xlu0 %v2185_v5 }
 0xd55   : > { %v2188_v7 = vsel %vm1272_vm2, %v2184_v6, 0.0 }
 0xd56   : > { %2189 = vadd.xlane.f32.xlu1 %v2188_v7 }
 0xde1   : > { %v2187_v19 = vpop.xlane.xlu0 %2186 }
 0xde2   : > { %v2191_v20 = vmul.f32 0.015625, %v2187_v19 }
 0xde3   : > { %v2190_v21 = vpop.xlane.xlu1 %2189 }
 0xde4   : > { %v2193_v22 = vadd.f32 1e-05, %v2191_v20  ;;  %v2192_v23 = vmul.f32 0.015625, %v2190_v21 }
 0xde6   : > { %10625 = vrsqrt.f32 %v2193_v22  ;;  %v2194_v24 = vadd.f32 1e-05, %v2192_v23 }
 0xde8   : > { %10627 = vrsqrt.f32 %v2194_v24 }
 0xdf0   : > { %v10626_v27 = vpop.eup %10625 }
 0xdf1   : > { %v2197_v28 = vmul.f32 %v10626_v27, %v2181_v36 }
 0xdf2   : > { %v10628_v29 = vpop.eup %10627 }
 0xdf3   : > { %v2203_v30 = vmul.f32 %v2202_v26, %v2197_v28  ;;  %v2198_v31 = vmul.f32 %v10628_v29, %v2182_v3 }
 0xdf5   : > { %v2204_v35 = vmul.f32 %v2202_v26, %v2198_v31  ;;  %v2209_v37 = vadd.f32 %v2208_v34, %v2203_v30 }
 0xdf7   : > { %v2210_v38 = vadd.f32 %v2208_v34, %v2204_v35 }
 0xdf9   : > { %v2220_v39 = vpack.c.bf16 %v2210_v38, %v2209_v37 }
 0xdfb   : > { %8547 = vmatmul.mubr.msk.bf16.vlgmr.msra.gmra.mrb[16].mxu0 %vm1272_vm2, %v2220_v39 }
 0xece   : > { %v2311_v42 = vpop.f32.mrb[16].mxu0 }
 0xecf   : > { %v2312_v46 = vadd.f32 %v2311_v42, %v2227_v12  ;;  %v2313_v15 = vpop.f32.mrb[17].mxu0 }
 0xed0   : > { %v2315_v47 = vpop.f32.mrb[18].mxu0  ;;  %v12155_v51 = vadd.f32 %v2313_v15, %v2231_v43 }
 0xed1   : > { %v2316_v48 = vadd.f32 %v2315_v47, %v2227_v12  ;;  %v2317_v49 = vpop.f32.mrb[19].mxu0  ;;  %9362 = vmatprep.mubr.msk.f32.mxu0 %vm1425_vm3, %v2312_v46 }
 0xed2   : > { %v12157_v52 = vadd.f32 %v2317_v49, %v2231_v43 }
 0xed3   : > { %v10159_v53 = vpack.i.bf16 %v2316_v48, %v2312_v46 }
 0xed4   : > { %v10169_v54 = vpack.i.bf16 %v12157_v52, %v12155_v51  ;;  %v9808_v55 = vpack.c.bf16 %v12157_v52, %v12155_v51  ;;  %v10313_v51 = vld [vmem:[#allocation8 + $0x20] sm:$0xff]   ;;  %v10314_v52 = vld [vmem:[#allocation8 + $0x28] sm:$0xff]  }
 0xed5   : > { %10160 = vrot.lane.b32.xlu0 %v10159_v53, %s13625_s19 }
 0xed9   : > { %2512 = vrot.lane.b32.xlu0 %v2312_v46, %s13623_s28 }
 0xedd   : > { %2514 = vrot.lane.b32.xlu0 %v2316_v48, %s13623_s28 }
 0xf47   : > { %v10161_v56 = vpop.permute.xlu0 %10160 }
 0xf48   : > { %v10163_v58 = vunpack.i.h.bf16 %v10161_v56  ;;  %v10162_v59 = vunpack.i.l.bf16 %v10161_v56 }
 0xf4a   : > { %v9802_v61 = vpack.c.bf16 %v10163_v58, %v10162_v59 }
 0xf4b   : > { %v2513_v24 = vpop.permute.xlu0 %2512 }
 0xf4c   : > { %9804 = vmatprep.subr.msk.bf16.mxu0 %vm12042_vm4, %v9802_v61 }
 0xf4d   : > { %9807 = vmatpush3.bf16.xpose.msk.msra.mxu0 %vm12042_vm4, %v9802_v61 }
 0xf4e   : > { %9809 = vmatprep.subr.bf16.mxu0 %v9808_v55 }
 0xf4f   : > { %v2515_v25 = vpop.permute.xlu0 %2514 }
 0xf54   : > { %9363 = vmatmul.mubr.msk.f32.vlgmr.msra.gmra.mrb[10].mxu0 %vm1425_vm3, %v2316_v48 }
 0xf55   : > { %9811 = vmatpush3.bf16.msra.mxu0 %v9808_v55 }
0x1027   : > { %v9364_v62 = vpop.f32.mrb[10].mxu0 }
0x1028   : > { %v2400_v33 = vpop.f32.mrb[11].mxu0  ;;  %v2412_v1 = vsel %vm1509_vm5, %v9364_v62, -inf }
0x1029   : > { %v2409_v63 = vsel %vm1509_vm5, %v2400_v33, -inf }
0x102a   : > { %2410 = vmax.xlane.f32.xlu1 %v2409_v63 }
0x102e   : > { %2413 = vmax.xlane.f32.xlu1 %v2412_v1 }
0x10b7   : > { %v2411_v36 = vpop.xlane.xlu1 %2410 }
0x10b8   : > { %v2415_v2 = vsub.f32 %v2400_v33, %v2411_v36 }
0x10ba   : > { %v2417_v5 = vmul.f32 1.442695, %v2415_v2 }
0x10bb   : > { %v2414_v3 = vpop.xlane.xlu1 %2413 }
0x10bc   : > { %v2416_v4 = vsub.f32 %v9364_v62, %v2414_v3  ;;  %v10316_v62 = vld [vmem:[#allocation8 + $0x38] sm:$0xff]  }
0x10be   : > { %v2419_v6 = vmul.f32 1.442695, %v2416_v4 }
0x10c0   : > { %10629 = vpow2.f32 %v2419_v6 }
0x10c1   : > { %10631 = vpow2.f32 %v2417_v5 }
0x10ca   : > { %v10630_v7 = vpop.eup %10629 }
0x10cb   : > { %v2424_v8 = vsel %vm1509_vm5, %v10630_v7, 0.0  ;;  %v10632_v9 = vpop.eup %10631 }
0x10cc   : > { %2425 = vadd.xlane.f32.xlu1 %v2424_v8  ;;  %v2421_v10 = vsel %vm1509_vm5, %v10632_v9, 0.0  ;;  %v8566_v8 = vld [vmem:[%s13717_s3 + $0x1] ss:$0 sm:$0xff]  ;;  %s13738_s3 = smov 80  }
0x10d0   : > { %2422 = vadd.xlane.f32.xlu1 %v2421_v10 }
0x10e1   : > { %10165 = vrot.lane.b32.xlu1 %v10159_v53, %s13627_s18 }
0x1159   : > { %v2426_v11 = vpop.xlane.xlu1 %2425 }
0x115a   : > { %10633 = vrcp.f32 %v2426_v11 }
0x115d   : > { %v2423_v13 = vpop.xlane.xlu1 %2422 }
0x115e   : > { %10635 = vrcp.f32 %v2423_v13 }
0x1161   : > { %v10166_v14 = vpop.permute.xlu1 %10165 }
0x1162   : > { %v10168_v16 = vunpack.i.h.bf16 %v10166_v14  ;;  %v10167_v17 = vunpack.i.l.bf16 %v10166_v14 }
0x1164   : > { %v9812_v19 = vpack.c.bf16 %v10168_v16, %v10167_v17  ;;  %v10634_v20 = vpop.eup %10633 }
0x1165   : > { %v2430_v23 = vmul.f32 %v10634_v20, %v10630_v7 }
0x1166   : > { %9814 = vmatprep.subr.msk.bf16.mxu0 %vm12042_vm4, %v9812_v19 }
0x1168   : > { %v10636_v21 = vpop.eup %10635 }
0x1169   : > { %v2429_v22 = vmul.f32 %v10636_v21, %v10632_v9 }
0x116b   : > { %9369 = vmatprep.mubr.msk.f32.mxu0 %vm1509_vm5, %v2429_v22 }
0x116c   : > { %9370 = vmatmul.mubr.msk.f32.vlgmr.msra.gmra.mrb[20].mxu0 %vm1509_vm5, %v2430_v23 }
0x116d   : > { %9817 = vmatpush3.bf16.xpose.msk.msra.mxu0 %vm12042_vm4, %v9812_v19  ;;  %9376 = vmatprep.mubr.msk.f32.mxu0 %vm1425_vm3, %v2513_v24 }
0x116e   : > { %9386 = vmatprep.subr.bf16.mxu0 %v11471_v0 }
0x1174   : > { %9377 = vmatmul.mubr.msk.f32.vlgmr.msra.gmra.mrb[22].mxu0 %vm1425_vm3, %v2515_v25 }
0x1175   : > { %9394 = vmatprep.mubr.msk.bf16.mxu0 %vm11472_vm0, %v11471_v0  ;;  %9387 = vmatpush3.bf16.msra.mxu0 %v10313_v51  ;;  %v10324_v51 = vld [vmem:[%s13718_s25 + $0x58] sm:$0xff]  }
0x1176   : > { %9388 = vmatprep.subr.bf16.mxu0 %v11471_v0 }
0x1179   : > { %9389 = vmatpush3.bf16.msra.mxu0 %v10314_v52  ;;  %v10325_v52 = vld [vmem:[%s13718_s25 + $0x60] sm:$0xff]  }
0x117a   : > { %9390 = vmatprep.subr.bf16.mxu0 %v11471_v0 }
0x123f   : > { %v9371_v26 = vpop.f32.mrb[20].mxu0 }
0x1240   : > { %v2503_v27 = vpop.f32.mrb[21].mxu0 }
0x1247   : > { %v9378_v28 = vpop.f32.mrb[22].mxu0 }
0x1248   : > { %v2594_v29 = vpop.f32.mrb[23].mxu0  ;;  %v2606_v30 = vsel %vm1509_vm5, %v9378_v28, -inf }
0x1249   : > { %2607 = vmax.xlane.f32.xlu1 %v2606_v30  ;;  %v2603_v31 = vsel %vm1509_vm5, %v2594_v29, -inf  ;;  %v10318_v30 = vld [vmem:[#allocation11 + $0x28] sm:$0xff]  }
0x124a   : > { %2604 = vmax.xlane.f32.xlu0 %v2603_v31  ;;  %v10319_v31 = vld [vmem:[#allocation11 + $0x30] sm:$0xff]  }
0x12d6   : > { %v2608_v34 = vpop.xlane.xlu1 %2607 }
0x12d7   : > { %v2610_v35 = vsub.f32 %v9378_v28, %v2608_v34  ;;  %v2605_v37 = vpop.xlane.xlu0 %2604  ;;  %v10320_v34 = vld [vmem:[#allocation11 + $0x38] sm:$0xff]  }
0x12d8   : > { %v2609_v38 = vsub.f32 %v2594_v29, %v2605_v37  ;;  %v10317_v29 = vld [vmem:[#allocation11 + $0x20] sm:$0xff]  }
0x12d9   : > { %v2613_v39 = vmul.f32 1.442695, %v2610_v35 }
0x12da   : > { %v2611_v40 = vmul.f32 1.442695, %v2609_v38 }
0x12db   : > { %10637 = vpow2.f32 %v2613_v39 }
0x12dc   : > { %10639 = vpow2.f32 %v2611_v40 }
0x12e5   : > { %v10638_v12 = vpop.eup %10637 }
0x12e6   : > { %v2618_v42 = vsel %vm1509_vm5, %v10638_v12, 0.0  ;;  %v10640_v43 = vpop.eup %10639 }
0x12e7   : > { %2619 = vadd.xlane.f32.xlu0 %v2618_v42  ;;  %v2615_v46 = vsel %vm1509_vm5, %v10640_v43, 0.0  ;;  %v2815_v42 = vld [vmem:[#allocation10 + $0x2] sm:$0x3] }
0x12eb   : > { %2616 = vadd.xlane.f32.xlu0 %v2615_v46 }
0x1301   : > { %10170 = vrot.lane.b32.xlu0 %v10169_v54, %s13623_s28  ;;  %v10315_v54 = vld [vmem:[#allocation8 + $0x30] sm:$0xff]   ;;  %s8481_s28 = sshll.u32 %s11983_s1, 2  ;;  %s13631_s1 = smov 112  }
0x1302   : > { %9391 = vmatpush3.bf16.msra.mxu0 %v10315_v54  ;;  %v10326_v54 = vld [vmem:[%s13718_s25 + $0x68] sm:$0xff]   ;;  %s1182_s19 = scalar_lea.vmem %s13722_s22, %s8481_s28  ;;  %s13636_s28 = smov 48  }
0x1303   : > { %9392 = vmatprep.subr.bf16.mxu0 %v11471_v0  ;;  %s13634_s22 = smov 16  }
0x1306   : > { %9393 = vmatpush3.bf16.msra.mxu0 %v10316_v62  ;;  %v10327_v62 = vld [vmem:[%s13718_s25 + $0x70] sm:$0xff]  }
0x1307   : > { %9410 = vmatprep.subr.bf16.mxu0 %v11471_v0 }
0x1374   : > { %v2620_v15 = vpop.xlane.xlu0 %2619 }
0x1375   : > { %10641 = vrcp.f32 %v2620_v15 }
0x1378   : > { %v2617_v47 = vpop.xlane.xlu0 %2616 }
0x1379   : > { %10643 = vrcp.f32 %v2617_v47 }
0x137c   : > { %v10171_v48 = vpop.permute.xlu0 %10170 }
0x137d   : > { %v10173_v49 = vunpack.i.h.bf16 %v10171_v48  ;;  %v10172_v53 = vunpack.i.l.bf16 %v10171_v48 }
0x137f   : > { %v9818_v55 = vpack.c.bf16 %v10173_v49, %v10172_v53  ;;  %v10642_v56 = vpop.eup %10641  ;;  %v2851_v53 = vrot.slane %v2815_v42, %v12021_v50  ;;  %v10323_v50 = vld [vmem:[%s13718_s25 + $0x50] sm:$0xff]  }
0x1380   : > { %v2624_v61 = vmul.f32 %v10642_v56, %v10638_v12 }
0x1381   : > { %9819 = vmatprep.subr.bf16.mxu1 %v9818_v55 }
0x1382   : > { %9821 = vmatpush3.bf16.msra.mxu1 %v9818_v55 }
0x1383   : > { %v10644_v58 = vpop.eup %10643  ;;  %9398 = vmatprep.subr.bf16.mxu1 %v11471_v0 }
0x1384   : > { %v2623_v59 = vmul.f32 %v10644_v58, %v10640_v43  ;;  %v2845_v43 = vrot.slane %v2815_v42, %v12016_v45  ;;  %v10321_v45 = vld [vmem:[%s13718_s25 + $0x40] sm:$0xff]  }
0x1386   : > { %9383 = vmatprep.mubr.msk.f32.mxu1 %vm1509_vm5, %v2623_v59 }
0x1387   : > { %9384 = vmatmul.mubr.msk.f32.vlgmr.msra.gmra.mrb[6].mxu1 %vm1509_vm5, %v2624_v61  ;;  %v10322_v61 = vld [vmem:[%s13718_s25 + $0x48] sm:$0xff]  }
0x1388   : > { %9406 = vmatprep.mubr.msk.bf16.mxu1 %vm11472_vm0, %v11471_v0  ;;  %9399 = vmatpush3.bf16.msra.mxu1 %v10317_v29  ;;  %v8597_v29 = vld [vmem:[#allocation14 + $0x1] ss:$0 sm:$0xff] }
0x1389   : > { %9400 = vmatprep.subr.bf16.mxu1 %v11471_v0 }
0x138c   : > { %9401 = vmatpush3.bf16.msra.mxu1 %v10318_v30 }
0x138d   : > { %9402 = vmatprep.subr.bf16.mxu1 %v11471_v0 }
0x1390   : > { %9403 = vmatpush3.bf16.msra.mxu1 %v10319_v31 }
0x1391   : > { %9404 = vmatprep.subr.bf16.mxu1 %v11471_v0 }
0x1394   : > { %9405 = vmatpush3.bf16.msra.mxu1 %v10320_v34 }
0x1395   : > { %9430 = vmatprep.subr.bf16.mxu1 %v11471_v0 }
0x145a   : > { %v9385_v33 = vpop.f32.mrb[6].mxu1 }
0x145b   : > { %v2705_v63 = vpop.f32.mrb[7].mxu1 }
0x145c   : > { %v10174_v1 = vpack.i.bf16 %v9385_v33, %v2705_v63  ;;  %v10328_v33 = vld [vmem:[%s13718_s25 + $0x78] sm:$0xff]   ;;  %v8567_v63 = vld [vmem:[#allocation13 + $0x1] ss:$0 sm:$0xff] }
0x145e   : > { %10175 = vrot.lane.b32.xlu1 %v10174_v1, %s13627_s18 }
0x14d0   : > { %v10176_v36 = vpop.permute.xlu1 %10175 }
0x14d1   : > { %v10178_v2 = vunpack.i.h.bf16 %v10176_v36  ;;  %v10177_v3 = vunpack.i.l.bf16 %v10176_v36 }
0x14d3   : > { %v2723_v4 = vsel %vm1425_vm3, %v9371_v26, %v10178_v2  ;;  %v2722_v5 = vsel %vm1425_vm3, %v2503_v27, %v10177_v3 }
0x14d4   : > { %v2733_v6 = vpack.c.bf16 %v2723_v4, %v2722_v5 }
0x14d6   : > { %9395 = vmatmul.mubr.msk.bf16.vlgmr.msra.gmra.mrb[24].mxu0 %vm1272_vm2, %v2733_v6 }
0x14d7   : > { %9426 = vmatprep.mubr.msk.bf16.mxu0 %vm11472_vm0, %v11471_v0  ;;  %9411 = vmatpush3.bf16.msra.mxu0 %v10321_v45 }
0x14d8   : > { %9412 = vmatprep.subr.bf16.mxu0 %v11471_v0 }
0x14db   : > { %9413 = vmatpush3.bf16.msra.mxu0 %v10322_v61 }
0x14dc   : > { %9414 = vmatprep.subr.bf16.mxu0 %v11471_v0 }
0x14df   : > { %9415 = vmatpush3.bf16.msra.mxu0 %v10323_v50 }
0x14e0   : > { %9416 = vmatprep.subr.bf16.mxu0 %v11471_v0 }
0x14e3   : > { %9417 = vmatpush3.bf16.msra.mxu0 %v10324_v51 }
0x14e4   : > { %9418 = vmatprep.subr.bf16.mxu0 %v11471_v0 }
0x14e7   : > { %9419 = vmatpush3.bf16.msra.mxu0 %v10325_v52 }
0x14e8   : > { %9420 = vmatprep.subr.bf16.mxu0 %v11471_v0 }
0x14eb   : > { %9421 = vmatpush3.bf16.msra.mxu0 %v10326_v54 }
0x14ec   : > { %9422 = vmatprep.subr.bf16.mxu0 %v11471_v0 }
0x14ef   : > { %9423 = vmatpush3.bf16.msra.mxu0 %v10327_v62 }
0x14f0   : > { %9424 = vmatprep.subr.bf16.mxu0 %v11471_v0 }
0x14f3   : > { %9425 = vmatpush3.bf16.msra.mxu0 %v10328_v33  ;;  %v8598_v33 = vld [vmem:[#allocation16] ss:$0 sm:$0xff] }
0x15a9   : > { %v2795_v7 = vpop.f32.mrb[24].mxu0 }
0x15aa   : > { %v2802_v9 = vadd.f32 %v2795_v7, %v12127_v57  ;;  %v9396_v10 = vpop.f32.mrb[25].mxu0 }
0x15ab   : > { %v2798_v11 = vpop.f32.mrb[26].mxu0 }
0x15ac   : > { %v12212_v13 = vadd.f32 %v8566_v8, %v2802_v9  ;;  %v2803_v14 = vadd.f32 %v2798_v11, %v12130_v60  ;;  %v9397_v16 = vpop.f32.mrb[27].mxu0 }
0x15ae   : > { %v12215_v17 = vadd.f32 %v8566_v8, %v2803_v14  ;;  %v2816_v19 = vsel %vm1272_vm2, %v12212_v13, 0.0 }
0x15af   : > { %2817 = vadd.xlane.f32.xlu1 %v2816_v19 }
0x15b0   : > { %v2819_v20 = vsel %vm1272_vm2, %v12215_v17, 0.0 }
0x15b1   : > { %2820 = vadd.xlane.f32.xlu0 %v2819_v20 }
0x163c   : > { %v2818_v21 = vpop.xlane.xlu1 %2817 }
0x163d   : > { %v2822_v22 = vmul.f32 0.015625, %v2818_v21 }
0x163e   : > { %v2821_v57 = vpop.xlane.xlu0 %2820 }
0x163f   : > { %v2824_v23 = vsub.f32 %v12212_v13, %v2822_v22  ;;  %v2823_v24 = vmul.f32 0.015625, %v2821_v57 }
0x1641   : > { %v2825_v25 = vsub.f32 %v12215_v17, %v2823_v24  ;;  %v2826_v60 = vmul.f32 %v2824_v23, %v2824_v23 }
0x1643   : > { %v2828_v26 = vsel %vm1272_vm2, %v2826_v60, 0.0  ;;  %v2827_v27 = vmul.f32 %v2825_v25, %v2825_v25 }
0x1644   : > { %2829 = vadd.xlane.f32.xlu0 %v2828_v26 }
0x1645   : > { %v2831_v28 = vsel %vm1272_vm2, %v2827_v27, 0.0 }
0x1646   : > { %2832 = vadd.xlane.f32.xlu1 %v2831_v28 }
0x16d1   : > { %v2830_v35 = vpop.xlane.xlu0 %2829 }
0x16d2   : > { %v2834_v37 = vmul.f32 0.015625, %v2830_v35 }
0x16d3   : > { %v2833_v38 = vpop.xlane.xlu1 %2832 }
0x16d4   : > { %v2836_v39 = vadd.f32 1e-05, %v2834_v37  ;;  %v2835_v40 = vmul.f32 0.015625, %v2833_v38 }
0x16d6   : > { %10645 = vrsqrt.f32 %v2836_v39  ;;  %v2837_v12 = vadd.f32 1e-05, %v2835_v40 }
0x16d8   : > { %10647 = vrsqrt.f32 %v2837_v12 }
0x16e0   : > { %v10646_v46 = vpop.eup %10645 }
0x16e1   : > { %v2840_v15 = vmul.f32 %v10646_v46, %v2824_v23 }
0x16e2   : > { %v10648_v47 = vpop.eup %10647 }
0x16e3   : > { %v2846_v48 = vmul.f32 %v2845_v43, %v2840_v15  ;;  %v2841_v49 = vmul.f32 %v10648_v47, %v2825_v25 }
0x16e5   : > { %v2847_v55 = vmul.f32 %v2845_v43, %v2841_v49  ;;  %v2852_v56 = vadd.f32 %v2851_v53, %v2846_v48 }
0x16e7   : > { %v2853_v58 = vadd.f32 %v2851_v53, %v2847_v55  ;;  %v10329_v55 = vld [vmem:[%s13719_s11] sm:$0xff]  }
0x16e9   : > { %v2863_v59 = vpack.c.bf16 %v2853_v58, %v2852_v56  ;;  %v10330_v56 = vld [vmem:[%s13719_s11 + $0x8] sm:$0xff]   ;;  %v10331_v58 = vld [vmem:[%s13719_s11 + $0x10] sm:$0xff]  }
0x16eb   : > { %9407 = vmatmul.mubr.msk.bf16.vlgmr.msra.gmra.mrb[16].mxu1 %vm1272_vm2, %v2863_v59  ;;  %v10332_v59 = vld [vmem:[%s13719_s11 + $0x18] sm:$0xff]  }
0x16ec   : > { %9438 = vmatprep.mubr.msk.bf16.mxu1 %vm11472_vm0, %v11471_v0  ;;  %9431 = vmatpush3.bf16.msra.mxu1 %v10329_v55  ;;  %v10349_v55 = vld [vmem:[%s13721_s26 + $0x34] ss:$12 sps:$4 sm:$0xff]  }
0x16ed   : > { %9432 = vmatprep.subr.bf16.mxu1 %v11471_v0 }
0x16f0   : > { %9433 = vmatpush3.bf16.msra.mxu1 %v10330_v56  ;;  %v10347_v56 = vld [vmem:[%s13721_s26 + $0x30] ss:$12 sps:$4 sm:$0xff]  }
0x16f1   : > { %9434 = vmatprep.subr.bf16.mxu1 %v11471_v0 }
0x16f4   : > { %9435 = vmatpush3.bf16.msra.mxu1 %v10331_v58  ;;  %v8606_v58 = vld [vmem:[#allocation20] ss:$0 sm:$0xff] }
0x16f5   : > { %9436 = vmatprep.subr.bf16.mxu1 %v11471_v0 }
0x16f8   : > { %9437 = vmatpush3.bf16.msra.mxu1 %v10332_v59  ;;  %v3332_v59 = vld [vmem:[%s1182_s19] sm:$0xf]  ;;  %s13629_s19 = smov 80  }
0x16f9   : > { %9442 = vmatprep.subr.bf16.mxu1 %v11471_v0 }
0x17be   : > { %v2933_v1 = vpop.f32.mrb[16].mxu1 }
0x17bf   : > { %v2934_v36 = vadd.f32 %v8567_v63, %v2933_v1  ;;  %v9408_v2 = vpop.f32.mrb[17].mxu1 }
0x17c0   : > { %v2936_v3 = vpop.f32.mrb[18].mxu1 }
0x17c1   : > { %v2940_v4 = vmul.f32 %v2934_v36, %v2934_v36  ;;  %v2937_v5 = vadd.f32 %v8567_v63, %v2936_v3  ;;  %v9409_v6 = vpop.f32.mrb[19].mxu1  ;;  %v8599_v3 = vld [vmem:[#allocation16 + $0x1] ss:$0 sm:$0xff] }
0x17c3   : > { %v2942_v7 = vmul.f32 %v2940_v4, %v2934_v36  ;;  %v2941_v8 = vmul.f32 %v2937_v5, %v2937_v5 }
0x17c5   : > { %v2944_v9 = vmul.f32 0.044715, %v2942_v7  ;;  %v2943_v10 = vmul.f32 %v2941_v8, %v2937_v5  ;;  %v10333_v8 = vld [vmem:[#allocation19] sm:$0xff]  }
0x17c7   : > { %v2946_v11 = vadd.f32 %v2944_v9, %v2934_v36  ;;  %v2945_v14 = vmul.f32 0.044715, %v2943_v10  ;;  %v10334_v9 = vld [vmem:[#allocation19 + $0x8] sm:$0xff]   ;;  %v10335_v10 = vld [vmem:[#allocation19 + $0x10] sm:$0xff]  }
0x17c9   : > { %v2948_v16 = vmul.f32 0.7978846, %v2946_v11  ;;  %v2947_v19 = vadd.f32 %v2945_v14, %v2937_v5  ;;  %v10336_v11 = vld [vmem:[#allocation19 + $0x18] sm:$0xff]   ;;  %v10337_v14 = vld [vmem:[#allocation19 + $0x20] sm:$0xff]  }
0x17cb   : > { %10649 = vtanh.f32 %v2948_v16  ;;  %v2949_v20 = vmul.f32 0.7978846, %v2947_v19  ;;  %v10338_v16 = vld [vmem:[#allocation19 + $0x28] sm:$0xff]   ;;  %v10339_v19 = vld [vmem:[#allocation19 + $0x30] sm:$0xff]  }
0x17cd   : > { %10651 = vtanh.f32 %v2949_v20  ;;  %v10340_v20 = vld [vmem:[#allocation19 + $0x38] sm:$0xff]  }
0x17d5   : > { %v10650_v21 = vpop.eup %10649 }
0x17d6   : > { %v2952_v22 = vadd.f32 1.0, %v10650_v21  ;;  %v8600_v21 = vld [vmem:[#allocation17] ss:$0 sm:$0xff] }
0x17d7   : > { %v10652_v57 = vpop.eup %10651 }
0x17d8   : > { %v2954_v23 = vmul.f32 0.5, %v2952_v22  ;;  %v2953_v24 = vadd.f32 1.0, %v10652_v57 }
0x17da   : > { %v2955_v25 = vmul.f32 0.5, %v2953_v24  ;;  %v2956_v60 = vmul.f32 %v2954_v23, %v2934_v36 }
0x17dc   : > { %v2957_v26 = vmul.f32 %v2955_v25, %v2937_v5 }
0x17de   : > { %v2975_v27 = vpack.c.bf16 %v2957_v26, %v2956_v60 }
0x17e0   : > { %9427 = vmatmul.mubr.bf16.vlgmr.msra.gmra.mrb[28].mxu0 %v2975_v27 }
0x17e1   : > { %3575 = vmatprep.mubr.bf16.mxu0 %v11473_v32 }
0x18b3   : > { %v3058_v28 = vpop.f32.mrb[28].mxu0 }
0x18b4   : > { %v3065_v30 = vadd.f32 %v3058_v28, %v12212_v13  ;;  %v9428_v31 = vpop.f32.mrb[29].mxu0 }
0x18b5   : > { %v3061_v34 = vpop.f32.mrb[30].mxu0 }
0x18b6   : > { %v3066_v35 = vadd.f32 %v3061_v34, %v12215_v17  ;;  %v9429_v37 = vpop.f32.mrb[31].mxu0  ;;  %v3075_v38 = vadd.f32 %v8597_v29, %v3065_v30 }
0x18b8   : > { %v3079_v39 = vsel %vm1272_vm2, %v3075_v38, 0.0  ;;  %v3076_v40 = vadd.f32 %v8597_v29, %v3066_v35 }
0x18b9   : > { %3080 = vadd.xlane.f32.xlu0 %v3079_v39 }
0x18ba   : > { %v3082_v12 = vsel %vm1272_vm2, %v3076_v40, 0.0 }
0x18bb   : > { %3083 = vadd.xlane.f32.xlu1 %v3082_v12 }
0x1946   : > { %v3081_v42 = vpop.xlane.xlu0 %3080 }
0x1947   : > { %v3085_v43 = vmul.f32 0.015625, %v3081_v42 }
0x1948   : > { %v3084_v46 = vpop.xlane.xlu1 %3083 }
0x1949   : > { %v3087_v13 = vsub.f32 %v3075_v38, %v3085_v43  ;;  %v3086_v15 = vmul.f32 0.015625, %v3084_v46 }
0x194b   : > { %v3088_v47 = vsub.f32 %v3076_v40, %v3086_v15  ;;  %v3089_v17 = vmul.f32 %v3087_v13, %v3087_v13 }
0x194d   : > { %v3091_v48 = vsel %vm1272_vm2, %v3089_v17, 0.0  ;;  %v3090_v49 = vmul.f32 %v3088_v47, %v3088_v47  ;;  %v10341_v17 = vld [vmem:[%s13720_s15] ss:$12 sps:$4 sm:$0xff]   ;;  %s13723_s15 = sld [smem:[#allocation42_spill]] }
0x194e   : > { %3092 = vadd.xlane.f32.xlu0 %v3091_v48  ;;  %v10343_v48 = vld [vmem:[%s13721_s26 + $0x4] ss:$12 sps:$4 sm:$0xff]  }
0x194f   : > { %v3094_v53 = vsel %vm1272_vm2, %v3090_v49, 0.0  ;;  %v10346_v49 = vld [vmem:[%s13721_s26 + $0x1c] ss:$12 sps:$4 sm:$0xff]   ;;  %3543 = vmatprep.subr.bf16.mxu0 %v10343_v48 }
0x1950   : > { %3095 = vadd.xlane.f32.xlu1 %v3094_v53  ;;  %3544 = vmatpush1.bf16.msra.mxu0 %v10341_v17  ;;  %v10344_v53 = vld [vmem:[%s13721_s26 + $0x18] ss:$12 sps:$4 sm:$0xff]  }
0x1951   : > { %3545 = vmatprep.subr.bf16.mxu0 %v10346_v49 }
0x1953   : > { %s13724_s18 = smov %s13723_s15 }
0x1954   : > { %3546 = vmatpush1.bf16.msra.mxu0 %v10344_v53 }
0x1955   : > { %3547 = vmatprep.subr.bf16.mxu0 %v10349_v55 }
0x1958   : > { %3548 = vmatpush1.bf16.msra.mxu0 %v10347_v56 }
0x19db   : > { %v3093_v45 = vpop.xlane.xlu0 %3092 }
0x19dc   : > { %v3097_v61 = vmul.f32 0.015625, %v3093_v45 }
0x19dd   : > { %v3096_v50 = vpop.xlane.xlu1 %3095 }
0x19de   : > { %v3099_v51 = vadd.f32 1e-05, %v3097_v61  ;;  %v3098_v52 = vmul.f32 0.015625, %v3096_v50 }
0x19e0   : > { %10653 = vrsqrt.f32 %v3099_v51  ;;  %v3100_v54 = vadd.f32 1e-05, %v3098_v52  ;;  %v12284_v51 = vunpack.c.l.bf16 %v3332_v59 }
0x19e2   : > { %10655 = vrsqrt.f32 %v3100_v54 }
0x19ea   : > { %v10654_v62 = vpop.eup %10653 }
0x19eb   : > { %v3103_v63 = vmul.f32 %v10654_v62, %v3087_v13 }
0x19ec   : > { %v10656_v1 = vpop.eup %10655 }
0x19ed   : > { %v3109_v36 = vmul.f32 %v8598_v33, %v3103_v63  ;;  %v3104_v2 = vmul.f32 %v10656_v1, %v3088_v47  ;;  %v3352_v1 = vmul.f32 %v12284_v51, %v12284_v51 }
0x19ef   : > { %v3110_v4 = vmul.f32 %v8598_v33, %v3104_v2  ;;  %v3115_v5 = vadd.f32 %v8599_v3, %v3109_v36  ;;  %v10350_v36 = vld [vmem:[%s13721_s26 + $0x8] ss:$12 sps:$4 sm:$0xff]   ;;  %v10353_v2 = vld [vmem:[%s13721_s26 + $0x4c] ss:$12 sps:$4 sm:$0xff]  }
0x19f0   : > { %3549 = vmatprep.subr.bf16.mxu0 %v10353_v2 }
0x19f1   : > { %v3116_v6 = vadd.f32 %v8599_v3, %v3110_v4  ;;  %v10351_v3 = vld [vmem:[%s13721_s26 + $0x48] ss:$12 sps:$4 sm:$0xff]   ;;  %v10354_v4 = vld [vmem:[%s13721_s26 + $0x20] ss:$12 sps:$4 sm:$0xff]  }
0x19f2   : > { %3550 = vmatpush1.bf16.msra.mxu0 %v10351_v3 }
0x19f3   : > { %v3125_v7 = vpack.c.bf16 %v3116_v6, %v3115_v5  ;;  %v10357_v5 = vld [vmem:[%s13721_s26 + $0x64] ss:$12 sps:$4 sm:$0xff]   ;;  %v10355_v6 = vld [vmem:[%s13721_s26 + $0x60] ss:$12 sps:$4 sm:$0xff]  }
0x19f4   : > { %3551 = vmatprep.subr.bf16.mxu0 %v10357_v5 }
0x19f5   : > { %9439 = vmatmul.mubr.msk.bf16.vlgmr.msra.gmra.mrb[20].mxu1 %vm1272_vm2, %v3125_v7  ;;  %v10358_v7 = vld [vmem:[%s13721_s26 + $0x38] ss:$12 sps:$4 sm:$0xff]  }
0x19f6   : > { %9458 = vmatprep.mubr.msk.bf16.mxu1 %vm11472_vm0, %v11471_v0  ;;  %9443 = vmatpush3.bf16.msra.mxu1 %v10333_v8  ;;  %v10361_v8 = vld [vmem:[%s13721_s26 + $0x7c] ss:$12 sps:$4 sm:$0xff]  }
0x19f7   : > { %9444 = vmatprep.subr.bf16.mxu1 %v11471_v0  ;;  %3552 = vmatpush1.bf16.msra.mxu0 %v10355_v6 }
0x19f8   : > { %3553 = vmatprep.subr.bf16.mxu0 %v10361_v8 }
0x19fa   : > { %9445 = vmatpush3.bf16.msra.mxu1 %v10334_v9  ;;  %v10359_v9 = vld [vmem:[%s13721_s26 + $0x78] ss:$12 sps:$4 sm:$0xff]  }
0x19fb   : > { %9446 = vmatprep.subr.bf16.mxu1 %v11471_v0  ;;  %3554 = vmatpush1.bf16.msra.mxu0 %v10359_v9 }
0x19fe   : > { %9447 = vmatpush3.bf16.msra.mxu1 %v10335_v10  ;;  %v10362_v10 = vld [vmem:[%s13721_s26 + $0x50] ss:$12 sps:$4 sm:$0xff]  }
0x19ff   : > { %9448 = vmatprep.subr.bf16.mxu1 %v11471_v0 }
0x1a02   : > { %9449 = vmatpush3.bf16.msra.mxu1 %v10336_v11  ;;  %v10365_v11 = vld [vmem:[%s13721_s26 + $0x94] ss:$12 sps:$4 sm:$0xff]  }
0x1a03   : > { %9450 = vmatprep.subr.bf16.mxu1 %v11471_v0  ;;  %3555 = vmatprep.subr.bf16.mxu0 %v10365_v11 }
0x1a06   : > { %9451 = vmatpush3.bf16.msra.mxu1 %v10337_v14  ;;  %v10363_v14 = vld [vmem:[%s13721_s26 + $0x90] ss:$12 sps:$4 sm:$0xff]  }
0x1a07   : > { %9452 = vmatprep.subr.bf16.mxu1 %v11471_v0  ;;  %3556 = vmatpush1.bf16.msra.mxu0 %v10363_v14 }
0x1a0a   : > { %9453 = vmatpush3.bf16.msra.mxu1 %v10338_v16  ;;  %v10366_v16 = vld [vmem:[%s13721_s26 + $0x68] ss:$12 sps:$4 sm:$0xff]  }
0x1a0b   : > { %9454 = vmatprep.subr.bf16.mxu1 %v11471_v0 }
0x1a0e   : > { %9455 = vmatpush3.bf16.msra.mxu1 %v10339_v19  ;;  %v10369_v19 = vld [vmem:[%s13721_s26 + $0xac] ss:$12 sps:$4 sm:$0xff]  }
0x1a0f   : > { %9456 = vmatprep.subr.bf16.mxu1 %v11471_v0  ;;  %3557 = vmatprep.subr.bf16.mxu0 %v10369_v19 }
0x1a12   : > { %9457 = vmatpush3.bf16.msra.mxu1 %v10340_v20  ;;  %v10367_v20 = vld [vmem:[%s13721_s26 + $0xa8] ss:$12 sps:$4 sm:$0xff]  }
0x1a13   : > { %9462 = vmatprep.subr.bf16.mxu1 %v10350_v36  ;;  %3558 = vmatpush1.bf16.msra.mxu0 %v10367_v20 }
0x1ac8   : > { %v3194_v22 = vpop.f32.mrb[20].mxu1 }
0x1ac9   : > { %v3195_v57 = vadd.f32 %v8600_v21, %v3194_v22  ;;  %v9440_v23 = vpop.f32.mrb[21].mxu1  ;;  %v10371_v22 = vld [vmem:[%s13721_s26 + $0x98] ss:$12 sps:$4 sm:$0xff]  }
0x1aca   : > { %v3197_v24 = vpop.f32.mrb[22].mxu1 }
0x1acb   : > { %v3201_v25 = vmul.f32 %v3195_v57, %v3195_v57  ;;  %v3198_v60 = vadd.f32 %v8600_v21, %v3197_v24  ;;  %v9441_v26 = vpop.f32.mrb[23].mxu1  ;;  %v10370_v21 = vld [vmem:[%s13721_s26 + $0x80] ss:$12 sps:$4 sm:$0xff]  }
0x1acd   : > { %v3203_v27 = vmul.f32 %v3201_v25, %v3195_v57  ;;  %v3202_v28 = vmul.f32 %v3198_v60, %v3198_v60 }
0x1acf   : > { %v3205_v29 = vmul.f32 0.044715, %v3203_v27  ;;  %v3204_v30 = vmul.f32 %v3202_v28, %v3198_v60 }
0x1ad1   : > { %v3207_v31 = vadd.f32 %v3205_v29, %v3195_v57  ;;  %v3206_v34 = vmul.f32 0.044715, %v3204_v30 }
0x1ad3   : > { %v3209_v35 = vmul.f32 0.7978846, %v3207_v31  ;;  %v3208_v37 = vadd.f32 %v3206_v34, %v3198_v60 }
0x1ad5   : > { %10657 = vtanh.f32 %v3209_v35  ;;  %v3210_v38 = vmul.f32 0.7978846, %v3208_v37  ;;  %v8615_v37 = vld [vmem:[#allocation22] ss:$0 sm:$0xff] }
0x1ad7   : > { %10659 = vtanh.f32 %v3210_v38 }
0x1adf   : > { %v10658_v39 = vpop.eup %10657 }
0x1ae0   : > { %v3213_v40 = vadd.f32 1.0, %v10658_v39 }
0x1ae1   : > { %v10660_v12 = vpop.eup %10659 }
0x1ae2   : > { %v3215_v42 = vmul.f32 0.5, %v3213_v40  ;;  %v3214_v43 = vadd.f32 1.0, %v10660_v12 }
0x1ae4   : > { %v3216_v46 = vmul.f32 0.5, %v3214_v43  ;;  %v3217_v13 = vmul.f32 %v3215_v42, %v3195_v57  ;;  %v10372_v57 = vld [vmem:[%s13721_s26 + $0xb0] ss:$12 sps:$4 sm:$0xff]  }
0x1ae6   : > { %v3218_v15 = vmul.f32 %v3216_v46, %v3198_v60 }
0x1ae8   : > { %v3235_v47 = vpack.c.bf16 %v3218_v15, %v3217_v13  ;;  %v11477_v15 = vmov 0.0|0.0  }
0x1ae9   : > { %9822 = vmatprep.subr.bf16.mxu0 %v11477_v15 }
0x1aea   : > { %9459 = vmatmul.mubr.bf16.vlgmr.msra.gmra.mrb[24].mxu1 %v3235_v47 }
0x1aeb   : > { %9463 = vmatpush3.bf16.msra.mxu1 %v10350_v36  ;;  %v12402_v36 = vld [vmem:[%s13724_s18 + $0x10] sm:$0xff] }
0x1aec   : > { %9464 = vmatprep.subr.bf16.mxu1 %v10354_v4 }
0x1aef   : > { %9465 = vmatpush3.bf16.msra.mxu1 %v10354_v4 }
0x1af0   : > { %9466 = vmatprep.subr.bf16.mxu1 %v10358_v7 }
0x1af3   : > { %9467 = vmatpush3.bf16.msra.mxu1 %v10358_v7 }
0x1af4   : > { %9468 = vmatprep.subr.bf16.mxu1 %v10362_v10 }
0x1af7   : > { %9469 = vmatpush3.bf16.msra.mxu1 %v10362_v10 }
0x1af8   : > { %9470 = vmatprep.subr.bf16.mxu1 %v10366_v16 }
0x1afb   : > { %9471 = vmatpush3.bf16.msra.mxu1 %v10366_v16 }
0x1afc   : > { %9472 = vmatprep.subr.bf16.mxu1 %v10370_v21 }
0x1aff   : > { %9473 = vmatpush3.bf16.msra.mxu1 %v10370_v21 }
0x1b00   : > { %9474 = vmatprep.subr.bf16.mxu1 %v10371_v22 }
0x1b03   : > { %9475 = vmatpush3.bf16.msra.mxu1 %v10371_v22 }
0x1b04   : > { %9476 = vmatprep.subr.bf16.mxu1 %v10372_v57 }
0x1b07   : > { %9477 = vmatpush3.bf16.msra.mxu1 %v10372_v57 }
0x1b08   : > { %9826 = vmatprep.subr.bf16.mxu1 %v11477_v15 }
0x1bbd   : > { %v3325_v45 = vpop.f32.mrb[24].mxu1 }
0x1bbe   : > { %v12282_v61 = vadd.f32 %v8606_v58, %v3325_v45  ;;  %v9460_v50 = vpop.f32.mrb[25].mxu1 }
0x1bbf   : > { %v3328_v52 = vpop.f32.mrb[26].mxu1 }
0x1bc0   : > { %v12286_v54 = vadd.f32 %v8606_v58, %v3328_v52  ;;  %v9461_v62 = vpop.f32.mrb[27].mxu1  ;;  %v3350_v33 = vmul.f32 %v12282_v61, %v12282_v61 }
0x1bc2   : > { %3353 = vadd.xlane.f32.xlu0 %v3350_v33  ;;  %v3351_v63 = vmul.f32 %v12286_v54, %v12286_v54 }
0x1bc4   : > { %3355 = vadd.xlane.f32.xlu1 %v3351_v63  ;;  %v12388_v63 = vld [vmem:[%s13723_s15 + $0x8] sm:$0xff]  ;;  %s13728_s15 = smov 96  }
0x1bc6   : > { %3357 = vadd.xlane.f32.xlu0 %v3352_v1  ;;  %v12397_v1 = vld [vmem:[%s13724_s18] sm:$0xff] }
0x1c4f   : > { %v3354_v23 = vpop.xlane.xlu0 %3353 }
0x1c50   : > { %v3360_v24 = vmul.f32 0.0078125, %v3354_v23 }
0x1c51   : > { %v3356_v25 = vpop.xlane.xlu1 %3355 }
0x1c52   : > { %v3363_v60 = vadd.f32 1e-06, %v3360_v24  ;;  %v3361_v26 = vmul.f32 0.0078125, %v3356_v25 }
0x1c53   : > { %v3358_v27 = vpop.xlane.xlu0 %3357 }
0x1c54   : > { %10661 = vrsqrt.f32 %v3363_v60  ;;  %v3364_v28 = vadd.f32 1e-06, %v3361_v26  ;;  %v3362_v29 = vmul.f32 0.0078125, %v3358_v27 }
0x1c56   : > { %10663 = vrsqrt.f32 %v3364_v28  ;;  %v3365_v30 = vadd.f32 1e-06, %v3362_v29 }
0x1c58   : > { %10665 = vrsqrt.f32 %v3365_v30 }
0x1c5e   : > { %v10662_v31 = vpop.eup %10661 }
0x1c5f   : > { %v3369_v34 = vmul.f32 %v10662_v31, %v12282_v61 }
0x1c60   : > { %v10664_v35 = vpop.eup %10663 }
0x1c61   : > { %v3370_v38 = vmul.f32 %v10664_v35, %v12286_v54  ;;  %v3378_v40 = vmul.f32 %v8615_v37, %v3369_v34 }
0x1c62   : > { %v10666_v39 = vpop.eup %10665 }
0x1c63   : > { %v3379_v12 = vmul.f32 %v8615_v37, %v3370_v38  ;;  %v3371_v42 = vmul.f32 %v10666_v39, %v12284_v51 }
0x1c65   : > { %v3413_v43 = vpack.c.bf16 %v3379_v12, %v3378_v40  ;;  %v3380_v46 = vmul.f32 %v8615_v37, %v3371_v42 }
0x1c67   : > { %3576 = vmatmul.mubr.bf16.vlgmr.msra.gmra.mrb[32].mxu0 %v3413_v43  ;;  %9478 = vmatprep.mubr.bf16.mxu1 %v3413_v43  ;;  %v3414_v13 = vpack.c.bf16 %v3380_v46, %v3380_v46 }
0x1c68   : > { %3585 = vmatprep.mubr.bf16.mxu0 %v11473_v32 }
0x1c69   : > { %9479 = vmatmul.mubr.bf16.vlgmr.msra.gmra.mrb[28].mxu1 %v3414_v13 }
0x1c6a   : > { %9503 = vmatprep.mubr.msk.f32.mxu1 %vm11472_vm0, %v11471_v0 }
0x1c6f   : > { %3586 = vmatmul.mubr.bf16.gmra.mrb[36].mxu0 %v3414_v13 }
0x1c70   : > { %9488 = vmatprep.mubr.msk.f32.mxu0 %vm11472_vm0, %v11471_v0 }
0x1d3a   : > { %v12322_v47 = vpop.f32.mrb[32].mxu0 }
0x1d3b   : > { %v12324_v17 = vpop.f32.mrb[33].mxu0 }
0x1d3c   : > { %3681 = vrot.lane.b32.xlu1 %v12324_v17, %s13631_s1  ;;  %v12328_v48 = vpop.f32.mrb[34].mxu0  ;;  %v12330_v49 = vpop.f32.mrb[28].mxu1 }
0x1d3d   : > { %v12332_v53 = vpop.f32.mrb[35].mxu0  ;;  %v3628_v55 = vpop.f32.mrb[29].mxu1 }
0x1d3e   : > { %3683 = vrot.lane.b32.xlu0 %v12332_v53, %s13631_s1  ;;  %v9481_v56 = vpop.f32.mrb[30].mxu1 }
0x1d3f   : > { %v3631_v58 = vpop.f32.mrb[31].mxu1 }
0x1d40   : > { %3980 = vrot.lane.b32.xlu1 %v12324_v17, %s13629_s19  ;;  %v12338_v59 = vpack.i.bf16 %v3631_v58, %v3628_v55  ;;  %v9827_v45 = vpack.c.bf16 %v3631_v58, %v3628_v55  ;;  %v3675_v58 = vmul.f32 %v12324_v17, %v12397_v1 }
0x1d42   : > { %3947 = vrot.lane.b32.xlu0 %v12322_v47, %s13629_s19  ;;  %v12342_v50 = vpop.f32.mrb[36].mxu0  ;;  %9828 = vmatpush3.bf16.msra.mxu1 %v9827_v45 }
0x1d43   : > { %v12344_v52 = vpop.f32.mrb[37].mxu0  ;;  %9501 = vmatprep.subr.mxu1 %v11471_v0 }
0x1d44   : > { %4302 = vrot.lane.b32.xlu1 %v12324_v17, %s13636_s28  ;;  %v3591_v62 = vpop.f32.mrb[38].mxu0 }
0x1d45   : > { %v3592_v33 = vpop.f32.mrb[39].mxu0 }
0x1d46   : > { %4304 = vrot.lane.b32.xlu0 %v12332_v53, %s13636_s28  ;;  %9502 = vmatpush3.msra.mxu1 %v12330_v49 }
0x1d47   : > { %9833 = vmatprep.subr.bf16.mxu1 %v11477_v15 }
0x1d48   : > { %3982 = vrot.lane.b32.xlu1 %v12332_v53, %s13629_s19 }
0x1d4a   : > { %3984 = vrot.lane.b32.xlu0 %v12344_v52, %s13629_s19 }
0x1d4c   : > { %3648 = vrot.lane.b32.xlu1 %v12322_v47, %s13631_s1 }
0x1d4e   : > { %3949 = vrot.lane.b32.xlu0 %v12328_v48, %s13629_s19 }
0x1d50   : > { %3685 = vrot.lane.b32.xlu1 %v12344_v52, %s13631_s1 }
0x1d52   : > { %3951 = vrot.lane.b32.xlu0 %v12342_v50, %s13629_s19  ;;  %s13725_s19 = sld [smem:[#allocation43_spill]] }
0x1d54   : > { %3650 = vrot.lane.b32.xlu1 %v12328_v48, %s13631_s1 }
0x1d56   : > { %3690 = vrot.lane.b32.xlu0 %v12324_v17, %s13634_s22 }
0x1d58   : > { %3652 = vrot.lane.b32.xlu1 %v12342_v50, %s13631_s1  ;;  %s13726_s1 = smov 32   ;;  %v12409_v4 = vld [vmem:[%s13725_s19] sm:$0xff]  ;;  %v12417_v11 = vld [vmem:[%s13725_s19 + $0x8] sm:$0xff]  ;;  %v12443_v39 = vld [vmem:[%s13725_s19 + $0x10] sm:$0xff] }
0x1d5a   : > { %4269 = vrot.lane.b32.xlu0 %v12322_v47, %s13636_s28 }
0x1d5c   : > { %4306 = vrot.lane.b32.xlu1 %v12344_v52, %s13636_s28 }
0x1d5e   : > { %4273 = vrot.lane.b32.xlu0 %v12342_v50, %s13636_s28 }
0x1d60   : > { %3692 = vrot.lane.b32.xlu1 %v12332_v53, %s13634_s22 }
0x1d62   : > { %3657 = vrot.lane.b32.xlu0 %v12322_v47, %s13634_s22 }
0x1d64   : > { %4271 = vrot.lane.b32.xlu1 %v12328_v48, %s13636_s28 }
0x1d66   : > { %3661 = vrot.lane.b32.xlu0 %v12342_v50, %s13634_s22 }
0x1d68   : > { %3694 = vrot.lane.b32.xlu1 %v12344_v52, %s13634_s22 }
0x1d6a   : > { %3937 = vrot.lane.b32.xlu0 %v12388_v63, %s13726_s1 }
0x1d6c   : > { %3659 = vrot.lane.b32.xlu1 %v12328_v48, %s13634_s22  ;;  %s13735_s22 = sld [smem:[#allocation58_spill]] }
0x1d6e   : > { %4259 = vrot.lane.b32.xlu0 %v12388_v63, %s13727_s2 }
0x1d70   : > { %3935 = vrot.lane.b32.xlu1 %v12397_v1, %s13726_s1 }
0x1d72   : > { %s13736_s28 = smov %s13735_s22 }
0x1d74   : > { %3939 = vrot.lane.b32.xlu1 %v12402_v36, %s13726_s1 }
0x1d78   : > { %4257 = vrot.lane.b32.xlu1 %v12397_v1, %s13727_s2 }
0x1dae   : > { %v3682_v2 = vpop.permute.xlu1 %3681 }
0x1db0   : > { %v3684_v3 = vpop.permute.xlu0 %3683 }
0x1db2   : > { %v3981_v5 = vpop.permute.xlu1 %3980 }
0x1db3   : > { %v3989_v6 = vsel %vm1509_vm5, %v3981_v5, %v3682_v2 }
0x1db4   : > { %v12412_v7 = vpop.permute.xlu0 %3947  ;;  %v3992_v8 = vmul.f32 %v3989_v6, %v12409_v4 }
0x1db6   : > { %v4303_v9 = vpop.permute.xlu1 %4302  ;;  %3998 = vrot.lane.b32.xlu1 %v3992_v8, %s13726_s1 }
0x1db7   : > { %v4311_v24 = vsel %vm1509_vm5, %v4303_v9, %v3981_v5 }
0x1db8   : > { %v4305_v10 = vpop.permute.xlu0 %4304  ;;  %v4314_v26 = vmul.f32 %v4311_v24, %v12409_v4 }
0x1dba   : > { %v3983_v14 = vpop.permute.xlu1 %3982 }
0x1dbb   : > { %v3990_v16 = vsel %vm1509_vm5, %v3983_v14, %v3684_v3  ;;  %v4312_v31 = vsel %vm1509_vm5, %v4305_v10, %v3983_v14 }
0x1dbc   : > { %v3985_v19 = vpop.permute.xlu0 %3984  ;;  %v3993_v20 = vmul.f32 %v3990_v16, %v12417_v11  ;;  %v4315_v35 = vmul.f32 %v4312_v31, %v12417_v11 }
0x1dbe   : > { %v3649_v21 = vpop.permute.xlu1 %3648  ;;  %4000 = vrot.lane.b32.xlu0 %v3993_v20, %s13726_s1 }
0x1dbf   : > { %v3956_v22 = vsel %vm1509_vm5, %v12412_v7, %v3649_v21 }
0x1dc0   : > { %v3950_v57 = vpop.permute.xlu0 %3949  ;;  %v3959_v23 = vmul.f32 %v3956_v22, %v12409_v4 }
0x1dc2   : > { %3965 = vrot.lane.b32.xlu1 %v3959_v23, %s13726_s1  ;;  %v3686_v25 = vpop.permute.xlu1 %3685 }
0x1dc3   : > { %v3991_v37 = vsel %vm1509_vm5, %v3985_v19, %v3686_v25 }
0x1dc4   : > { %v3952_v60 = vpop.permute.xlu0 %3951  ;;  %v3994_v43 = vmul.f32 %v3991_v37, %v12443_v39 }
0x1dc6   : > { %4320 = vrot.lane.b32.xlu1 %v4314_v26, %s13727_s2  ;;  %v12429_v27 = vpop.permute.xlu1 %3650 }
0x1dc7   : > { %v3957_v28 = vsel %vm1509_vm5, %v3950_v57, %v12429_v27 }
0x1dc8   : > { %v3691_v29 = vpop.permute.xlu0 %3690  ;;  %v3960_v30 = vmul.f32 %v3957_v28, %v12417_v11 }
0x1dc9   : > { %v3699_v12 = vsel %vm1509_vm5, %v3682_v2, %v3691_v29  ;;  %v3676_v2 = vmul.f32 %v12332_v53, %v12388_v63  ;;  %v4612_v22 = vsel %vm1509_vm5, %v3691_v29, %v4303_v9 }
0x1dca   : > { %4261 = vrot.lane.b32.xlu1 %v12402_v36, %s13727_s2  ;;  %3967 = vrot.lane.b32.xlu0 %v3960_v30, %s13726_s1  ;;  %v12438_v34 = vpop.permute.xlu1 %3652  ;;  %v3702_v55 = vmul.f32 %v3699_v12, %v12409_v4  ;;  %v4615_v29 = vmul.f32 %v4612_v22, %v12409_v4 }
0x1dcb   : > { %v3958_v13 = vsel %vm1509_vm5, %v3952_v60, %v12438_v34 }
0x1dcc   : > { %v4270_v38 = vpop.permute.xlu0 %4269  ;;  %v3961_v6 = vmul.f32 %v3958_v13, %v12443_v39  ;;  %v3705_v14 = vadd.f32 %v3702_v55, %v3675_v58 }
0x1dce   : > { %4578 = vrot.lane.b32.xlu1 %v12388_v63, %s13728_s15  ;;  %4322 = vrot.lane.b32.xlu0 %v4315_v35, %s13727_s2  ;;  %v4307_v40 = vpop.permute.xlu1 %4306  ;;  %v3677_v35 = vmul.f32 %v12344_v52, %v12402_v36 }
0x1dcf   : > { %v4313_v42 = vsel %vm1509_vm5, %v4307_v40, %v3985_v19 }
0x1dd0   : > { %v4316_v46 = vmul.f32 %v4313_v42, %v12443_v39  ;;  %v4274_v45 = vpop.permute.xlu0 %4273 }
0x1dd1   : > { %v4280_v24 = vsel %vm1509_vm5, %v4274_v45, %v3952_v60  ;;  %v4278_v60 = vsel %vm1509_vm5, %v4270_v38, %v12412_v7 }
0x1dd2   : > { %4002 = vrot.lane.b32.xlu0 %v3994_v43, %s13726_s1  ;;  %4324 = vrot.lane.b32.xlu1 %v4316_v46, %s13727_s2  ;;  %v3693_v56 = vpop.permute.xlu1 %3692  ;;  %v4283_v30 = vmul.f32 %v4280_v24, %v12443_v39  ;;  %v4281_v7 = vmul.f32 %v4278_v60, %v12409_v4 }
0x1dd3   : > { %v3700_v62 = vsel %vm1509_vm5, %v3684_v3, %v3693_v56  ;;  %v4613_v33 = vsel %vm1509_vm5, %v3693_v56, %v4305_v10  ;;  %v3643_v56 = vmul.f32 %v12328_v48, %v12388_v63 }
0x1dd4   : > { %v3703_v5 = vmul.f32 %v3700_v62, %v12417_v11  ;;  %v4616_v8 = vmul.f32 %v4613_v33, %v12417_v11  ;;  %v3658_v23 = vpop.permute.xlu0 %3657 }
0x1dd5   : > { %v4588_v31 = vsel %vm1509_vm5, %v3658_v23, %v4270_v38  ;;  %v3642_v38 = vmul.f32 %v12322_v47, %v12397_v1 }
0x1dd6   : > { %v3706_v16 = vadd.f32 %v3703_v5, %v3676_v2  ;;  %3969 = vrot.lane.b32.xlu0 %v3961_v6, %s13726_s1  ;;  %4623 = vrot.lane.b32.xlu1 %v4616_v8, %s13728_s15  ;;  %v4272_v19 = vpop.permute.xlu1 %4271  ;;  %v4591_v43 = vmul.f32 %v4588_v31, %v12409_v4 }
0x1dd7   : > { %v4279_v3 = vsel %vm1509_vm5, %v4272_v19, %v3950_v57  ;;  %v3666_v57 = vsel %vm1509_vm5, %v3649_v21, %v3658_v23 }
0x1dd8   : > { %v9823_v20 = vpack.c.bf16 %v3706_v16, %v3705_v14  ;;  %v4282_v10 = vmul.f32 %v4279_v3, %v12417_v11  ;;  %v3669_v37 = vmul.f32 %v3666_v57, %v12409_v4  ;;  %v3662_v21 = vpop.permute.xlu0 %3661 }
0x1dd9   : > { %v4590_v46 = vsel %vm1509_vm5, %v3662_v21, %v4274_v45 }
0x1dda   : > { %4576 = vrot.lane.b32.xlu0 %v12397_v1, %s13728_s15  ;;  %9825 = vmatpush3.bf16.xpose.msk.msra.mxu0 %vm12042_vm4, %v9823_v20  ;;  %v3695_v26 = vpop.permute.xlu1 %3694  ;;  %v3672_v13 = vadd.f32 %v3669_v37, %v3642_v38  ;;  %v4593_v1 = vmul.f32 %v4590_v46, %v12443_v39 }
0x1ddb   : > { %4289 = vrot.lane.b32.xlu1 %v4282_v10, %s13727_s2  ;;  %v3701_v28 = vsel %vm1509_vm5, %v3686_v25, %v3695_v26  ;;  %9486 = vmatprep.subr.mxu0 %v11471_v0  ;;  %v4614_v4 = vsel %vm1509_vm5, %v3695_v26, %v4307_v40  ;;  %v3644_v40 = vmul.f32 %v12342_v50, %v12402_v36 }
0x1ddc   : > { %v3704_v9 = vmul.f32 %v3701_v28, %v12443_v39  ;;  %v12533_v2 = vpop.permute.xlu0 %3937 }
0x1ddd   : > { %v3978_v14 = vmul.f32 %v12533_v2, %v12332_v53  ;;  %v3945_v37 = vmul.f32 %v12533_v2, %v12328_v48 }
0x1dde   : > { %4621 = vrot.lane.b32.xlu0 %v4615_v29, %s13728_s15  ;;  %v3660_v25 = vpop.permute.xlu1 %3659  ;;  %v3707_v12 = vadd.f32 %v3704_v9, %v3677_v35 }
0x1ddf   : > { %4291 = vrot.lane.b32.xlu1 %v4283_v30, %s13727_s2  ;;  %v3667_v42 = vsel %vm1509_vm5, %v12429_v27, %v3660_v25  ;;  %v3668_v27 = vsel %vm1509_vm5, %v12438_v34, %v3662_v21  ;;  %v4617_v34 = vmul.f32 %v4614_v4, %v12443_v39  ;;  %v4589_v63 = vsel %vm1509_vm5, %v3660_v25, %v4272_v19 }
0x1de0   : > { %v3670_v55 = vmul.f32 %v3667_v42, %v12417_v11  ;;  %v3671_v58 = vmul.f32 %v3668_v27, %v12443_v39  ;;  %v4592_v33 = vmul.f32 %v4589_v63, %v12417_v11  ;;  %v12537_v6 = vpop.permute.xlu0 %4259 }
0x1de1   : > { %v4300_v28 = vmul.f32 %v12537_v6, %v12332_v53 }
0x1de2   : > { %4287 = vrot.lane.b32.xlu0 %v4281_v7, %s13727_s2  ;;  %9487 = vmatpush3.xpose.msk.msra.mxu0 %vm1425_vm3, %v3707_v12  ;;  %v3673_v45 = vadd.f32 %v3670_v55, %v3643_v56  ;;  %v3674_v62 = vadd.f32 %v3671_v58, %v3644_v40 }
0x1de3   : > { %4597 = vrot.lane.b32.xlu1 %v4591_v43, %s13728_s15  ;;  %9829 = vmatprep.subr.bf16.mxu0 %v11477_v15 }
0x1de5   : > { %9489 = vmatmul.mubr.msk.f32.vlgmr.msra.gmra.mrb[40].mxu0 %vm1425_vm3, %v3672_v13 }
0x1de6   : > { %4580 = vrot.lane.b32.xlu0 %v12402_v36, %s13728_s15  ;;  %9491 = vmatprep.mubr.msk.f32.mxu0 %vm11472_vm0, %v11471_v0  ;;  %v12529_v36 = vpop.permute.xlu1 %3935 }
0x1de7   : > { %4601 = vrot.lane.b32.xlu1 %v4593_v1, %s13728_s15  ;;  %v3977_v11 = vmul.f32 %v12529_v36, %v12324_v17  ;;  %v3944_v12 = vmul.f32 %v12529_v36, %v12322_v47 }
0x1de9   : > { %9492 = vmatmul.mubr.msk.f32.gmra.mrb[42].mxu0 %vm1425_vm3, %v3673_v45 }
0x1dea   : > { %4625 = vrot.lane.b32.xlu0 %v4617_v34, %s13728_s15  ;;  %9494 = vmatprep.mubr.msk.f32.mxu0 %vm11472_vm0, %v11471_v0  ;;  %v12531_v39 = vpop.permute.xlu1 %3939 }
0x1deb   : > { %v3979_v31 = vmul.f32 %v12531_v39, %v12344_v52  ;;  %v3946_v55 = vmul.f32 %v12531_v39, %v12342_v50 }
0x1ded   : > { %9495 = vmatmul.mubr.msk.f32.gmra.mrb[44].mxu0 %vm1425_vm3, %v3674_v62 }
0x1dee   : > { %4599 = vrot.lane.b32.xlu0 %v4592_v33, %s13728_s15  ;;  %9518 = vmatprep.mubr.msk.f32.mxu0 %vm11472_vm0, %v11471_v0  ;;  %v12535_v5 = vpop.permute.xlu1 %4257 }
0x1def   : > { %v4299_v26 = vmul.f32 %v12535_v5, %v12324_v17  ;;  %v4266_v62 = vmul.f32 %v12535_v5, %v12322_v47 }
0x1e28   : > { %v3999_v8 = vpop.permute.xlu1 %3998 }
0x1e29   : > { %v4007_v19 = vadd.f32 %v3999_v8, %v3977_v11  ;;  %v4267_v11 = vmul.f32 %v12537_v6, %v12328_v48 }
0x1e30   : > { %v4001_v16 = vpop.permute.xlu0 %4000 }
0x1e31   : > { %v4008_v3 = vadd.f32 %v4001_v16, %v3978_v14 }
0x1e33   : > { %v10179_v20 = vpack.i.bf16 %v4008_v3, %v4007_v19 }
0x1e34   : > { %v3966_v10 = vpop.permute.xlu1 %3965 }
0x1e35   : > { %10180 = vrot.lane.b32.xlu0 %v10179_v20, %s13728_s15  ;;  %v3974_v43 = vadd.f32 %v3966_v10, %v3944_v12 }
0x1e38   : > { %v4321_v22 = vpop.permute.xlu1 %4320 }
0x1e39   : > { %v4329_v29 = vadd.f32 %v4321_v22, %v4299_v26 }
0x1e3c   : > { %v3968_v23 = vpop.permute.xlu0 %3967  ;;  %v12544_v24 = vpop.permute.xlu1 %4261 }
0x1e3d   : > { %v3975_v42 = vadd.f32 %v3968_v23, %v3945_v37  ;;  %v4301_v46 = vmul.f32 %v12544_v24, %v12344_v52  ;;  %v4268_v16 = vmul.f32 %v12544_v24, %v12342_v50  ;;  %v3342_v37 = vadd.s32 8, %v12013_v44 }
0x1e40   : > { %v4323_v57 = vpop.permute.xlu0 %4322  ;;  %v12550_v9 = vpop.permute.xlu1 %4578 }
0x1e41   : > { %v4330_v60 = vadd.f32 %v4323_v57, %v4300_v28  ;;  %v4610_v56 = vmul.f32 %v12550_v9, %v12332_v53  ;;  %v4586_v57 = vmul.f32 %v12550_v9, %v12328_v48 }
0x1e43   : > { %v10184_v30 = vpack.i.bf16 %v4330_v60, %v4329_v29 }
0x1e44   : > { %v4003_v35 = vpop.permute.xlu0 %4002  ;;  %v4325_v25 = vpop.permute.xlu1 %4324 }
0x1e45   : > { %v4009_v21 = vadd.f32 %v4003_v35, %v3979_v31  ;;  %10185 = vrot.lane.b32.xlu0 %v10184_v30, %s13727_s2  ;;  %v4331_v13 = vadd.f32 %v4325_v25, %v4301_v46  ;;  %v3345_v25 = vand.u32 127, %v1300_v41 }
0x1e47   : > { %4026 = vrot.lane.b32.xlu1 %v4009_v21, %s13728_s15  ;;  %vm12603_vm6 = vcmp.ge.s32.totalorder %v12013_v44, %v3345_v25  ;;  %vm12612_vm8 = vcmp.ge.s32.totalorder %v3342_v37, %v3345_v25 }
0x1e48   : > { %v3970_v7 = vpop.permute.xlu0 %3969  ;;  %v4624_v38 = vpop.permute.xlu1 %4623 }
0x1e49   : > { %4015 = vrot.lane.b32.xlu0 %v3975_v42, %s13728_s15  ;;  %v3976_v1 = vadd.f32 %v3970_v7, %v3946_v55  ;;  %v4631_v34 = vadd.f32 %v4624_v38, %v4610_v56  ;;  %v3343_v55 = vadd.s32 16, %v12013_v44 }
0x1e4b   : > { %4013 = vrot.lane.b32.xlu1 %v3974_v43, %s13728_s15  ;;  %vm12622_vm9 = vcmp.ge.s32.totalorder %v3343_v55, %v3345_v25 }
0x1e4c   : > { %v12566_v27 = vpop.permute.xlu0 %4576 }
0x1e4d   : > { %4348 = vrot.lane.b32.xlu0 %v4331_v13, %s13727_s2  ;;  %v4290_v4 = vpop.permute.xlu1 %4289  ;;  %v4609_v58 = vmul.f32 %v12566_v27, %v12324_v17  ;;  %v4585_v20 = vmul.f32 %v12566_v27, %v12322_v47 }
0x1e4e   : > { %v4297_v53 = vadd.f32 %v4290_v4, %v4267_v11 }
0x1e4f   : > { %4017 = vrot.lane.b32.xlu1 %v3976_v1, %s13728_s15 }
0x1e50   : > { %v4622_v45 = vpop.permute.xlu0 %4621 }
0x1e51   : > { %v4630_v40 = vadd.f32 %v4622_v45, %v4609_v58  ;;  %v4292_v33 = vpop.permute.xlu1 %4291 }
0x1e52   : > { %v4298_v19 = vadd.f32 %v4292_v33, %v4268_v16 }
0x1e53   : > { %v10189_v63 = vpack.i.bf16 %v4631_v34, %v4630_v40 }
0x1e54   : > { %v4288_v8 = vpop.permute.xlu0 %4287 }
0x1e55   : > { %v4296_v14 = vadd.f32 %v4288_v8, %v4266_v62  ;;  %10190 = vrot.lane.b32.xlu1 %v10189_v63, %s13726_s1  ;;  %v4598_v3 = vpop.permute.xlu1 %4597 }
0x1e56   : > { %v4606_v23 = vadd.f32 %v4598_v3, %v4585_v20 }
0x1e57   : > { %4335 = vrot.lane.b32.xlu0 %v4296_v14, %s13727_s2 }
0x1e58   : > { %v12582_v17 = vpop.permute.xlu0 %4580 }
0x1e59   : > { %4337 = vrot.lane.b32.xlu1 %v4297_v53, %s13727_s2  ;;  %v4611_v10 = vmul.f32 %v12582_v17, %v12344_v52  ;;  %v4587_v26 = vmul.f32 %v12582_v17, %v12342_v50  ;;  %v4602_v29 = vpop.permute.xlu1 %4601 }
0x1e5b   : > { %4339 = vrot.lane.b32.xlu0 %v4298_v19, %s13727_s2  ;;  %v4608_v60 = vadd.f32 %v4602_v29, %v4587_v26 }
0x1e5c   : > { %v4626_v22 = vpop.permute.xlu0 %4625 }
0x1e5d   : > { %v4632_v28 = vadd.f32 %v4626_v22, %v4611_v10 }
0x1e5f   : > { %4649 = vrot.lane.b32.xlu1 %v4632_v28, %s13726_s1  ;;  %4636 = vrot.lane.b32.xlu0 %v4606_v23, %s13726_s1 }
0x1e60   : > { %v4600_v47 = vpop.permute.xlu0 %4599 }
0x1e61   : > { %v4607_v30 = vadd.f32 %v4600_v47, %v4586_v57 }
0x1e63   : > { %4638 = vrot.lane.b32.xlu1 %v4607_v30, %s13726_s1  ;;  %4640 = vrot.lane.b32.xlu0 %v4608_v60, %s13726_s1 }
0x1ea7   : > { %v10181_v52 = vpop.permute.xlu0 %10180 }
0x1ea8   : > { %v10183_v31 = vunpack.i.h.bf16 %v10181_v52  ;;  %v10182_v35 = vunpack.i.l.bf16 %v10181_v52 }
0x1eaa   : > { %v9830_v50 = vpack.c.bf16 %v10183_v31, %v10182_v35 }
0x1eac   : > { %9832 = vmatpush3.bf16.xpose.msk.msra.mxu0 %vm12042_vm4, %v9830_v50 }
0x1ead   : > { %9516 = vmatprep.subr.mxu0 %v11471_v0 }
0x1eb7   : > { %v10186_v21 = vpop.permute.xlu0 %10185 }
0x1eb8   : > { %v3792_v12 = vpop.f32.mrb[40].mxu0  ;;  %v10188_v42 = vunpack.i.h.bf16 %v10186_v21  ;;  %v10187_v7 = vunpack.i.l.bf16 %v10186_v21 }
0x1eb9   : > { %v3806_v38 = vsel %vm12603_vm6, %v3792_v12, -1e+09  ;;  %v4027_v43 = vpop.permute.xlu1 %4026  ;;  %v9490_v46 = vpop.f32.mrb[41].mxu0 }
0x1eba   : > { %v3810_v13 = vsel %vm3809_vm7, %v3806_v38, -inf  ;;  %9517 = vmatpush3.xpose.msk.msra.mxu0 %vm1425_vm3, %v4027_v43  ;;  %v9837_v4 = vpack.c.bf16 %v10188_v42, %v10187_v7 }
0x1ebb   : > { %3811 = vmax.xlane.f32.xlu1 %v3810_v13  ;;  %9836 = vmatprep.subr.bf16.mxu0 %v11477_v15  ;;  %v4016_v63 = vpop.permute.xlu0 %4015 }
0x1ebc   : > { %v3797_v1 = vpop.f32.mrb[42].mxu0 }
0x1ebd   : > { %v3807_v56 = vsel %vm12612_vm8, %v3797_v1, -1e+09  ;;  %v4014_v58 = vpop.permute.xlu1 %4013  ;;  %v9493_v45 = vpop.f32.mrb[43].mxu0 }
0x1ebe   : > { %v3813_v34 = vsel %vm3809_vm7, %v3807_v56, -inf  ;;  %9519 = vmatmul.mubr.msk.f32.vlgmr.msra.gmra.mrb[46].mxu0 %vm1425_vm3, %v4014_v58 }
0x1ebf   : > { %9839 = vmatpush3.bf16.xpose.msk.msra.mxu0 %vm12042_vm4, %v9837_v4  ;;  %3814 = vmax.xlane.f32.xlu0 %v3813_v34  ;;  %v4349_v14 = vpop.permute.xlu0 %4348 }
0x1ec0   : > { %v3802_v44 = vpop.f32.mrb[44].mxu0  ;;  %9521 = vmatprep.mubr.msk.f32.mxu0 %vm11472_vm0, %v11471_v0  ;;  %9546 = vmatprep.subr.mxu0 %v11471_v0 }
0x1ec1   : > { %v3808_v62 = vsel %vm12622_vm9, %v3802_v44, -1e+09  ;;  %v9496_v33 = vpop.f32.mrb[45].mxu0  ;;  %v4018_v11 = vpop.permute.xlu1 %4017 }
0x1ec2   : > { %v3816_v8 = vsel %vm3809_vm7, %v3808_v62, -inf  ;;  %9522 = vmatmul.mubr.msk.f32.gmra.mrb[48].mxu0 %vm1425_vm3, %v4016_v63 }
0x1ec3   : > { %3817 = vmax.xlane.f32.xlu0 %v3816_v8  ;;  %9524 = vmatprep.mubr.msk.f32.mxu0 %vm11472_vm0, %v11471_v0 }
0x1ec6   : > { %9525 = vmatmul.mubr.msk.f32.gmra.mrb[50].mxu0 %vm1425_vm3, %v4018_v11 }
0x1ec7   : > { %9547 = vmatpush3.xpose.msk.msra.mxu0 %vm1425_vm3, %v4349_v14  ;;  %v10191_v53 = vpop.permute.xlu1 %10190  ;;  %9548 = vmatprep.mubr.msk.f32.mxu0 %vm11472_vm0, %v11471_v0 }
0x1ec8   : > { %v10193_v16 = vunpack.i.h.bf16 %v10191_v53  ;;  %v10192_v19 = vunpack.i.l.bf16 %v10191_v53  ;;  %9843 = vmatprep.subr.bf16.mxu0 %v11477_v15 }
0x1ec9   : > { %v4336_v3 = vpop.permute.xlu0 %4335 }
0x1eca   : > { %v9844_v20 = vpack.c.bf16 %v10193_v16, %v10192_v19  ;;  %9549 = vmatmul.mubr.msk.f32.vlgmr.msra.gmra.mrb[52].mxu0 %vm1425_vm3, %v4336_v3 }
0x1ecb   : > { %9551 = vmatprep.mubr.msk.f32.mxu0 %vm11472_vm0, %v11471_v0  ;;  %v4338_v10 = vpop.permute.xlu1 %4337 }
0x1ecc   : > { %9846 = vmatpush3.bf16.xpose.msk.msra.mxu0 %vm12042_vm4, %v9844_v20 }
0x1ecd   : > { %9576 = vmatprep.subr.mxu0 %v11471_v0  ;;  %v4340_v22 = vpop.permute.xlu0 %4339 }
0x1ece   : > { %9552 = vmatmul.mubr.msk.f32.gmra.mrb[54].mxu0 %vm1425_vm3, %v4338_v10 }
0x1ecf   : > { %9554 = vmatprep.mubr.msk.f32.mxu0 %vm11472_vm0, %v11471_v0 }
0x1ed1   : > { %v4650_v23 = vpop.permute.xlu1 %4649  ;;  %v4637_v26 = vpop.permute.xlu0 %4636 }
0x1ed2   : > { %9555 = vmatmul.mubr.msk.f32.gmra.mrb[56].mxu0 %vm1425_vm3, %v4340_v22 }
0x1ed3   : > { %9578 = vmatprep.mubr.msk.f32.mxu0 %vm11472_vm0, %v11471_v0 }
0x1ed4   : > { %9577 = vmatpush3.xpose.msk.msra.mxu0 %vm1425_vm3, %v4650_v23 }
0x1ed5   : > { %v4639_v28 = vpop.permute.xlu1 %4638  ;;  %v4641_v57 = vpop.permute.xlu0 %4640 }
0x1ed7   : > { %9579 = vmatmul.mubr.msk.f32.vlgmr.msra.gmra.mrb[58].mxu0 %vm1425_vm3, %v4637_v26 }
0x1ed8   : > { %9581 = vmatprep.mubr.msk.f32.mxu0 %vm11472_vm0, %v11471_v0 }
0x1edb   : > { %9582 = vmatmul.mubr.msk.f32.gmra.mrb[60].mxu0 %vm1425_vm3, %v4639_v28 }
0x1edc   : > { %9584 = vmatprep.mubr.msk.f32.mxu0 %vm11472_vm0, %v11471_v0 }
0x1edf   : > { %9585 = vmatmul.mubr.msk.f32.gmra.mrb[62].mxu0 %vm1425_vm3, %v4641_v57 }
0x1f48   : > { %v3812_v29 = vpop.xlane.xlu1 %3811 }
0x1f49   : > { %v3819_v47 = vsub.f32 %v3806_v38, %v3812_v29 }
0x1f4b   : > { %v3822_v60 = vmul.f32 1.442695, %v3819_v47 }
0x1f4c   : > { %v3815_v30 = vpop.xlane.xlu0 %3814 }
0x1f4d   : > { %10667 = vpow2.f32 %v3822_v60  ;;  %v3820_v52 = vsub.f32 %v3807_v56, %v3815_v30 }
0x1f4f   : > { %v3824_v31 = vmul.f32 1.442695, %v3820_v52 }
0x1f50   : > { %v3818_v35 = vpop.xlane.xlu0 %3817 }
0x1f51   : > { %10669 = vpow2.f32 %v3824_v31  ;;  %v3821_v50 = vsub.f32 %v3808_v62, %v3818_v35 }
0x1f53   : > { %v3826_v25 = vmul.f32 1.442695, %v3821_v50 }
0x1f55   : > { %10671 = vpow2.f32 %v3826_v25 }
0x1f57   : > { %v12662_v37 = vpop.eup %10667 }
0x1f58   : > { %v3828_v21 = vsel %vm3809_vm7, %v12662_v37, 0.0 }
0x1f59   : > { %3829 = vadd.xlane.f32.xlu1 %v3828_v21 }
0x1f5b   : > { %v12666_v12 = vpop.eup %10669 }
0x1f5c   : > { %v3831_v42 = vsel %vm3809_vm7, %v12666_v12, 0.0 }
0x1f5d   : > { %3832 = vadd.xlane.f32.xlu0 %v3831_v42 }
0x1f5f   : > { %v12670_v7 = vpop.eup %10671 }
0x1f60   : > { %v3834_v38 = vsel %vm3809_vm7, %v12670_v7, 0.0 }
0x1f61   : > { %3835 = vadd.xlane.f32.xlu1 %v3834_v38 }
0x1f91   : > { %v4106_v43 = vpop.f32.mrb[46].mxu0 }
0x1f92   : > { %v12676_v46 = vsel %vm12603_vm6, %v4106_v43, -1e+09  ;;  %v9520_v13 = vpop.f32.mrb[47].mxu0 }
0x1f93   : > { %v4123_v55 = vsel %vm3809_vm7, %v12676_v46, -inf }
0x1f94   : > { %4124 = vmax.xlane.f32.xlu0 %v4123_v55 }
0x1f95   : > { %v4111_v1 = vpop.f32.mrb[48].mxu0 }
0x1f96   : > { %v12682_v4 = vsel %vm12612_vm8, %v4111_v1, -1e+09  ;;  %v9523_v56 = vpop.f32.mrb[49].mxu0 }
0x1f97   : > { %v4126_v58 = vsel %vm3809_vm7, %v12682_v4, -inf }
0x1f98   : > { %4127 = vmax.xlane.f32.xlu1 %v4126_v58 }
0x1f99   : > { %v4116_v45 = vpop.f32.mrb[50].mxu0 }
0x1f9a   : > { %v12688_v34 = vsel %vm12622_vm9, %v4116_v45, -1e+09  ;;  %v9526_v63 = vpop.f32.mrb[51].mxu0 }
0x1f9b   : > { %v4129_v44 = vsel %vm3809_vm7, %v12688_v34, -inf }
0x1f9c   : > { %4130 = vmax.xlane.f32.xlu0 %v4129_v44 }
0x1f9d   : > { %v4428_v62 = vpop.f32.mrb[52].mxu0 }
0x1f9e   : > { %v12694_v33 = vsel %vm12603_vm6, %v4428_v62, -1e+09  ;;  %v9550_v8 = vpop.f32.mrb[53].mxu0 }
0x1f9f   : > { %v4445_v11 = vsel %vm3809_vm7, %v12694_v33, -inf }
0x1fa0   : > { %4446 = vmax.xlane.f32.xlu1 %v4445_v11 }
0x1fa1   : > { %v4433_v14 = vpop.f32.mrb[54].mxu0 }
0x1fa2   : > { %v12700_v53 = vsel %vm12612_vm8, %v4433_v14, -1e+09  ;;  %v9553_v16 = vpop.f32.mrb[55].mxu0 }
0x1fa3   : > { %v4448_v19 = vsel %vm3809_vm7, %v12700_v53, -inf }
0x1fa4   : > { %4449 = vmax.xlane.f32.xlu0 %v4448_v19 }
0x1fa5   : > { %v4438_v3 = vpop.f32.mrb[56].mxu0 }
0x1fa6   : > { %v12706_v20 = vsel %vm12622_vm9, %v4438_v3, -1e+09  ;;  %v9556_v10 = vpop.f32.mrb[57].mxu0 }
0x1fa7   : > { %v4451_v22 = vsel %vm3809_vm7, %v12706_v20, -inf }
0x1fa8   : > { %4452 = vmax.xlane.f32.xlu1 %v4451_v22 }
0x1faa   : > { %v4729_v23 = vpop.f32.mrb[58].mxu0 }
0x1fab   : > { %v12712_v26 = vsel %vm12603_vm6, %v4729_v23, -1e+09  ;;  %v9580_v28 = vpop.f32.mrb[59].mxu0 }
0x1fac   : > { %v4746_v57 = vsel %vm3809_vm7, %v12712_v26, -inf }
0x1fad   : > { %4747 = vmax.xlane.f32.xlu0 %v4746_v57 }
0x1fae   : > { %v4734_v29 = vpop.f32.mrb[60].mxu0 }
0x1faf   : > { %v12718_v47 = vsel %vm12612_vm8, %v4734_v29, -1e+09  ;;  %v9583_v60 = vpop.f32.mrb[61].mxu0 }
0x1fb0   : > { %v4749_v30 = vsel %vm3809_vm7, %v12718_v47, -inf }
0x1fb1   : > { %4750 = vmax.xlane.f32.xlu1 %v4749_v30 }
0x1fb2   : > { %v4739_v52 = vpop.f32.mrb[62].mxu0 }
0x1fb3   : > { %v9586_v31 = vpop.f32.mrb[63].mxu0  ;;  %v12728_v35 = vsel %vm12622_vm9, %v4739_v52, -1e+09 }
0x1fb4   : > { %v4752_v50 = vsel %vm3809_vm7, %v12728_v35, -inf }
0x1fc2   : > { %10195 = vrot.lane.b32.xlu1 %v12338_v59, %s13728_s15 }
0x1fc3   : > { %4163 = vrot.lane.b32.xlu0 %v12330_v49, %s13728_s15 }
0x1fe2   : > { %4753 = vmax.xlane.f32.xlu0 %v4752_v50 }
0x1fe6   : > { %v3830_v25 = vpop.xlane.xlu1 %3829 }
0x1fe7   : > { %10673 = vrcp.f32 %v3830_v25 }
0x1fea   : > { %v3833_v21 = vpop.xlane.xlu0 %3832 }
0x1feb   : > { %10675 = vrcp.f32 %v3833_v21 }
0x1fee   : > { %v3836_v42 = vpop.xlane.xlu1 %3835 }
0x1fef   : > { %10677 = vrcp.f32 %v3836_v42 }
0x1ff1   : > { %v10674_v38 = vpop.eup %10673 }
0x1ff2   : > { %v3840_v43 = vmul.f32 %v10674_v38, %v12662_v37 }
0x1ff4   : > { %9504 = vmatmul.mubr.msk.f32.vlgmr.msra.gmra.mrb[32].mxu1 %vm3809_vm7, %v3840_v43 }
0x1ff5   : > { %v10676_v13 = vpop.eup %10675  ;;  %9506 = vmatprep.mubr.msk.f32.mxu1 %vm11472_vm0, %v11471_v0 }
0x1ff6   : > { %v3841_v55 = vmul.f32 %v10676_v13, %v12666_v12 }
0x1ff8   : > { %9507 = vmatmul.mubr.msk.f32.gmra.mrb[34].mxu1 %vm3809_vm7, %v3841_v55  ;;  %10200 = vrot.lane.b32.xlu0 %v12338_v59, %s13727_s2 }
0x1ff9   : > { %v10678_v1 = vpop.eup %10677  ;;  %9509 = vmatprep.mubr.msk.f32.mxu1 %vm11472_vm0, %v11471_v0 }
0x1ffa   : > { %v3842_v56 = vmul.f32 %v10678_v1, %v12670_v7 }
0x1ffc   : > { %9510 = vmatmul.mubr.msk.f32.gmra.mrb[36].mxu1 %vm3809_vm7, %v3842_v56 }
0x1ffd   : > { %9533 = vmatprep.mubr.msk.f32.mxu1 %vm11472_vm0, %v11471_v0 }
0x2021   : > { %v4125_v37 = vpop.xlane.xlu0 %4124 }
0x2022   : > { %v4132_v58 = vsub.f32 %v12676_v46, %v4125_v37 }
0x2024   : > { %v4135_v12 = vmul.f32 1.442695, %v4132_v58 }
0x2025   : > { %v4128_v45 = vpop.xlane.xlu1 %4127 }
0x2026   : > { %10679 = vpow2.f32 %v4135_v12  ;;  %v4133_v63 = vsub.f32 %v12682_v4, %v4128_v45 }
0x2028   : > { %v4137_v44 = vmul.f32 1.442695, %v4133_v63 }
0x2029   : > { %v4131_v62 = vpop.xlane.xlu0 %4130 }
0x202a   : > { %10681 = vpow2.f32 %v4137_v44  ;;  %v4134_v8 = vsub.f32 %v12688_v34, %v4131_v62 }
0x202c   : > { %v4139_v11 = vmul.f32 1.442695, %v4134_v8 }
0x202d   : > { %v4447_v14 = vpop.xlane.xlu1 %4446 }
0x202e   : > { %10683 = vpow2.f32 %v4139_v11  ;;  %v4454_v55 = vsub.f32 %v12694_v33, %v4447_v14 }
0x2030   : > { %v12749_v7 = vpop.eup %10679  ;;  %v4457_v1 = vmul.f32 1.442695, %v4454_v55 }
0x2031   : > { %v4450_v16 = vpop.xlane.xlu0 %4449  ;;  %v4141_v19 = vsel %vm3809_vm7, %v12749_v7, 0.0 }
0x2032   : > { %v4455_v46 = vsub.f32 %v12700_v53, %v4450_v16  ;;  %4142 = vadd.xlane.f32.xlu0 %v4141_v19 }
0x2034   : > { %v12754_v3 = vpop.eup %10681  ;;  %v4459_v4 = vmul.f32 1.442695, %v4455_v46 }
0x2035   : > { %v4453_v10 = vpop.xlane.xlu1 %4452  ;;  %v4144_v22 = vsel %vm3809_vm7, %v12754_v3, 0.0 }
0x2036   : > { %10685 = vpow2.f32 %v4459_v4  ;;  %v4456_v34 = vsub.f32 %v12706_v20, %v4453_v10  ;;  %4145 = vadd.xlane.f32.xlu1 %v4144_v22 }
0x2038   : > { %v12759_v23 = vpop.eup %10683  ;;  %v4461_v28 = vmul.f32 1.442695, %v4456_v34 }
0x2039   : > { %v4147_v57 = vsel %vm3809_vm7, %v12759_v23, 0.0 }
0x203a   : > { %10687 = vpow2.f32 %v4461_v28  ;;  %v4748_v53 = vpop.xlane.xlu0 %4747  ;;  %4148 = vadd.xlane.f32.xlu0 %v4147_v57 }
0x203b   : > { %v4755_v29 = vsub.f32 %v12712_v26, %v4748_v53 }
0x203d   : > { %v4758_v60 = vmul.f32 1.442695, %v4755_v29 }
0x203e   : > { %v4751_v30 = vpop.xlane.xlu1 %4750  ;;  %v4164_v43 = vpop.permute.xlu0 %4163 }
0x203f   : > { %10689 = vpow2.f32 %v4758_v60  ;;  %v4756_v56 = vsub.f32 %v12718_v47, %v4751_v30 }
0x2040   : > { %v12764_v52 = vpop.eup %10685  ;;  %10691 = vpow2.f32 %v4457_v1 }
0x2041   : > { %v4466_v20 = vsel %vm3809_vm7, %v12764_v52, 0.0  ;;  %v4760_v37 = vmul.f32 1.442695, %v4756_v56 }
0x2042   : > { %v10196_v31 = vpop.permute.xlu1 %10195  ;;  %4467 = vadd.xlane.f32.xlu0 %v4466_v20 }
0x2043   : > { %v10198_v50 = vunpack.i.h.bf16 %v10196_v31  ;;  %v10197_v25 = vunpack.i.l.bf16 %v10196_v31  ;;  %10693 = vpow2.f32 %v4760_v37 }
0x2044   : > { %v12768_v21 = vpop.eup %10687 }
0x2045   : > { %v9834_v42 = vpack.c.bf16 %v10198_v50, %v10197_v25  ;;  %v4469_v38 = vsel %vm3809_vm7, %v12768_v21, 0.0 }
0x2046   : > { %4470 = vadd.xlane.f32.xlu0 %v4469_v38 }
0x2047   : > { %4482 = vrot.lane.b32.xlu1 %v12330_v49, %s13727_s2  ;;  %9835 = vmatpush3.bf16.msra.mxu1 %v9834_v42 }
0x2048   : > { %9531 = vmatprep.subr.mxu1 %v11471_v0 }
0x2049   : > { %v12775_v26 = vpop.eup %10689 }
0x204a   : > { %v4764_v13 = vsel %vm3809_vm7, %v12775_v26, 0.0  ;;  %v10692_v58 = vpop.eup %10691 }
0x204b   : > { %9532 = vmatpush3.msra.mxu1 %v4164_v43  ;;  %4765 = vadd.xlane.f32.xlu0 %v4764_v13  ;;  %v4463_v12 = vsel %vm3809_vm7, %v10692_v58, 0.0 }
0x204c   : > { %9840 = vmatprep.subr.bf16.mxu1 %v11477_v15 }
0x204d   : > { %v12783_v45 = vpop.eup %10693 }
0x204e   : > { %v4767_v63 = vsel %vm3809_vm7, %v12783_v45, 0.0 }
0x206b   : > { %4464 = vadd.xlane.f32.xlu1 %v4463_v12 }
0x206f   : > { %4768 = vadd.xlane.f32.xlu1 %v4767_v63  ;;  %v4754_v44 = vpop.xlane.xlu0 %4753 }
0x2070   : > { %v4757_v62 = vsub.f32 %v12728_v35, %v4754_v44 }
0x2072   : > { %v4762_v33 = vmul.f32 1.442695, %v4757_v62 }
0x2073   : > { %v10201_v11 = vpop.permute.xlu0 %10200 }
0x2074   : > { %10695 = vpow2.f32 %v4762_v33  ;;  %v10203_v19 = vunpack.i.h.bf16 %v10201_v11  ;;  %v10202_v46 = vunpack.i.l.bf16 %v10201_v11 }
0x2076   : > { %v9841_v28 = vpack.c.bf16 %v10203_v19, %v10202_v46 }
0x207e   : > { %v12788_v8 = vpop.eup %10695 }
0x207f   : > { %v4770_v47 = vsel %vm3809_vm7, %v12788_v8, 0.0 }
0x2080   : > { %4783 = vrot.lane.b32.xlu1 %v12330_v49, %s13726_s1  ;;  %4771 = vadd.xlane.f32.xlu0 %v4770_v47 }
0x2096   : > { %10205 = vrot.lane.b32.xlu0 %v12338_v59, %s13726_s1 }
0x20bf   : > { %v4143_v14 = vpop.xlane.xlu0 %4142 }
0x20c0   : > { %10697 = vrcp.f32 %v4143_v14  ;;  %v10374_v14 = vld [vmem:[#allocation23 + $0x8] sm:$0xff]  }
0x20c3   : > { %v4146_v16 = vpop.xlane.xlu1 %4145 }
0x20c4   : > { %10699 = vrcp.f32 %v4146_v16 }
0x20c7   : > { %v12796_v35 = vpop.f32.mrb[32].mxu1  ;;  %v4149_v4 = vpop.xlane.xlu0 %4148 }
0x20c8   : > { %v9505_v10 = vpop.f32.mrb[33].mxu1  ;;  %10701 = vrcp.f32 %v4149_v4  ;;  %v4483_v30 = vpop.permute.xlu1 %4482 }
0x20ca   : > { %v10698_v22 = vpop.eup %10697 }
0x20cb   : > { %v4153_v34 = vmul.f32 %v10698_v22, %v12749_v7  ;;  %v12799_v49 = vpop.f32.mrb[34].mxu1 }
0x20cc   : > { %v9508_v57 = vpop.f32.mrb[35].mxu1 }
0x20cd   : > { %9534 = vmatmul.mubr.msk.f32.vlgmr.msra.gmra.mrb[38].mxu1 %vm3809_vm7, %v4153_v34  ;;  %v10376_v34 = vld [vmem:[#allocation23 + $0x18] sm:$0xff]  }
0x20ce   : > { %v10700_v59 = vpop.eup %10699  ;;  %9842 = vmatpush3.bf16.msra.mxu1 %v9841_v28  ;;  %9536 = vmatprep.mubr.msk.f32.mxu1 %vm11472_vm0, %v11471_v0  ;;  %v10377_v28 = vld [vmem:[#allocation23 + $0x20] sm:$0xff]  }
0x20cf   : > { %v12804_v53 = vpop.f32.mrb[36].mxu1  ;;  %9561 = vmatprep.subr.mxu1 %v11471_v0  ;;  %v4154_v29 = vmul.f32 %v10700_v59, %v12754_v3  ;;  %v4468_v31 = vpop.xlane.xlu0 %4467 }
0x20d0   : > { %v9511_v60 = vpop.f32.mrb[37].mxu1 }
0x20d1   : > { %9537 = vmatmul.mubr.msk.f32.gmra.mrb[40].mxu1 %vm3809_vm7, %v4154_v29  ;;  %v10378_v29 = vld [vmem:[#allocation23 + $0x28] sm:$0xff]  }
0x20d2   : > { %9562 = vmatpush3.msra.mxu1 %v4483_v30  ;;  %9539 = vmatprep.mubr.msk.f32.mxu1 %vm11472_vm0, %v11471_v0  ;;  %v10702_v7 = vpop.eup %10701 }
0x20d3   : > { %9847 = vmatprep.subr.bf16.mxu1 %v11477_v15  ;;  %v4155_v20 = vmul.f32 %v10702_v7, %v12759_v23  ;;  %v4471_v50 = vpop.xlane.xlu0 %4470 }
0x20d5   : > { %9540 = vmatmul.mubr.msk.f32.gmra.mrb[42].mxu1 %vm3809_vm7, %v4155_v20  ;;  %v10379_v20 = vld [vmem:[#allocation23 + $0x30] sm:$0xff]  }
0x20d6   : > { %9563 = vmatprep.mubr.msk.f32.mxu1 %vm11472_vm0, %v11471_v0 }
0x20d8   : > { %v4766_v13 = vpop.xlane.xlu0 %4765 }
0x20f8   : > { %v4465_v3 = vpop.xlane.xlu1 %4464 }
0x20f9   : > { %10703 = vrcp.f32 %v4465_v3 }
0x20fa   : > { %10705 = vrcp.f32 %v4468_v31 }
0x20fb   : > { %10707 = vrcp.f32 %v4471_v50  ;;  %v10380_v50 = vld [vmem:[#allocation23 + $0x38] sm:$0xff]  }
0x20fc   : > { %10709 = vrcp.f32 %v4766_v13  ;;  %v4769_v1 = vpop.xlane.xlu1 %4768 }
0x20fd   : > { %10711 = vrcp.f32 %v4769_v1 }
0x2103   : > { %v10704_v25 = vpop.eup %10703 }
0x2104   : > { %v4475_v42 = vmul.f32 %v10704_v25, %v10692_v58  ;;  %v10706_v38 = vpop.eup %10705 }
0x2105   : > { %v4476_v23 = vmul.f32 %v10706_v38, %v12764_v52  ;;  %v10708_v43 = vpop.eup %10707 }
0x2106   : > { %9564 = vmatmul.mubr.msk.f32.vlgmr.msra.gmra.mrb[44].mxu1 %vm3809_vm7, %v4475_v42  ;;  %v4477_v55 = vmul.f32 %v10708_v43, %v12768_v21  ;;  %v10710_v63 = vpop.eup %10709  ;;  %v4784_v21 = vpop.permute.xlu1 %4783 }
0x2107   : > { %9566 = vmatprep.mubr.msk.f32.mxu1 %vm11472_vm0, %v11471_v0  ;;  %v4776_v44 = vmul.f32 %v10710_v63, %v12775_v26  ;;  %v10712_v62 = vpop.eup %10711  ;;  %v10373_v26 = vld [vmem:[#allocation23] sm:$0xff]  }
0x2108   : > { %v4777_v33 = vmul.f32 %v10712_v62, %v12783_v45  ;;  %9602 = vmatprep.subr.bf16.mxu0 %v10373_v26 }
0x2109   : > { %9603 = vmatpush3.bf16.msra.mxu0 %v10373_v26 }
0x210a   : > { %9567 = vmatmul.mubr.msk.f32.gmra.mrb[46].mxu1 %vm3809_vm7, %v4476_v23  ;;  %9604 = vmatprep.subr.bf16.mxu0 %v10374_v14 }
0x210b   : > { %9569 = vmatprep.mubr.msk.f32.mxu1 %vm11472_vm0, %v11471_v0 }
0x210d   : > { %v4772_v56 = vpop.xlane.xlu0 %4771  ;;  %9605 = vmatpush3.bf16.msra.mxu0 %v10374_v14 }
0x210e   : > { %9570 = vmatmul.mubr.msk.f32.gmra.mrb[48].mxu1 %vm3809_vm7, %v4477_v55  ;;  %10713 = vrcp.f32 %v4772_v56 }
0x210f   : > { %9593 = vmatprep.mubr.msk.f32.mxu1 %vm11472_vm0, %v11471_v0 }
0x2111   : > { %v10206_v37 = vpop.permute.xlu0 %10205 }
0x2112   : > { %v10208_v52 = vunpack.i.h.bf16 %v10206_v37  ;;  %v10207_v58 = vunpack.i.l.bf16 %v10206_v37 }
0x2114   : > { %v9848_v12 = vpack.c.bf16 %v10208_v52, %v10207_v58 }
0x2116   : > { %9849 = vmatpush3.bf16.msra.mxu1 %v9848_v12 }
0x2117   : > { %9591 = vmatprep.subr.mxu1 %v11471_v0 }
0x2118   : > { %v10714_v47 = vpop.eup %10713 }
0x2119   : > { %v4778_v11 = vmul.f32 %v10714_v47, %v12788_v8  ;;  %v10375_v8 = vld [vmem:[#allocation23 + $0x10] sm:$0xff]  }
0x211a   : > { %9592 = vmatpush3.msra.mxu1 %v4784_v21  ;;  %9606 = vmatprep.subr.bf16.mxu0 %v10375_v8 }
0x211b   : > { %9594 = vmatmul.mubr.msk.f32.vlgmr.msra.gmra.mrb[50].mxu1 %vm3809_vm7, %v4776_v44  ;;  %9607 = vmatpush3.bf16.msra.mxu0 %v10375_v8  ;;  %v10384_v8 = vld [vmem:[%s13736_s28 + $0x8] ss:$16 sps:$4 sm:$0xff]  }
0x211c   : > { %9596 = vmatprep.mubr.msk.f32.mxu1 %vm11472_vm0, %v11471_v0  ;;  %9608 = vmatprep.subr.bf16.mxu0 %v10376_v34 }
0x211f   : > { %9597 = vmatmul.mubr.msk.f32.gmra.mrb[52].mxu1 %vm3809_vm7, %v4777_v33  ;;  %9609 = vmatpush3.bf16.msra.mxu0 %v10376_v34  ;;  %v10386_v34 = vld [vmem:[%s13736_s28 + $0xc] ss:$16 sps:$4 sm:$0xff]  }
0x2120   : > { %9599 = vmatprep.mubr.msk.f32.mxu1 %vm11472_vm0, %v11471_v0  ;;  %9610 = vmatprep.subr.bf16.mxu0 %v10377_v28 }
0x2123   : > { %9600 = vmatmul.mubr.msk.f32.gmra.mrb[54].mxu1 %vm3809_vm7, %v4778_v11  ;;  %9611 = vmatpush3.bf16.msra.mxu0 %v10377_v28  ;;  %v10389_v28 = vld [vmem:[%s13736_s28 + $0x24] ss:$16 sps:$4 sm:$0xff]  }
0x2124   : > { %5297 = vmatprep.mubr.bf16.mxu1 %v11473_v32  ;;  %9612 = vmatprep.subr.bf16.mxu0 %v10378_v29 }
0x2127   : > { %9613 = vmatpush3.bf16.msra.mxu0 %v10378_v29  ;;  %v10390_v29 = vld [vmem:[%s13736_s28 + $0x28] ss:$16 sps:$4 sm:$0xff]  }
0x2128   : > { %9614 = vmatprep.subr.bf16.mxu0 %v10379_v20 }
0x212b   : > { %9615 = vmatpush3.bf16.msra.mxu0 %v10379_v20  ;;  %v10396_v20 = vld [vmem:[%s13736_s28 + $0x48] ss:$16 sps:$4 sm:$0xff]  }
0x212c   : > { %9616 = vmatprep.subr.bf16.mxu0 %v10380_v50 }
0x212f   : > { %9617 = vmatpush3.bf16.msra.mxu0 %v10380_v50 }
0x2130   : > { %5316 = vmatprep.subr.bf16.mxu0 %v10386_v34 }
0x21a0   : > { %v4243_v16 = vpop.f32.mrb[38].mxu1 }
0x21a1   : > { %v9535_v19 = vpop.f32.mrb[39].mxu1 }
0x21a4   : > { %v4248_v45 = vpop.f32.mrb[40].mxu1 }
0x21a5   : > { %v10209_v46 = vpack.i.bf16 %v4248_v45, %v4243_v16  ;;  %v9538_v4 = vpop.f32.mrb[41].mxu1 }
0x21a7   : > { %10210 = vrot.lane.b32.xlu1 %v10209_v46, %s13726_s1 }
0x21a8   : > { %v4253_v10 = vpop.f32.mrb[42].mxu1 }
0x21a9   : > { %v9541_v22 = vpop.f32.mrb[43].mxu1 }
0x21aa   : > { %v10383_v22 = vld [vmem:[%s13736_s28 + $0x4] ss:$16 sps:$4 sm:$0xff]  }
0x21ab   : > { %4884 = vrot.lane.b32.xlu1 %v4253_v10, %s13726_s1  ;;  %v10381_v10 = vld [vmem:[%s13735_s22] ss:$16 sps:$4 sm:$0xff]   ;;  %5265 = vmatprep.subr.bf16.mxu1 %v10383_v22  ;;  %s13737_s22 = smov 112  }
0x21ac   : > { %5266 = vmatpush1.bf16.msra.mxu1 %v10381_v10 }
0x21ad   : > { %5267 = vmatprep.subr.bf16.mxu1 %v10389_v28 }
0x21d9   : > { %v4562_v57 = vpop.f32.mrb[44].mxu1 }
0x21da   : > { %v9565_v59 = vpop.f32.mrb[45].mxu1 }
0x21db   : > { %v10387_v59 = vld [vmem:[%s13736_s28 + $0x20] ss:$16 sps:$4 sm:$0xff]  }
0x21dc   : > { %5268 = vmatpush1.bf16.msra.mxu1 %v10387_v59  ;;  %v8684_v59 = vld [vmem:[#allocation25] ss:$0 sm:$0xff] }
0x21dd   : > { %v4567_v60 = vpop.f32.mrb[46].mxu1 }
0x21de   : > { %v10214_v30 = vpack.i.bf16 %v4567_v60, %v4562_v57  ;;  %v9568_v7 = vpop.f32.mrb[47].mxu1  ;;  %v10392_v57 = vld [vmem:[%s13736_s28 + $0x2c] ss:$16 sps:$4 sm:$0xff]   ;;  %v10395_v60 = vld [vmem:[%s13736_s28 + $0x44] ss:$16 sps:$4 sm:$0xff]  }
0x21df   : > { %v10393_v7 = vld [vmem:[%s13736_s28 + $0x40] ss:$16 sps:$4 sm:$0xff]   ;;  %5269 = vmatprep.subr.bf16.mxu1 %v10395_v60 }
0x21e0   : > { %10215 = vrot.lane.b32.xlu1 %v10214_v30, %s13727_s2  ;;  %v10398_v30 = vld [vmem:[%s13736_s28 + $0x4c] ss:$16 sps:$4 sm:$0xff]   ;;  %5270 = vmatpush1.bf16.msra.mxu1 %v10393_v7 }
0x21e1   : > { %v4572_v31 = vpop.f32.mrb[48].mxu1 }
0x21e2   : > { %v9571_v3 = vpop.f32.mrb[49].mxu1 }
0x21e4   : > { %4896 = vrot.lane.b32.xlu1 %v4572_v31, %s13727_s2 }
0x21ee   : > { %v4863_v25 = vpop.f32.mrb[50].mxu1 }
0x21ef   : > { %v9595_v42 = vpop.f32.mrb[51].mxu1 }
0x21f2   : > { %v4868_v38 = vpop.f32.mrb[52].mxu1 }
0x21f3   : > { %v10219_v23 = vpack.i.bf16 %v4868_v38, %v4863_v25  ;;  %v9598_v43 = vpop.f32.mrb[53].mxu1 }
0x21f5   : > { %10220 = vrot.lane.b32.xlu1 %v10219_v23, %s13728_s15 }
0x21f6   : > { %v4873_v13 = vpop.f32.mrb[54].mxu1 }
0x21f7   : > { %4908 = vrot.lane.b32.xlu0 %v4873_v13, %s13728_s15  ;;  %v9601_v55 = vpop.f32.mrb[55].mxu1 }
0x21f8   : > { %v10404_v55 = vld [vmem:[%s13736_s28 + $0x6c] ss:$16 sps:$4 sm:$0xff]  }
0x2219   : > { %v10211_v1 = vpop.permute.xlu1 %10210 }
0x221a   : > { %v10213_v52 = vunpack.i.h.bf16 %v10211_v1  ;;  %v10212_v12 = vunpack.i.l.bf16 %v10211_v1  ;;  %v10399_v1 = vld [vmem:[%s13736_s28 + $0x60] ss:$16 sps:$4 sm:$0xff]  }
0x221c   : > { %v4914_v21 = vsel %vm1425_vm3, %v12799_v49, %v10213_v52  ;;  %v4913_v33 = vsel %vm1425_vm3, %v12796_v35, %v10212_v12  ;;  %v10405_v52 = vld [vmem:[%s13736_s28 + $0x80] ss:$16 sps:$4 sm:$0xff]   ;;  %v10413_v12 = vld [vmem:[%s13736_s28 + $0xa4] ss:$16 sps:$4 sm:$0xff]  }
0x221d   : > { %v4885_v56 = vpop.permute.xlu1 %4884 }
0x221e   : > { %v4915_v47 = vsel %vm1425_vm3, %v12804_v53, %v4885_v56  ;;  %v10402_v56 = vld [vmem:[%s13736_s28 + $0x68] ss:$16 sps:$4 sm:$0xff]  }
0x2252   : > { %v10216_v37 = vpop.permute.xlu1 %10215 }
0x2253   : > { %v10218_v63 = vunpack.i.h.bf16 %v10216_v37  ;;  %v10217_v44 = vunpack.i.l.bf16 %v10216_v37  ;;  %v10410_v37 = vld [vmem:[%s13736_s28 + $0x8c] ss:$16 sps:$4 sm:$0xff]  }
0x2255   : > { %v4916_v49 = vsel %vm1272_vm2, %v4913_v33, %v10217_v44  ;;  %v4917_v19 = vsel %vm1272_vm2, %v4914_v21, %v10218_v63  ;;  %v10416_v63 = vld [vmem:[%s13736_s28 + $0xac] ss:$16 sps:$4 sm:$0xff]   ;;  %v10411_v44 = vld [vmem:[%s13736_s28 + $0xa0] ss:$16 sps:$4 sm:$0xff]   ;;  %v10414_v21 = vld [vmem:[%s13736_s28 + $0xa8] ss:$16 sps:$4 sm:$0xff]  }
0x2256   : > { %v4897_v58 = vpop.permute.xlu1 %4896  ;;  %v10422_v33 = vld [vmem:[%s13736_s28 + $0xcc] ss:$16 sps:$4 sm:$0xff]  }
0x2257   : > { %v4918_v14 = vsel %vm1272_vm2, %v4915_v47, %v4897_v58  ;;  %v10408_v58 = vld [vmem:[%s13736_s28 + $0x88] ss:$16 sps:$4 sm:$0xff]   ;;  %v10417_v47 = vld [vmem:[%s13736_s28 + $0xc0] ss:$16 sps:$4 sm:$0xff]  }
0x2267   : > { %v10221_v62 = vpop.permute.xlu1 %10220 }
0x2268   : > { %v10223_v11 = vunpack.i.h.bf16 %v10221_v62  ;;  %v10222_v26 = vunpack.i.l.bf16 %v10221_v62  ;;  %v10419_v62 = vld [vmem:[%s13736_s28 + $0xc4] ss:$16 sps:$4 sm:$0xff]  }
0x2269   : > { %v4909_v16 = vpop.permute.xlu0 %4908 }
0x226a   : > { %v4922_v35 = vsel %vm4919_vm10, %v4918_v14, %v4909_v16  ;;  %v4920_v45 = vsel %vm4919_vm10, %v4916_v49, %v10222_v26  ;;  %v4921_v53 = vsel %vm4919_vm10, %v4917_v19, %v10223_v11  ;;  %v10420_v11 = vld [vmem:[%s13736_s28 + $0xc8] ss:$16 sps:$4 sm:$0xff]   ;;  %v10423_v26 = vld [vmem:[%s13736_s28 + $0xe0] ss:$16 sps:$4 sm:$0xff]   ;;  %v10425_v14 = vld [vmem:[%s13736_s28 + $0xe4] ss:$16 sps:$4 sm:$0xff]  }
0x226b   : > { %v4940_v46 = vpack.c.bf16 %v4922_v35, %v4922_v35  ;;  %v4939_v4 = vpack.c.bf16 %v4921_v53, %v4920_v45  ;;  %v10426_v16 = vld [vmem:[%s13736_s28 + $0xe8] ss:$16 sps:$4 sm:$0xff]   ;;  %v10428_v49 = vld [vmem:[%s13736_s28 + $0xec] ss:$16 sps:$4 sm:$0xff]  }
0x226d   : > { %9618 = vmatprep.mubr.bf16.mxu0 %v4939_v4 }
0x226e   : > { %9619 = vmatmul.mubr.bf16.vlgmr.msra.gmra.mrb[64].mxu0 %v4940_v46 }
0x226f   : > { %5348 = vmatprep.mubr.bf16.mxu0 %v11473_v32  ;;  %5317 = vmatpush1.bf16.msra.mxu0 %v10384_v8 }
0x2270   : > { %5318 = vmatprep.subr.bf16.mxu0 %v10392_v57 }
0x2273   : > { %5319 = vmatpush1.bf16.msra.mxu0 %v10390_v29 }
0x2274   : > { %5320 = vmatprep.subr.bf16.mxu0 %v10398_v30 }
0x2277   : > { %5321 = vmatpush1.bf16.msra.mxu0 %v10396_v20 }
0x2278   : > { %5322 = vmatprep.subr.bf16.mxu0 %v10404_v55  ;;  %v10434_v55 = vld [vmem:[%s11627_s24 + $0x10] sm:$0xff]  }
0x227b   : > { %5323 = vmatpush1.bf16.msra.mxu0 %v10402_v56  ;;  %v10436_v56 = vld [vmem:[%s11627_s24 + $0x18] sm:$0xff]  }
0x227c   : > { %5324 = vmatprep.subr.bf16.mxu0 %v10410_v37  ;;  %v10438_v37 = vld [vmem:[%s11627_s24 + $0x20] sm:$0xff]  }
0x227f   : > { %5325 = vmatpush1.bf16.msra.mxu0 %v10408_v58  ;;  %v10440_v58 = vld [vmem:[%s11627_s24 + $0x28] sm:$0xff]  }
0x2280   : > { %5326 = vmatprep.subr.bf16.mxu0 %v10416_v63  ;;  %v10442_v63 = vld [vmem:[%s11627_s24 + $0x30] sm:$0xff]  }
0x2283   : > { %5327 = vmatpush1.bf16.msra.mxu0 %v10414_v21  ;;  %v10444_v21 = vld [vmem:[%s11627_s24 + $0x38] sm:$0xff]  }
0x2284   : > { %5328 = vmatprep.subr.bf16.mxu0 %v10422_v33 }
0x2287   : > { %5329 = vmatpush1.bf16.msra.mxu0 %v10420_v11 }
0x2288   : > { %5330 = vmatprep.subr.bf16.mxu0 %v10428_v49 }
0x228b   : > { %5331 = vmatpush1.bf16.msra.mxu0 %v10426_v16 }
0x2341   : > { %v9620_v31 = vpop.f32.mrb[64].mxu0 }
0x2342   : > { %v5023_v3 = vpop.f32.mrb[65].mxu0  ;;  %v12879_v43 = vadd.f32 %v9620_v31, %v12284_v51  ;;  %v10407_v51 = vld [vmem:[%s13736_s28 + $0x84] ss:$16 sps:$4 sm:$0xff]  }
0x2343   : > { %v12871_v50 = vadd.f32 %v5023_v3, %v12282_v61  ;;  %v9621_v25 = vpop.f32.mrb[66].mxu0 }
0x2344   : > { %v5026_v42 = vpop.f32.mrb[67].mxu0  ;;  %v5043_v13 = vmul.f32 %v12879_v43, %v12879_v43 }
0x2345   : > { %v12874_v38 = vadd.f32 %v5026_v42, %v12286_v54  ;;  %v5041_v23 = vmul.f32 %v12871_v50, %v12871_v50  ;;  %v10401_v54 = vld [vmem:[%s13736_s28 + $0x64] ss:$16 sps:$4 sm:$0xff]  }
0x2346   : > { %5271 = vmatprep.subr.bf16.mxu1 %v10401_v54  ;;  %v10429_v42 = vld [vmem:[%s11627_s24 + $0x40] sm:$0xff]   ;;  %v10433_v54 = vld [vmem:[%s11627_s24 + $0x50] sm:$0xff]  }
0x2347   : > { %5044 = vadd.xlane.f32.xlu1 %v5041_v23  ;;  %v5042_v61 = vmul.f32 %v12874_v38, %v12874_v38  ;;  %5272 = vmatpush1.bf16.msra.mxu1 %v10399_v1  ;;  %v10430_v23 = vld [vmem:[%s11627_s24] sm:$0xff]   ;;  %v10435_v1 = vld [vmem:[%s11627_s24 + $0x58] sm:$0xff]  }
0x2348   : > { %5273 = vmatprep.subr.bf16.mxu1 %v10407_v51  ;;  %v10437_v51 = vld [vmem:[%s11627_s24 + $0x60] sm:$0xff]  }
0x2349   : > { %5046 = vadd.xlane.f32.xlu0 %v5042_v61  ;;  %v10431_v61 = vld [vmem:[%s11627_s24 + $0x48] sm:$0xff]  }
0x234b   : > { %5274 = vmatpush1.bf16.msra.mxu1 %v10405_v52  ;;  %v10439_v52 = vld [vmem:[%s11627_s24 + $0x68] sm:$0xff]  }
0x234c   : > { %5275 = vmatprep.subr.bf16.mxu1 %v10413_v12  ;;  %v10441_v12 = vld [vmem:[%s11627_s24 + $0x70] sm:$0xff]  }
0x234d   : > { %5048 = vadd.xlane.f32.xlu0 %v5043_v13  ;;  %v10432_v13 = vld [vmem:[%s11627_s24 + $0x8] sm:$0xff]  }
0x234f   : > { %5276 = vmatpush1.bf16.msra.mxu1 %v10411_v44  ;;  %v10443_v44 = vld [vmem:[%s11627_s24 + $0x78] sm:$0xff]  }
0x2350   : > { %5277 = vmatprep.subr.bf16.mxu1 %v10419_v62 }
0x2353   : > { %5278 = vmatpush1.bf16.msra.mxu1 %v10417_v47 }
0x2354   : > { %5279 = vmatprep.subr.bf16.mxu1 %v10425_v14 }
0x2357   : > { %5280 = vmatpush1.bf16.msra.mxu1 %v10423_v26 }
0x2358   : > { %9152 = vmatprep.subr.bf16.mxu1 %v10429_v42 }
0x23d4   : > { %v5045_v19 = vpop.xlane.xlu1 %5044 }
0x23d5   : > { %v5050_v35 = vmul.f32 0.0078125, %v5045_v19 }
0x23d6   : > { %v5047_v45 = vpop.xlane.xlu0 %5046 }
0x23d7   : > { %v5053_v53 = vadd.f32 1e-06, %v5050_v35  ;;  %v5051_v46 = vmul.f32 0.0078125, %v5047_v45 }
0x23d9   : > { %10715 = vrsqrt.f32 %v5053_v53  ;;  %v5054_v4 = vadd.f32 1e-06, %v5051_v46 }
0x23da   : > { %v5049_v10 = vpop.xlane.xlu0 %5048 }
0x23db   : > { %10717 = vrsqrt.f32 %v5054_v4  ;;  %v5052_v22 = vmul.f32 0.0078125, %v5049_v10 }
0x23dd   : > { %v5055_v8 = vadd.f32 1e-06, %v5052_v22 }
0x23df   : > { %10719 = vrsqrt.f32 %v5055_v8 }
0x23e3   : > { %v10716_v34 = vpop.eup %10715 }
0x23e4   : > { %v5059_v28 = vmul.f32 %v10716_v34, %v12871_v50 }
0x23e5   : > { %v10718_v57 = vpop.eup %10717 }
0x23e6   : > { %v5060_v29 = vmul.f32 %v10718_v57, %v12874_v38  ;;  %v5068_v60 = vmul.f32 %v8684_v59, %v5059_v28 }
0x23e8   : > { %v5069_v30 = vmul.f32 %v8684_v59, %v5060_v29 }
0x23e9   : > { %v10720_v7 = vpop.eup %10719 }
0x23ea   : > { %v5103_v20 = vpack.c.bf16 %v5069_v30, %v5068_v60  ;;  %v5061_v31 = vmul.f32 %v10720_v7, %v12879_v43 }
0x23ec   : > { %5298 = vmatmul.mubr.bf16.vlgmr.msra.gmra.mrb[56].mxu1 %v5103_v20  ;;  %5349 = vmatmul.mubr.bf16.vlgmr.msra.gmra.mrb[68].mxu0 %v5103_v20  ;;  %v5070_v3 = vmul.f32 %v8684_v59, %v5061_v31 }
0x23ed   : > { %5307 = vmatprep.mubr.bf16.mxu1 %v11473_v32  ;;  %5358 = vmatprep.mubr.bf16.mxu0 %v11473_v32 }
0x23ee   : > { %v5104_v25 = vpack.c.bf16 %v5070_v3, %v5070_v3  ;;  %9153 = vmatpush3.bf16.msra.mxu1 %v10430_v23 }
0x23ef   : > { %9154 = vmatprep.subr.bf16.mxu1 %v10431_v61 }
0x23f2   : > { %9155 = vmatpush3.bf16.msra.mxu1 %v10432_v13 }
0x23f3   : > { %9156 = vmatprep.subr.bf16.mxu1 %v10433_v54 }
0x23f4   : > { %5308 = vmatmul.mubr.bf16.gmra.mrb[60].mxu1 %v5104_v25  ;;  %5359 = vmatmul.mubr.bf16.gmra.mrb[72].mxu0 %v5104_v25 }
0x23f5   : > { %5825 = vmatprep.mubr.bf16.mxu0 %v11473_v32 }
0x23f6   : > { %9157 = vmatpush3.bf16.msra.mxu1 %v10434_v55 }
0x23f7   : > { %9158 = vmatprep.subr.bf16.mxu1 %v10435_v1 }
0x23fa   : > { %9159 = vmatpush3.bf16.msra.mxu1 %v10436_v56 }
0x23fb   : > { %9160 = vmatprep.subr.bf16.mxu1 %v10437_v51 }
0x23fe   : > { %9161 = vmatpush3.bf16.msra.mxu1 %v10438_v37 }
0x23ff   : > { %9162 = vmatprep.subr.bf16.mxu1 %v10439_v52 }
0x2402   : > { %9163 = vmatpush3.bf16.msra.mxu1 %v10440_v58 }
0x2403   : > { %9164 = vmatprep.subr.bf16.mxu1 %v10441_v12 }
0x2406   : > { %9165 = vmatpush3.bf16.msra.mxu1 %v10442_v63 }
0x2407   : > { %9166 = vmatprep.subr.bf16.mxu1 %v10443_v44 }
0x240a   : > { %9167 = vmatpush3.bf16.msra.mxu1 %v10444_v21 }
0x24bf   : > { %v5299_v62 = vpop.f32.mrb[56].mxu1  ;;  %v5350_v33 = vpop.f32.mrb[68].mxu0 }
0x24c0   : > { %v8717_v47 = vmul.f32 -1.442695, %v5299_v62  ;;  %v5301_v11 = vpop.f32.mrb[57].mxu1  ;;  %v5352_v26 = vpop.f32.mrb[69].mxu0 }
0x24c1   : > { %v8718_v14 = vmul.f32 -1.442695, %v5301_v11  ;;  %v5303_v16 = vpop.f32.mrb[58].mxu1  ;;  %v5354_v49 = vpop.f32.mrb[70].mxu0 }
0x24c2   : > { %10721 = vpow2.f32 %v8717_v47  ;;  %v8719_v19 = vmul.f32 -1.442695, %v5303_v16  ;;  %v5305_v35 = vpop.f32.mrb[59].mxu1  ;;  %v5356_v45 = vpop.f32.mrb[71].mxu0 }
0x24c3   : > { %10723 = vpow2.f32 %v8718_v14  ;;  %v8720_v53 = vmul.f32 -1.442695, %v5305_v35 }
0x24c4   : > { %10725 = vpow2.f32 %v8719_v19 }
0x24c5   : > { %10727 = vpow2.f32 %v8720_v53 }
0x24c7   : > { %v5309_v46 = vpop.f32.mrb[60].mxu1  ;;  %v5360_v4 = vpop.f32.mrb[72].mxu0 }
0x24c8   : > { %v8721_v10 = vmul.f32 -1.442695, %v5309_v46  ;;  %v5311_v22 = vpop.f32.mrb[61].mxu1  ;;  %v5362_v8 = vpop.f32.mrb[73].mxu0 }
0x24c9   : > { %v8722_v34 = vmul.f32 -1.442695, %v5311_v22  ;;  %v5313_v28 = vpop.f32.mrb[62].mxu1  ;;  %v5364_v57 = vpop.f32.mrb[74].mxu0 }
0x24ca   : > { %10729 = vpow2.f32 %v8721_v10  ;;  %v5314_v59 = vpop.f32.mrb[63].mxu1  ;;  %v5365_v29 = vpop.f32.mrb[75].mxu0  ;;  %v10451_v28 = vld [vmem:[%s13721_s26 + $0xc8] ss:$12 sps:$4 sm:$0xff]   ;;  %v10448_v57 = vld [vmem:[%s13721_s26 + $0xd8] ss:$12 sps:$4 sm:$0xff]  }
0x24cb   : > { %10731 = vpow2.f32 %v8722_v34  ;;  %9622 = vmatprep.subr.bf16.mxu1 %v10451_v28 }
0x24cc   : > { %v10722_v60 = vpop.eup %10721 }
0x24cd   : > { %v10724_v30 = vpop.eup %10723  ;;  %v5385_v7 = vadd.f32 1.0, %v10722_v60 }
0x24ce   : > { %v10726_v20 = vpop.eup %10725  ;;  %v5386_v31 = vadd.f32 1.0, %v10724_v30 }
0x24cf   : > { %v10728_v3 = vpop.eup %10727  ;;  %10733 = vrcp.f32 %v5385_v7  ;;  %v5387_v25 = vadd.f32 1.0, %v10726_v20 }
0x24d0   : > { %10735 = vrcp.f32 %v5386_v31  ;;  %v5388_v42 = vadd.f32 1.0, %v10728_v3 }
0x24d1   : > { %10737 = vrcp.f32 %v5387_v25 }
0x24d2   : > { %10739 = vrcp.f32 %v5388_v42 }
0x24d4   : > { %v10730_v23 = vpop.eup %10729 }
0x24d5   : > { %v10732_v61 = vpop.eup %10731  ;;  %v5389_v13 = vadd.f32 1.0, %v10730_v23 }
0x24d6   : > { %v5390_v54 = vadd.f32 1.0, %v10732_v61 }
0x24d7   : > { %10741 = vrcp.f32 %v5389_v13 }
0x24d8   : > { %10743 = vrcp.f32 %v5390_v54  ;;  %v10455_v54 = vld [vmem:[%s13721_s26 + $0xe0] ss:$12 sps:$4 sm:$0xff]  }
0x24d9   : > { %v10734_v55 = vpop.eup %10733 }
0x24da   : > { %v10736_v1 = vpop.eup %10735  ;;  %v5403_v56 = vmul.f32 %v10734_v55, %v5299_v62  ;;  %v10458_v55 = vld [vmem:[%s13721_s26 + $0x10c] ss:$12 sps:$4 sm:$0xff]  }
0x24db   : > { %v10738_v51 = vpop.eup %10737  ;;  %v5404_v37 = vmul.f32 %v10736_v1, %v5301_v11  ;;  %v10456_v1 = vld [vmem:[%s13721_s26 + $0x108] ss:$12 sps:$4 sm:$0xff]  }
0x24dc   : > { %v10740_v52 = vpop.eup %10739  ;;  %v5409_v58 = vmul.f32 %v5403_v56, %v5350_v33  ;;  %v5405_v12 = vmul.f32 %v10738_v51, %v5303_v16  ;;  %v10459_v56 = vld [vmem:[%s13721_s26 + $0xf8] ss:$12 sps:$4 sm:$0xff]   ;;  %v10460_v51 = vld [vmem:[%s13721_s26 + $0x120] ss:$12 sps:$4 sm:$0xff]  }
0x24dd   : > { %v5410_v63 = vmul.f32 %v5404_v37, %v5352_v26  ;;  %v5406_v44 = vmul.f32 %v10740_v52, %v5305_v35  ;;  %v10447_v35 = vld [vmem:[%s13721_s26 + $0xc4] ss:$12 sps:$4 sm:$0xff]   ;;  %v10466_v52 = vld [vmem:[%s13721_s26 + $0x13c] ss:$12 sps:$4 sm:$0xff]  }
0x24de   : > { %v5411_v21 = vmul.f32 %v5405_v12, %v5354_v49  ;;  %v10445_v49 = vld [vmem:[%s13721_s26 + $0xc0] ss:$12 sps:$4 sm:$0xff]   ;;  %5793 = vmatprep.subr.bf16.mxu0 %v10447_v35  ;;  %v10463_v37 = vld [vmem:[%s13721_s26 + $0x110] ss:$12 sps:$4 sm:$0xff]   ;;  %v10467_v12 = vld [vmem:[%s13721_s26 + $0x128] ss:$12 sps:$4 sm:$0xff]  }
0x24df   : > { %v5412_v47 = vmul.f32 %v5406_v44, %v5356_v45  ;;  %v10450_v45 = vld [vmem:[%s13721_s26 + $0xdc] ss:$12 sps:$4 sm:$0xff]   ;;  %5794 = vmatpush1.bf16.msra.mxu0 %v10445_v49 }
0x24e0   : > { %v5447_v14 = vpack.c.bf16 %v5411_v21, %v5409_v58  ;;  %5795 = vmatprep.subr.bf16.mxu0 %v10450_v45  ;;  %v10464_v58 = vld [vmem:[%s13721_s26 + $0x138] ss:$12 sps:$4 sm:$0xff]   ;;  %v10468_v44 = vld [vmem:[%s13721_s26 + $0x150] ss:$12 sps:$4 sm:$0xff]   ;;  %v10471_v21 = vld [vmem:[%s13721_s26 + $0x140] ss:$12 sps:$4 sm:$0xff]  }
0x24e1   : > { %v10742_v19 = vpop.eup %10741  ;;  %v5448_v53 = vpack.c.bf16 %v5412_v47, %v5410_v63  ;;  %v10470_v63 = vld [vmem:[%s13721_s26 + $0x154] ss:$12 sps:$4 sm:$0xff]   ;;  %v10474_v47 = vld [vmem:[%s13721_s26 + $0x16c] ss:$12 sps:$4 sm:$0xff]  }
0x24e2   : > { %v10744_v10 = vpop.eup %10743  ;;  %v5407_v34 = vmul.f32 %v10742_v19, %v5309_v46  ;;  %v10454_v46 = vld [vmem:[%s13721_s26 + $0xf4] ss:$12 sps:$4 sm:$0xff]   ;;  %v10475_v19 = vld [vmem:[%s13721_s26 + $0x158] ss:$12 sps:$4 sm:$0xff]  }
0x24e3   : > { %v5408_v62 = vmul.f32 %v10744_v10, %v5311_v22  ;;  %5579 = vmatprep.mubr.bf16.mxu1 %v5448_v53  ;;  %5796 = vmatpush1.bf16.msra.mxu0 %v10448_v57  ;;  %v10476_v53 = vld [vmem:[%s13721_s26 + $0x170] ss:$12 sps:$4 sm:$0xff]  }
0x24e4   : > { %v5413_v11 = vmul.f32 %v5407_v34, %v5360_v4  ;;  %5580 = vmatmul.mubr.bf16.vlgmr.msra.gmra.mrb[64].mxu1 %v5447_v14  ;;  %v10452_v4 = vld [vmem:[%s13721_s26 + $0xf0] ss:$12 sps:$4 sm:$0xff]   ;;  %5797 = vmatprep.subr.bf16.mxu0 %v10454_v46  ;;  %v10472_v14 = vld [vmem:[%s13721_s26 + $0x168] ss:$12 sps:$4 sm:$0xff]   ;;  %v8739_v46 = vld [vmem:[#allocation22 + $0x1] ss:$0 sm:$0xff] }
0x24e5   : > { %v5414_v33 = vmul.f32 %v5408_v62, %v5362_v8  ;;  %9623 = vmatpush3.bf16.msra.mxu1 %v10451_v28 }
0x24e6   : > { %v5449_v16 = vpack.c.bf16 %v5413_v11, %v5413_v11  ;;  %9624 = vmatprep.subr.bf16.mxu1 %v10455_v54 }
0x24e7   : > { %v5450_v26 = vpack.c.bf16 %v5414_v33, %v5414_v33  ;;  %5798 = vmatpush1.bf16.msra.mxu0 %v10452_v4 }
0x24e8   : > { %5799 = vmatprep.subr.bf16.mxu0 %v10458_v55 }
0x24e9   : > { %5587 = vmatprep.mubr.bf16.mxu1 %v5450_v26  ;;  %9625 = vmatpush3.bf16.msra.mxu1 %v10455_v54 }
0x24ea   : > { %9626 = vmatprep.subr.bf16.mxu1 %v10459_v56 }
0x24eb   : > { %5800 = vmatpush1.bf16.msra.mxu0 %v10456_v1 }
0x24ec   : > { %5588 = vmatmul.mubr.bf16.gmra.mrb[68].mxu1 %v5449_v16 }
0x24ed   : > { %9627 = vmatpush3.bf16.msra.mxu1 %v10459_v56 }
0x24ee   : > { %9628 = vmatprep.subr.bf16.mxu1 %v10463_v37 }
0x24f1   : > { %9629 = vmatpush3.bf16.msra.mxu1 %v10463_v37 }
0x24f2   : > { %9630 = vmatprep.subr.bf16.mxu1 %v10467_v12 }
0x24f5   : > { %9631 = vmatpush3.bf16.msra.mxu1 %v10467_v12 }
0x24f6   : > { %9632 = vmatprep.subr.bf16.mxu1 %v10471_v21 }
0x24f9   : > { %9633 = vmatpush3.bf16.msra.mxu1 %v10471_v21 }
0x24fa   : > { %9634 = vmatprep.subr.bf16.mxu1 %v10475_v19 }
0x24fd   : > { %9635 = vmatpush3.bf16.msra.mxu1 %v10475_v19 }
0x24fe   : > { %9636 = vmatprep.subr.bf16.mxu1 %v10476_v53 }
0x2501   : > { %9637 = vmatpush3.bf16.msra.mxu1 %v10476_v53 }
0x2502   : > { %9854 = vmatprep.subr.bf16.mxu1 %v11477_v15 }
0x25b7   : > { %v9168_v22 = vpop.f32.mrb[64].mxu1 }
0x25b8   : > { %v9169_v8 = vpop.f32.mrb[65].mxu1 }
0x25b9   : > { %v9170_v59 = vadd.f32 %v9169_v8, %v9168_v22  ;;  %v9171_v29 = vpop.f32.mrb[66].mxu1 }
0x25ba   : > { %v9172_v60 = vpop.f32.mrb[67].mxu1 }
0x25bb   : > { %v12935_v30 = vadd.f32 %v9170_v59, %v12871_v50  ;;  %v9173_v7 = vadd.f32 %v9172_v60, %v9171_v29 }
0x25bd   : > { %v12938_v20 = vadd.f32 %v9173_v7, %v12874_v38  ;;  %v5600_v31 = vmul.f32 %v12935_v30, %v12935_v30 }
0x25bf   : > { %v9174_v3 = vpop.f32.mrb[68].mxu1  ;;  %5603 = vadd.xlane.f32.xlu0 %v5600_v31  ;;  %v5601_v25 = vmul.f32 %v12938_v20, %v12938_v20 }
0x25c0   : > { %v9175_v42 = vpop.f32.mrb[69].mxu1 }
0x25c1   : > { %v9176_v23 = vadd.f32 %v9175_v42, %v9174_v3  ;;  %v9177_v50 = vpop.f32.mrb[70].mxu1  ;;  %5605 = vadd.xlane.f32.xlu1 %v5601_v25 }
0x25c2   : > { %v9178_v61 = vpop.f32.mrb[71].mxu1 }
0x25c3   : > { %v12945_v38 = vadd.f32 %v9176_v23, %v12879_v43  ;;  %v10462_v43 = vld [vmem:[%s13721_s26 + $0x124] ss:$12 sps:$4 sm:$0xff]  }
0x25c4   : > { %5801 = vmatprep.subr.bf16.mxu0 %v10462_v43 }
0x25c5   : > { %v5602_v13 = vmul.f32 %v12945_v38, %v12945_v38  ;;  %5802 = vmatpush1.bf16.msra.mxu0 %v10460_v51 }
0x25c6   : > { %5803 = vmatprep.subr.bf16.mxu0 %v10466_v52 }
0x25c7   : > { %5607 = vadd.xlane.f32.xlu0 %v5602_v13 }
0x25c9   : > { %5804 = vmatpush1.bf16.msra.mxu0 %v10464_v58 }
0x25ca   : > { %5805 = vmatprep.subr.bf16.mxu0 %v10470_v63 }
0x25cd   : > { %5806 = vmatpush1.bf16.msra.mxu0 %v10468_v44  ;;  %v13045_v44 = vld [vmem:[%s13725_s19] sm:$0xff] }
0x25ce   : > { %5807 = vmatprep.subr.bf16.mxu0 %v10474_v47 }
0x25d1   : > { %5808 = vmatpush1.bf16.msra.mxu0 %v10472_v14 }
0x25d2   : > { %9850 = vmatprep.subr.bf16.mxu0 %v11477_v15 }
0x264c   : > { %v5604_v10 = vpop.xlane.xlu0 %5603 }
0x264d   : > { %v5609_v34 = vmul.f32 0.0078125, %v5604_v10 }
0x264e   : > { %v5606_v62 = vpop.xlane.xlu1 %5605 }
0x264f   : > { %v5612_v11 = vadd.f32 1e-06, %v5609_v34  ;;  %v5610_v33 = vmul.f32 0.0078125, %v5606_v62  ;;  %v13051_v34 = vld [vmem:[%s13725_s19 + $0x8] sm:$0xff] }
0x2651   : > { %10745 = vrsqrt.f32 %v5612_v11  ;;  %v5613_v26 = vadd.f32 1e-06, %v5610_v33 }
0x2653   : > { %10747 = vrsqrt.f32 %v5613_v26 }
0x2654   : > { %v5608_v16 = vpop.xlane.xlu0 %5607 }
0x2655   : > { %v5611_v49 = vmul.f32 0.0078125, %v5608_v16 }
0x2657   : > { %v5614_v35 = vadd.f32 1e-06, %v5611_v49 }
0x2659   : > { %10749 = vrsqrt.f32 %v5614_v35 }
0x265b   : > { %v10746_v45 = vpop.eup %10745 }
0x265c   : > { %v5618_v28 = vmul.f32 %v10746_v45, %v12935_v30 }
0x265d   : > { %v10748_v57 = vpop.eup %10747 }
0x265e   : > { %v5619_v4 = vmul.f32 %v10748_v57, %v12938_v20  ;;  %v5627_v22 = vmul.f32 %v8739_v46, %v5618_v28 }
0x2660   : > { %v5628_v8 = vmul.f32 %v8739_v46, %v5619_v4 }
0x2662   : > { %v5663_v59 = vpack.c.bf16 %v5628_v8, %v5627_v22 }
0x2663   : > { %v10750_v29 = vpop.eup %10749 }
0x2664   : > { %v5620_v60 = vmul.f32 %v10750_v29, %v12945_v38  ;;  %5826 = vmatmul.mubr.bf16.vlgmr.msra.gmra.mrb[76].mxu0 %v5663_v59  ;;  %9638 = vmatprep.mubr.bf16.mxu1 %v5663_v59 }
0x2665   : > { %5835 = vmatprep.mubr.bf16.mxu0 %v11473_v32 }
0x2666   : > { %v5629_v7 = vmul.f32 %v8739_v46, %v5620_v60  ;;  %v13065_v46 = vld [vmem:[%s13725_s19 + $0x10] sm:$0xff] }
0x2668   : > { %v5664_v31 = vpack.c.bf16 %v5629_v7, %v5629_v7 }
0x266a   : > { %9639 = vmatmul.mubr.bf16.vlgmr.msra.gmra.mrb[72].mxu1 %v5664_v31 }
0x266b   : > { %9663 = vmatprep.mubr.msk.f32.mxu1 %vm11472_vm0, %v11471_v0 }
0x266c   : > { %5836 = vmatmul.mubr.bf16.gmra.mrb[80].mxu0 %v5664_v31 }
0x266d   : > { %9648 = vmatprep.mubr.msk.f32.mxu0 %vm11472_vm0, %v11471_v0 }
0x2737   : > { %v12976_v3 = vpop.f32.mrb[76].mxu0 }
0x2738   : > { %v12978_v25 = vpop.f32.mrb[77].mxu0 }
0x2739   : > { %5931 = vrot.lane.b32.xlu1 %v12978_v25, %s13737_s22  ;;  %v12982_v42 = vpop.f32.mrb[78].mxu0 }
0x273a   : > { %v12984_v23 = vpop.f32.mrb[79].mxu0 }
0x273b   : > { %5933 = vrot.lane.b32.xlu0 %v12984_v23, %s13737_s22 }
0x273d   : > { %6217 = vrot.lane.b32.xlu1 %v12978_v25, %s13738_s3  ;;  %v12990_v50 = vpop.f32.mrb[72].mxu1 }
0x273e   : > { %v5878_v61 = vpop.f32.mrb[73].mxu1 }
0x273f   : > { %6184 = vrot.lane.b32.xlu0 %v12976_v3, %s13738_s3  ;;  %v12994_v13 = vpop.f32.mrb[80].mxu0  ;;  %v9641_v54 = vpop.f32.mrb[74].mxu1 }
0x2740   : > { %v12996_v55 = vpop.f32.mrb[81].mxu0  ;;  %v5881_v1 = vpop.f32.mrb[75].mxu1 }
0x2741   : > { %v12998_v56 = vpack.i.bf16 %v5881_v1, %v5878_v61  ;;  %v9855_v43 = vpack.c.bf16 %v5881_v1, %v5878_v61  ;;  %6530 = vrot.lane.b32.xlu1 %v12978_v25, %s13739_s4  ;;  %v5841_v51 = vpop.f32.mrb[82].mxu0 }
0x2742   : > { %v5842_v37 = vpop.f32.mrb[83].mxu0 }
0x2743   : > { %6532 = vrot.lane.b32.xlu0 %v12984_v23, %s13739_s4  ;;  %9856 = vmatpush3.bf16.msra.mxu1 %v9855_v43 }
0x2744   : > { %9661 = vmatprep.subr.mxu1 %v11471_v0 }
0x2745   : > { %6219 = vrot.lane.b32.xlu1 %v12984_v23, %s13738_s3 }
0x2747   : > { %9662 = vmatpush3.msra.mxu1 %v12990_v50  ;;  %6221 = vrot.lane.b32.xlu0 %v12996_v55, %s13738_s3 }
0x2748   : > { %9861 = vmatprep.subr.bf16.mxu1 %v11477_v15 }
0x2749   : > { %5898 = vrot.lane.b32.xlu1 %v12976_v3, %s13737_s22 }
0x274b   : > { %6186 = vrot.lane.b32.xlu0 %v12982_v42, %s13738_s3 }
0x274d   : > { %5935 = vrot.lane.b32.xlu1 %v12996_v55, %s13737_s22 }
0x274f   : > { %6188 = vrot.lane.b32.xlu0 %v12994_v13, %s13738_s3  ;;  %s9879_s3 = smul.u32 1536, %s11665_s0 }
0x2751   : > { %5900 = vrot.lane.b32.xlu1 %v12982_v42, %s13737_s22 }
0x2753   : > { %5940 = vrot.lane.b32.xlu0 %v12978_v25, %s13740_s5 }
0x2755   : > { %5902 = vrot.lane.b32.xlu1 %v12994_v13, %s13737_s22  ;;  %s13547_s22 = scalar_lea.hbm %s11642_s29, %s9879_s3  ;;  %s11482_s3 = smov [#allocation29]  }
0x2756   : > { %s11321_s6 = sshll.u32 %s11482_s3, 4  ;;  %s11322_s6 = int_to_ptr.vmem [resolvable:$false] %s11321_s6 }
0x2757   : > { %6497 = vrot.lane.b32.xlu0 %v12976_v3, %s13739_s4  ;;  %s11323_s8 = scalar_lea.vmem %s11322_s6, 3072 }
0x2759   : > { %6534 = vrot.lane.b32.xlu1 %v12996_v55, %s13739_s4 }
0x275b   : > { %6501 = vrot.lane.b32.xlu0 %v12994_v13, %s13739_s4 }
0x275d   : > { %5942 = vrot.lane.b32.xlu1 %v12984_v23, %s13740_s5 }
0x275f   : > { %5907 = vrot.lane.b32.xlu0 %v12976_v3, %s13740_s5 }
0x2761   : > { %6499 = vrot.lane.b32.xlu1 %v12982_v42, %s13739_s4 }
0x2763   : > { %5911 = vrot.lane.b32.xlu0 %v12994_v13, %s13740_s5 }
0x2765   : > { %5944 = vrot.lane.b32.xlu1 %v12996_v55, %s13740_s5 }
0x2769   : > { %5909 = vrot.lane.b32.xlu1 %v12982_v42, %s13740_s5  ;;  %s1171_s5 = sand.u32 1, %s11407_s16  }
0x276a   : > { %s13553_s0 = scalar_lea.sflag [#allocation4], %s1171_s5 }
0x27ab   : > { %v5932_v52 = vpop.permute.xlu1 %5931 }
0x27ad   : > { %v5934_v58 = vpop.permute.xlu0 %5933 }
0x27af   : > { %v6218_v12 = vpop.permute.xlu1 %6217 }
0x27b0   : > { %v6226_v63 = vsel %vm1509_vm5, %v6218_v12, %v5932_v52 }
0x27b1   : > { %v6229_v21 = vmul.f32 %v13045_v44, %v6226_v63  ;;  %v6185_v47 = vpop.permute.xlu0 %6184 }
0x27b3   : > { %v6531_v14 = vpop.permute.xlu1 %6530  ;;  %6235 = vrot.lane.b32.xlu1 %v6229_v21, %s13726_s1 }
0x27b4   : > { %v6539_v33 = vsel %vm1509_vm5, %v6531_v14, %v6218_v12 }
0x27b5   : > { %v6533_v19 = vpop.permute.xlu0 %6532  ;;  %v6542_v16 = vmul.f32 %v13045_v44, %v6539_v33 }
0x27b7   : > { %v6220_v53 = vpop.permute.xlu1 %6219 }
0x27b8   : > { %v6227_v10 = vsel %vm1509_vm5, %v6220_v53, %v5934_v58  ;;  %v6540_v8 = vsel %vm1509_vm5, %v6533_v19, %v6220_v53 }
0x27b9   : > { %v6230_v62 = vmul.f32 %v13051_v34, %v6227_v10  ;;  %v6222_v11 = vpop.permute.xlu0 %6221  ;;  %v6543_v29 = vmul.f32 %v13051_v34, %v6540_v8 }
0x27bb   : > { %v13055_v26 = vpop.permute.xlu1 %5898  ;;  %6237 = vrot.lane.b32.xlu0 %v6230_v62, %s13726_s1 }
0x27bc   : > { %v6193_v35 = vsel %vm1509_vm5, %v6185_v47, %v13055_v26 }
0x27bd   : > { %v6187_v49 = vpop.permute.xlu0 %6186  ;;  %v6196_v57 = vmul.f32 %v13045_v44, %v6193_v35 }
0x27bf   : > { %v5936_v45 = vpop.permute.xlu1 %5935  ;;  %6548 = vrot.lane.b32.xlu0 %v6542_v16, %s13727_s2  ;;  %v10838_v16 = vld [vmem:[%s13724_s18] sm:$0xff] }
0x27c0   : > { %v6228_v28 = vsel %vm1509_vm5, %v6222_v11, %v5936_v45  ;;  %v5925_v35 = vmul.f32 %v10838_v16, %v12978_v25 }
0x27c1   : > { %v6231_v4 = vmul.f32 %v13065_v46, %v6228_v28  ;;  %v6189_v22 = vpop.permute.xlu0 %6188 }
0x27c3   : > { %v13069_v59 = vpop.permute.xlu1 %5900  ;;  %6202 = vrot.lane.b32.xlu0 %v6196_v57, %s13726_s1  ;;  %6239 = vrot.lane.b32.xlu1 %v6231_v4, %s13726_s1  ;;  %v10839_v57 = vld [vmem:[%s13724_s18 + $0x8] sm:$0xff] }
0x27c4   : > { %v6194_v7 = vsel %vm1509_vm5, %v6187_v49, %v13069_v59  ;;  %v5926_v4 = vmul.f32 %v10839_v57, %v12984_v23 }
0x27c5   : > { %v5941_v60 = vpop.permute.xlu0 %5940  ;;  %v6197_v54 = vmul.f32 %v13051_v34, %v6194_v7 }
0x27c6   : > { %v6831_v51 = vsel %vm1509_vm5, %v5941_v60, %v6531_v14  ;;  %v5949_v12 = vsel %vm1509_vm5, %v5932_v52, %v5941_v60 }
0x27c7   : > { %v13076_v31 = vpop.permute.xlu1 %5902  ;;  %6550 = vrot.lane.b32.xlu1 %v6543_v29, %s13727_s2  ;;  %v6834_v21 = vmul.f32 %v13045_v44, %v6831_v51  ;;  %v5952_v33 = vmul.f32 %v13045_v44, %v5949_v12 }
0x27c8   : > { %v6195_v61 = vsel %vm1509_vm5, %v6189_v22, %v13076_v31 }
0x27c9   : > { %v6198_v1 = vmul.f32 %v13065_v46, %v6195_v61  ;;  %v6498_v43 = vpop.permute.xlu0 %6497  ;;  %v5955_v60 = vadd.f32 %v5952_v33, %v5925_v35  ;;  %v10840_v35 = vld [vmem:[%s13724_s18 + $0x10] sm:$0xff] }
0x27ca   : > { %v6506_v62 = vsel %vm1509_vm5, %v6498_v43, %v6185_v47 }
0x27cb   : > { %v6535_v37 = vpop.permute.xlu1 %6534  ;;  %6204 = vrot.lane.b32.xlu1 %v6197_v54, %s13726_s1  ;;  %6206 = vrot.lane.b32.xlu0 %v6198_v1, %s13726_s1  ;;  %v6509_v28 = vmul.f32 %v13045_v44, %v6506_v62 }
0x27cc   : > { %v6541_v63 = vsel %vm1509_vm5, %v6535_v37, %v6222_v11 }
0x27cd   : > { %v6544_v53 = vmul.f32 %v13065_v46, %v6541_v63  ;;  %v6502_v10 = vpop.permute.xlu0 %6501 }
0x27ce   : > { %v6508_v7 = vsel %vm1509_vm5, %v6502_v10, %v6189_v22 }
0x27cf   : > { %v5943_v14 = vpop.permute.xlu1 %5942  ;;  %6552 = vrot.lane.b32.xlu1 %v6544_v53, %s13727_s2  ;;  %6840 = vrot.lane.b32.xlu0 %v6834_v21, %s13728_s15  ;;  %v6511_v51 = vmul.f32 %v13065_v46, %v6508_v7  ;;  %v5894_v7 = vmul.f32 %v10840_v35, %v12994_v13 }
0x27d0   : > { %v5950_v52 = vsel %vm1509_vm5, %v5934_v58, %v5943_v14  ;;  %v6832_v11 = vsel %vm1509_vm5, %v5943_v14, %v6533_v19 }
0x27d1   : > { %v5953_v47 = vmul.f32 %v13051_v34, %v5950_v52  ;;  %v6835_v8 = vmul.f32 %v13051_v34, %v6832_v11  ;;  %v5908_v29 = vpop.permute.xlu0 %5907 }
0x27d2   : > { %v6807_v12 = vsel %vm1509_vm5, %v5908_v29, %v6498_v43 }
0x27d3   : > { %v5956_v61 = vadd.f32 %v5953_v47, %v5926_v4  ;;  %v6500_v54 = vpop.permute.xlu1 %6499  ;;  %6842 = vrot.lane.b32.xlu1 %v6835_v8, %s13728_s15  ;;  %6515 = vrot.lane.b32.xlu0 %v6509_v28, %s13727_s2  ;;  %v6810_v33 = vmul.f32 %v13045_v44, %v6807_v12 }
0x27d4   : > { %v6507_v58 = vsel %vm1509_vm5, %v6500_v54, %v6187_v49  ;;  %v5916_v49 = vsel %vm1509_vm5, %v13055_v26, %v5908_v29  ;;  %v5893_v29 = vmul.f32 %v10839_v57, %v12982_v42  ;;  %v6214_v57 = vmul.f32 %v12978_v25, %v12529_v36 }
0x27d5   : > { %v9851_v19 = vpack.c.bf16 %v5956_v61, %v5955_v60  ;;  %v6510_v1 = vmul.f32 %v13051_v34, %v6507_v58  ;;  %v5912_v22 = vpop.permute.xlu0 %5911 }
0x27d6   : > { %v6809_v14 = vsel %vm1509_vm5, %v5912_v22, %v6502_v10  ;;  %v5892_v10 = vmul.f32 %v10838_v16, %v12976_v3 }
0x27d7   : > { %v5945_v63 = vpop.permute.xlu1 %5944  ;;  %6517 = vrot.lane.b32.xlu1 %v6510_v1, %s13727_s2  ;;  %9853 = vmatpush3.bf16.xpose.msk.msra.mxu0 %vm12042_vm4, %v9851_v19  ;;  %v6812_v47 = vmul.f32 %v13065_v46, %v6809_v14 }
0x27d8   : > { %v5951_v21 = vsel %vm1509_vm5, %v5936_v45, %v5945_v63  ;;  %v6833_v53 = vsel %vm1509_vm5, %v5945_v63, %v6535_v37  ;;  %6519 = vrot.lane.b32.xlu0 %v6511_v51, %s13727_s2  ;;  %9646 = vmatprep.subr.mxu0 %v11471_v0  ;;  %v5927_v45 = vmul.f32 %v10840_v35, %v12996_v55 }
0x27d9   : > { %v5954_v43 = vmul.f32 %v13065_v46, %v5951_v21  ;;  %v6836_v62 = vmul.f32 %v13065_v46, %v6833_v53  ;;  %v5919_v37 = vmul.f32 %v13045_v44, %v5916_v49  ;;  %v6216_v51 = vmul.f32 %v12996_v55, %v12531_v39 }
0x27da   : > { %v6527_v21 = vmul.f32 %v12978_v25, %v12535_v5  ;;  %v6181_v53 = vmul.f32 %v12976_v3, %v12529_v36  ;;  %v6528_v49 = vmul.f32 %v12984_v23, %v12537_v6  ;;  %v6182_v36 = vmul.f32 %v12982_v42, %v12533_v2 }
0x27db   : > { %v5910_v52 = vpop.permute.xlu1 %5909  ;;  %6844 = vrot.lane.b32.xlu1 %v6836_v62, %s13728_s15  ;;  %v5957_v26 = vadd.f32 %v5954_v43, %v5927_v45  ;;  %v5922_v8 = vadd.f32 %v5919_v37, %v5892_v10  ;;  %v6183_v45 = vmul.f32 %v12994_v13, %v12531_v39  ;;  %v6529_v10 = vmul.f32 %v12996_v55, %v12544_v24 }
0x27dc   : > { %v6808_v11 = vsel %vm1509_vm5, %v5910_v52, %v6500_v54  ;;  %6816 = vrot.lane.b32.xlu0 %v6810_v33, %s13728_s15  ;;  %v5917_v28 = vsel %vm1509_vm5, %v13069_v59, %v5910_v52  ;;  %v5918_v59 = vsel %vm1509_vm5, %v13076_v31, %v5912_v22  ;;  %v6828_v39 = vmul.f32 %v12978_v25, %v12566_v27 }
0x27dd   : > { %v6811_v4 = vmul.f32 %v13051_v34, %v6808_v11  ;;  %v5920_v44 = vmul.f32 %v13051_v34, %v5917_v28  ;;  %v5921_v16 = vmul.f32 %v13065_v46, %v5918_v59  ;;  %v6215_v46 = vmul.f32 %v12984_v23, %v12533_v2 }
0x27de   : > { %v6829_v2 = vmul.f32 %v12984_v23, %v12550_v9  ;;  %v6496_v25 = vmul.f32 %v12994_v13, %v12544_v24 }
0x27df   : > { %6818 = vrot.lane.b32.xlu1 %v6811_v4, %s13728_s15  ;;  %9647 = vmatpush3.xpose.msk.msra.mxu0 %vm1425_vm3, %v5957_v26  ;;  %v5923_v60 = vadd.f32 %v5920_v44, %v5893_v29  ;;  %v5924_v34 = vadd.f32 %v5921_v16, %v5894_v7  ;;  %v6494_v16 = vmul.f32 %v12976_v3, %v12535_v5 }
0x27e0   : > { %6820 = vrot.lane.b32.xlu0 %v6812_v47, %s13728_s15  ;;  %9857 = vmatprep.subr.bf16.mxu0 %v11477_v15  ;;  %v6830_v5 = vmul.f32 %v12996_v55, %v12582_v17 }
0x27e2   : > { %9649 = vmatmul.mubr.msk.f32.vlgmr.msra.gmra.mrb[84].mxu0 %vm1425_vm3, %v5922_v8 }
0x27e3   : > { %9651 = vmatprep.mubr.msk.f32.mxu0 %vm11472_vm0, %v11471_v0 }
0x27e6   : > { %9652 = vmatmul.mubr.msk.f32.gmra.mrb[86].mxu0 %vm1425_vm3, %v5923_v60 }
0x27e7   : > { %9654 = vmatprep.mubr.msk.f32.mxu0 %vm11472_vm0, %v11471_v0 }
0x27ea   : > { %9655 = vmatmul.mubr.msk.f32.gmra.mrb[88].mxu0 %vm1425_vm3, %v5924_v34 }
0x27eb   : > { %9678 = vmatprep.mubr.msk.f32.mxu0 %vm11472_vm0, %v11471_v0 }
0x2825   : > { %v6236_v31 = vpop.permute.xlu1 %6235 }
0x2826   : > { %v6244_v54 = vadd.f32 %v6236_v31, %v6214_v57  ;;  %v6495_v31 = vmul.f32 %v12982_v42, %v12537_v6 }
0x282d   : > { %v6238_v61 = vpop.permute.xlu0 %6237 }
0x282e   : > { %v6245_v58 = vadd.f32 %v6238_v61, %v6215_v46 }
0x2830   : > { %v10224_v19 = vpack.i.bf16 %v6245_v58, %v6244_v54  ;;  %v6804_v54 = vmul.f32 %v12976_v3, %v12566_v27 }
0x2831   : > { %v6549_v1 = vpop.permute.xlu0 %6548 }
0x2832   : > { %10225 = vrot.lane.b32.xlu1 %v10224_v19, %s13728_s15  ;;  %v6557_v62 = vadd.f32 %v6549_v1, %v6527_v21  ;;  %v6805_v1 = vmul.f32 %v12982_v42, %v12550_v9 }
0x2835   : > { %v6240_v12 = vpop.permute.xlu1 %6239  ;;  %v6203_v22 = vpop.permute.xlu0 %6202 }
0x2836   : > { %v6246_v63 = vadd.f32 %v6240_v12, %v6216_v51  ;;  %v6211_v33 = vadd.f32 %v6203_v22, %v6181_v53  ;;  %v6806_v51 = vmul.f32 %v12994_v13, %v12582_v17 }
0x2838   : > { %6263 = vrot.lane.b32.xlu0 %v6246_v63, %s13728_s15 }
0x2839   : > { %v6551_v43 = vpop.permute.xlu1 %6550 }
0x283a   : > { %v6558_v14 = vadd.f32 %v6551_v43, %v6528_v49 }
0x283c   : > { %v10229_v35 = vpack.i.bf16 %v6558_v14, %v6557_v62  ;;  %6250 = vrot.lane.b32.xlu0 %v6211_v33, %s13728_s15 }
0x283d   : > { %v6205_v52 = vpop.permute.xlu1 %6204  ;;  %v6207_v37 = vpop.permute.xlu0 %6206 }
0x283e   : > { %v6213_v11 = vadd.f32 %v6207_v37, %v6183_v45  ;;  %10230 = vrot.lane.b32.xlu1 %v10229_v35, %s13727_s2  ;;  %v6212_v26 = vadd.f32 %v6205_v52, %v6182_v36 }
0x2840   : > { %6254 = vrot.lane.b32.xlu0 %v6213_v11, %s13728_s15 }
0x2841   : > { %v6553_v28 = vpop.permute.xlu1 %6552  ;;  %v6841_v4 = vpop.permute.xlu0 %6840 }
0x2842   : > { %6252 = vrot.lane.b32.xlu1 %v6212_v26, %s13728_s15  ;;  %v6559_v47 = vadd.f32 %v6553_v28, %v6529_v10  ;;  %v6849_v59 = vadd.f32 %v6841_v4, %v6828_v39 }
0x2845   : > { %v6843_v8 = vpop.permute.xlu1 %6842  ;;  %v6516_v44 = vpop.permute.xlu0 %6515 }
0x2846   : > { %v6850_v29 = vadd.f32 %v6843_v8, %v6829_v2  ;;  %6576 = vrot.lane.b32.xlu1 %v6559_v47, %s13727_s2  ;;  %v6524_v7 = vadd.f32 %v6516_v44, %v6494_v16 }
0x2848   : > { %v10234_v60 = vpack.i.bf16 %v6850_v29, %v6849_v59 }
0x2849   : > { %v6518_v34 = vpop.permute.xlu1 %6517 }
0x284a   : > { %v6520_v57 = vpop.permute.xlu0 %6519  ;;  %10235 = vrot.lane.b32.xlu0 %v10234_v60, %s13726_s1  ;;  %6563 = vrot.lane.b32.xlu1 %v6524_v7, %s13727_s2  ;;  %v6525_v23 = vadd.f32 %v6518_v34, %v6495_v31 }
0x284b   : > { %v6526_v46 = vadd.f32 %v6520_v57, %v6496_v25 }
0x284d   : > { %v6845_v61 = vpop.permute.xlu1 %6844 }
0x284e   : > { %v6817_v58 = vpop.permute.xlu0 %6816  ;;  %6565 = vrot.lane.b32.xlu0 %v6525_v23, %s13727_s2  ;;  %6567 = vrot.lane.b32.xlu1 %v6526_v46, %s13727_s2  ;;  %v6851_v6 = vadd.f32 %v6845_v61, %v6830_v5 }
0x284f   : > { %v6825_v24 = vadd.f32 %v6817_v58, %v6804_v54 }
0x2851   : > { %v6819_v19 = vpop.permute.xlu1 %6818 }
0x2852   : > { %v6821_v12 = vpop.permute.xlu0 %6820  ;;  %6868 = vrot.lane.b32.xlu0 %v6851_v6, %s13726_s1  ;;  %6855 = vrot.lane.b32.xlu1 %v6825_v24, %s13726_s1  ;;  %v6826_v27 = vadd.f32 %v6819_v19, %v6805_v1 }
0x2853   : > { %v6827_v3 = vadd.f32 %v6821_v12, %v6806_v51 }
0x2856   : > { %6857 = vrot.lane.b32.xlu0 %v6826_v27, %s13726_s1  ;;  %6859 = vrot.lane.b32.xlu1 %v6827_v3, %s13726_s1 }
0x28a4   : > { %v10226_v55 = vpop.permute.xlu1 %10225 }
0x28a5   : > { %v10228_v63 = vunpack.i.h.bf16 %v10226_v55  ;;  %v10227_v22 = vunpack.i.l.bf16 %v10226_v55 }
0x28a7   : > { %v9858_v21 = vpack.c.bf16 %v10228_v63, %v10227_v22 }
0x28a9   : > { %9860 = vmatpush3.bf16.xpose.msk.msra.mxu0 %vm12042_vm4, %v9858_v21 }
0x28aa   : > { %9676 = vmatprep.subr.mxu0 %v11471_v0  ;;  %v6264_v9 = vpop.permute.xlu0 %6263 }
0x28ae   : > { %v6251_v53 = vpop.permute.xlu0 %6250 }
0x28b0   : > { %v10231_v17 = vpop.permute.xlu1 %10230 }
0x28b1   : > { %v10233_v42 = vunpack.i.h.bf16 %v10231_v17  ;;  %v10232_v13 = vunpack.i.l.bf16 %v10231_v17  ;;  %9677 = vmatpush3.xpose.msk.msra.mxu0 %vm1425_vm3, %v6264_v9 }
0x28b2   : > { %9864 = vmatprep.subr.bf16.mxu0 %v11477_v15  ;;  %v6255_v45 = vpop.permute.xlu0 %6254 }
0x28b3   : > { %v9865_v49 = vpack.c.bf16 %v10233_v42, %v10232_v13 }
0x28b4   : > { %v6253_v43 = vpop.permute.xlu1 %6252  ;;  %9679 = vmatmul.mubr.msk.f32.vlgmr.msra.gmra.mrb[90].mxu0 %vm1425_vm3, %v6251_v53 }
0x28b5   : > { %v6042_v62 = vpop.f32.mrb[84].mxu0  ;;  %9867 = vmatpush3.bf16.xpose.msk.msra.mxu0 %vm12042_vm4, %v9865_v49  ;;  %9681 = vmatprep.mubr.msk.f32.mxu0 %vm11472_vm0, %v11471_v0 }
0x28b6   : > { %v6056_v33 = vsel %vm12603_vm6, %v6042_v62, -1e+09  ;;  %v9650_v14 = vpop.f32.mrb[85].mxu0  ;;  %9706 = vmatprep.subr.mxu0 %v11471_v0 }
0x28b7   : > { %v6059_v35 = vsel %vm3809_vm7, %v6056_v33, -inf }
0x28b8   : > { %6060 = vmax.xlane.f32.xlu0 %v6059_v35  ;;  %9682 = vmatmul.mubr.msk.f32.gmra.mrb[92].mxu0 %vm1425_vm3, %v6253_v43  ;;  %v6577_v52 = vpop.permute.xlu1 %6576 }
0x28b9   : > { %v6047_v37 = vpop.f32.mrb[86].mxu0  ;;  %9684 = vmatprep.mubr.msk.f32.mxu0 %vm11472_vm0, %v11471_v0 }
0x28ba   : > { %v6057_v36 = vsel %vm12612_vm8, %v6047_v37, -1e+09  ;;  %v9653_v11 = vpop.f32.mrb[87].mxu0 }
0x28bb   : > { %v6062_v26 = vsel %vm3809_vm7, %v6057_v36, -inf }
0x28bc   : > { %6063 = vmax.xlane.f32.xlu1 %v6062_v26  ;;  %9685 = vmatmul.mubr.msk.f32.gmra.mrb[94].mxu0 %vm1425_vm3, %v6255_v45  ;;  %v10236_v28 = vpop.permute.xlu0 %10235  ;;  %v6564_v8 = vpop.permute.xlu1 %6563 }
0x28bd   : > { %v10238_v4 = vunpack.i.h.bf16 %v10236_v28  ;;  %v10237_v10 = vunpack.i.l.bf16 %v10236_v28  ;;  %v6052_v47 = vpop.f32.mrb[88].mxu0  ;;  %9707 = vmatpush3.xpose.msk.msra.mxu0 %vm1425_vm3, %v6577_v52  ;;  %9708 = vmatprep.mubr.msk.f32.mxu0 %vm11472_vm0, %v11471_v0 }
0x28be   : > { %v6058_v39 = vsel %vm12622_vm9, %v6052_v47, -1e+09  ;;  %v9656_v2 = vpop.f32.mrb[89].mxu0  ;;  %9871 = vmatprep.subr.bf16.mxu0 %v11477_v15 }
0x28bf   : > { %v9872_v44 = vpack.c.bf16 %v10238_v4, %v10237_v10  ;;  %v6065_v59 = vsel %vm3809_vm7, %v6058_v39, -inf }
0x28c0   : > { %6066 = vmax.xlane.f32.xlu0 %v6065_v59  ;;  %9709 = vmatmul.mubr.msk.f32.vlgmr.msra.gmra.mrb[96].mxu0 %vm1425_vm3, %v6564_v8  ;;  %v6566_v29 = vpop.permute.xlu0 %6565  ;;  %v6568_v16 = vpop.permute.xlu1 %6567 }
0x28c1   : > { %9874 = vmatpush3.bf16.xpose.msk.msra.mxu0 %vm12042_vm4, %v9872_v44  ;;  %9711 = vmatprep.mubr.msk.f32.mxu0 %vm11472_vm0, %v11471_v0 }
0x28c2   : > { %9736 = vmatprep.subr.mxu0 %v11471_v0 }
0x28c4   : > { %9712 = vmatmul.mubr.msk.f32.gmra.mrb[98].mxu0 %vm1425_vm3, %v6566_v29  ;;  %v6869_v60 = vpop.permute.xlu0 %6868  ;;  %v6856_v18 = vpop.permute.xlu1 %6855 }
0x28c5   : > { %9714 = vmatprep.mubr.msk.f32.mxu0 %vm11472_vm0, %v11471_v0 }
0x28c8   : > { %9715 = vmatmul.mubr.msk.f32.gmra.mrb[100].mxu0 %vm1425_vm3, %v6568_v16  ;;  %v6858_v7 = vpop.permute.xlu0 %6857  ;;  %v6860_v34 = vpop.permute.xlu1 %6859 }
0x28c9   : > { %9737 = vmatpush3.xpose.msk.msra.mxu0 %vm1425_vm3, %v6869_v60  ;;  %9738 = vmatprep.mubr.msk.f32.mxu0 %vm11472_vm0, %v11471_v0 }
0x28cc   : > { %9739 = vmatmul.mubr.msk.f32.vlgmr.msra.gmra.mrb[102].mxu0 %vm1425_vm3, %v6856_v18 }
0x28cd   : > { %9741 = vmatprep.mubr.msk.f32.mxu0 %vm11472_vm0, %v11471_v0 }
0x28d0   : > { %9742 = vmatmul.mubr.msk.f32.gmra.mrb[104].mxu0 %vm1425_vm3, %v6858_v7 }
0x28d1   : > { %9744 = vmatprep.mubr.msk.f32.mxu0 %vm11472_vm0, %v11471_v0 }
0x28d4   : > { %9745 = vmatmul.mubr.msk.f32.gmra.mrb[106].mxu0 %vm1425_vm3, %v6860_v34 }
0x2945   : > { %v6061_v31 = vpop.xlane.xlu0 %6060 }
0x2946   : > { %v6068_v25 = vsub.f32 %v6056_v33, %v6061_v31 }
0x2948   : > { %v6071_v57 = vmul.f32 1.442695, %v6068_v25 }
0x2949   : > { %v6064_v23 = vpop.xlane.xlu1 %6063 }
0x294a   : > { %10751 = vpow2.f32 %v6071_v57  ;;  %v6069_v46 = vsub.f32 %v6057_v36, %v6064_v23 }
0x294c   : > { %v6073_v61 = vmul.f32 1.442695, %v6069_v46 }
0x294d   : > { %v6067_v5 = vpop.xlane.xlu0 %6066 }
0x294e   : > { %10753 = vpow2.f32 %v6073_v61  ;;  %v6070_v54 = vsub.f32 %v6058_v39, %v6067_v5 }
0x2950   : > { %v6075_v58 = vmul.f32 1.442695, %v6070_v54 }
0x2952   : > { %10755 = vpow2.f32 %v6075_v58 }
0x2954   : > { %v13252_v6 = vpop.eup %10751 }
0x2955   : > { %v6077_v24 = vsel %vm3809_vm7, %v13252_v6, 0.0 }
0x2956   : > { %6078 = vadd.xlane.f32.xlu0 %v6077_v24 }
0x2958   : > { %v13256_v19 = vpop.eup %10753 }
0x2959   : > { %v6080_v1 = vsel %vm3809_vm7, %v13256_v19, 0.0 }
0x295a   : > { %6081 = vadd.xlane.f32.xlu1 %v6080_v1 }
0x295c   : > { %v13260_v51 = vpop.eup %10755 }
0x295d   : > { %v6083_v12 = vsel %vm3809_vm7, %v13260_v51, 0.0 }
0x295e   : > { %6084 = vadd.xlane.f32.xlu0 %v6083_v12 }
0x2987   : > { %v6343_v27 = vpop.f32.mrb[90].mxu0 }
0x2988   : > { %v13266_v3 = vsel %vm12603_vm6, %v6343_v27, -1e+09  ;;  %v9680_v55 = vpop.f32.mrb[91].mxu0 }
0x2989   : > { %v6360_v63 = vsel %vm3809_vm7, %v13266_v3, -inf }
0x298a   : > { %6361 = vmax.xlane.f32.xlu0 %v6360_v63 }
0x298b   : > { %v6348_v22 = vpop.f32.mrb[92].mxu0 }
0x298c   : > { %v13272_v21 = vsel %vm12612_vm8, %v6348_v22, -1e+09  ;;  %v9683_v9 = vpop.f32.mrb[93].mxu0 }
0x298d   : > { %v6363_v17 = vsel %vm3809_vm7, %v13272_v21, -inf }
0x298e   : > { %6364 = vmax.xlane.f32.xlu0 %v6363_v17 }
0x298f   : > { %v6353_v42 = vpop.f32.mrb[94].mxu0 }
0x2990   : > { %v13278_v13 = vsel %vm12622_vm9, %v6353_v42, -1e+09  ;;  %v9686_v53 = vpop.f32.mrb[95].mxu0 }
0x2991   : > { %v6366_v49 = vsel %vm3809_vm7, %v13278_v13, -inf }
0x2992   : > { %6367 = vmax.xlane.f32.xlu1 %v6366_v49 }
0x2993   : > { %v6656_v43 = vpop.f32.mrb[96].mxu0 }
0x2994   : > { %v13284_v62 = vsel %vm12603_vm6, %v6656_v43, -1e+09  ;;  %v9710_v33 = vpop.f32.mrb[97].mxu0 }
0x2995   : > { %v6673_v14 = vsel %vm3809_vm7, %v13284_v62, -inf }
0x2996   : > { %6674 = vmax.xlane.f32.xlu0 %v6673_v14 }
0x2997   : > { %v6661_v35 = vpop.f32.mrb[98].mxu0 }
0x2998   : > { %v13290_v45 = vsel %vm12612_vm8, %v6661_v35, -1e+09  ;;  %v9713_v52 = vpop.f32.mrb[99].mxu0 }
0x2999   : > { %v6676_v37 = vsel %vm3809_vm7, %v13290_v45, -inf }
0x299a   : > { %6677 = vmax.xlane.f32.xlu1 %v6676_v37 }
0x299b   : > { %v6666_v36 = vpop.f32.mrb[100].mxu0 }
0x299c   : > { %v13296_v11 = vsel %vm12622_vm9, %v6666_v36, -1e+09  ;;  %v9716_v26 = vpop.f32.mrb[101].mxu0 }
0x299d   : > { %v6679_v28 = vsel %vm3809_vm7, %v13296_v11, -inf }
0x299e   : > { %6680 = vmax.xlane.f32.xlu0 %v6679_v28 }
0x299f   : > { %v6948_v4 = vpop.f32.mrb[102].mxu0 }
0x29a0   : > { %v13302_v10 = vsel %vm12603_vm6, %v6948_v4, -1e+09  ;;  %v9740_v47 = vpop.f32.mrb[103].mxu0 }
0x29a1   : > { %v6965_v39 = vsel %vm3809_vm7, %v13302_v10, -inf }
0x29a2   : > { %6966 = vmax.xlane.f32.xlu1 %v6965_v39 }
0x29a3   : > { %v6953_v2 = vpop.f32.mrb[104].mxu0 }
0x29a4   : > { %v13308_v8 = vsel %vm12612_vm8, %v6953_v2, -1e+09  ;;  %v9743_v44 = vpop.f32.mrb[105].mxu0 }
0x29a5   : > { %v6968_v59 = vsel %vm3809_vm7, %v13308_v8, -inf }
0x29a6   : > { %6969 = vmax.xlane.f32.xlu0 %v6968_v59 }
0x29a7   : > { %v6958_v29 = vpop.f32.mrb[106].mxu0 }
0x29a8   : > { %v9746_v16 = vpop.f32.mrb[107].mxu0  ;;  %v13318_v48 = vsel %vm12622_vm9, %v6958_v29, -1e+09 }
0x29a9   : > { %v6971_v41 = vsel %vm3809_vm7, %v13318_v48, -inf }
0x29b3   : > { %6400 = vrot.lane.b32.xlu1 %v12990_v50, %s13728_s15 }
0x29bc   : > { %10240 = vrot.lane.b32.xlu0 %v12998_v56, %s13728_s15 }
0x29d7   : > { %6972 = vmax.xlane.f32.xlu1 %v6971_v41 }
0x29e3   : > { %v6079_v60 = vpop.xlane.xlu0 %6078 }
0x29e4   : > { %10757 = vrcp.f32 %v6079_v60 }
0x29e7   : > { %v6082_v18 = vpop.xlane.xlu1 %6081 }
0x29e8   : > { %10759 = vrcp.f32 %v6082_v18  ;;  %10245 = vrot.lane.b32.xlu1 %v12998_v56, %s13727_s2 }
0x29eb   : > { %v6085_v7 = vpop.xlane.xlu0 %6084 }
0x29ec   : > { %10761 = vrcp.f32 %v6085_v7 }
0x29ee   : > { %v10758_v34 = vpop.eup %10757 }
0x29ef   : > { %v6089_v31 = vmul.f32 %v10758_v34, %v13252_v6 }
0x29f1   : > { %9664 = vmatmul.mubr.msk.f32.vlgmr.msra.gmra.mrb[76].mxu1 %vm3809_vm7, %v6089_v31 }
0x29f2   : > { %v10760_v40 = vpop.eup %10759  ;;  %9666 = vmatprep.mubr.msk.f32.mxu1 %vm11472_vm0, %v11471_v0 }
0x29f3   : > { %v6090_v25 = vmul.f32 %v10760_v40, %v13256_v19 }
0x29f5   : > { %9667 = vmatmul.mubr.msk.f32.gmra.mrb[78].mxu1 %vm3809_vm7, %v6090_v25 }
0x29f6   : > { %v10762_v57 = vpop.eup %10761  ;;  %9669 = vmatprep.mubr.msk.f32.mxu1 %vm11472_vm0, %v11471_v0 }
0x29f7   : > { %v6091_v23 = vmul.f32 %v10762_v57, %v13260_v51 }
0x29f9   : > { %9670 = vmatmul.mubr.msk.f32.gmra.mrb[80].mxu1 %vm3809_vm7, %v6091_v23 }
0x29fa   : > { %9693 = vmatprep.mubr.msk.f32.mxu1 %vm11472_vm0, %v11471_v0 }
0x2a17   : > { %v6362_v46 = vpop.xlane.xlu0 %6361 }
0x2a18   : > { %v6369_v61 = vsub.f32 %v13266_v3, %v6362_v46 }
0x2a1a   : > { %v6372_v5 = vmul.f32 1.442695, %v6369_v61 }
0x2a1b   : > { %v6365_v54 = vpop.xlane.xlu0 %6364 }
0x2a1c   : > { %10763 = vpow2.f32 %v6372_v5  ;;  %v6370_v58 = vsub.f32 %v13272_v21, %v6365_v54 }
0x2a1e   : > { %v6374_v6 = vmul.f32 1.442695, %v6370_v58 }
0x2a1f   : > { %v6368_v24 = vpop.xlane.xlu1 %6367 }
0x2a20   : > { %10765 = vpow2.f32 %v6374_v6  ;;  %v6371_v19 = vsub.f32 %v13278_v13, %v6368_v24 }
0x2a22   : > { %v6376_v1 = vmul.f32 1.442695, %v6371_v19 }
0x2a23   : > { %v6675_v51 = vpop.xlane.xlu0 %6674 }
0x2a24   : > { %10767 = vpow2.f32 %v6376_v1  ;;  %v6682_v12 = vsub.f32 %v13284_v62, %v6675_v51 }
0x2a26   : > { %v13340_v27 = vpop.eup %10763  ;;  %v6685_v55 = vmul.f32 1.442695, %v6682_v12 }
0x2a27   : > { %v6678_v63 = vpop.xlane.xlu1 %6677  ;;  %v6378_v3 = vsel %vm3809_vm7, %v13340_v27, 0.0 }
0x2a28   : > { %10769 = vpow2.f32 %v6685_v55  ;;  %v6683_v22 = vsub.f32 %v13290_v45, %v6678_v63  ;;  %6379 = vadd.xlane.f32.xlu1 %v6378_v3 }
0x2a2a   : > { %v13345_v21 = vpop.eup %10765  ;;  %v6687_v9 = vmul.f32 1.442695, %v6683_v22 }
0x2a2b   : > { %v6681_v17 = vpop.xlane.xlu0 %6680  ;;  %v6381_v42 = vsel %vm3809_vm7, %v13345_v21, 0.0 }
0x2a2c   : > { %10771 = vpow2.f32 %v6687_v9  ;;  %v6684_v13 = vsub.f32 %v13296_v11, %v6681_v17  ;;  %6382 = vadd.xlane.f32.xlu0 %v6381_v42 }
0x2a2e   : > { %v13350_v53 = vpop.eup %10767  ;;  %v6689_v49 = vmul.f32 1.442695, %v6684_v13 }
0x2a2f   : > { %v6967_v43 = vpop.xlane.xlu1 %6966  ;;  %v6384_v62 = vsel %vm3809_vm7, %v13350_v53, 0.0 }
0x2a30   : > { %10773 = vpow2.f32 %v6689_v49  ;;  %v6974_v33 = vsub.f32 %v13302_v10, %v6967_v43  ;;  %6385 = vadd.xlane.f32.xlu1 %v6384_v62 }
0x2a32   : > { %v13355_v14 = vpop.eup %10769  ;;  %v6977_v35 = vmul.f32 1.442695, %v6974_v33 }
0x2a33   : > { %v6970_v45 = vpop.xlane.xlu0 %6969  ;;  %v6691_v52 = vsel %vm3809_vm7, %v13355_v14, 0.0  ;;  %v6401_v2 = vpop.permute.xlu1 %6400 }
0x2a34   : > { %10775 = vpow2.f32 %v6977_v35  ;;  %6692 = vadd.xlane.f32.xlu0 %v6691_v52  ;;  %v6975_v59 = vsub.f32 %v13308_v8, %v6970_v45 }
0x2a36   : > { %v13359_v37 = vpop.eup %10771  ;;  %v6979_v29 = vmul.f32 1.442695, %v6975_v59  ;;  %v10477_v59 = vld [vmem:[#allocation23 + $0x40] sm:$0xff]  }
0x2a37   : > { %v10241_v36 = vpop.permute.xlu0 %10240  ;;  %v6694_v11 = vsel %vm3809_vm7, %v13359_v37, 0.0  ;;  %9762 = vmatprep.subr.bf16.mxu0 %v10477_v59 }
0x2a38   : > { %v10243_v26 = vunpack.i.h.bf16 %v10241_v36  ;;  %v10242_v28 = vunpack.i.l.bf16 %v10241_v36  ;;  %6695 = vadd.xlane.f32.xlu1 %v6694_v11  ;;  %10777 = vpow2.f32 %v6979_v29  ;;  %v10478_v29 = vld [vmem:[#allocation23 + $0x48] sm:$0xff]   ;;  %9763 = vmatpush3.bf16.msra.mxu0 %v10477_v59 }
0x2a39   : > { %9764 = vmatprep.subr.bf16.mxu0 %v10478_v29 }
0x2a3a   : > { %v13363_v4 = vpop.eup %10773  ;;  %v9862_v10 = vpack.c.bf16 %v10243_v26, %v10242_v28 }
0x2a3b   : > { %v6697_v47 = vsel %vm3809_vm7, %v13363_v4, 0.0 }
0x2a3c   : > { %9863 = vmatpush3.bf16.msra.mxu1 %v9862_v10  ;;  %6698 = vadd.xlane.f32.xlu1 %v6697_v47 }
0x2a3d   : > { %9691 = vmatprep.subr.mxu1 %v11471_v0  ;;  %9765 = vmatpush3.bf16.msra.mxu0 %v10478_v29 }
0x2a3e   : > { %v13368_v39 = vpop.eup %10775 }
0x2a3f   : > { %v6983_v44 = vsel %vm3809_vm7, %v13368_v39, 0.0 }
0x2a40   : > { %9692 = vmatpush3.msra.mxu1 %v6401_v2  ;;  %6984 = vadd.xlane.f32.xlu1 %v6983_v44 }
0x2a41   : > { %9868 = vmatprep.subr.bf16.mxu1 %v11477_v15 }
0x2a42   : > { %v13376_v41 = vpop.eup %10777 }
0x2a43   : > { %v6986_v7 = vsel %vm3809_vm7, %v13376_v41, 0.0 }
0x2a4a   : > { %6710 = vrot.lane.b32.xlu0 %v12990_v50, %s13727_s2 }
0x2a64   : > { %v6973_v16 = vpop.xlane.xlu1 %6972 }
0x2a65   : > { %v6976_v60 = vsub.f32 %v13318_v48, %v6973_v16 }
0x2a67   : > { %v6981_v18 = vmul.f32 1.442695, %v6976_v60 }
0x2a68   : > { %v10246_v8 = vpop.permute.xlu1 %10245 }
0x2a69   : > { %10779 = vpow2.f32 %v6981_v18  ;;  %6987 = vadd.xlane.f32.xlu0 %v6986_v7  ;;  %v10248_v57 = vunpack.i.h.bf16 %v10246_v8  ;;  %v10247_v23 = vunpack.i.l.bf16 %v10246_v8  ;;  %v10480_v18 = vld [vmem:[#allocation23 + $0x58] sm:$0xff]   ;;  %v10481_v8 = vld [vmem:[#allocation23 + $0x60] sm:$0xff]  }
0x2a6b   : > { %v9869_v54 = vpack.c.bf16 %v10248_v57, %v10247_v23  ;;  %v10484_v57 = vld [vmem:[#allocation23 + $0x78] sm:$0xff]  }
0x2a73   : > { %v13381_v34 = vpop.eup %10779 }
0x2a74   : > { %v6989_v31 = vsel %vm3809_vm7, %v13381_v34, 0.0 }
0x2a75   : > { %6990 = vadd.xlane.f32.xlu1 %v6989_v31 }
0x2a7f   : > { %7002 = vrot.lane.b32.xlu0 %v12990_v50, %s13726_s1 }
0x2a86   : > { %10250 = vrot.lane.b32.xlu1 %v12998_v56, %s13726_s1 }
0x2ab5   : > { %v6380_v48 = vpop.xlane.xlu1 %6379 }
0x2ab6   : > { %10781 = vrcp.f32 %v6380_v48 }
0x2ab9   : > { %v6383_v40 = vpop.xlane.xlu0 %6382 }
0x2aba   : > { %10783 = vrcp.f32 %v6383_v40  ;;  %v10482_v40 = vld [vmem:[#allocation23 + $0x68] sm:$0xff]  }
0x2abd   : > { %v6386_v25 = vpop.xlane.xlu1 %6385 }
0x2abe   : > { %10785 = vrcp.f32 %v6386_v25  ;;  %v10483_v25 = vld [vmem:[#allocation23 + $0x70] sm:$0xff]  }
0x2ac0   : > { %v10782_v46 = vpop.eup %10781 }
0x2ac1   : > { %v6390_v61 = vmul.f32 %v10782_v46, %v13340_v27  ;;  %v6693_v5 = vpop.xlane.xlu0 %6692 }
0x2ac2   : > { %10787 = vrcp.f32 %v6693_v5 }
0x2ac3   : > { %9694 = vmatmul.mubr.msk.f32.vlgmr.msra.gmra.mrb[82].mxu1 %vm3809_vm7, %v6390_v61 }
0x2ac4   : > { %v10784_v50 = vpop.eup %10783  ;;  %9870 = vmatpush3.bf16.msra.mxu1 %v9869_v54  ;;  %v13391_v56 = vpop.f32.mrb[76].mxu1  ;;  %9696 = vmatprep.mubr.msk.f32.mxu1 %vm11472_vm0, %v11471_v0 }
0x2ac5   : > { %v9665_v58 = vpop.f32.mrb[77].mxu1  ;;  %v6711_v6 = vpop.permute.xlu0 %6710  ;;  %9721 = vmatprep.subr.mxu1 %v11471_v0  ;;  %v6391_v24 = vmul.f32 %v10784_v50, %v13345_v21 }
0x2ac6   : > { %v6696_v19 = vpop.xlane.xlu1 %6695 }
0x2ac7   : > { %10789 = vrcp.f32 %v6696_v19  ;;  %9697 = vmatmul.mubr.msk.f32.gmra.mrb[84].mxu1 %vm3809_vm7, %v6391_v24 }
0x2ac8   : > { %v10786_v1 = vpop.eup %10785  ;;  %9722 = vmatpush3.msra.mxu1 %v6711_v6  ;;  %v13398_v51 = vpop.f32.mrb[78].mxu1  ;;  %9699 = vmatprep.mubr.msk.f32.mxu1 %vm11472_vm0, %v11471_v0 }
0x2ac9   : > { %v9668_v12 = vpop.f32.mrb[79].mxu1  ;;  %v6392_v27 = vmul.f32 %v10786_v1, %v13350_v53  ;;  %9875 = vmatprep.subr.bf16.mxu1 %v11477_v15 }
0x2aca   : > { %v6699_v55 = vpop.xlane.xlu1 %6698 }
0x2acb   : > { %10791 = vrcp.f32 %v6699_v55  ;;  %9700 = vmatmul.mubr.msk.f32.gmra.mrb[86].mxu1 %vm3809_vm7, %v6392_v27 }
0x2acc   : > { %v10788_v63 = vpop.eup %10787  ;;  %v13405_v3 = vpop.f32.mrb[80].mxu1  ;;  %9723 = vmatprep.mubr.msk.f32.mxu1 %vm11472_vm0, %v11471_v0 }
0x2acd   : > { %v6703_v22 = vmul.f32 %v10788_v63, %v13355_v14  ;;  %v9671_v21 = vpop.f32.mrb[81].mxu1 }
0x2ace   : > { %v6985_v13 = vpop.xlane.xlu1 %6984 }
0x2acf   : > { %9724 = vmatmul.mubr.msk.f32.vlgmr.msra.gmra.mrb[88].mxu1 %vm3809_vm7, %v6703_v22  ;;  %10793 = vrcp.f32 %v6985_v13 }
0x2ad0   : > { %9726 = vmatprep.mubr.msk.f32.mxu1 %vm11472_vm0, %v11471_v0 }
0x2ad1   : > { %v10790_v9 = vpop.eup %10789 }
0x2ad2   : > { %v6704_v15 = vmul.f32 %v10790_v9, %v13359_v37 }
0x2ad4   : > { %9727 = vmatmul.mubr.msk.f32.gmra.mrb[90].mxu1 %vm3809_vm7, %v6704_v15 }
0x2ad5   : > { %v10792_v17 = vpop.eup %10791  ;;  %9729 = vmatprep.mubr.msk.f32.mxu1 %vm11472_vm0, %v11471_v0 }
0x2ad6   : > { %v6705_v42 = vmul.f32 %v10792_v17, %v13363_v4 }
0x2ad8   : > { %9730 = vmatmul.mubr.msk.f32.gmra.mrb[92].mxu1 %vm3809_vm7, %v6705_v42 }
0x2ad9   : > { %9753 = vmatprep.mubr.msk.f32.mxu1 %vm11472_vm0, %v11471_v0  ;;  %v10794_v35 = vpop.eup %10793 }
0x2ada   : > { %v6995_v45 = vmul.f32 %v10794_v35, %v13368_v39  ;;  %v10487_v35 = vld [vmem:[%s13736_s28 + $0x104] ss:$16 sps:$4 sm:$0xff]  }
0x2af6   : > { %v6988_v53 = vpop.xlane.xlu0 %6987 }
0x2af7   : > { %10795 = vrcp.f32 %v6988_v53 }
0x2afa   : > { %v7003_v52 = vpop.permute.xlu0 %7002 }
0x2b01   : > { %v10796_v37 = vpop.eup %10795 }
0x2b02   : > { %v6991_v49 = vpop.xlane.xlu1 %6990  ;;  %v6996_v36 = vmul.f32 %v10796_v37, %v13376_v41  ;;  %v10479_v41 = vld [vmem:[#allocation23 + $0x50] sm:$0xff]  }
0x2b03   : > { %10797 = vrcp.f32 %v6991_v49  ;;  %9766 = vmatprep.subr.bf16.mxu0 %v10479_v41  ;;  %v10493_v37 = vld [vmem:[%s13736_s28 + $0x124] ss:$16 sps:$4 sm:$0xff]  }
0x2b04   : > { %9767 = vmatpush3.bf16.msra.mxu0 %v10479_v41 }
0x2b05   : > { %9768 = vmatprep.subr.bf16.mxu0 %v10480_v18 }
0x2b06   : > { %v10251_v43 = vpop.permute.xlu1 %10250 }
0x2b07   : > { %v10253_v62 = vunpack.i.h.bf16 %v10251_v43  ;;  %v10252_v33 = vunpack.i.l.bf16 %v10251_v43 }
0x2b08   : > { %9769 = vmatpush3.bf16.msra.mxu0 %v10480_v18  ;;  %v10508_v18 = vld [vmem:[%s13736_s28 + $0x16c] ss:$16 sps:$4 sm:$0xff]  }
0x2b09   : > { %v9876_v14 = vpack.c.bf16 %v10253_v62, %v10252_v33  ;;  %9770 = vmatprep.subr.bf16.mxu0 %v10481_v8 }
0x2b0b   : > { %9877 = vmatpush3.bf16.msra.mxu1 %v9876_v14  ;;  %v10485_v14 = vld [vmem:[%s13736_s28 + $0x100] ss:$16 sps:$4 sm:$0xff]  }
0x2b0c   : > { %9751 = vmatprep.subr.mxu1 %v11471_v0  ;;  %9771 = vmatpush3.bf16.msra.mxu0 %v10481_v8  ;;  %v10509_v8 = vld [vmem:[%s13736_s28 + $0x180] ss:$16 sps:$4 sm:$0xff]  }
0x2b0d   : > { %v10798_v11 = vpop.eup %10797  ;;  %9772 = vmatprep.subr.bf16.mxu0 %v10482_v40 }
0x2b0e   : > { %v6997_v26 = vmul.f32 %v10798_v11, %v13381_v34  ;;  %v10491_v11 = vld [vmem:[%s13736_s28 + $0x120] ss:$16 sps:$4 sm:$0xff]  }
0x2b0f   : > { %9752 = vmatpush3.msra.mxu1 %v7003_v52  ;;  %v10490_v52 = vld [vmem:[%s13736_s28 + $0x10c] ss:$16 sps:$4 sm:$0xff]  }
0x2b10   : > { %9754 = vmatmul.mubr.msk.f32.vlgmr.msra.gmra.mrb[94].mxu1 %vm3809_vm7, %v6995_v45  ;;  %9773 = vmatpush3.bf16.msra.mxu0 %v10482_v40  ;;  %v10488_v45 = vld [vmem:[%s13736_s28 + $0x108] ss:$16 sps:$4 sm:$0xff]   ;;  %v10517_v40 = vld [vmem:[%s13736_s28 + $0x1a4] ss:$16 sps:$4 sm:$0xff]  }
0x2b11   : > { %9756 = vmatprep.mubr.msk.f32.mxu1 %vm11472_vm0, %v11471_v0  ;;  %9774 = vmatprep.subr.bf16.mxu0 %v10483_v25 }
0x2b12   : > { %7486 = vmatprep.subr.bf16.mxu1 %v10487_v35  ;;  %v10534_v35 = vld [vmem:[%s11627_s24 + $0x80] sm:$0xff]  }
0x2b13   : > { %7487 = vmatpush1.bf16.msra.mxu1 %v10485_v14  ;;  %v10533_v14 = vld [vmem:[%s11627_s24 + $0xc0] sm:$0xff]  }
0x2b14   : > { %9757 = vmatmul.mubr.msk.f32.gmra.mrb[96].mxu1 %vm3809_vm7, %v6996_v36  ;;  %9775 = vmatpush3.bf16.msra.mxu0 %v10483_v25  ;;  %v10496_v36 = vld [vmem:[%s13736_s28 + $0x12c] ss:$16 sps:$4 sm:$0xff]  }
0x2b15   : > { %9759 = vmatprep.mubr.msk.f32.mxu1 %vm11472_vm0, %v11471_v0  ;;  %9776 = vmatprep.subr.bf16.mxu0 %v10484_v57  ;;  %v10520_v25 = vld [vmem:[%s13736_s28 + $0x1ac] ss:$16 sps:$4 sm:$0xff]  }
0x2b16   : > { %7488 = vmatprep.subr.bf16.mxu1 %v10493_v37  ;;  %v10537_v37 = vld [vmem:[%s11627_s24 + $0xd0] sm:$0xff]  }
0x2b17   : > { %7489 = vmatpush1.bf16.msra.mxu1 %v10491_v11  ;;  %v10539_v11 = vld [vmem:[%s11627_s24 + $0xd8] sm:$0xff]  }
0x2b18   : > { %9760 = vmatmul.mubr.msk.f32.gmra.mrb[98].mxu1 %vm3809_vm7, %v6997_v26  ;;  %9777 = vmatpush3.bf16.msra.mxu0 %v10484_v57  ;;  %v10494_v26 = vld [vmem:[%s13736_s28 + $0x128] ss:$16 sps:$4 sm:$0xff]   ;;  %v10515_v57 = vld [vmem:[%s13736_s28 + $0x1a0] ss:$16 sps:$4 sm:$0xff]  }
0x2b19   : > { %7518 = vmatprep.mubr.bf16.mxu1 %v11473_v32  ;;  %7537 = vmatprep.subr.bf16.mxu0 %v10490_v52  ;;  %v10536_v52 = vld [vmem:[%s11627_s24 + $0x88] sm:$0xff]  }
0x2b96   : > { %v6480_v28 = vpop.f32.mrb[82].mxu1 }
0x2b97   : > { %v9695_v4 = vpop.f32.mrb[83].mxu1 }
0x2b98   : > { %v10502_v4 = vld [vmem:[%s13736_s28 + $0x14c] ss:$16 sps:$4 sm:$0xff]  }
0x2b9a   : > { %v6485_v10 = vpop.f32.mrb[84].mxu1 }
0x2b9b   : > { %v10254_v47 = vpack.i.bf16 %v6485_v10, %v6480_v28  ;;  %v9698_v39 = vpop.f32.mrb[85].mxu1  ;;  %v10499_v28 = vld [vmem:[%s13736_s28 + $0x144] ss:$16 sps:$4 sm:$0xff]   ;;  %v10497_v10 = vld [vmem:[%s13736_s28 + $0x140] ss:$16 sps:$4 sm:$0xff]  }
0x2b9c   : > { %7490 = vmatprep.subr.bf16.mxu1 %v10499_v28  ;;  %v10541_v28 = vld [vmem:[%s11627_s24 + $0xe0] sm:$0xff]  }
0x2b9d   : > { %10255 = vrot.lane.b32.xlu0 %v10254_v47, %s13726_s1  ;;  %v10500_v47 = vld [vmem:[%s13736_s28 + $0x148] ss:$16 sps:$4 sm:$0xff]   ;;  %7491 = vmatpush1.bf16.msra.mxu1 %v10497_v10 }
0x2b9e   : > { %v6490_v2 = vpop.f32.mrb[86].mxu1  ;;  %v10543_v10 = vld [vmem:[%s11627_s24 + $0xe8] sm:$0xff]  }
0x2b9f   : > { %7103 = vrot.lane.b32.xlu1 %v6490_v2, %s13726_s1  ;;  %v9701_v44 = vpop.f32.mrb[87].mxu1 }
0x2ba2   : > { %v6790_v0 = vpop.f32.mrb[88].mxu1 }
0x2ba3   : > { %v9725_v16 = vpop.f32.mrb[89].mxu1 }
0x2ba7   : > { %v6795_v60 = vpop.f32.mrb[90].mxu1 }
0x2ba8   : > { %v10259_v7 = vpack.i.bf16 %v6795_v60, %v6790_v0  ;;  %v9728_v34 = vpop.f32.mrb[91].mxu1 }
0x2ba9   : > { %v10511_v34 = vld [vmem:[%s13736_s28 + $0x184] ss:$16 sps:$4 sm:$0xff]  }
0x2baa   : > { %10260 = vrot.lane.b32.xlu0 %v10259_v7, %s13727_s2  ;;  %v10506_v7 = vld [vmem:[%s13736_s28 + $0x168] ss:$16 sps:$4 sm:$0xff]  }
0x2bab   : > { %v6800_v31 = vpop.f32.mrb[92].mxu1 }
0x2bac   : > { %7115 = vrot.lane.b32.xlu1 %v6800_v31, %s13727_s2  ;;  %v9731_v48 = vpop.f32.mrb[93].mxu1  ;;  %v10514_v31 = vld [vmem:[%s13736_s28 + $0x18c] ss:$16 sps:$4 sm:$0xff]   ;;  %s9878_s2 = smul.u32 96, %s1171_s5 }
0x2bad   : > { %v10512_v48 = vld [vmem:[%s13736_s28 + $0x188] ss:$16 sps:$4 sm:$0xff]  }
0x2bae   : > { %s1173_s4 = scalar_lea.vmem [#allocation29], %s9878_s2 }
0x2be3   : > { %v7082_v23 = vpop.f32.mrb[94].mxu1 }
0x2be4   : > { %v9755_v46 = vpop.f32.mrb[95].mxu1 }
0x2be5   : > { %v10523_v46 = vld [vmem:[%s13736_s28 + $0x1c4] ss:$16 sps:$4 sm:$0xff]  }
0x2be7   : > { %v7087_v61 = vpop.f32.mrb[96].mxu1 }
0x2be8   : > { %v10264_v5 = vpack.i.bf16 %v7087_v61, %v7082_v23  ;;  %v9758_v54 = vpop.f32.mrb[97].mxu1  ;;  %v10518_v23 = vld [vmem:[%s13736_s28 + $0x1a8] ss:$16 sps:$4 sm:$0xff]   ;;  %v10526_v61 = vld [vmem:[%s13736_s28 + $0x1cc] ss:$16 sps:$4 sm:$0xff]  }
0x2be9   : > { %v10524_v54 = vld [vmem:[%s13736_s28 + $0x1c8] ss:$16 sps:$4 sm:$0xff]  }
0x2bea   : > { %10265 = vrot.lane.b32.xlu0 %v10264_v5, %s13728_s15  ;;  %v10521_v5 = vld [vmem:[%s13736_s28 + $0x1c0] ss:$16 sps:$4 sm:$0xff]  }
0x2beb   : > { %v7092_v50 = vpop.f32.mrb[98].mxu1 }
0x2bec   : > { %7127 = vrot.lane.b32.xlu1 %v7092_v50, %s13728_s15  ;;  %v9761_v58 = vpop.f32.mrb[99].mxu1  ;;  %v10527_v50 = vld [vmem:[%s13736_s28 + $0x1e0] ss:$16 sps:$4 sm:$0xff]   ;;  %s8173_s15 = sshll.u32 %s1173_s4, 4  ;;  %s13549_s15 = int_to_ptr.vmem [resolvable:$true] %s8173_s15 }
0x2bed   : > { %v10529_v58 = vld [vmem:[%s13736_s28 + $0x1e4] ss:$16 sps:$4 sm:$0xff]   ;;  %s11317_s2 = scalar_lea.vmem %s13549_s15, 1536  ;;  %p11324_p10 = scmp.lt.s32.totalorder %s13549_s15, %s11322_s6 }
0x2bee   : > { %p11318_p12 = scmp.ne.s32.totalorder %s13549_s15, %s11317_s2  ;;  %p11325_p7 = scmp.lt.s32.totalorder %s11323_s8, %s11317_s2 }
0x2bf0   : > { %p11319_p6 = pnand %p11318_p12, %p13741_p5  ;;  %p11326_p8 = por %p11325_p7, %p11324_p10 }
0x2bf2   : > { %p11320_p9 = pneg %p11319_p6 }
0x2bf4   : > { %p11327_p11 = pnand %p11326_p8, %p11320_p9 }
0x2c0f   : > { %v10256_v6 = vpop.permute.xlu0 %10255 }
0x2c10   : > { %v10258_v1 = vunpack.i.h.bf16 %v10256_v6  ;;  %v10257_v12 = vunpack.i.l.bf16 %v10256_v6  ;;  %v10530_v6 = vld [vmem:[%s13736_s28 + $0x1e8] ss:$16 sps:$4 sm:$0xff]  }
0x2c11   : > { %v7104_v24 = vpop.permute.xlu1 %7103 }
0x2c12   : > { %v7133_v22 = vsel %vm1425_vm3, %v13398_v51, %v10258_v1  ;;  %v7132_v9 = vsel %vm1425_vm3, %v13391_v56, %v10257_v12  ;;  %v7134_v15 = vsel %vm1425_vm3, %v13405_v3, %v7104_v24  ;;  %v10532_v24 = vld [vmem:[%s13736_s28 + $0x1ec] ss:$16 sps:$4 sm:$0xff]  }
0x2c1c   : > { %v10261_v19 = vpop.permute.xlu0 %10260 }
0x2c1d   : > { %v10263_v27 = vunpack.i.h.bf16 %v10261_v19  ;;  %v10262_v55 = vunpack.i.l.bf16 %v10261_v19 }
0x2c1e   : > { %v7116_v63 = vpop.permute.xlu1 %7115 }
0x2c1f   : > { %v7136_v13 = vsel %vm1272_vm2, %v7133_v22, %v10263_v27  ;;  %v7135_v53 = vsel %vm1272_vm2, %v7132_v9, %v10262_v55  ;;  %v7137_v51 = vsel %vm1272_vm2, %v7134_v15, %v7116_v63 }
0x2c5c   : > { %v10266_v21 = vpop.permute.xlu0 %10265 }
0x2c5d   : > { %v10268_v17 = vunpack.i.h.bf16 %v10266_v21  ;;  %v10267_v42 = vunpack.i.l.bf16 %v10266_v21 }
0x2c5e   : > { %v7128_v49 = vpop.permute.xlu1 %7127 }
0x2c5f   : > { %v7140_v56 = vsel %vm4919_vm10, %v7137_v51, %v7128_v49  ;;  %v7138_v43 = vsel %vm4919_vm10, %v7135_v53, %v10267_v42  ;;  %v7139_v3 = vsel %vm4919_vm10, %v7136_v13, %v10268_v17  ;;  %v8840_v13 = vld [vmem:[#allocation25 + $0x1] ss:$0 sm:$0xff] }
0x2c60   : > { %v7159_v62 = vpack.c.bf16 %v7140_v56, %v7140_v56  ;;  %v7158_v33 = vpack.c.bf16 %v7139_v3, %v7138_v43 }
0x2c62   : > { %9778 = vmatprep.mubr.bf16.mxu0 %v7158_v33 }
0x2c63   : > { %9779 = vmatmul.mubr.bf16.vlgmr.msra.gmra.mrb[108].mxu0 %v7159_v62 }
0x2c64   : > { %7569 = vmatprep.mubr.bf16.mxu0 %v11473_v32  ;;  %7538 = vmatpush1.bf16.msra.mxu0 %v10488_v45  ;;  %v10535_v45 = vld [vmem:[%s11627_s24 + $0xc8] sm:$0xff]  }
0x2c65   : > { %7539 = vmatprep.subr.bf16.mxu0 %v10496_v36  ;;  %v10538_v36 = vld [vmem:[%s11627_s24 + $0x90] sm:$0xff]  }
0x2c68   : > { %7540 = vmatpush1.bf16.msra.mxu0 %v10494_v26  ;;  %v10540_v26 = vld [vmem:[%s11627_s24 + $0x98] sm:$0xff]  }
0x2c69   : > { %7541 = vmatprep.subr.bf16.mxu0 %v10502_v4  ;;  %v10542_v4 = vld [vmem:[%s11627_s24 + $0xa0] sm:$0xff]  }
0x2c6c   : > { %7542 = vmatpush1.bf16.msra.mxu0 %v10500_v47  ;;  %v10544_v47 = vld [vmem:[%s11627_s24 + $0xa8] sm:$0xff]  }
0x2c6d   : > { %7543 = vmatprep.subr.bf16.mxu0 %v10508_v18 }
0x2c70   : > { %7544 = vmatpush1.bf16.msra.mxu0 %v10506_v7 }
0x2c71   : > { %7545 = vmatprep.subr.bf16.mxu0 %v10514_v31 }
0x2c74   : > { %7546 = vmatpush1.bf16.msra.mxu0 %v10512_v48 }
0x2c75   : > { %7547 = vmatprep.subr.bf16.mxu0 %v10520_v25 }
0x2c78   : > { %7548 = vmatpush1.bf16.msra.mxu0 %v10518_v23 }
0x2c79   : > { %7549 = vmatprep.subr.bf16.mxu0 %v10526_v61 }
0x2c7c   : > { %7550 = vmatpush1.bf16.msra.mxu0 %v10524_v54 }
0x2c7d   : > { %7551 = vmatprep.subr.bf16.mxu0 %v10532_v24 }
0x2c80   : > { %7552 = vmatpush1.bf16.msra.mxu0 %v10530_v6 }
0x2d36   : > { %v9780_v39 = vpop.f32.mrb[108].mxu0 }
0x2d37   : > { %v7242_v2 = vpop.f32.mrb[109].mxu0  ;;  %v13468_v0 = vadd.f32 %v9780_v39, %v12945_v38  ;;  %v10505_v38 = vld [vmem:[%s13736_s28 + $0x164] ss:$16 sps:$4 sm:$0xff]  }
0x2d38   : > { %v13465_v44 = vadd.f32 %v7242_v2, %v12935_v30  ;;  %v9781_v59 = vpop.f32.mrb[110].mxu0  ;;  %7492 = vmatprep.subr.bf16.mxu1 %v10505_v38  ;;  %v10545_v39 = vld [vmem:[%s11627_s24 + $0xf0] sm:$0xff]  }
0x2d39   : > { %v7245_v29 = vpop.f32.mrb[111].mxu0  ;;  %v7263_v60 = vmul.f32 %v13468_v0, %v13468_v0  ;;  %v10546_v2 = vld [vmem:[%s11627_s24 + $0xb0] sm:$0xff]   ;;  %v10547_v59 = vld [vmem:[%s11627_s24 + $0xf8] sm:$0xff]  }
0x2d3a   : > { %v13471_v16 = vadd.f32 %v7245_v29, %v12938_v20  ;;  %v7261_v41 = vmul.f32 %v13465_v44, %v13465_v44  ;;  %v10503_v20 = vld [vmem:[%s13736_s28 + $0x160] ss:$16 sps:$4 sm:$0xff]   ;;  %v10548_v29 = vld [vmem:[%s11627_s24 + $0xb8] sm:$0xff]  }
0x2d3b   : > { %7493 = vmatpush1.bf16.msra.mxu1 %v10503_v20 }
0x2d3c   : > { %7264 = vadd.xlane.f32.xlu0 %v7261_v41  ;;  %v7262_v30 = vmul.f32 %v13471_v16, %v13471_v16  ;;  %7494 = vmatprep.subr.bf16.mxu1 %v10511_v34 }
0x2d3e   : > { %7266 = vadd.xlane.f32.xlu1 %v7262_v30 }
0x2d3f   : > { %7495 = vmatpush1.bf16.msra.mxu1 %v10509_v8 }
0x2d40   : > { %7268 = vadd.xlane.f32.xlu0 %v7263_v60  ;;  %7496 = vmatprep.subr.bf16.mxu1 %v10517_v40 }
0x2d43   : > { %7497 = vmatpush1.bf16.msra.mxu1 %v10515_v57 }
0x2d44   : > { %7498 = vmatprep.subr.bf16.mxu1 %v10523_v46 }
0x2d47   : > { %7499 = vmatpush1.bf16.msra.mxu1 %v10521_v5 }
0x2d48   : > { %7500 = vmatprep.subr.bf16.mxu1 %v10529_v58 }
0x2d4b   : > { %7501 = vmatpush1.bf16.msra.mxu1 %v10527_v50 }
0x2d4c   : > { %9248 = vmatprep.subr.bf16.mxu1 %v10533_v14 }
0x2dc9   : > { %v7265_v19 = vpop.xlane.xlu0 %7264 }
0x2dca   : > { %v7270_v1 = vmul.f32 0.0078125, %v7265_v19 }
0x2dcb   : > { %v7267_v12 = vpop.xlane.xlu1 %7266 }
0x2dcc   : > { %v7273_v27 = vadd.f32 1e-06, %v7270_v1  ;;  %v7271_v55 = vmul.f32 0.0078125, %v7267_v12 }
0x2dcd   : > { %v7269_v63 = vpop.xlane.xlu0 %7268 }
0x2dce   : > { %10799 = vrsqrt.f32 %v7273_v27  ;;  %v7274_v22 = vadd.f32 1e-06, %v7271_v55  ;;  %v7272_v21 = vmul.f32 0.0078125, %v7269_v63 }
0x2dd0   : > { %10801 = vrsqrt.f32 %v7274_v22  ;;  %v7275_v9 = vadd.f32 1e-06, %v7272_v21 }
0x2dd2   : > { %10803 = vrsqrt.f32 %v7275_v9 }
0x2dd8   : > { %v10800_v15 = vpop.eup %10799 }
0x2dd9   : > { %v7279_v17 = vmul.f32 %v10800_v15, %v13465_v44 }
0x2dda   : > { %v10802_v42 = vpop.eup %10801 }
0x2ddb   : > { %v7280_v53 = vmul.f32 %v10802_v42, %v13471_v16  ;;  %v7288_v49 = vmul.f32 %v8840_v13, %v7279_v17 }
0x2ddc   : > { %v10804_v51 = vpop.eup %10803 }
0x2ddd   : > { %v7289_v56 = vmul.f32 %v8840_v13, %v7280_v53  ;;  %v7281_v3 = vmul.f32 %v10804_v51, %v13468_v0 }
0x2ddf   : > { %v7324_v43 = vpack.c.bf16 %v7289_v56, %v7288_v49  ;;  %v7290_v62 = vmul.f32 %v8840_v13, %v7281_v3 }
0x2de1   : > { %7519 = vmatmul.mubr.bf16.vlgmr.msra.gmra.mrb[100].mxu1 %v7324_v43  ;;  %7570 = vmatmul.mubr.bf16.vlgmr.msra.gmra.mrb[112].mxu0 %v7324_v43  ;;  %v7325_v33 = vpack.c.bf16 %v7290_v62, %v7290_v62 }
0x2de2   : > { %7528 = vmatprep.mubr.bf16.mxu1 %v11473_v32  ;;  %7579 = vmatprep.mubr.bf16.mxu0 %v11473_v32 }
0x2de3   : > { %9249 = vmatpush3.bf16.msra.mxu1 %v10534_v35 }
0x2de4   : > { %9250 = vmatprep.subr.bf16.mxu1 %v10535_v45 }
0x2de7   : > { %9251 = vmatpush3.bf16.msra.mxu1 %v10536_v52 }
0x2de8   : > { %9252 = vmatprep.subr.bf16.mxu1 %v10537_v37 }
0x2de9   : > { %7529 = vmatmul.mubr.bf16.gmra.mrb[104].mxu1 %v7325_v33  ;;  %7580 = vmatmul.mubr.bf16.gmra.mrb[116].mxu0 %v7325_v33 }
0x2dea   : > { %8077 = vmatprep.mubr.bf16.mxu0 %v11473_v32 }
0x2deb   : > { %9253 = vmatpush3.bf16.msra.mxu1 %v10538_v36 }
0x2dec   : > { %9254 = vmatprep.subr.bf16.mxu1 %v10539_v11 }
0x2def   : > { %9255 = vmatpush3.bf16.msra.mxu1 %v10540_v26 }
0x2df0   : > { %9256 = vmatprep.subr.bf16.mxu1 %v10541_v28 }
0x2df3   : > { %9257 = vmatpush3.bf16.msra.mxu1 %v10542_v4 }
0x2df4   : > { %9258 = vmatprep.subr.bf16.mxu1 %v10543_v10 }
0x2df7   : > { %9259 = vmatpush3.bf16.msra.mxu1 %v10544_v47 }
0x2df8   : > { %9260 = vmatprep.subr.bf16.mxu1 %v10545_v39  ;;  %v10549_v39 = vld [vmem:[#allocation28] ss:$16 sps:$4 sm:$0xff]  }
0x2dfb   : > { %9261 = vmatpush3.bf16.msra.mxu1 %v10546_v2  ;;  %v10551_v2 = vld [vmem:[#allocation28 + $0x4] ss:$16 sps:$4 sm:$0xff]  }
0x2dfc   : > { %9262 = vmatprep.subr.bf16.mxu1 %v10547_v59  ;;  %v10552_v59 = vld [vmem:[#allocation28 + $0x8] ss:$16 sps:$4 sm:$0xff]   ;;  %8045 = vmatprep.subr.bf16.mxu0 %v10551_v2 }
0x2dfd   : > { %8046 = vmatpush1.bf16.msra.mxu0 %v10549_v39 }
0x2dff   : > { %9263 = vmatpush3.bf16.msra.mxu1 %v10548_v29  ;;  %v10554_v29 = vld [vmem:[#allocation28 + $0xc] ss:$16 sps:$4 sm:$0xff]  }
0x2e00   : > { %8096 = vmatprep.subr.bf16.mxu1 %v10554_v29 }
0x2eb4   : > { %v7520_v41 = vpop.f32.mrb[100].mxu1  ;;  %v7571_v30 = vpop.f32.mrb[112].mxu0 }
0x2eb5   : > { %v8905_v60 = vmul.f32 -1.442695, %v7520_v41  ;;  %v7522_v38 = vpop.f32.mrb[101].mxu1  ;;  %v7573_v18 = vpop.f32.mrb[113].mxu0 }
0x2eb6   : > { %v8906_v20 = vmul.f32 -1.442695, %v7522_v38  ;;  %v7524_v7 = vpop.f32.mrb[102].mxu1  ;;  %v7575_v34 = vpop.f32.mrb[114].mxu0 }
0x2eb7   : > { %10805 = vpow2.f32 %v8905_v60  ;;  %v8907_v31 = vmul.f32 -1.442695, %v7524_v7  ;;  %v7526_v8 = vpop.f32.mrb[103].mxu1  ;;  %v7577_v48 = vpop.f32.mrb[115].mxu0  ;;  %v10555_v60 = vld [vmem:[#allocation28 + $0x20] ss:$16 sps:$4 sm:$0xff]  }
0x2eb8   : > { %10807 = vpow2.f32 %v8906_v20  ;;  %v8908_v40 = vmul.f32 -1.442695, %v7526_v8 }
0x2eb9   : > { %10809 = vpow2.f32 %v8907_v31 }
0x2eba   : > { %10811 = vpow2.f32 %v8908_v40 }
0x2ebc   : > { %v7530_v25 = vpop.f32.mrb[104].mxu1  ;;  %v7581_v57 = vpop.f32.mrb[116].mxu0 }
0x2ebd   : > { %v8909_v23 = vmul.f32 -1.442695, %v7530_v25  ;;  %v7532_v46 = vpop.f32.mrb[105].mxu1  ;;  %v7583_v61 = vpop.f32.mrb[117].mxu0 }
0x2ebe   : > { %v8910_v5 = vmul.f32 -1.442695, %v7532_v46  ;;  %v7534_v54 = vpop.f32.mrb[106].mxu1  ;;  %v7585_v50 = vpop.f32.mrb[118].mxu0 }
0x2ebf   : > { %10813 = vpow2.f32 %v8909_v23  ;;  %v7535_v58 = vpop.f32.mrb[107].mxu1  ;;  %v7586_v6 = vpop.f32.mrb[119].mxu0 }
0x2ec0   : > { %10815 = vpow2.f32 %v8910_v5  ;;  %v10566_v58 = vld [vmem:[#allocation28 + $0x4c] ss:$16 sps:$4 sm:$0xff]   ;;  %v10561_v6 = vld [vmem:[#allocation28 + $0x40] ss:$16 sps:$4 sm:$0xff]  }
0x2ec1   : > { %v10806_v24 = vpop.eup %10805 }
0x2ec2   : > { %v10808_v19 = vpop.eup %10807  ;;  %v7606_v1 = vadd.f32 1.0, %v10806_v24  ;;  %v10564_v24 = vld [vmem:[#allocation28 + $0x48] ss:$16 sps:$4 sm:$0xff]  }
0x2ec3   : > { %v10810_v12 = vpop.eup %10809  ;;  %v7607_v27 = vadd.f32 1.0, %v10808_v19  ;;  %v10569_v19 = vld [vmem:[#allocation28 + $0x64] ss:$16 sps:$4 sm:$0xff]  }
0x2ec4   : > { %v10812_v55 = vpop.eup %10811  ;;  %10817 = vrcp.f32 %v7606_v1  ;;  %v7608_v63 = vadd.f32 1.0, %v10810_v12  ;;  %v10572_v1 = vld [vmem:[#allocation28 + $0x6c] ss:$16 sps:$4 sm:$0xff]   ;;  %v10567_v12 = vld [vmem:[#allocation28 + $0x60] ss:$16 sps:$4 sm:$0xff]  }
0x2ec5   : > { %10819 = vrcp.f32 %v7607_v27  ;;  %v7609_v22 = vadd.f32 1.0, %v10812_v55  ;;  %v10570_v27 = vld [vmem:[#allocation28 + $0x68] ss:$16 sps:$4 sm:$0xff]   ;;  %v10578_v55 = vld [vmem:[#allocation28 + $0x8c] ss:$16 sps:$4 sm:$0xff]  }
0x2ec6   : > { %10821 = vrcp.f32 %v7608_v63  ;;  %v10573_v63 = vld [vmem:[#allocation28 + $0x80] ss:$16 sps:$4 sm:$0xff]  }
0x2ec7   : > { %10823 = vrcp.f32 %v7609_v22  ;;  %v10576_v22 = vld [vmem:[#allocation28 + $0x88] ss:$16 sps:$4 sm:$0xff]  }
0x2ec9   : > { %v10814_v21 = vpop.eup %10813 }
0x2eca   : > { %v10816_v9 = vpop.eup %10815  ;;  %v7610_v15 = vadd.f32 1.0, %v10814_v21  ;;  %v10581_v21 = vld [vmem:[#allocation28 + $0xa4] ss:$16 sps:$4 sm:$0xff]  }
0x2ecb   : > { %v7611_v17 = vadd.f32 1.0, %v10816_v9  ;;  %v10584_v9 = vld [vmem:[#allocation28 + $0xac] ss:$16 sps:$4 sm:$0xff]  }
0x2ecc   : > { %10825 = vrcp.f32 %v7610_v15  ;;  %v10579_v15 = vld [vmem:[#allocation28 + $0xa0] ss:$16 sps:$4 sm:$0xff]  }
0x2ecd   : > { %10827 = vrcp.f32 %v7611_v17  ;;  %v10582_v17 = vld [vmem:[#allocation28 + $0xa8] ss:$16 sps:$4 sm:$0xff]  }
0x2ece   : > { %v10818_v42 = vpop.eup %10817 }
0x2ecf   : > { %v10820_v13 = vpop.eup %10819  ;;  %v7624_v53 = vmul.f32 %v10818_v42, %v7520_v41  ;;  %v10557_v41 = vld [vmem:[#allocation28 + $0x24] ss:$16 sps:$4 sm:$0xff]  }
0x2ed0   : > { %v10822_v51 = vpop.eup %10821  ;;  %v7625_v49 = vmul.f32 %v10820_v13, %v7522_v38  ;;  %8047 = vmatprep.subr.bf16.mxu0 %v10557_v41  ;;  %v10558_v38 = vld [vmem:[#allocation28 + $0x28] ss:$16 sps:$4 sm:$0xff]   ;;  %v10587_v42 = vld [vmem:[#allocation28 + $0xc4] ss:$16 sps:$4 sm:$0xff]   ;;  %v10590_v13 = vld [vmem:[#allocation28 + $0xcc] ss:$16 sps:$4 sm:$0xff]  }
0x2ed1   : > { %v10824_v56 = vpop.eup %10823  ;;  %v7630_v43 = vmul.f32 %v7624_v53, %v7571_v30  ;;  %v7626_v3 = vmul.f32 %v10822_v51, %v7524_v7  ;;  %v10560_v30 = vld [vmem:[#allocation28 + $0x2c] ss:$16 sps:$4 sm:$0xff]   ;;  %8048 = vmatpush1.bf16.msra.mxu0 %v10555_v60  ;;  %v10585_v53 = vld [vmem:[#allocation28 + $0xc0] ss:$16 sps:$4 sm:$0xff]   ;;  %v10588_v51 = vld [vmem:[#allocation28 + $0xc8] ss:$16 sps:$4 sm:$0xff]  }
0x2ed2   : > { %v7631_v62 = vmul.f32 %v7625_v49, %v7573_v18  ;;  %v7627_v33 = vmul.f32 %v10824_v56, %v7526_v8  ;;  %v10593_v49 = vld [vmem:[#allocation28 + $0xe4] ss:$16 sps:$4 sm:$0xff]   ;;  %v10596_v56 = vld [vmem:[#allocation28 + $0xec] ss:$16 sps:$4 sm:$0xff]  }
0x2ed3   : > { %v7632_v14 = vmul.f32 %v7626_v3, %v7575_v34  ;;  %v10594_v3 = vld [vmem:[#allocation28 + $0xe8] ss:$16 sps:$4 sm:$0xff]  }
0x2ed4   : > { %v7633_v35 = vmul.f32 %v7627_v33, %v7577_v48 }
0x2ed5   : > { %v7669_v45 = vpack.c.bf16 %v7632_v14, %v7630_v43  ;;  %v10591_v43 = vld [vmem:[#allocation28 + $0xe0] ss:$16 sps:$4 sm:$0xff]  }
0x2ed6   : > { %v10826_v52 = vpop.eup %10825  ;;  %v7670_v37 = vpack.c.bf16 %v7633_v35, %v7631_v62 }
0x2ed7   : > { %v10828_v36 = vpop.eup %10827  ;;  %v7628_v11 = vmul.f32 %v10826_v52, %v7530_v25 }
0x2ed8   : > { %v7629_v26 = vmul.f32 %v10828_v36, %v7532_v46  ;;  %7801 = vmatprep.mubr.bf16.mxu1 %v7670_v37 }
0x2ed9   : > { %v7634_v28 = vmul.f32 %v7628_v11, %v7581_v57  ;;  %7802 = vmatmul.mubr.bf16.vlgmr.msra.gmra.mrb[108].mxu1 %v7669_v45 }
0x2eda   : > { %v7635_v4 = vmul.f32 %v7629_v26, %v7583_v61  ;;  %8097 = vmatpush1.bf16.msra.mxu1 %v10552_v59 }
0x2edb   : > { %v7671_v47 = vpack.c.bf16 %v7634_v28, %v7634_v28  ;;  %8098 = vmatprep.subr.bf16.mxu1 %v10560_v30 }
0x2edc   : > { %v7672_v10 = vpack.c.bf16 %v7635_v4, %v7635_v4 }
0x2ede   : > { %7809 = vmatprep.mubr.bf16.mxu1 %v7672_v10  ;;  %8099 = vmatpush1.bf16.msra.mxu1 %v10558_v38  ;;  %v8959_v10 = vld [vmem:[#allocation26] ss:$0 sm:$0xff] }
0x2edf   : > { %8100 = vmatprep.subr.bf16.mxu1 %v10566_v58 }
0x2ee1   : > { %7810 = vmatmul.mubr.bf16.gmra.mrb[112].mxu1 %v7671_v47 }
0x2ee2   : > { %8128 = vmatprep.mubr.bf16.mxu1 %v11473_v32  ;;  %8101 = vmatpush1.bf16.msra.mxu1 %v10564_v24 }
0x2ee3   : > { %8102 = vmatprep.subr.bf16.mxu1 %v10572_v1 }
0x2ee6   : > { %8103 = vmatpush1.bf16.msra.mxu1 %v10570_v27 }
0x2ee7   : > { %8104 = vmatprep.subr.bf16.mxu1 %v10578_v55 }
0x2eea   : > { %8105 = vmatpush1.bf16.msra.mxu1 %v10576_v22 }
0x2eeb   : > { %8106 = vmatprep.subr.bf16.mxu1 %v10584_v9 }
0x2eee   : > { %8107 = vmatpush1.bf16.msra.mxu1 %v10582_v17 }
0x2eef   : > { %8108 = vmatprep.subr.bf16.mxu1 %v10590_v13 }
0x2ef2   : > { %8109 = vmatpush1.bf16.msra.mxu1 %v10588_v51 }
0x2ef3   : > { %8110 = vmatprep.subr.bf16.mxu1 %v10596_v56 }
0x2ef6   : > { %8111 = vmatpush1.bf16.msra.mxu1 %v10594_v3 }
0x2fac   : > { %v9264_v18 = vpop.f32.mrb[108].mxu1 }
0x2fad   : > { %v9265_v20 = vpop.f32.mrb[109].mxu1 }
0x2fae   : > { %v9266_v7 = vadd.f32 %v9265_v20, %v9264_v18  ;;  %v9267_v34 = vpop.f32.mrb[110].mxu1 }
0x2faf   : > { %v9268_v31 = vpop.f32.mrb[111].mxu1 }
0x2fb0   : > { %v13523_v8 = vadd.f32 %v9266_v7, %v13465_v44  ;;  %v9269_v48 = vadd.f32 %v9268_v31, %v9267_v34 }
0x2fb2   : > { %v13526_v40 = vadd.f32 %v9269_v48, %v13471_v16  ;;  %v7821_v25 = vmul.f32 %v13523_v8, %v13523_v8  ;;  %v10563_v16 = vld [vmem:[#allocation28 + $0x44] ss:$16 sps:$4 sm:$0xff]  }
0x2fb3   : > { %8049 = vmatprep.subr.bf16.mxu0 %v10563_v16 }
0x2fb4   : > { %v9270_v57 = vpop.f32.mrb[112].mxu1  ;;  %7824 = vadd.xlane.f32.xlu0 %v7821_v25  ;;  %v7822_v5 = vmul.f32 %v13526_v40, %v13526_v40  ;;  %8050 = vmatpush1.bf16.msra.mxu0 %v10561_v6 }
0x2fb5   : > { %v9271_v23 = vpop.f32.mrb[113].mxu1  ;;  %8051 = vmatprep.subr.bf16.mxu0 %v10569_v19 }
0x2fb6   : > { %v9272_v46 = vadd.f32 %v9271_v23, %v9270_v57  ;;  %v9273_v61 = vpop.f32.mrb[114].mxu1 }
0x2fb7   : > { %v9274_v54 = vpop.f32.mrb[115].mxu1 }
0x2fb8   : > { %v13533_v50 = vadd.f32 %v9272_v46, %v13468_v0  ;;  %7826 = vadd.xlane.f32.xlu0 %v7822_v5  ;;  %8052 = vmatpush1.bf16.msra.mxu0 %v10567_v12  ;;  %v10575_v0 = vld [vmem:[#allocation28 + $0x84] ss:$16 sps:$4 sm:$0xff]  }
0x2fb9   : > { %8053 = vmatprep.subr.bf16.mxu0 %v10575_v0 }
0x2fba   : > { %v7823_v44 = vmul.f32 %v13533_v50, %v13533_v50 }
0x2fbc   : > { %7828 = vadd.xlane.f32.xlu1 %v7823_v44  ;;  %8054 = vmatpush1.bf16.msra.mxu0 %v10573_v63 }
0x2fbd   : > { %8055 = vmatprep.subr.bf16.mxu0 %v10581_v21 }
0x2fc0   : > { %8056 = vmatpush1.bf16.msra.mxu0 %v10579_v15 }
0x2fc1   : > { %8057 = vmatprep.subr.bf16.mxu0 %v10587_v42 }
0x2fc4   : > { %8058 = vmatpush1.bf16.msra.mxu0 %v10585_v53 }
0x2fc5   : > { %8059 = vmatprep.subr.bf16.mxu0 %v10593_v49 }
0x2fc8   : > { %8060 = vmatpush1.bf16.msra.mxu0 %v10591_v43 }
0x3041   : > { %v7825_v62 = vpop.xlane.xlu0 %7824 }
0x3042   : > { %v7830_v33 = vmul.f32 0.0078125, %v7825_v62 }
0x3044   : > { %v7833_v14 = vadd.f32 1e-06, %v7830_v33 }
0x3045   : > { %v7827_v35 = vpop.xlane.xlu0 %7826 }
0x3046   : > { %10829 = vrsqrt.f32 %v7833_v14  ;;  %v7831_v45 = vmul.f32 0.0078125, %v7827_v35 }
0x3048   : > { %v7834_v52 = vadd.f32 1e-06, %v7831_v45 }
0x3049   : > { %v7829_v37 = vpop.xlane.xlu1 %7828 }
0x304a   : > { %10831 = vrsqrt.f32 %v7834_v52  ;;  %v7832_v36 = vmul.f32 0.0078125, %v7829_v37 }
0x304c   : > { %v7835_v11 = vadd.f32 1e-06, %v7832_v36 }
0x304e   : > { %10833 = vrsqrt.f32 %v7835_v11 }
0x3050   : > { %v10830_v26 = vpop.eup %10829 }
0x3051   : > { %v7839_v28 = vmul.f32 %v10830_v26, %v13523_v8 }
0x3053   : > { %v7848_v2 = vmul.f32 %v8959_v10, %v7839_v28 }
0x3054   : > { %v10832_v4 = vpop.eup %10831 }
0x3055   : > { %v7840_v47 = vmul.f32 %v10832_v4, %v13526_v40 }
0x3057   : > { %v7849_v39 = vmul.f32 %v8959_v10, %v7840_v47 }
0x3058   : > { %v10834_v59 = vpop.eup %10833 }
0x3059   : > { %v7883_v29 = vpack.c.bf16 %v7849_v39, %v7848_v2  ;;  %v7841_v41 = vmul.f32 %v10834_v59, %v13533_v50 }
0x305b   : > { %8078 = vmatmul.mubr.bf16.vlgmr.msra.gmra.mrb[120].mxu0 %v7883_v29  ;;  %8129 = vmatmul.mubr.bf16.vlgmr.msra.gmra.mrb[116].mxu1 %v7883_v29  ;;  %v7850_v30 = vmul.f32 %v8959_v10, %v7841_v41 }
0x305c   : > { %8087 = vmatprep.mubr.bf16.mxu0 %v11473_v32  ;;  %8138 = vmatprep.mubr.bf16.mxu1 %v11473_v32 }
0x305d   : > { %v7884_v60 = vpack.c.bf16 %v7850_v30, %v7850_v30 }
0x3063   : > { %8088 = vmatmul.mubr.bf16.gmra.mrb[124].mxu0 %v7884_v60  ;;  %8139 = vmatmul.mubr.bf16.gmra.mrb[120].mxu1 %v7884_v60 }
0x312e   : > { %v8079_v38 = vpop.f32.mrb[120].mxu0  ;;  %v8130_v18 = vpop.f32.mrb[116].mxu1 }
0x312f   : > { %8147 = vst [vmem:[%s1173_s4] sm:$0xff] %v8079_v38  ;;  %8149 = vst [vmem:[%s1173_s4 + $0x10] sm:$0xff] %v8130_v18  ;;  %v8081_v20 = vpop.f32.mrb[121].mxu0  ;;  %v8132_v7 = vpop.f32.mrb[117].mxu1 }
0x3130   : > { %8148 = vst [vmem:[%s1173_s4 + $0x8] sm:$0xff] %v8081_v20  ;;  %8150 = vst [vmem:[%s1173_s4 + $0x18] sm:$0xff] %v8132_v7  ;;  %v8083_v34 = vpop.f32.mrb[122].mxu0  ;;  %v8134_v32 = vpop.f32.mrb[118].mxu1 }
0x3131   : > { %8151 = vst [vmem:[%s1173_s4 + $0x20] sm:$0xff] %v8083_v34  ;;  %8153 = vst [vmem:[%s1173_s4 + $0x30] sm:$0xff] %v8134_v32  ;;  %v8085_v31 = vpop.f32.mrb[123].mxu0  ;;  %v8136_v8 = vpop.f32.mrb[119].mxu1 }
0x3132   : > { %8152 = vst [vmem:[%s1173_s4 + $0x28] sm:$0xff] %v8085_v31  ;;  %8154 = vst [vmem:[%s1173_s4 + $0x38] sm:$0xff] %v8136_v8 }
0x3136   : > { %v8089_v48 = vpop.f32.mrb[124].mxu0  ;;  %v8140_v40 = vpop.f32.mrb[120].mxu1 }
0x3137   : > { %8155 = vst [vmem:[%s1173_s4 + $0x40] sm:$0xff] %v8089_v48  ;;  %8157 = vst [vmem:[%s1173_s4 + $0x50] sm:$0xff] %v8140_v40  ;;  %v8091_v25 = vpop.f32.mrb[125].mxu0  ;;  %v8142_v57 = vpop.f32.mrb[121].mxu1 }
0x3138   : > { %8156 = vst [vmem:[%s1173_s4 + $0x48] sm:$0xff] %v8091_v25  ;;  %8158 = vst [vmem:[%s1173_s4 + $0x58] sm:$0xff] %v8142_v57  ;;  %v8093_v23 = vpop.f32.mrb[126].mxu0  ;;  %v8144_v46 = vpop.f32.mrb[122].mxu1 }
0x3139   : > { %v8094_v61 = vpop.f32.mrb[127].mxu0  ;;  %v8145_v5 = vpop.f32.mrb[123].mxu1 }
0x313a   : > { %11330 = shalt.err (!%p11327_p11)
}
0x313b   : > { %s11331_s5 = scalar_lea.hbm %s13547_s22, 1536  ;;  %s11335_s4 = scalar_lea.hbm %s11642_s29, 3072 }
0x313c   : > { %p11332_p13 = scmp.ne.s32.totalorder %s13547_s22, %s11331_s5  ;;  %p11336_p2 = scmp.lt.u32.totalorder %s13547_s22, %s11642_s29 }
0x313d   : > { %p11337_p3 = scmp.lt.u32.totalorder %s11335_s4, %s11331_s5  ;;  %p11339_p12 = scmp.lt.u32.totalorder %s11331_s5, %s13547_s22 }
0x313e   : > { %p11333_p1 = pnand %p11332_p13, %p13741_p5 }
0x313f   : > { %p11338_p4 = por %p11337_p3, %p11336_p2 }
0x3140   : > { %p11334_p0 = pneg %p11333_p1 }
0x3141   : > { %p11340_p6 = por %p11339_p12, %p11338_p4 }
0x3143   : > { %p11341_p9 = pnand %p11340_p6, %p11334_p0 }
0x3145   : > { %11344 = shalt.err (!%p11341_p9)
}
0x3146   : > { %s11483_s8 = smov 512  }
0x3147   : > { %9948 = dma.vmem_to_hbm [thread:$0]  (%p13741_p5), %s13549_s15, 1536, %s13547_s22, %s13553_s0, %s11483_s8, %s11483_s8, %s13726_s1  }
0x3148 PF: > { %s13742_s6 = sld [smem:[#allocation63_spill]]  ;;  %s13743_s2 = sld [smem:[#allocation61_spill]] }
0x3149   : > { %s13744_s3 = sld [smem:[#allocation66_spill]] }
0x314e   : > { %p10040_p10 = scmp.ge.s32.totalorder %s13742_s6, 2  ;;  %s8188_s9 = sand.u32 1, %s13743_s2  }
0x314f   : > { %p13745_p7 = scmp.ne.s32.totalorder %s13744_s3, 0  ;;  %s8189_s5 = scalar_lea.sflag [#allocation4], %s8188_s9 }
0x3151   : > { %p10003_p8 = pnand %p10040_p10, %p13745_p7 }
0x3153   : > { %11398 = dma.done.wait (!%p10003_p8), %s8189_s5, 1536  }
0x3154   : > { %11400 = vsyncadd (!%p10003_p8), %s8189_s5, 4294965760  ;;  %s13746_s22 = sld [smem:[#allocation64_spill]]  ;;  %s13747_s4 = sld [smem:[#allocation62_spill]] }
0x3155   : > { %s13748_s7 = sld [smem:[#allocation65_spill]]  ;;  %s13749_s15 = smov %s11407_s16 }
0x315a   : > { %p80_p11 = scmp.ge.s32.totalorder %s13746_s22, 4   ;;  %s13750_s16 = smov %s13747_s4 }
0x315b   : > { %13751 = sst [smem:[#allocation61_spill]] %s13748_s7 }
0x315c   :  { %82 = sbr.rel (!%p80_p11) target bundleno = 70 (0x46), region = 293 }
0x3163   :  { %8194 = vsyncpa [#allocation3], 1 }
0x3164   :  { %8196 = vsyncpa [#allocation3 + $0x1], 1 }
0x3165   :  { %8197 = vsyncpa [#allocation6], 1 }
0x3166   :  { %8198 = vsyncpa [#allocation9], 1 }
0x3167   :  { %8199 = vsyncpa [#allocation12], 1 }
0x3168   :  { %8200 = vsyncpa [#allocation15], 1 }
0x3169   :  { %8201 = vsyncpa [#allocation18], 1 }
0x316a   :  { %8202 = vsyncpa [#allocation21], 1 }
0x316b   :  { %8203 = vsyncpa [#allocation24], 1 }
0x316c   :  { %8204 = vsyncpa [#allocation27], 1 }
0x316d   :  { %8205 = vsyncpa [#allocation4], 1 }
0x316e   :  { %8207 = vsyncpa [#allocation4 + $0x1], 1 }

</bundles_post_ra>
